<compile_context>
chip_gen: v5e
topology: v5e:2x2
jax: 0.10.0
libtpu: 0.0.40
codegen_flags: <defaults>
</compile_context>

<pallas_src>
import jax
import jax.numpy as jnp
from jax import lax
from jax.experimental import pallas as pl
from jax.experimental.pallas import tpu as pltpu


# ---------------------------------------------------------------------------
# small static helpers
# ---------------------------------------------------------------------------
def _round_up(x, m):
    return (x + m - 1) // m * m


def _band(w):
    # Zero rows added above/below the flattened image so every 3x3 tap is a
    # contiguous row window.  Multiple of 8 keeps scratch stores sublane
    # aligned; must be >= w + 1.
    return _round_up(w + 1, 8)


# ---------------------------------------------------------------------------
# in-kernel building blocks
# ---------------------------------------------------------------------------
def _conv3x3_bn_relu(src_ref, w_ref, shift_ref, *, h, w, band):
    """3x3 stride-1 conv + folded-BN shift + ReLU from a row-extended ref.

    src_ref  : [band + h*w + band, cin] f32; rows = flattened (i, j); the top
               and bottom `band` rows are zeros.
    w_ref    : [9, cin, cout] bf16, tap t = kh*3 + kw, BN scale pre-folded.
    shift_ref: [1, cout] f32 folded BN shift.
    returns  : [h*w, cout] f32 (post-ReLU).
    """
    hw = h * w
    cout = w_ref.shape[2]
    # column index of each flattened row (w is a power of two)
    jcol = lax.broadcasted_iota(jnp.int32, (hw, 1), 0) & (w - 1)
    acc = jnp.zeros((hw, cout), jnp.float32)
    for kh in range(3):
        for kw in range(3):
            dh, dw = kh - 1, kw - 1
            off = band + dh * w + dw                 # static offset
            xt = src_ref[pl.ds(off, hw), :]          # [hw, cin] f32
            if dw == -1:                             # j == 0 has no left nbr
                xt = jnp.where(jcol >= 1, xt, 0.0)
            elif dw == 1:                            # j == w-1 has no right nbr
                xt = jnp.where(jcol <= w - 2, xt, 0.0)
            acc = acc + jnp.dot(xt.astype(jnp.bfloat16),
                                w_ref[kh * 3 + kw],
                                preferred_element_type=jnp.float32)
    # folded BatchNorm shift + ReLU (f32 epilogue)
    return jnp.maximum(acc + shift_ref[...], 0.0)


def _store_extended(buf_ref, y, band):
    """Write y into the interior of a zero-banded VMEM scratch buffer."""
    buf_ref[...] = jnp.zeros(buf_ref.shape, buf_ref.dtype)
    buf_ref[pl.ds(band, y.shape[0]), :] = y


# ---------------------------------------------------------------------------
# full forward pass (single fused pallas_call)
# ---------------------------------------------------------------------------
def plain_cnn_forward(x_nchw, params):
    n, cin, h, w = x_nchw.shape
    assert h == w and h % 4 == 0 and (w & (w - 1)) == 0, (
        "this fused kernel expects square power-of-two inputs")

    c0 = params["adapter"][0].shape[0]     # initial_channels (16)
    c1 = params["s1c1"][0].shape[0]        # stage1 channels  (16)
    c2 = params["s2c1"][0].shape[0]        # stage2 channels  (32)
    num_classes = params["fc_w"].shape[0]

    h1, w1 = h, w                          # adapter + stage1-conv1 (full res)
    h2, w2 = h // 2, w // 2                # stage1-conv2 + stage2-conv1
    h3, w3 = h // 4, w // 4                # stage2-conv2
    b1, b2, b3 = _band(w1), _band(w2), _band(w3)
    e1 = h1 * w1 + 2 * b1
    e2 = h2 * w2 + 2 * b2
    e3 = h3 * w3 + 2 * b3

    # ---- parameter prep (cheap, XLA side): fold BN scale into weights ------
    def fold(wc, scale, shift):
        co, ci = wc.shape[0], wc.shape[1]
        wt = jnp.transpose(wc, (2, 3, 1, 0)) * scale[None, None, None, :]
        return (wt.reshape(9, ci, co).astype(jnp.bfloat16),
                shift.reshape(1, co).astype(jnp.float32))

    w1p, s1p = fold(*params["adapter"])
    w2p, s2p = fold(*params["s1c1"])
    w3p, s3p = fold(*params["s1c2"])
    w4p, s4p = fold(*params["s2c1"])
    w5p, s5p = fold(*params["s2c2"])
    wfc = params["fc_w"].T.astype(jnp.float32)                   # [c2, classes]
    bfc = params["fc_b"].reshape(1, num_classes).astype(jnp.float32)

    def subsample_matrix(hh, ww):
        # 0/1 matrix selecting the (::2, ::2) rows of a flattened hh x ww map.
        ho, wo = hh // 2, ww // 2
        u = jnp.arange(ho * wo)
        src = (u // wo) * (2 * ww) + (u % wo) * 2
        return (src[:, None] == jnp.arange(hh * ww)[None, :]).astype(jnp.bfloat16)

    sel1 = subsample_matrix(h1, w1)        # [h2*w2, h1*w1]
    sel2 = subsample_matrix(h2, w2)        # [h3*w3, h2*w2]

    # input: NCHW -> NHWC -> per-image flattened rows with zero bands
    x = jnp.transpose(x_nchw, (0, 2, 3, 1)).astype(jnp.float32)
    x = x.reshape(n, h * w, cin)
    x_ext = jnp.pad(x, ((0, 0), (b1, b1), (0, 0)))               # [n, e1, cin]

    # ---- the fused kernel ---------------------------------------------------
    def kernel(x_ref, w1_ref, s1_ref, w2_ref, s2_ref, w3_ref, s3_ref,
               w4_ref, s4_ref, w5_ref, s5_ref, sel1_ref, sel2_ref,
               wfc_ref, bfc_ref, out_ref, buf1, buf2, buf3, buf4):
        # input_adapter: conv3x3 s1 (cin -> c0) at h1 x w1
        y = _conv3x3_bn_relu(x_ref, w1_ref, s1_ref, h=h1, w=w1, band=b1)
        # stage1 conv1: stride 2 (c0 -> c1) = full-res conv + 2x2 subsample
        _store_extended(buf1, y, b1)
        y = _conv3x3_bn_relu(buf1, w2_ref, s2_ref, h=h1, w=w1, band=b1)
        y = jnp.dot(sel1_ref[...], y.astype(jnp.bfloat16),
                    preferred_element_type=jnp.float32)           # [h2*w2, c1]
        # stage1 conv2: stride 1 (c1 -> c1) at h2 x w2
        _store_extended(buf2, y, b2)
        y = _conv3x3_bn_relu(buf2, w3_ref, s3_ref, h=h2, w=w2, band=b2)
        # stage2 conv1: stride 2 (c1 -> c2) = full-res conv + 2x2 subsample
        _store_extended(buf3, y, b2)
        y = _conv3x3_bn_relu(buf3, w4_ref, s4_ref, h=h2, w=w2, band=b2)
        y = jnp.dot(sel2_ref[...], y.astype(jnp.bfloat16),
                    preferred_element_type=jnp.float32)           # [h3*w3, c2]
        # stage2 conv2: stride 1 (c2 -> c2) at h3 x w3
        _store_extended(buf4, y, b3)
        y = _conv3x3_bn_relu(buf4, w5_ref, s5_ref, h=h3, w=w3, band=b3)
        # classifier head: global average pool + Linear (f32)
        pooled = jnp.mean(y, axis=0, keepdims=True)               # [1, c2]
        out_ref[...] = (jnp.dot(pooled, wfc_ref[...],
                                preferred_element_type=jnp.float32)
                        + bfc_ref[...])

    def full(shape):
        return pl.BlockSpec(shape, lambda i: (0,) * len(shape))

    grid_spec = pltpu.PrefetchScalarGridSpec(
        num_scalar_prefetch=0,
        grid=(n,),
        in_specs=[
            pl.BlockSpec((None, e1, cin), lambda i: (i, 0, 0)),   # per-image input
            full((9, cin, c0)), full((1, c0)),                    # adapter
            full((9, c0, c1)), full((1, c1)),                     # stage1 conv1
            full((9, c1, c1)), full((1, c1)),                     # stage1 conv2
            full((9, c1, c2)), full((1, c2)),                     # stage2 conv1
            full((9, c2, c2)), full((1, c2)),                     # stage2 conv2
            full((h2 * w2, h1 * w1)),                             # subsample 1
            full((h3 * w3, h2 * w2)),                             # subsample 2
            full((c2, num_classes)), full((1, num_classes)),      # fc
        ],
        out_specs=pl.BlockSpec((None, 1, num_classes), lambda i: (i, 0, 0)),
        scratch_shapes=[
            pltpu.VMEM((e1, c0), jnp.float32),    # adapter output (banded)
            pltpu.VMEM((e2, c1), jnp.float32),    # stage1 conv1 output (banded)
            pltpu.VMEM((e2, c1), jnp.float32),    # stage1 conv2 output (banded)
            pltpu.VMEM((e3, c2), jnp.float32),    # stage2 conv1 output (banded)
        ],
    )

    if hasattr(pltpu, "CompilerParams"):
        compiler_params = pltpu.CompilerParams(dimension_semantics=("parallel",))
    elif hasattr(pltpu, "TPUCompilerParams"):
        compiler_params = pltpu.TPUCompilerParams(dimension_semantics=("parallel",))
    else:
        compiler_params = None

    args = (x_ext, w1p, s1p, w2p, s2p, w3p, s3p, w4p, s4p, w5p, s5p,
            sel1, sel2, wfc, bfc)

    flops_per_image = 2 * (
        h1 * w1 * 9 * (cin * c0 + c0 * c1)
        + (h2 * w2) * (h1 * w1) * c1
        + h2 * w2 * 9 * (c1 * c1 + c1 * c2)
        + (h3 * w3) * (h2 * w2) * c2
        + h3 * w3 * 9 * c2 * c2
        + c2 * num_classes)
    bytes_accessed = (sum(int(a.size) * a.dtype.itemsize for a in args)
                      + n * num_classes * 4)
    cost = (pl.CostEstimate(flops=n * flops_per_image, transcendentals=0,
                            bytes_accessed=bytes_accessed)
            if hasattr(pl, "CostEstimate") else None)

    out = pl.pallas_call(
        kernel,
        out_shape=jax.ShapeDtypeStruct((n, 1, num_classes), jnp.float32),
        grid_spec=grid_spec,
        compiler_params=compiler_params,
        cost_estimate=cost,
    )(*args)
    return out.reshape(n, num_classes)


# ---------------------------------------------------------------------------
# deterministic synthetic parameters (mirrors the nn.Module shapes)
# ---------------------------------------------------------------------------
def fold_bn(gamma, beta, mean, var, eps=1e-5):
    scale = gamma / jnp.sqrt(var + eps)
    shift = beta - mean * scale
    return scale, shift


def make_conv_bn_params(key, cin, cout):
    k_w, k_g, k_b, k_m, k_v = jax.random.split(key, 5)
    w = 0.1 * jax.random.normal(k_w, (cout, cin, 3, 3), dtype=jnp.float32)
    gamma = 1.0 + 0.1 * jax.random.normal(k_g, (cout,), dtype=jnp.float32)
    beta = 0.1 * jax.random.normal(k_b, (cout,), dtype=jnp.float32)
    mean = 0.1 * jax.random.normal(k_m, (cout,), dtype=jnp.float32)
    var = 0.5 + jnp.abs(jax.random.normal(k_v, (cout,), dtype=jnp.float32))
    scale, shift = fold_bn(gamma, beta, mean, var)
    return (w, scale, shift)


def make_params(key, num_classes=10, channels=(16, 32), initial_channels=16,
                input_rgb=True):
    in_ch = 3 if input_rgb else 1
    keys = jax.random.split(key, 7)
    return {
        "adapter": make_conv_bn_params(keys[0], in_ch, initial_channels),
        "s1c1": make_conv_bn_params(keys[1], initial_channels, channels[0]),
        "s1c2": make_conv_bn_params(keys[2], channels[0], channels[0]),
        "s2c1": make_conv_bn_params(keys[3], channels[0], channels[1]),
        "s2c2": make_conv_bn_params(keys[4], channels[1], channels[1]),
        "fc_w": 0.1 * jax.random.normal(keys[5], (num_classes, channels[1]),
                                        dtype=jnp.float32),
        "fc_b": 0.1 * jax.random.normal(keys[6], (num_classes,),
                                        dtype=jnp.float32),
    }


# ---------------------------------------------------------------------------
# pure-JAX reference (same eval-mode BN folding), for a sanity check
# ---------------------------------------------------------------------------
def reference_forward(x_nchw, params):
    x = jnp.transpose(x_nchw, (0, 2, 3, 1)).astype(jnp.float32)

    def block(x, p, stride):
        w, scale, shift = p
        y = lax.conv_general_dilated(
            x, w, window_strides=(stride, stride), padding=((1, 1), (1, 1)),
            dimension_numbers=("NHWC", "OIHW", "NHWC"))
        return jax.nn.relu(y * scale + shift)

    x = block(x, params["adapter"], 1)
    x = block(x, params["s1c1"], 2)
    x = block(x, params["s1c2"], 1)
    x = block(x, params["s2c1"], 2)
    x = block(x, params["s2c2"], 1)
    pooled = x.mean(axis=(1, 2))
    return pooled @ params["fc_w"].T + params["fc_b"]


if __name__ == "__main__":
    key = jax.random.PRNGKey(0)
    k_x, k_p = jax.random.split(key)
    # small NCHW input consistent with the module (RGB input)
    x = jax.random.normal(k_x, (2, 3, 16, 16), dtype=jnp.float32)
    params = make_params(k_p)

    logits = jax.jit(plain_cnn_forward)(x, params)
    jax.block_until_ready(logits)
    assert logits.shape == (2, 10), logits.shape
    assert logits.dtype == jnp.float32
    assert bool(jnp.all(jnp.isfinite(logits)))

    # loose tolerance: kernel uses bf16 MXU operands with f32 accumulation
    ref = reference_forward(x, params)
    assert bool(jnp.allclose(logits, ref, atol=5e-2, rtol=5e-2)), (
        float(jnp.max(jnp.abs(logits - ref))))
    print("KERNEL_OK")
</pallas_src>

<mosaic_0001>
module attributes {stable_mosaic.version = 11 : i64} {
  func.func @kernel(%arg0: i32, %arg1: memref<1x304x3xf32, #tpu.memory_space<vmem>>, %arg2: memref<9x3x16xbf16, #tpu.memory_space<vmem>>, %arg3: memref<1x16xf32, #tpu.memory_space<vmem>>, %arg4: memref<9x16x16xbf16, #tpu.memory_space<vmem>>, %arg5: memref<1x16xf32, #tpu.memory_space<vmem>>, %arg6: memref<9x16x16xbf16, #tpu.memory_space<vmem>>, %arg7: memref<1x16xf32, #tpu.memory_space<vmem>>, %arg8: memref<9x16x32xbf16, #tpu.memory_space<vmem>>, %arg9: memref<1x32xf32, #tpu.memory_space<vmem>>, %arg10: memref<9x32x32xbf16, #tpu.memory_space<vmem>>, %arg11: memref<1x32xf32, #tpu.memory_space<vmem>>, %arg12: memref<64x256xbf16, #tpu.memory_space<vmem>>, %arg13: memref<16x64xbf16, #tpu.memory_space<vmem>>, %arg14: memref<32x10xf32, #tpu.memory_space<vmem>>, %arg15: memref<1x10xf32, #tpu.memory_space<vmem>>, %arg16: memref<1x1x10xf32, #tpu.memory_space<vmem>>, %arg17: memref<304x16xf32, #tpu.memory_space<vmem>>, %arg18: memref<96x16xf32, #tpu.memory_space<vmem>>, %arg19: memref<96x16xf32, #tpu.memory_space<vmem>>, %arg20: memref<32x32xf32, #tpu.memory_space<vmem>>) attributes {dimension_semantics = [#tpu.dimension_semantics<parallel>], iteration_bounds = array<i64: 2>, scalar_prefetch = 0 : i64, scratch_operands = 4 : i64, tpu.core_type = #tpu.core_type<tc>, window_params = [{transform_indices = @transform_0, window_bounds = array<i64: 1, 304, 3>}, {pipeline_mode = #tpu.pipeline_mode<synchronous>, transform_indices = @transform_1, window_bounds = array<i64: 9, 3, 16>}, {pipeline_mode = #tpu.pipeline_mode<synchronous>, transform_indices = @transform_2, window_bounds = array<i64: 1, 16>}, {pipeline_mode = #tpu.pipeline_mode<synchronous>, transform_indices = @transform_3, window_bounds = array<i64: 9, 16, 16>}, {pipeline_mode = #tpu.pipeline_mode<synchronous>, transform_indices = @transform_4, window_bounds = array<i64: 1, 16>}, {pipeline_mode = #tpu.pipeline_mode<synchronous>, transform_indices = @transform_5, window_bounds = array<i64: 9, 16, 16>}, {pipeline_mode = #tpu.pipeline_mode<synchronous>, transform_indices = @transform_6, window_bounds = array<i64: 1, 16>}, {pipeline_mode = #tpu.pipeline_mode<synchronous>, transform_indices = @transform_7, window_bounds = array<i64: 9, 16, 32>}, {pipeline_mode = #tpu.pipeline_mode<synchronous>, transform_indices = @transform_8, window_bounds = array<i64: 1, 32>}, {pipeline_mode = #tpu.pipeline_mode<synchronous>, transform_indices = @transform_9, window_bounds = array<i64: 9, 32, 32>}, {pipeline_mode = #tpu.pipeline_mode<synchronous>, transform_indices = @transform_10, window_bounds = array<i64: 1, 32>}, {pipeline_mode = #tpu.pipeline_mode<synchronous>, transform_indices = @transform_11, window_bounds = array<i64: 64, 256>}, {pipeline_mode = #tpu.pipeline_mode<synchronous>, transform_indices = @transform_12, window_bounds = array<i64: 16, 64>}, {pipeline_mode = #tpu.pipeline_mode<synchronous>, transform_indices = @transform_13, window_bounds = array<i64: 32, 10>}, {pipeline_mode = #tpu.pipeline_mode<synchronous>, transform_indices = @transform_14, window_bounds = array<i64: 1, 10>}, {transform_indices = @transform_15, window_bounds = array<i64: 1, 1, 10>}]} {
    %0 = tpu.iota {dimensions = array<i32: 0>} : vector<256x1xi32>
    %c15_i32 = arith.constant 15 : i32
    %1 = vector.broadcast %c15_i32 : i32 to vector<256x1xi32>
    %2 = arith.andi %0, %1 : vector<256x1xi32>
    %cst = arith.constant 0.000000e+00 : f32
    %3 = vector.broadcast %cst : f32 to vector<256x16xf32>
    %c0 = arith.constant 0 : index
    %c7 = arith.constant 7 : index
    %c0_0 = arith.constant 0 : index
    %4 = vector.load %arg1[%c0, %c7, %c0_0] : memref<1x304x3xf32, #tpu.memory_space<vmem>>, vector<1x256x3xf32>
    %5 = vector.shape_cast %4 : vector<1x256x3xf32> to vector<256x3xf32>
    %c1_i32 = arith.constant 1 : i32
    %6 = vector.broadcast %c1_i32 : i32 to vector<256x1xi32>
    %7 = arith.cmpi sge, %2, %6 : vector<256x1xi32>
    %cst_1 = arith.constant 0.000000e+00 : f32
    %8 = vector.shape_cast %7 : vector<256x1xi1> to vector<256x1xi1>
    %9 = vector.broadcast %8 : vector<256x1xi1> to vector<256x3xi1>
    %10 = vector.broadcast %cst_1 : f32 to vector<256x3xf32>
    %11 = arith.select %9, %5, %10 : vector<256x3xi1>, vector<256x3xf32>
    %12 = arith.truncf %11 : vector<256x3xf32> to vector<256x3xbf16>
    %c0_2 = arith.constant 0 : index
    %c0_3 = arith.constant 0 : index
    %c0_4 = arith.constant 0 : index
    %13 = vector.load %arg2[%c0_2, %c0_3, %c0_4] : memref<9x3x16xbf16, #tpu.memory_space<vmem>>, vector<1x3x16xbf16>
    %14 = vector.shape_cast %13 : vector<1x3x16xbf16> to vector<3x16xbf16>
    %cst_5 = arith.constant dense<0.000000e+00> : vector<256x16xf32>
    %15 = tpu.matmul %12, %14, %cst_5 {dimension_numbers = #tpu.dot_dimension_numbers<[1], [0], [0], [1], [0, 0, 1, 1], [], []>} : vector<256x3xbf16>, vector<3x16xbf16>, vector<256x16xf32> -> vector<256x16xf32>
    %16 = arith.addf %3, %15 : vector<256x16xf32>
    %c0_6 = arith.constant 0 : index
    %c8 = arith.constant 8 : index
    %c0_7 = arith.constant 0 : index
    %17 = vector.load %arg1[%c0_6, %c8, %c0_7] : memref<1x304x3xf32, #tpu.memory_space<vmem>>, vector<1x256x3xf32>
    %18 = vector.shape_cast %17 : vector<1x256x3xf32> to vector<256x3xf32>
    %19 = arith.truncf %18 : vector<256x3xf32> to vector<256x3xbf16>
    %c1 = arith.constant 1 : index
    %c0_8 = arith.constant 0 : index
    %c0_9 = arith.constant 0 : index
    %20 = vector.load %arg2[%c1, %c0_8, %c0_9] : memref<9x3x16xbf16, #tpu.memory_space<vmem>>, vector<1x3x16xbf16>
    %21 = vector.shape_cast %20 : vector<1x3x16xbf16> to vector<3x16xbf16>
    %cst_10 = arith.constant dense<0.000000e+00> : vector<256x16xf32>
    %22 = tpu.matmul %19, %21, %cst_10 {dimension_numbers = #tpu.dot_dimension_numbers<[1], [0], [0], [1], [0, 0, 1, 1], [], []>} : vector<256x3xbf16>, vector<3x16xbf16>, vector<256x16xf32> -> vector<256x16xf32>
    %23 = arith.addf %16, %22 : vector<256x16xf32>
    %c0_11 = arith.constant 0 : index
    %c9 = arith.constant 9 : index
    %c0_12 = arith.constant 0 : index
    %24 = vector.load %arg1[%c0_11, %c9, %c0_12] : memref<1x304x3xf32, #tpu.memory_space<vmem>>, vector<1x256x3xf32>
    %25 = vector.shape_cast %24 : vector<1x256x3xf32> to vector<256x3xf32>
    %c14_i32 = arith.constant 14 : i32
    %26 = vector.broadcast %c14_i32 : i32 to vector<256x1xi32>
    %27 = arith.cmpi sle, %2, %26 : vector<256x1xi32>
    %cst_13 = arith.constant 0.000000e+00 : f32
    %28 = vector.shape_cast %27 : vector<256x1xi1> to vector<256x1xi1>
    %29 = vector.broadcast %28 : vector<256x1xi1> to vector<256x3xi1>
    %30 = vector.broadcast %cst_13 : f32 to vector<256x3xf32>
    %31 = arith.select %29, %25, %30 : vector<256x3xi1>, vector<256x3xf32>
    %32 = arith.truncf %31 : vector<256x3xf32> to vector<256x3xbf16>
    %c2 = arith.constant 2 : index
    %c0_14 = arith.constant 0 : index
    %c0_15 = arith.constant 0 : index
    %33 = vector.load %arg2[%c2, %c0_14, %c0_15] : memref<9x3x16xbf16, #tpu.memory_space<vmem>>, vector<1x3x16xbf16>
    %34 = vector.shape_cast %33 : vector<1x3x16xbf16> to vector<3x16xbf16>
    %cst_16 = arith.constant dense<0.000000e+00> : vector<256x16xf32>
    %35 = tpu.matmul %32, %34, %cst_16 {dimension_numbers = #tpu.dot_dimension_numbers<[1], [0], [0], [1], [0, 0, 1, 1], [], []>} : vector<256x3xbf16>, vector<3x16xbf16>, vector<256x16xf32> -> vector<256x16xf32>
    %36 = arith.addf %23, %35 : vector<256x16xf32>
    %c0_17 = arith.constant 0 : index
    %c23 = arith.constant 23 : index
    %c0_18 = arith.constant 0 : index
    %37 = vector.load %arg1[%c0_17, %c23, %c0_18] : memref<1x304x3xf32, #tpu.memory_space<vmem>>, vector<1x256x3xf32>
    %38 = vector.shape_cast %37 : vector<1x256x3xf32> to vector<256x3xf32>
    %c1_i32_19 = arith.constant 1 : i32
    %39 = vector.broadcast %c1_i32_19 : i32 to vector<256x1xi32>
    %40 = arith.cmpi sge, %2, %39 : vector<256x1xi32>
    %cst_20 = arith.constant 0.000000e+00 : f32
    %41 = vector.shape_cast %40 : vector<256x1xi1> to vector<256x1xi1>
    %42 = vector.broadcast %41 : vector<256x1xi1> to vector<256x3xi1>
    %43 = vector.broadcast %cst_20 : f32 to vector<256x3xf32>
    %44 = arith.select %42, %38, %43 : vector<256x3xi1>, vector<256x3xf32>
    %45 = arith.truncf %44 : vector<256x3xf32> to vector<256x3xbf16>
    %c3 = arith.constant 3 : index
    %c0_21 = arith.constant 0 : index
    %c0_22 = arith.constant 0 : index
    %46 = vector.load %arg2[%c3, %c0_21, %c0_22] : memref<9x3x16xbf16, #tpu.memory_space<vmem>>, vector<1x3x16xbf16>
    %47 = vector.shape_cast %46 : vector<1x3x16xbf16> to vector<3x16xbf16>
    %cst_23 = arith.constant dense<0.000000e+00> : vector<256x16xf32>
    %48 = tpu.matmul %45, %47, %cst_23 {dimension_numbers = #tpu.dot_dimension_numbers<[1], [0], [0], [1], [0, 0, 1, 1], [], []>} : vector<256x3xbf16>, vector<3x16xbf16>, vector<256x16xf32> -> vector<256x16xf32>
    %49 = arith.addf %36, %48 : vector<256x16xf32>
    %c0_24 = arith.constant 0 : index
    %c24 = arith.constant 24 : index
    %c0_25 = arith.constant 0 : index
    %50 = vector.load %arg1[%c0_24, %c24, %c0_25] : memref<1x304x3xf32, #tpu.memory_space<vmem>>, vector<1x256x3xf32>
    %51 = vector.shape_cast %50 : vector<1x256x3xf32> to vector<256x3xf32>
    %52 = arith.truncf %51 : vector<256x3xf32> to vector<256x3xbf16>
    %c4 = arith.constant 4 : index
    %c0_26 = arith.constant 0 : index
    %c0_27 = arith.constant 0 : index
    %53 = vector.load %arg2[%c4, %c0_26, %c0_27] : memref<9x3x16xbf16, #tpu.memory_space<vmem>>, vector<1x3x16xbf16>
    %54 = vector.shape_cast %53 : vector<1x3x16xbf16> to vector<3x16xbf16>
    %cst_28 = arith.constant dense<0.000000e+00> : vector<256x16xf32>
    %55 = tpu.matmul %52, %54, %cst_28 {dimension_numbers = #tpu.dot_dimension_numbers<[1], [0], [0], [1], [0, 0, 1, 1], [], []>} : vector<256x3xbf16>, vector<3x16xbf16>, vector<256x16xf32> -> vector<256x16xf32>
    %56 = arith.addf %49, %55 : vector<256x16xf32>
    %c0_29 = arith.constant 0 : index
    %c25 = arith.constant 25 : index
    %c0_30 = arith.constant 0 : index
    %57 = vector.load %arg1[%c0_29, %c25, %c0_30] : memref<1x304x3xf32, #tpu.memory_space<vmem>>, vector<1x256x3xf32>
    %58 = vector.shape_cast %57 : vector<1x256x3xf32> to vector<256x3xf32>
    %c14_i32_31 = arith.constant 14 : i32
    %59 = vector.broadcast %c14_i32_31 : i32 to vector<256x1xi32>
    %60 = arith.cmpi sle, %2, %59 : vector<256x1xi32>
    %cst_32 = arith.constant 0.000000e+00 : f32
    %61 = vector.shape_cast %60 : vector<256x1xi1> to vector<256x1xi1>
    %62 = vector.broadcast %61 : vector<256x1xi1> to vector<256x3xi1>
    %63 = vector.broadcast %cst_32 : f32 to vector<256x3xf32>
    %64 = arith.select %62, %58, %63 : vector<256x3xi1>, vector<256x3xf32>
    %65 = arith.truncf %64 : vector<256x3xf32> to vector<256x3xbf16>
    %c5 = arith.constant 5 : index
    %c0_33 = arith.constant 0 : index
    %c0_34 = arith.constant 0 : index
    %66 = vector.load %arg2[%c5, %c0_33, %c0_34] : memref<9x3x16xbf16, #tpu.memory_space<vmem>>, vector<1x3x16xbf16>
    %67 = vector.shape_cast %66 : vector<1x3x16xbf16> to vector<3x16xbf16>
    %cst_35 = arith.constant dense<0.000000e+00> : vector<256x16xf32>
    %68 = tpu.matmul %65, %67, %cst_35 {dimension_numbers = #tpu.dot_dimension_numbers<[1], [0], [0], [1], [0, 0, 1, 1], [], []>} : vector<256x3xbf16>, vector<3x16xbf16>, vector<256x16xf32> -> vector<256x16xf32>
    %69 = arith.addf %56, %68 : vector<256x16xf32>
    %c0_36 = arith.constant 0 : index
    %c39 = arith.constant 39 : index
    %c0_37 = arith.constant 0 : index
    %70 = vector.load %arg1[%c0_36, %c39, %c0_37] : memref<1x304x3xf32, #tpu.memory_space<vmem>>, vector<1x256x3xf32>
    %71 = vector.shape_cast %70 : vector<1x256x3xf32> to vector<256x3xf32>
    %c1_i32_38 = arith.constant 1 : i32
    %72 = vector.broadcast %c1_i32_38 : i32 to vector<256x1xi32>
    %73 = arith.cmpi sge, %2, %72 : vector<256x1xi32>
    %cst_39 = arith.constant 0.000000e+00 : f32
    %74 = vector.shape_cast %73 : vector<256x1xi1> to vector<256x1xi1>
    %75 = vector.broadcast %74 : vector<256x1xi1> to vector<256x3xi1>
    %76 = vector.broadcast %cst_39 : f32 to vector<256x3xf32>
    %77 = arith.select %75, %71, %76 : vector<256x3xi1>, vector<256x3xf32>
    %78 = arith.truncf %77 : vector<256x3xf32> to vector<256x3xbf16>
    %c6 = arith.constant 6 : index
    %c0_40 = arith.constant 0 : index
    %c0_41 = arith.constant 0 : index
    %79 = vector.load %arg2[%c6, %c0_40, %c0_41] : memref<9x3x16xbf16, #tpu.memory_space<vmem>>, vector<1x3x16xbf16>
    %80 = vector.shape_cast %79 : vector<1x3x16xbf16> to vector<3x16xbf16>
    %cst_42 = arith.constant dense<0.000000e+00> : vector<256x16xf32>
    %81 = tpu.matmul %78, %80, %cst_42 {dimension_numbers = #tpu.dot_dimension_numbers<[1], [0], [0], [1], [0, 0, 1, 1], [], []>} : vector<256x3xbf16>, vector<3x16xbf16>, vector<256x16xf32> -> vector<256x16xf32>
    %82 = arith.addf %69, %81 : vector<256x16xf32>
    %c0_43 = arith.constant 0 : index
    %c40 = arith.constant 40 : index
    %c0_44 = arith.constant 0 : index
    %83 = vector.load %arg1[%c0_43, %c40, %c0_44] : memref<1x304x3xf32, #tpu.memory_space<vmem>>, vector<1x256x3xf32>
    %84 = vector.shape_cast %83 : vector<1x256x3xf32> to vector<256x3xf32>
    %85 = arith.truncf %84 : vector<256x3xf32> to vector<256x3xbf16>
    %c7_45 = arith.constant 7 : index
    %c0_46 = arith.constant 0 : index
    %c0_47 = arith.constant 0 : index
    %86 = vector.load %arg2[%c7_45, %c0_46, %c0_47] : memref<9x3x16xbf16, #tpu.memory_space<vmem>>, vector<1x3x16xbf16>
    %87 = vector.shape_cast %86 : vector<1x3x16xbf16> to vector<3x16xbf16>
    %cst_48 = arith.constant dense<0.000000e+00> : vector<256x16xf32>
    %88 = tpu.matmul %85, %87, %cst_48 {dimension_numbers = #tpu.dot_dimension_numbers<[1], [0], [0], [1], [0, 0, 1, 1], [], []>} : vector<256x3xbf16>, vector<3x16xbf16>, vector<256x16xf32> -> vector<256x16xf32>
    %89 = arith.addf %82, %88 : vector<256x16xf32>
    %c0_49 = arith.constant 0 : index
    %c41 = arith.constant 41 : index
    %c0_50 = arith.constant 0 : index
    %90 = vector.load %arg1[%c0_49, %c41, %c0_50] : memref<1x304x3xf32, #tpu.memory_space<vmem>>, vector<1x256x3xf32>
    %91 = vector.shape_cast %90 : vector<1x256x3xf32> to vector<256x3xf32>
    %c14_i32_51 = arith.constant 14 : i32
    %92 = vector.broadcast %c14_i32_51 : i32 to vector<256x1xi32>
    %93 = arith.cmpi sle, %2, %92 : vector<256x1xi32>
    %cst_52 = arith.constant 0.000000e+00 : f32
    %94 = vector.shape_cast %93 : vector<256x1xi1> to vector<256x1xi1>
    %95 = vector.broadcast %94 : vector<256x1xi1> to vector<256x3xi1>
    %96 = vector.broadcast %cst_52 : f32 to vector<256x3xf32>
    %97 = arith.select %95, %91, %96 : vector<256x3xi1>, vector<256x3xf32>
    %98 = arith.truncf %97 : vector<256x3xf32> to vector<256x3xbf16>
    %c8_53 = arith.constant 8 : index
    %c0_54 = arith.constant 0 : index
    %c0_55 = arith.constant 0 : index
    %99 = vector.load %arg2[%c8_53, %c0_54, %c0_55] : memref<9x3x16xbf16, #tpu.memory_space<vmem>>, vector<1x3x16xbf16>
    %100 = vector.shape_cast %99 : vector<1x3x16xbf16> to vector<3x16xbf16>
    %cst_56 = arith.constant dense<0.000000e+00> : vector<256x16xf32>
    %101 = tpu.matmul %98, %100, %cst_56 {dimension_numbers = #tpu.dot_dimension_numbers<[1], [0], [0], [1], [0, 0, 1, 1], [], []>} : vector<256x3xbf16>, vector<3x16xbf16>, vector<256x16xf32> -> vector<256x16xf32>
    %102 = arith.addf %89, %101 : vector<256x16xf32>
    %c0_57 = arith.constant 0 : index
    %c0_58 = arith.constant 0 : index
    %103 = vector.load %arg3[%c0_57, %c0_58] : memref<1x16xf32, #tpu.memory_space<vmem>>, vector<1x16xf32>
    %104 = vector.broadcast %103 : vector<1x16xf32> to vector<256x16xf32>
    %105 = arith.addf %102, %104 : vector<256x16xf32>
    %cst_59 = arith.constant 0.000000e+00 : f32
    %106 = vector.broadcast %cst_59 : f32 to vector<256x16xf32>
    %107 = arith.maximumf %105, %106 : vector<256x16xf32>
    %cst_60 = arith.constant 0.000000e+00 : f32
    %108 = vector.broadcast %cst_60 : f32 to vector<304x16xf32>
    %c0_61 = arith.constant 0 : index
    %c0_62 = arith.constant 0 : index
    %109 = vector.load %arg17[%c0_61, %c0_62] : memref<304x16xf32, #tpu.memory_space<vmem>>, vector<304x16xf32>
    tpu.vector_store %arg17[%c0_61, %c0_62], %108 {strides = array<i32>} : memref<304x16xf32, #tpu.memory_space<vmem>>, vector<304x16xf32>,
    %c24_63 = arith.constant 24 : index
    %c0_64 = arith.constant 0 : index
    %110 = vector.load %arg17[%c24_63, %c0_64] : memref<304x16xf32, #tpu.memory_space<vmem>>, vector<256x16xf32>
    tpu.vector_store %arg17[%c24_63, %c0_64], %107 {strides = array<i32>} : memref<304x16xf32, #tpu.memory_space<vmem>>, vector<256x16xf32>,
    %111 = tpu.iota {dimensions = array<i32: 0>} : vector<256x1xi32>
    %c15_i32_65 = arith.constant 15 : i32
    %112 = vector.broadcast %c15_i32_65 : i32 to vector<256x1xi32>
    %113 = arith.andi %111, %112 : vector<256x1xi32>
    %cst_66 = arith.constant 0.000000e+00 : f32
    %114 = vector.broadcast %cst_66 : f32 to vector<256x16xf32>
    %c7_67 = arith.constant 7 : index
    %c0_68 = arith.constant 0 : index
    %115 = vector.load %arg17[%c7_67, %c0_68] : memref<304x16xf32, #tpu.memory_space<vmem>>, vector<256x16xf32>
    %c1_i32_69 = arith.constant 1 : i32
    %116 = vector.broadcast %c1_i32_69 : i32 to vector<256x1xi32>
    %117 = arith.cmpi sge, %113, %116 : vector<256x1xi32>
    %cst_70 = arith.constant 0.000000e+00 : f32
    %118 = vector.shape_cast %117 : vector<256x1xi1> to vector<256x1xi1>
    %119 = vector.broadcast %118 : vector<256x1xi1> to vector<256x16xi1>
    %120 = vector.broadcast %cst_70 : f32 to vector<256x16xf32>
    %121 = arith.select %119, %115, %120 : vector<256x16xi1>, vector<256x16xf32>
    %122 = arith.truncf %121 : vector<256x16xf32> to vector<256x16xbf16>
    %c0_71 = arith.constant 0 : index
    %c0_72 = arith.constant 0 : index
    %c0_73 = arith.constant 0 : index
    %123 = vector.load %arg4[%c0_71, %c0_72, %c0_73] : memref<9x16x16xbf16, #tpu.memory_space<vmem>>, vector<1x16x16xbf16>
    %124 = vector.shape_cast %123 : vector<1x16x16xbf16> to vector<16x16xbf16>
    %cst_74 = arith.constant dense<0.000000e+00> : vector<256x16xf32>
    %125 = tpu.matmul %122, %124, %cst_74 {dimension_numbers = #tpu.dot_dimension_numbers<[1], [0], [0], [1], [0, 0, 1, 1], [], []>} : vector<256x16xbf16>, vector<16x16xbf16>, vector<256x16xf32> -> vector<256x16xf32>
    %126 = arith.addf %114, %125 : vector<256x16xf32>
    %c8_75 = arith.constant 8 : index
    %c0_76 = arith.constant 0 : index
    %127 = vector.load %arg17[%c8_75, %c0_76] : memref<304x16xf32, #tpu.memory_space<vmem>>, vector<256x16xf32>
    %128 = arith.truncf %127 : vector<256x16xf32> to vector<256x16xbf16>
    %c1_77 = arith.constant 1 : index
    %c0_78 = arith.constant 0 : index
    %c0_79 = arith.constant 0 : index
    %129 = vector.load %arg4[%c1_77, %c0_78, %c0_79] : memref<9x16x16xbf16, #tpu.memory_space<vmem>>, vector<1x16x16xbf16>
    %130 = vector.shape_cast %129 : vector<1x16x16xbf16> to vector<16x16xbf16>
    %cst_80 = arith.constant dense<0.000000e+00> : vector<256x16xf32>
    %131 = tpu.matmul %128, %130, %cst_80 {dimension_numbers = #tpu.dot_dimension_numbers<[1], [0], [0], [1], [0, 0, 1, 1], [], []>} : vector<256x16xbf16>, vector<16x16xbf16>, vector<256x16xf32> -> vector<256x16xf32>
    %132 = arith.addf %126, %131 : vector<256x16xf32>
    %c9_81 = arith.constant 9 : index
    %c0_82 = arith.constant 0 : index
    %133 = vector.load %arg17[%c9_81, %c0_82] : memref<304x16xf32, #tpu.memory_space<vmem>>, vector<256x16xf32>
    %c14_i32_83 = arith.constant 14 : i32
    %134 = vector.broadcast %c14_i32_83 : i32 to vector<256x1xi32>
    %135 = arith.cmpi sle, %113, %134 : vector<256x1xi32>
    %cst_84 = arith.constant 0.000000e+00 : f32
    %136 = vector.shape_cast %135 : vector<256x1xi1> to vector<256x1xi1>
    %137 = vector.broadcast %136 : vector<256x1xi1> to vector<256x16xi1>
    %138 = vector.broadcast %cst_84 : f32 to vector<256x16xf32>
    %139 = arith.select %137, %133, %138 : vector<256x16xi1>, vector<256x16xf32>
    %140 = arith.truncf %139 : vector<256x16xf32> to vector<256x16xbf16>
    %c2_85 = arith.constant 2 : index
    %c0_86 = arith.constant 0 : index
    %c0_87 = arith.constant 0 : index
    %141 = vector.load %arg4[%c2_85, %c0_86, %c0_87] : memref<9x16x16xbf16, #tpu.memory_space<vmem>>, vector<1x16x16xbf16>
    %142 = vector.shape_cast %141 : vector<1x16x16xbf16> to vector<16x16xbf16>
    %cst_88 = arith.constant dense<0.000000e+00> : vector<256x16xf32>
    %143 = tpu.matmul %140, %142, %cst_88 {dimension_numbers = #tpu.dot_dimension_numbers<[1], [0], [0], [1], [0, 0, 1, 1], [], []>} : vector<256x16xbf16>, vector<16x16xbf16>, vector<256x16xf32> -> vector<256x16xf32>
    %144 = arith.addf %132, %143 : vector<256x16xf32>
    %c23_89 = arith.constant 23 : index
    %c0_90 = arith.constant 0 : index
    %145 = vector.load %arg17[%c23_89, %c0_90] : memref<304x16xf32, #tpu.memory_space<vmem>>, vector<256x16xf32>
    %c1_i32_91 = arith.constant 1 : i32
    %146 = vector.broadcast %c1_i32_91 : i32 to vector<256x1xi32>
    %147 = arith.cmpi sge, %113, %146 : vector<256x1xi32>
    %cst_92 = arith.constant 0.000000e+00 : f32
    %148 = vector.shape_cast %147 : vector<256x1xi1> to vector<256x1xi1>
    %149 = vector.broadcast %148 : vector<256x1xi1> to vector<256x16xi1>
    %150 = vector.broadcast %cst_92 : f32 to vector<256x16xf32>
    %151 = arith.select %149, %145, %150 : vector<256x16xi1>, vector<256x16xf32>
    %152 = arith.truncf %151 : vector<256x16xf32> to vector<256x16xbf16>
    %c3_93 = arith.constant 3 : index
    %c0_94 = arith.constant 0 : index
    %c0_95 = arith.constant 0 : index
    %153 = vector.load %arg4[%c3_93, %c0_94, %c0_95] : memref<9x16x16xbf16, #tpu.memory_space<vmem>>, vector<1x16x16xbf16>
    %154 = vector.shape_cast %153 : vector<1x16x16xbf16> to vector<16x16xbf16>
    %cst_96 = arith.constant dense<0.000000e+00> : vector<256x16xf32>
    %155 = tpu.matmul %152, %154, %cst_96 {dimension_numbers = #tpu.dot_dimension_numbers<[1], [0], [0], [1], [0, 0, 1, 1], [], []>} : vector<256x16xbf16>, vector<16x16xbf16>, vector<256x16xf32> -> vector<256x16xf32>
    %156 = arith.addf %144, %155 : vector<256x16xf32>
    %c24_97 = arith.constant 24 : index
    %c0_98 = arith.constant 0 : index
    %157 = vector.load %arg17[%c24_97, %c0_98] : memref<304x16xf32, #tpu.memory_space<vmem>>, vector<256x16xf32>
    %158 = arith.truncf %157 : vector<256x16xf32> to vector<256x16xbf16>
    %c4_99 = arith.constant 4 : index
    %c0_100 = arith.constant 0 : index
    %c0_101 = arith.constant 0 : index
    %159 = vector.load %arg4[%c4_99, %c0_100, %c0_101] : memref<9x16x16xbf16, #tpu.memory_space<vmem>>, vector<1x16x16xbf16>
    %160 = vector.shape_cast %159 : vector<1x16x16xbf16> to vector<16x16xbf16>
    %cst_102 = arith.constant dense<0.000000e+00> : vector<256x16xf32>
    %161 = tpu.matmul %158, %160, %cst_102 {dimension_numbers = #tpu.dot_dimension_numbers<[1], [0], [0], [1], [0, 0, 1, 1], [], []>} : vector<256x16xbf16>, vector<16x16xbf16>, vector<256x16xf32> -> vector<256x16xf32>
    %162 = arith.addf %156, %161 : vector<256x16xf32>
    %c25_103 = arith.constant 25 : index
    %c0_104 = arith.constant 0 : index
    %163 = vector.load %arg17[%c25_103, %c0_104] : memref<304x16xf32, #tpu.memory_space<vmem>>, vector<256x16xf32>
    %c14_i32_105 = arith.constant 14 : i32
    %164 = vector.broadcast %c14_i32_105 : i32 to vector<256x1xi32>
    %165 = arith.cmpi sle, %113, %164 : vector<256x1xi32>
    %cst_106 = arith.constant 0.000000e+00 : f32
    %166 = vector.shape_cast %165 : vector<256x1xi1> to vector<256x1xi1>
    %167 = vector.broadcast %166 : vector<256x1xi1> to vector<256x16xi1>
    %168 = vector.broadcast %cst_106 : f32 to vector<256x16xf32>
    %169 = arith.select %167, %163, %168 : vector<256x16xi1>, vector<256x16xf32>
    %170 = arith.truncf %169 : vector<256x16xf32> to vector<256x16xbf16>
    %c5_107 = arith.constant 5 : index
    %c0_108 = arith.constant 0 : index
    %c0_109 = arith.constant 0 : index
    %171 = vector.load %arg4[%c5_107, %c0_108, %c0_109] : memref<9x16x16xbf16, #tpu.memory_space<vmem>>, vector<1x16x16xbf16>
    %172 = vector.shape_cast %171 : vector<1x16x16xbf16> to vector<16x16xbf16>
    %cst_110 = arith.constant dense<0.000000e+00> : vector<256x16xf32>
    %173 = tpu.matmul %170, %172, %cst_110 {dimension_numbers = #tpu.dot_dimension_numbers<[1], [0], [0], [1], [0, 0, 1, 1], [], []>} : vector<256x16xbf16>, vector<16x16xbf16>, vector<256x16xf32> -> vector<256x16xf32>
    %174 = arith.addf %162, %173 : vector<256x16xf32>
    %c39_111 = arith.constant 39 : index
    %c0_112 = arith.constant 0 : index
    %175 = vector.load %arg17[%c39_111, %c0_112] : memref<304x16xf32, #tpu.memory_space<vmem>>, vector<256x16xf32>
    %c1_i32_113 = arith.constant 1 : i32
    %176 = vector.broadcast %c1_i32_113 : i32 to vector<256x1xi32>
    %177 = arith.cmpi sge, %113, %176 : vector<256x1xi32>
    %cst_114 = arith.constant 0.000000e+00 : f32
    %178 = vector.shape_cast %177 : vector<256x1xi1> to vector<256x1xi1>
    %179 = vector.broadcast %178 : vector<256x1xi1> to vector<256x16xi1>
    %180 = vector.broadcast %cst_114 : f32 to vector<256x16xf32>
    %181 = arith.select %179, %175, %180 : vector<256x16xi1>, vector<256x16xf32>
    %182 = arith.truncf %181 : vector<256x16xf32> to vector<256x16xbf16>
    %c6_115 = arith.constant 6 : index
    %c0_116 = arith.constant 0 : index
    %c0_117 = arith.constant 0 : index
    %183 = vector.load %arg4[%c6_115, %c0_116, %c0_117] : memref<9x16x16xbf16, #tpu.memory_space<vmem>>, vector<1x16x16xbf16>
    %184 = vector.shape_cast %183 : vector<1x16x16xbf16> to vector<16x16xbf16>
    %cst_118 = arith.constant dense<0.000000e+00> : vector<256x16xf32>
    %185 = tpu.matmul %182, %184, %cst_118 {dimension_numbers = #tpu.dot_dimension_numbers<[1], [0], [0], [1], [0, 0, 1, 1], [], []>} : vector<256x16xbf16>, vector<16x16xbf16>, vector<256x16xf32> -> vector<256x16xf32>
    %186 = arith.addf %174, %185 : vector<256x16xf32>
    %c40_119 = arith.constant 40 : index
    %c0_120 = arith.constant 0 : index
    %187 = vector.load %arg17[%c40_119, %c0_120] : memref<304x16xf32, #tpu.memory_space<vmem>>, vector<256x16xf32>
    %188 = arith.truncf %187 : vector<256x16xf32> to vector<256x16xbf16>
    %c7_121 = arith.constant 7 : index
    %c0_122 = arith.constant 0 : index
    %c0_123 = arith.constant 0 : index
    %189 = vector.load %arg4[%c7_121, %c0_122, %c0_123] : memref<9x16x16xbf16, #tpu.memory_space<vmem>>, vector<1x16x16xbf16>
    %190 = vector.shape_cast %189 : vector<1x16x16xbf16> to vector<16x16xbf16>
    %cst_124 = arith.constant dense<0.000000e+00> : vector<256x16xf32>
    %191 = tpu.matmul %188, %190, %cst_124 {dimension_numbers = #tpu.dot_dimension_numbers<[1], [0], [0], [1], [0, 0, 1, 1], [], []>} : vector<256x16xbf16>, vector<16x16xbf16>, vector<256x16xf32> -> vector<256x16xf32>
    %192 = arith.addf %186, %191 : vector<256x16xf32>
    %c41_125 = arith.constant 41 : index
    %c0_126 = arith.constant 0 : index
    %193 = vector.load %arg17[%c41_125, %c0_126] : memref<304x16xf32, #tpu.memory_space<vmem>>, vector<256x16xf32>
    %c14_i32_127 = arith.constant 14 : i32
    %194 = vector.broadcast %c14_i32_127 : i32 to vector<256x1xi32>
    %195 = arith.cmpi sle, %113, %194 : vector<256x1xi32>
    %cst_128 = arith.constant 0.000000e+00 : f32
    %196 = vector.shape_cast %195 : vector<256x1xi1> to vector<256x1xi1>
    %197 = vector.broadcast %196 : vector<256x1xi1> to vector<256x16xi1>
    %198 = vector.broadcast %cst_128 : f32 to vector<256x16xf32>
    %199 = arith.select %197, %193, %198 : vector<256x16xi1>, vector<256x16xf32>
    %200 = arith.truncf %199 : vector<256x16xf32> to vector<256x16xbf16>
    %c8_129 = arith.constant 8 : index
    %c0_130 = arith.constant 0 : index
    %c0_131 = arith.constant 0 : index
    %201 = vector.load %arg4[%c8_129, %c0_130, %c0_131] : memref<9x16x16xbf16, #tpu.memory_space<vmem>>, vector<1x16x16xbf16>
    %202 = vector.shape_cast %201 : vector<1x16x16xbf16> to vector<16x16xbf16>
    %cst_132 = arith.constant dense<0.000000e+00> : vector<256x16xf32>
    %203 = tpu.matmul %200, %202, %cst_132 {dimension_numbers = #tpu.dot_dimension_numbers<[1], [0], [0], [1], [0, 0, 1, 1], [], []>} : vector<256x16xbf16>, vector<16x16xbf16>, vector<256x16xf32> -> vector<256x16xf32>
    %204 = arith.addf %192, %203 : vector<256x16xf32>
    %c0_133 = arith.constant 0 : index
    %c0_134 = arith.constant 0 : index
    %205 = vector.load %arg5[%c0_133, %c0_134] : memref<1x16xf32, #tpu.memory_space<vmem>>, vector<1x16xf32>
    %206 = vector.broadcast %205 : vector<1x16xf32> to vector<256x16xf32>
    %207 = arith.addf %204, %206 : vector<256x16xf32>
    %cst_135 = arith.constant 0.000000e+00 : f32
    %208 = vector.broadcast %cst_135 : f32 to vector<256x16xf32>
    %209 = arith.maximumf %207, %208 : vector<256x16xf32>
    %c0_136 = arith.constant 0 : index
    %c0_137 = arith.constant 0 : index
    %210 = vector.load %arg12[%c0_136, %c0_137] : memref<64x256xbf16, #tpu.memory_space<vmem>>, vector<64x256xbf16>
    %211 = arith.truncf %209 : vector<256x16xf32> to vector<256x16xbf16>
    %cst_138 = arith.constant dense<0.000000e+00> : vector<64x16xf32>
    %212 = tpu.matmul %210, %211, %cst_138 {dimension_numbers = #tpu.dot_dimension_numbers<[1], [0], [0], [1], [0, 0, 1, 1], [], []>} : vector<64x256xbf16>, vector<256x16xbf16>, vector<64x16xf32> -> vector<64x16xf32>
    %cst_139 = arith.constant 0.000000e+00 : f32
    %213 = vector.broadcast %cst_139 : f32 to vector<96x16xf32>
    %c0_140 = arith.constant 0 : index
    %c0_141 = arith.constant 0 : index
    %214 = vector.load %arg18[%c0_140, %c0_141] : memref<96x16xf32, #tpu.memory_space<vmem>>, vector<96x16xf32>
    tpu.vector_store %arg18[%c0_140, %c0_141], %213 {strides = array<i32>} : memref<96x16xf32, #tpu.memory_space<vmem>>, vector<96x16xf32>,
    %c16 = arith.constant 16 : index
    %c0_142 = arith.constant 0 : index
    %215 = vector.load %arg18[%c16, %c0_142] : memref<96x16xf32, #tpu.memory_space<vmem>>, vector<64x16xf32>
    tpu.vector_store %arg18[%c16, %c0_142], %212 {strides = array<i32>} : memref<96x16xf32, #tpu.memory_space<vmem>>, vector<64x16xf32>,
    %216 = tpu.iota {dimensions = array<i32: 0>} : vector<64x1xi32>
    %c7_i32 = arith.constant 7 : i32
    %217 = vector.broadcast %c7_i32 : i32 to vector<64x1xi32>
    %218 = arith.andi %216, %217 : vector<64x1xi32>
    %cst_143 = arith.constant 0.000000e+00 : f32
    %219 = vector.broadcast %cst_143 : f32 to vector<64x16xf32>
    %c7_144 = arith.constant 7 : index
    %c0_145 = arith.constant 0 : index
    %220 = vector.load %arg18[%c7_144, %c0_145] : memref<96x16xf32, #tpu.memory_space<vmem>>, vector<64x16xf32>
    %c1_i32_146 = arith.constant 1 : i32
    %221 = vector.broadcast %c1_i32_146 : i32 to vector<64x1xi32>
    %222 = arith.cmpi sge, %218, %221 : vector<64x1xi32>
    %cst_147 = arith.constant 0.000000e+00 : f32
    %223 = vector.shape_cast %222 : vector<64x1xi1> to vector<64x1xi1>
    %224 = vector.broadcast %223 : vector<64x1xi1> to vector<64x16xi1>
    %225 = vector.broadcast %cst_147 : f32 to vector<64x16xf32>
    %226 = arith.select %224, %220, %225 : vector<64x16xi1>, vector<64x16xf32>
    %227 = arith.truncf %226 : vector<64x16xf32> to vector<64x16xbf16>
    %c0_148 = arith.constant 0 : index
    %c0_149 = arith.constant 0 : index
    %c0_150 = arith.constant 0 : index
    %228 = vector.load %arg6[%c0_148, %c0_149, %c0_150] : memref<9x16x16xbf16, #tpu.memory_space<vmem>>, vector<1x16x16xbf16>
    %229 = vector.shape_cast %228 : vector<1x16x16xbf16> to vector<16x16xbf16>
    %cst_151 = arith.constant dense<0.000000e+00> : vector<64x16xf32>
    %230 = tpu.matmul %227, %229, %cst_151 {dimension_numbers = #tpu.dot_dimension_numbers<[1], [0], [0], [1], [0, 0, 1, 1], [], []>} : vector<64x16xbf16>, vector<16x16xbf16>, vector<64x16xf32> -> vector<64x16xf32>
    %231 = arith.addf %219, %230 : vector<64x16xf32>
    %c8_152 = arith.constant 8 : index
    %c0_153 = arith.constant 0 : index
    %232 = vector.load %arg18[%c8_152, %c0_153] : memref<96x16xf32, #tpu.memory_space<vmem>>, vector<64x16xf32>
    %233 = arith.truncf %232 : vector<64x16xf32> to vector<64x16xbf16>
    %c1_154 = arith.constant 1 : index
    %c0_155 = arith.constant 0 : index
    %c0_156 = arith.constant 0 : index
    %234 = vector.load %arg6[%c1_154, %c0_155, %c0_156] : memref<9x16x16xbf16, #tpu.memory_space<vmem>>, vector<1x16x16xbf16>
    %235 = vector.shape_cast %234 : vector<1x16x16xbf16> to vector<16x16xbf16>
    %cst_157 = arith.constant dense<0.000000e+00> : vector<64x16xf32>
    %236 = tpu.matmul %233, %235, %cst_157 {dimension_numbers = #tpu.dot_dimension_numbers<[1], [0], [0], [1], [0, 0, 1, 1], [], []>} : vector<64x16xbf16>, vector<16x16xbf16>, vector<64x16xf32> -> vector<64x16xf32>
    %237 = arith.addf %231, %236 : vector<64x16xf32>
    %c9_158 = arith.constant 9 : index
    %c0_159 = arith.constant 0 : index
    %238 = vector.load %arg18[%c9_158, %c0_159] : memref<96x16xf32, #tpu.memory_space<vmem>>, vector<64x16xf32>
    %c6_i32 = arith.constant 6 : i32
    %239 = vector.broadcast %c6_i32 : i32 to vector<64x1xi32>
    %240 = arith.cmpi sle, %218, %239 : vector<64x1xi32>
    %cst_160 = arith.constant 0.000000e+00 : f32
    %241 = vector.shape_cast %240 : vector<64x1xi1> to vector<64x1xi1>
    %242 = vector.broadcast %241 : vector<64x1xi1> to vector<64x16xi1>
    %243 = vector.broadcast %cst_160 : f32 to vector<64x16xf32>
    %244 = arith.select %242, %238, %243 : vector<64x16xi1>, vector<64x16xf32>
    %245 = arith.truncf %244 : vector<64x16xf32> to vector<64x16xbf16>
    %c2_161 = arith.constant 2 : index
    %c0_162 = arith.constant 0 : index
    %c0_163 = arith.constant 0 : index
    %246 = vector.load %arg6[%c2_161, %c0_162, %c0_163] : memref<9x16x16xbf16, #tpu.memory_space<vmem>>, vector<1x16x16xbf16>
    %247 = vector.shape_cast %246 : vector<1x16x16xbf16> to vector<16x16xbf16>
    %cst_164 = arith.constant dense<0.000000e+00> : vector<64x16xf32>
    %248 = tpu.matmul %245, %247, %cst_164 {dimension_numbers = #tpu.dot_dimension_numbers<[1], [0], [0], [1], [0, 0, 1, 1], [], []>} : vector<64x16xbf16>, vector<16x16xbf16>, vector<64x16xf32> -> vector<64x16xf32>
    %249 = arith.addf %237, %248 : vector<64x16xf32>
    %c15 = arith.constant 15 : index
    %c0_165 = arith.constant 0 : index
    %250 = vector.load %arg18[%c15, %c0_165] : memref<96x16xf32, #tpu.memory_space<vmem>>, vector<64x16xf32>
    %c1_i32_166 = arith.constant 1 : i32
    %251 = vector.broadcast %c1_i32_166 : i32 to vector<64x1xi32>
    %252 = arith.cmpi sge, %218, %251 : vector<64x1xi32>
    %cst_167 = arith.constant 0.000000e+00 : f32
    %253 = vector.shape_cast %252 : vector<64x1xi1> to vector<64x1xi1>
    %254 = vector.broadcast %253 : vector<64x1xi1> to vector<64x16xi1>
    %255 = vector.broadcast %cst_167 : f32 to vector<64x16xf32>
    %256 = arith.select %254, %250, %255 : vector<64x16xi1>, vector<64x16xf32>
    %257 = arith.truncf %256 : vector<64x16xf32> to vector<64x16xbf16>
    %c3_168 = arith.constant 3 : index
    %c0_169 = arith.constant 0 : index
    %c0_170 = arith.constant 0 : index
    %258 = vector.load %arg6[%c3_168, %c0_169, %c0_170] : memref<9x16x16xbf16, #tpu.memory_space<vmem>>, vector<1x16x16xbf16>
    %259 = vector.shape_cast %258 : vector<1x16x16xbf16> to vector<16x16xbf16>
    %cst_171 = arith.constant dense<0.000000e+00> : vector<64x16xf32>
    %260 = tpu.matmul %257, %259, %cst_171 {dimension_numbers = #tpu.dot_dimension_numbers<[1], [0], [0], [1], [0, 0, 1, 1], [], []>} : vector<64x16xbf16>, vector<16x16xbf16>, vector<64x16xf32> -> vector<64x16xf32>
    %261 = arith.addf %249, %260 : vector<64x16xf32>
    %c16_172 = arith.constant 16 : index
    %c0_173 = arith.constant 0 : index
    %262 = vector.load %arg18[%c16_172, %c0_173] : memref<96x16xf32, #tpu.memory_space<vmem>>, vector<64x16xf32>
    %263 = arith.truncf %262 : vector<64x16xf32> to vector<64x16xbf16>
    %c4_174 = arith.constant 4 : index
    %c0_175 = arith.constant 0 : index
    %c0_176 = arith.constant 0 : index
    %264 = vector.load %arg6[%c4_174, %c0_175, %c0_176] : memref<9x16x16xbf16, #tpu.memory_space<vmem>>, vector<1x16x16xbf16>
    %265 = vector.shape_cast %264 : vector<1x16x16xbf16> to vector<16x16xbf16>
    %cst_177 = arith.constant dense<0.000000e+00> : vector<64x16xf32>
    %266 = tpu.matmul %263, %265, %cst_177 {dimension_numbers = #tpu.dot_dimension_numbers<[1], [0], [0], [1], [0, 0, 1, 1], [], []>} : vector<64x16xbf16>, vector<16x16xbf16>, vector<64x16xf32> -> vector<64x16xf32>
    %267 = arith.addf %261, %266 : vector<64x16xf32>
    %c17 = arith.constant 17 : index
    %c0_178 = arith.constant 0 : index
    %268 = vector.load %arg18[%c17, %c0_178] : memref<96x16xf32, #tpu.memory_space<vmem>>, vector<64x16xf32>
    %c6_i32_179 = arith.constant 6 : i32
    %269 = vector.broadcast %c6_i32_179 : i32 to vector<64x1xi32>
    %270 = arith.cmpi sle, %218, %269 : vector<64x1xi32>
    %cst_180 = arith.constant 0.000000e+00 : f32
    %271 = vector.shape_cast %270 : vector<64x1xi1> to vector<64x1xi1>
    %272 = vector.broadcast %271 : vector<64x1xi1> to vector<64x16xi1>
    %273 = vector.broadcast %cst_180 : f32 to vector<64x16xf32>
    %274 = arith.select %272, %268, %273 : vector<64x16xi1>, vector<64x16xf32>
    %275 = arith.truncf %274 : vector<64x16xf32> to vector<64x16xbf16>
    %c5_181 = arith.constant 5 : index
    %c0_182 = arith.constant 0 : index
    %c0_183 = arith.constant 0 : index
    %276 = vector.load %arg6[%c5_181, %c0_182, %c0_183] : memref<9x16x16xbf16, #tpu.memory_space<vmem>>, vector<1x16x16xbf16>
    %277 = vector.shape_cast %276 : vector<1x16x16xbf16> to vector<16x16xbf16>
    %cst_184 = arith.constant dense<0.000000e+00> : vector<64x16xf32>
    %278 = tpu.matmul %275, %277, %cst_184 {dimension_numbers = #tpu.dot_dimension_numbers<[1], [0], [0], [1], [0, 0, 1, 1], [], []>} : vector<64x16xbf16>, vector<16x16xbf16>, vector<64x16xf32> -> vector<64x16xf32>
    %279 = arith.addf %267, %278 : vector<64x16xf32>
    %c23_185 = arith.constant 23 : index
    %c0_186 = arith.constant 0 : index
    %280 = vector.load %arg18[%c23_185, %c0_186] : memref<96x16xf32, #tpu.memory_space<vmem>>, vector<64x16xf32>
    %c1_i32_187 = arith.constant 1 : i32
    %281 = vector.broadcast %c1_i32_187 : i32 to vector<64x1xi32>
    %282 = arith.cmpi sge, %218, %281 : vector<64x1xi32>
    %cst_188 = arith.constant 0.000000e+00 : f32
    %283 = vector.shape_cast %282 : vector<64x1xi1> to vector<64x1xi1>
    %284 = vector.broadcast %283 : vector<64x1xi1> to vector<64x16xi1>
    %285 = vector.broadcast %cst_188 : f32 to vector<64x16xf32>
    %286 = arith.select %284, %280, %285 : vector<64x16xi1>, vector<64x16xf32>
    %287 = arith.truncf %286 : vector<64x16xf32> to vector<64x16xbf16>
    %c6_189 = arith.constant 6 : index
    %c0_190 = arith.constant 0 : index
    %c0_191 = arith.constant 0 : index
    %288 = vector.load %arg6[%c6_189, %c0_190, %c0_191] : memref<9x16x16xbf16, #tpu.memory_space<vmem>>, vector<1x16x16xbf16>
    %289 = vector.shape_cast %288 : vector<1x16x16xbf16> to vector<16x16xbf16>
    %cst_192 = arith.constant dense<0.000000e+00> : vector<64x16xf32>
    %290 = tpu.matmul %287, %289, %cst_192 {dimension_numbers = #tpu.dot_dimension_numbers<[1], [0], [0], [1], [0, 0, 1, 1], [], []>} : vector<64x16xbf16>, vector<16x16xbf16>, vector<64x16xf32> -> vector<64x16xf32>
    %291 = arith.addf %279, %290 : vector<64x16xf32>
    %c24_193 = arith.constant 24 : index
    %c0_194 = arith.constant 0 : index
    %292 = vector.load %arg18[%c24_193, %c0_194] : memref<96x16xf32, #tpu.memory_space<vmem>>, vector<64x16xf32>
    %293 = arith.truncf %292 : vector<64x16xf32> to vector<64x16xbf16>
    %c7_195 = arith.constant 7 : index
    %c0_196 = arith.constant 0 : index
    %c0_197 = arith.constant 0 : index
    %294 = vector.load %arg6[%c7_195, %c0_196, %c0_197] : memref<9x16x16xbf16, #tpu.memory_space<vmem>>, vector<1x16x16xbf16>
    %295 = vector.shape_cast %294 : vector<1x16x16xbf16> to vector<16x16xbf16>
    %cst_198 = arith.constant dense<0.000000e+00> : vector<64x16xf32>
    %296 = tpu.matmul %293, %295, %cst_198 {dimension_numbers = #tpu.dot_dimension_numbers<[1], [0], [0], [1], [0, 0, 1, 1], [], []>} : vector<64x16xbf16>, vector<16x16xbf16>, vector<64x16xf32> -> vector<64x16xf32>
    %297 = arith.addf %291, %296 : vector<64x16xf32>
    %c25_199 = arith.constant 25 : index
    %c0_200 = arith.constant 0 : index
    %298 = vector.load %arg18[%c25_199, %c0_200] : memref<96x16xf32, #tpu.memory_space<vmem>>, vector<64x16xf32>
    %c6_i32_201 = arith.constant 6 : i32
    %299 = vector.broadcast %c6_i32_201 : i32 to vector<64x1xi32>
    %300 = arith.cmpi sle, %218, %299 : vector<64x1xi32>
    %cst_202 = arith.constant 0.000000e+00 : f32
    %301 = vector.shape_cast %300 : vector<64x1xi1> to vector<64x1xi1>
    %302 = vector.broadcast %301 : vector<64x1xi1> to vector<64x16xi1>
    %303 = vector.broadcast %cst_202 : f32 to vector<64x16xf32>
    %304 = arith.select %302, %298, %303 : vector<64x16xi1>, vector<64x16xf32>
    %305 = arith.truncf %304 : vector<64x16xf32> to vector<64x16xbf16>
    %c8_203 = arith.constant 8 : index
    %c0_204 = arith.constant 0 : index
    %c0_205 = arith.constant 0 : index
    %306 = vector.load %arg6[%c8_203, %c0_204, %c0_205] : memref<9x16x16xbf16, #tpu.memory_space<vmem>>, vector<1x16x16xbf16>
    %307 = vector.shape_cast %306 : vector<1x16x16xbf16> to vector<16x16xbf16>
    %cst_206 = arith.constant dense<0.000000e+00> : vector<64x16xf32>
    %308 = tpu.matmul %305, %307, %cst_206 {dimension_numbers = #tpu.dot_dimension_numbers<[1], [0], [0], [1], [0, 0, 1, 1], [], []>} : vector<64x16xbf16>, vector<16x16xbf16>, vector<64x16xf32> -> vector<64x16xf32>
    %309 = arith.addf %297, %308 : vector<64x16xf32>
    %c0_207 = arith.constant 0 : index
    %c0_208 = arith.constant 0 : index
    %310 = vector.load %arg7[%c0_207, %c0_208] : memref<1x16xf32, #tpu.memory_space<vmem>>, vector<1x16xf32>
    %311 = vector.broadcast %310 : vector<1x16xf32> to vector<64x16xf32>
    %312 = arith.addf %309, %311 : vector<64x16xf32>
    %cst_209 = arith.constant 0.000000e+00 : f32
    %313 = vector.broadcast %cst_209 : f32 to vector<64x16xf32>
    %314 = arith.maximumf %312, %313 : vector<64x16xf32>
    %cst_210 = arith.constant 0.000000e+00 : f32
    %315 = vector.broadcast %cst_210 : f32 to vector<96x16xf32>
    %c0_211 = arith.constant 0 : index
    %c0_212 = arith.constant 0 : index
    %316 = vector.load %arg19[%c0_211, %c0_212] : memref<96x16xf32, #tpu.memory_space<vmem>>, vector<96x16xf32>
    tpu.vector_store %arg19[%c0_211, %c0_212], %315 {strides = array<i32>} : memref<96x16xf32, #tpu.memory_space<vmem>>, vector<96x16xf32>,
    %c16_213 = arith.constant 16 : index
    %c0_214 = arith.constant 0 : index
    %317 = vector.load %arg19[%c16_213, %c0_214] : memref<96x16xf32, #tpu.memory_space<vmem>>, vector<64x16xf32>
    tpu.vector_store %arg19[%c16_213, %c0_214], %314 {strides = array<i32>} : memref<96x16xf32, #tpu.memory_space<vmem>>, vector<64x16xf32>,
    %318 = tpu.iota {dimensions = array<i32: 0>} : vector<64x1xi32>
    %c7_i32_215 = arith.constant 7 : i32
    %319 = vector.broadcast %c7_i32_215 : i32 to vector<64x1xi32>
    %320 = arith.andi %318, %319 : vector<64x1xi32>
    %cst_216 = arith.constant 0.000000e+00 : f32
    %321 = vector.broadcast %cst_216 : f32 to vector<64x32xf32>
    %c7_217 = arith.constant 7 : index
    %c0_218 = arith.constant 0 : index
    %322 = vector.load %arg19[%c7_217, %c0_218] : memref<96x16xf32, #tpu.memory_space<vmem>>, vector<64x16xf32>
    %c1_i32_219 = arith.constant 1 : i32
    %323 = vector.broadcast %c1_i32_219 : i32 to vector<64x1xi32>
    %324 = arith.cmpi sge, %320, %323 : vector<64x1xi32>
    %cst_220 = arith.constant 0.000000e+00 : f32
    %325 = vector.shape_cast %324 : vector<64x1xi1> to vector<64x1xi1>
    %326 = vector.broadcast %325 : vector<64x1xi1> to vector<64x16xi1>
    %327 = vector.broadcast %cst_220 : f32 to vector<64x16xf32>
    %328 = arith.select %326, %322, %327 : vector<64x16xi1>, vector<64x16xf32>
    %329 = arith.truncf %328 : vector<64x16xf32> to vector<64x16xbf16>
    %c0_221 = arith.constant 0 : index
    %c0_222 = arith.constant 0 : index
    %c0_223 = arith.constant 0 : index
    %330 = vector.load %arg8[%c0_221, %c0_222, %c0_223] : memref<9x16x32xbf16, #tpu.memory_space<vmem>>, vector<1x16x32xbf16>
    %331 = vector.shape_cast %330 : vector<1x16x32xbf16> to vector<16x32xbf16>
    %cst_224 = arith.constant dense<0.000000e+00> : vector<64x32xf32>
    %332 = tpu.matmul %329, %331, %cst_224 {dimension_numbers = #tpu.dot_dimension_numbers<[1], [0], [0], [1], [0, 0, 1, 1], [], []>} : vector<64x16xbf16>, vector<16x32xbf16>, vector<64x32xf32> -> vector<64x32xf32>
    %333 = arith.addf %321, %332 : vector<64x32xf32>
    %c8_225 = arith.constant 8 : index
    %c0_226 = arith.constant 0 : index
    %334 = vector.load %arg19[%c8_225, %c0_226] : memref<96x16xf32, #tpu.memory_space<vmem>>, vector<64x16xf32>
    %335 = arith.truncf %334 : vector<64x16xf32> to vector<64x16xbf16>
    %c1_227 = arith.constant 1 : index
    %c0_228 = arith.constant 0 : index
    %c0_229 = arith.constant 0 : index
    %336 = vector.load %arg8[%c1_227, %c0_228, %c0_229] : memref<9x16x32xbf16, #tpu.memory_space<vmem>>, vector<1x16x32xbf16>
    %337 = vector.shape_cast %336 : vector<1x16x32xbf16> to vector<16x32xbf16>
    %cst_230 = arith.constant dense<0.000000e+00> : vector<64x32xf32>
    %338 = tpu.matmul %335, %337, %cst_230 {dimension_numbers = #tpu.dot_dimension_numbers<[1], [0], [0], [1], [0, 0, 1, 1], [], []>} : vector<64x16xbf16>, vector<16x32xbf16>, vector<64x32xf32> -> vector<64x32xf32>
    %339 = arith.addf %333, %338 : vector<64x32xf32>
    %c9_231 = arith.constant 9 : index
    %c0_232 = arith.constant 0 : index
    %340 = vector.load %arg19[%c9_231, %c0_232] : memref<96x16xf32, #tpu.memory_space<vmem>>, vector<64x16xf32>
    %c6_i32_233 = arith.constant 6 : i32
    %341 = vector.broadcast %c6_i32_233 : i32 to vector<64x1xi32>
    %342 = arith.cmpi sle, %320, %341 : vector<64x1xi32>
    %cst_234 = arith.constant 0.000000e+00 : f32
    %343 = vector.shape_cast %342 : vector<64x1xi1> to vector<64x1xi1>
    %344 = vector.broadcast %343 : vector<64x1xi1> to vector<64x16xi1>
    %345 = vector.broadcast %cst_234 : f32 to vector<64x16xf32>
    %346 = arith.select %344, %340, %345 : vector<64x16xi1>, vector<64x16xf32>
    %347 = arith.truncf %346 : vector<64x16xf32> to vector<64x16xbf16>
    %c2_235 = arith.constant 2 : index
    %c0_236 = arith.constant 0 : index
    %c0_237 = arith.constant 0 : index
    %348 = vector.load %arg8[%c2_235, %c0_236, %c0_237] : memref<9x16x32xbf16, #tpu.memory_space<vmem>>, vector<1x16x32xbf16>
    %349 = vector.shape_cast %348 : vector<1x16x32xbf16> to vector<16x32xbf16>
    %cst_238 = arith.constant dense<0.000000e+00> : vector<64x32xf32>
    %350 = tpu.matmul %347, %349, %cst_238 {dimension_numbers = #tpu.dot_dimension_numbers<[1], [0], [0], [1], [0, 0, 1, 1], [], []>} : vector<64x16xbf16>, vector<16x32xbf16>, vector<64x32xf32> -> vector<64x32xf32>
    %351 = arith.addf %339, %350 : vector<64x32xf32>
    %c15_239 = arith.constant 15 : index
    %c0_240 = arith.constant 0 : index
    %352 = vector.load %arg19[%c15_239, %c0_240] : memref<96x16xf32, #tpu.memory_space<vmem>>, vector<64x16xf32>
    %c1_i32_241 = arith.constant 1 : i32
    %353 = vector.broadcast %c1_i32_241 : i32 to vector<64x1xi32>
    %354 = arith.cmpi sge, %320, %353 : vector<64x1xi32>
    %cst_242 = arith.constant 0.000000e+00 : f32
    %355 = vector.shape_cast %354 : vector<64x1xi1> to vector<64x1xi1>
    %356 = vector.broadcast %355 : vector<64x1xi1> to vector<64x16xi1>
    %357 = vector.broadcast %cst_242 : f32 to vector<64x16xf32>
    %358 = arith.select %356, %352, %357 : vector<64x16xi1>, vector<64x16xf32>
    %359 = arith.truncf %358 : vector<64x16xf32> to vector<64x16xbf16>
    %c3_243 = arith.constant 3 : index
    %c0_244 = arith.constant 0 : index
    %c0_245 = arith.constant 0 : index
    %360 = vector.load %arg8[%c3_243, %c0_244, %c0_245] : memref<9x16x32xbf16, #tpu.memory_space<vmem>>, vector<1x16x32xbf16>
    %361 = vector.shape_cast %360 : vector<1x16x32xbf16> to vector<16x32xbf16>
    %cst_246 = arith.constant dense<0.000000e+00> : vector<64x32xf32>
    %362 = tpu.matmul %359, %361, %cst_246 {dimension_numbers = #tpu.dot_dimension_numbers<[1], [0], [0], [1], [0, 0, 1, 1], [], []>} : vector<64x16xbf16>, vector<16x32xbf16>, vector<64x32xf32> -> vector<64x32xf32>
    %363 = arith.addf %351, %362 : vector<64x32xf32>
    %c16_247 = arith.constant 16 : index
    %c0_248 = arith.constant 0 : index
    %364 = vector.load %arg19[%c16_247, %c0_248] : memref<96x16xf32, #tpu.memory_space<vmem>>, vector<64x16xf32>
    %365 = arith.truncf %364 : vector<64x16xf32> to vector<64x16xbf16>
    %c4_249 = arith.constant 4 : index
    %c0_250 = arith.constant 0 : index
    %c0_251 = arith.constant 0 : index
    %366 = vector.load %arg8[%c4_249, %c0_250, %c0_251] : memref<9x16x32xbf16, #tpu.memory_space<vmem>>, vector<1x16x32xbf16>
    %367 = vector.shape_cast %366 : vector<1x16x32xbf16> to vector<16x32xbf16>
    %cst_252 = arith.constant dense<0.000000e+00> : vector<64x32xf32>
    %368 = tpu.matmul %365, %367, %cst_252 {dimension_numbers = #tpu.dot_dimension_numbers<[1], [0], [0], [1], [0, 0, 1, 1], [], []>} : vector<64x16xbf16>, vector<16x32xbf16>, vector<64x32xf32> -> vector<64x32xf32>
    %369 = arith.addf %363, %368 : vector<64x32xf32>
    %c17_253 = arith.constant 17 : index
    %c0_254 = arith.constant 0 : index
    %370 = vector.load %arg19[%c17_253, %c0_254] : memref<96x16xf32, #tpu.memory_space<vmem>>, vector<64x16xf32>
    %c6_i32_255 = arith.constant 6 : i32
    %371 = vector.broadcast %c6_i32_255 : i32 to vector<64x1xi32>
    %372 = arith.cmpi sle, %320, %371 : vector<64x1xi32>
    %cst_256 = arith.constant 0.000000e+00 : f32
    %373 = vector.shape_cast %372 : vector<64x1xi1> to vector<64x1xi1>
    %374 = vector.broadcast %373 : vector<64x1xi1> to vector<64x16xi1>
    %375 = vector.broadcast %cst_256 : f32 to vector<64x16xf32>
    %376 = arith.select %374, %370, %375 : vector<64x16xi1>, vector<64x16xf32>
    %377 = arith.truncf %376 : vector<64x16xf32> to vector<64x16xbf16>
    %c5_257 = arith.constant 5 : index
    %c0_258 = arith.constant 0 : index
    %c0_259 = arith.constant 0 : index
    %378 = vector.load %arg8[%c5_257, %c0_258, %c0_259] : memref<9x16x32xbf16, #tpu.memory_space<vmem>>, vector<1x16x32xbf16>
    %379 = vector.shape_cast %378 : vector<1x16x32xbf16> to vector<16x32xbf16>
    %cst_260 = arith.constant dense<0.000000e+00> : vector<64x32xf32>
    %380 = tpu.matmul %377, %379, %cst_260 {dimension_numbers = #tpu.dot_dimension_numbers<[1], [0], [0], [1], [0, 0, 1, 1], [], []>} : vector<64x16xbf16>, vector<16x32xbf16>, vector<64x32xf32> -> vector<64x32xf32>
    %381 = arith.addf %369, %380 : vector<64x32xf32>
    %c23_261 = arith.constant 23 : index
    %c0_262 = arith.constant 0 : index
    %382 = vector.load %arg19[%c23_261, %c0_262] : memref<96x16xf32, #tpu.memory_space<vmem>>, vector<64x16xf32>
    %c1_i32_263 = arith.constant 1 : i32
    %383 = vector.broadcast %c1_i32_263 : i32 to vector<64x1xi32>
    %384 = arith.cmpi sge, %320, %383 : vector<64x1xi32>
    %cst_264 = arith.constant 0.000000e+00 : f32
    %385 = vector.shape_cast %384 : vector<64x1xi1> to vector<64x1xi1>
    %386 = vector.broadcast %385 : vector<64x1xi1> to vector<64x16xi1>
    %387 = vector.broadcast %cst_264 : f32 to vector<64x16xf32>
    %388 = arith.select %386, %382, %387 : vector<64x16xi1>, vector<64x16xf32>
    %389 = arith.truncf %388 : vector<64x16xf32> to vector<64x16xbf16>
    %c6_265 = arith.constant 6 : index
    %c0_266 = arith.constant 0 : index
    %c0_267 = arith.constant 0 : index
    %390 = vector.load %arg8[%c6_265, %c0_266, %c0_267] : memref<9x16x32xbf16, #tpu.memory_space<vmem>>, vector<1x16x32xbf16>
    %391 = vector.shape_cast %390 : vector<1x16x32xbf16> to vector<16x32xbf16>
    %cst_268 = arith.constant dense<0.000000e+00> : vector<64x32xf32>
    %392 = tpu.matmul %389, %391, %cst_268 {dimension_numbers = #tpu.dot_dimension_numbers<[1], [0], [0], [1], [0, 0, 1, 1], [], []>} : vector<64x16xbf16>, vector<16x32xbf16>, vector<64x32xf32> -> vector<64x32xf32>
    %393 = arith.addf %381, %392 : vector<64x32xf32>
    %c24_269 = arith.constant 24 : index
    %c0_270 = arith.constant 0 : index
    %394 = vector.load %arg19[%c24_269, %c0_270] : memref<96x16xf32, #tpu.memory_space<vmem>>, vector<64x16xf32>
    %395 = arith.truncf %394 : vector<64x16xf32> to vector<64x16xbf16>
    %c7_271 = arith.constant 7 : index
    %c0_272 = arith.constant 0 : index
    %c0_273 = arith.constant 0 : index
    %396 = vector.load %arg8[%c7_271, %c0_272, %c0_273] : memref<9x16x32xbf16, #tpu.memory_space<vmem>>, vector<1x16x32xbf16>
    %397 = vector.shape_cast %396 : vector<1x16x32xbf16> to vector<16x32xbf16>
    %cst_274 = arith.constant dense<0.000000e+00> : vector<64x32xf32>
    %398 = tpu.matmul %395, %397, %cst_274 {dimension_numbers = #tpu.dot_dimension_numbers<[1], [0], [0], [1], [0, 0, 1, 1], [], []>} : vector<64x16xbf16>, vector<16x32xbf16>, vector<64x32xf32> -> vector<64x32xf32>
    %399 = arith.addf %393, %398 : vector<64x32xf32>
    %c25_275 = arith.constant 25 : index
    %c0_276 = arith.constant 0 : index
    %400 = vector.load %arg19[%c25_275, %c0_276] : memref<96x16xf32, #tpu.memory_space<vmem>>, vector<64x16xf32>
    %c6_i32_277 = arith.constant 6 : i32
    %401 = vector.broadcast %c6_i32_277 : i32 to vector<64x1xi32>
    %402 = arith.cmpi sle, %320, %401 : vector<64x1xi32>
    %cst_278 = arith.constant 0.000000e+00 : f32
    %403 = vector.shape_cast %402 : vector<64x1xi1> to vector<64x1xi1>
    %404 = vector.broadcast %403 : vector<64x1xi1> to vector<64x16xi1>
    %405 = vector.broadcast %cst_278 : f32 to vector<64x16xf32>
    %406 = arith.select %404, %400, %405 : vector<64x16xi1>, vector<64x16xf32>
    %407 = arith.truncf %406 : vector<64x16xf32> to vector<64x16xbf16>
    %c8_279 = arith.constant 8 : index
    %c0_280 = arith.constant 0 : index
    %c0_281 = arith.constant 0 : index
    %408 = vector.load %arg8[%c8_279, %c0_280, %c0_281] : memref<9x16x32xbf16, #tpu.memory_space<vmem>>, vector<1x16x32xbf16>
    %409 = vector.shape_cast %408 : vector<1x16x32xbf16> to vector<16x32xbf16>
    %cst_282 = arith.constant dense<0.000000e+00> : vector<64x32xf32>
    %410 = tpu.matmul %407, %409, %cst_282 {dimension_numbers = #tpu.dot_dimension_numbers<[1], [0], [0], [1], [0, 0, 1, 1], [], []>} : vector<64x16xbf16>, vector<16x32xbf16>, vector<64x32xf32> -> vector<64x32xf32>
    %411 = arith.addf %399, %410 : vector<64x32xf32>
    %c0_283 = arith.constant 0 : index
    %c0_284 = arith.constant 0 : index
    %412 = vector.load %arg9[%c0_283, %c0_284] : memref<1x32xf32, #tpu.memory_space<vmem>>, vector<1x32xf32>
    %413 = vector.broadcast %412 : vector<1x32xf32> to vector<64x32xf32>
    %414 = arith.addf %411, %413 : vector<64x32xf32>
    %cst_285 = arith.constant 0.000000e+00 : f32
    %415 = vector.broadcast %cst_285 : f32 to vector<64x32xf32>
    %416 = arith.maximumf %414, %415 : vector<64x32xf32>
    %c0_286 = arith.constant 0 : index
    %c0_287 = arith.constant 0 : index
    %417 = vector.load %arg13[%c0_286, %c0_287] : memref<16x64xbf16, #tpu.memory_space<vmem>>, vector<16x64xbf16>
    %418 = arith.truncf %416 : vector<64x32xf32> to vector<64x32xbf16>
    %cst_288 = arith.constant dense<0.000000e+00> : vector<16x32xf32>
    %419 = tpu.matmul %417, %418, %cst_288 {dimension_numbers = #tpu.dot_dimension_numbers<[1], [0], [0], [1], [0, 0, 1, 1], [], []>} : vector<16x64xbf16>, vector<64x32xbf16>, vector<16x32xf32> -> vector<16x32xf32>
    %cst_289 = arith.constant 0.000000e+00 : f32
    %420 = vector.broadcast %cst_289 : f32 to vector<32x32xf32>
    %c0_290 = arith.constant 0 : index
    %c0_291 = arith.constant 0 : index
    %421 = vector.load %arg20[%c0_290, %c0_291] : memref<32x32xf32, #tpu.memory_space<vmem>>, vector<32x32xf32>
    tpu.vector_store %arg20[%c0_290, %c0_291], %420 {strides = array<i32>} : memref<32x32xf32, #tpu.memory_space<vmem>>, vector<32x32xf32>,
    %c8_292 = arith.constant 8 : index
    %c0_293 = arith.constant 0 : index
    %422 = vector.load %arg20[%c8_292, %c0_293] : memref<32x32xf32, #tpu.memory_space<vmem>>, vector<16x32xf32>
    tpu.vector_store %arg20[%c8_292, %c0_293], %419 {strides = array<i32>} : memref<32x32xf32, #tpu.memory_space<vmem>>, vector<16x32xf32>,
    %423 = tpu.iota {dimensions = array<i32: 0>} : vector<16x1xi32>
    %c3_i32 = arith.constant 3 : i32
    %424 = vector.broadcast %c3_i32 : i32 to vector<16x1xi32>
    %425 = arith.andi %423, %424 : vector<16x1xi32>
    %cst_294 = arith.constant 0.000000e+00 : f32
    %426 = vector.broadcast %cst_294 : f32 to vector<16x32xf32>
    %c3_295 = arith.constant 3 : index
    %c0_296 = arith.constant 0 : index
    %427 = vector.load %arg20[%c3_295, %c0_296] : memref<32x32xf32, #tpu.memory_space<vmem>>, vector<16x32xf32>
    %c1_i32_297 = arith.constant 1 : i32
    %428 = vector.broadcast %c1_i32_297 : i32 to vector<16x1xi32>
    %429 = arith.cmpi sge, %425, %428 : vector<16x1xi32>
    %cst_298 = arith.constant 0.000000e+00 : f32
    %430 = vector.shape_cast %429 : vector<16x1xi1> to vector<16x1xi1>
    %431 = vector.broadcast %430 : vector<16x1xi1> to vector<16x32xi1>
    %432 = vector.broadcast %cst_298 : f32 to vector<16x32xf32>
    %433 = arith.select %431, %427, %432 : vector<16x32xi1>, vector<16x32xf32>
    %434 = arith.truncf %433 : vector<16x32xf32> to vector<16x32xbf16>
    %c0_299 = arith.constant 0 : index
    %c0_300 = arith.constant 0 : index
    %c0_301 = arith.constant 0 : index
    %435 = vector.load %arg10[%c0_299, %c0_300, %c0_301] : memref<9x32x32xbf16, #tpu.memory_space<vmem>>, vector<1x32x32xbf16>
    %436 = vector.shape_cast %435 : vector<1x32x32xbf16> to vector<32x32xbf16>
    %cst_302 = arith.constant dense<0.000000e+00> : vector<16x32xf32>
    %437 = tpu.matmul %434, %436, %cst_302 {dimension_numbers = #tpu.dot_dimension_numbers<[1], [0], [0], [1], [0, 0, 1, 1], [], []>} : vector<16x32xbf16>, vector<32x32xbf16>, vector<16x32xf32> -> vector<16x32xf32>
    %438 = arith.addf %426, %437 : vector<16x32xf32>
    %c4_303 = arith.constant 4 : index
    %c0_304 = arith.constant 0 : index
    %439 = vector.load %arg20[%c4_303, %c0_304] : memref<32x32xf32, #tpu.memory_space<vmem>>, vector<16x32xf32>
    %440 = arith.truncf %439 : vector<16x32xf32> to vector<16x32xbf16>
    %c1_305 = arith.constant 1 : index
    %c0_306 = arith.constant 0 : index
    %c0_307 = arith.constant 0 : index
    %441 = vector.load %arg10[%c1_305, %c0_306, %c0_307] : memref<9x32x32xbf16, #tpu.memory_space<vmem>>, vector<1x32x32xbf16>
    %442 = vector.shape_cast %441 : vector<1x32x32xbf16> to vector<32x32xbf16>
    %cst_308 = arith.constant dense<0.000000e+00> : vector<16x32xf32>
    %443 = tpu.matmul %440, %442, %cst_308 {dimension_numbers = #tpu.dot_dimension_numbers<[1], [0], [0], [1], [0, 0, 1, 1], [], []>} : vector<16x32xbf16>, vector<32x32xbf16>, vector<16x32xf32> -> vector<16x32xf32>
    %444 = arith.addf %438, %443 : vector<16x32xf32>
    %c5_309 = arith.constant 5 : index
    %c0_310 = arith.constant 0 : index
    %445 = vector.load %arg20[%c5_309, %c0_310] : memref<32x32xf32, #tpu.memory_space<vmem>>, vector<16x32xf32>
    %c2_i32 = arith.constant 2 : i32
    %446 = vector.broadcast %c2_i32 : i32 to vector<16x1xi32>
    %447 = arith.cmpi sle, %425, %446 : vector<16x1xi32>
    %cst_311 = arith.constant 0.000000e+00 : f32
    %448 = vector.shape_cast %447 : vector<16x1xi1> to vector<16x1xi1>
    %449 = vector.broadcast %448 : vector<16x1xi1> to vector<16x32xi1>
    %450 = vector.broadcast %cst_311 : f32 to vector<16x32xf32>
    %451 = arith.select %449, %445, %450 : vector<16x32xi1>, vector<16x32xf32>
    %452 = arith.truncf %451 : vector<16x32xf32> to vector<16x32xbf16>
    %c2_312 = arith.constant 2 : index
    %c0_313 = arith.constant 0 : index
    %c0_314 = arith.constant 0 : index
    %453 = vector.load %arg10[%c2_312, %c0_313, %c0_314] : memref<9x32x32xbf16, #tpu.memory_space<vmem>>, vector<1x32x32xbf16>
    %454 = vector.shape_cast %453 : vector<1x32x32xbf16> to vector<32x32xbf16>
    %cst_315 = arith.constant dense<0.000000e+00> : vector<16x32xf32>
    %455 = tpu.matmul %452, %454, %cst_315 {dimension_numbers = #tpu.dot_dimension_numbers<[1], [0], [0], [1], [0, 0, 1, 1], [], []>} : vector<16x32xbf16>, vector<32x32xbf16>, vector<16x32xf32> -> vector<16x32xf32>
    %456 = arith.addf %444, %455 : vector<16x32xf32>
    %c7_316 = arith.constant 7 : index
    %c0_317 = arith.constant 0 : index
    %457 = vector.load %arg20[%c7_316, %c0_317] : memref<32x32xf32, #tpu.memory_space<vmem>>, vector<16x32xf32>
    %c1_i32_318 = arith.constant 1 : i32
    %458 = vector.broadcast %c1_i32_318 : i32 to vector<16x1xi32>
    %459 = arith.cmpi sge, %425, %458 : vector<16x1xi32>
    %cst_319 = arith.constant 0.000000e+00 : f32
    %460 = vector.shape_cast %459 : vector<16x1xi1> to vector<16x1xi1>
    %461 = vector.broadcast %460 : vector<16x1xi1> to vector<16x32xi1>
    %462 = vector.broadcast %cst_319 : f32 to vector<16x32xf32>
    %463 = arith.select %461, %457, %462 : vector<16x32xi1>, vector<16x32xf32>
    %464 = arith.truncf %463 : vector<16x32xf32> to vector<16x32xbf16>
    %c3_320 = arith.constant 3 : index
    %c0_321 = arith.constant 0 : index
    %c0_322 = arith.constant 0 : index
    %465 = vector.load %arg10[%c3_320, %c0_321, %c0_322] : memref<9x32x32xbf16, #tpu.memory_space<vmem>>, vector<1x32x32xbf16>
    %466 = vector.shape_cast %465 : vector<1x32x32xbf16> to vector<32x32xbf16>
    %cst_323 = arith.constant dense<0.000000e+00> : vector<16x32xf32>
    %467 = tpu.matmul %464, %466, %cst_323 {dimension_numbers = #tpu.dot_dimension_numbers<[1], [0], [0], [1], [0, 0, 1, 1], [], []>} : vector<16x32xbf16>, vector<32x32xbf16>, vector<16x32xf32> -> vector<16x32xf32>
    %468 = arith.addf %456, %467 : vector<16x32xf32>
    %c8_324 = arith.constant 8 : index
    %c0_325 = arith.constant 0 : index
    %469 = vector.load %arg20[%c8_324, %c0_325] : memref<32x32xf32, #tpu.memory_space<vmem>>, vector<16x32xf32>
    %470 = arith.truncf %469 : vector<16x32xf32> to vector<16x32xbf16>
    %c4_326 = arith.constant 4 : index
    %c0_327 = arith.constant 0 : index
    %c0_328 = arith.constant 0 : index
    %471 = vector.load %arg10[%c4_326, %c0_327, %c0_328] : memref<9x32x32xbf16, #tpu.memory_space<vmem>>, vector<1x32x32xbf16>
    %472 = vector.shape_cast %471 : vector<1x32x32xbf16> to vector<32x32xbf16>
    %cst_329 = arith.constant dense<0.000000e+00> : vector<16x32xf32>
    %473 = tpu.matmul %470, %472, %cst_329 {dimension_numbers = #tpu.dot_dimension_numbers<[1], [0], [0], [1], [0, 0, 1, 1], [], []>} : vector<16x32xbf16>, vector<32x32xbf16>, vector<16x32xf32> -> vector<16x32xf32>
    %474 = arith.addf %468, %473 : vector<16x32xf32>
    %c9_330 = arith.constant 9 : index
    %c0_331 = arith.constant 0 : index
    %475 = vector.load %arg20[%c9_330, %c0_331] : memref<32x32xf32, #tpu.memory_space<vmem>>, vector<16x32xf32>
    %c2_i32_332 = arith.constant 2 : i32
    %476 = vector.broadcast %c2_i32_332 : i32 to vector<16x1xi32>
    %477 = arith.cmpi sle, %425, %476 : vector<16x1xi32>
    %cst_333 = arith.constant 0.000000e+00 : f32
    %478 = vector.shape_cast %477 : vector<16x1xi1> to vector<16x1xi1>
    %479 = vector.broadcast %478 : vector<16x1xi1> to vector<16x32xi1>
    %480 = vector.broadcast %cst_333 : f32 to vector<16x32xf32>
    %481 = arith.select %479, %475, %480 : vector<16x32xi1>, vector<16x32xf32>
    %482 = arith.truncf %481 : vector<16x32xf32> to vector<16x32xbf16>
    %c5_334 = arith.constant 5 : index
    %c0_335 = arith.constant 0 : index
    %c0_336 = arith.constant 0 : index
    %483 = vector.load %arg10[%c5_334, %c0_335, %c0_336] : memref<9x32x32xbf16, #tpu.memory_space<vmem>>, vector<1x32x32xbf16>
    %484 = vector.shape_cast %483 : vector<1x32x32xbf16> to vector<32x32xbf16>
    %cst_337 = arith.constant dense<0.000000e+00> : vector<16x32xf32>
    %485 = tpu.matmul %482, %484, %cst_337 {dimension_numbers = #tpu.dot_dimension_numbers<[1], [0], [0], [1], [0, 0, 1, 1], [], []>} : vector<16x32xbf16>, vector<32x32xbf16>, vector<16x32xf32> -> vector<16x32xf32>
    %486 = arith.addf %474, %485 : vector<16x32xf32>
    %c11 = arith.constant 11 : index
    %c0_338 = arith.constant 0 : index
    %487 = vector.load %arg20[%c11, %c0_338] : memref<32x32xf32, #tpu.memory_space<vmem>>, vector<16x32xf32>
    %c1_i32_339 = arith.constant 1 : i32
    %488 = vector.broadcast %c1_i32_339 : i32 to vector<16x1xi32>
    %489 = arith.cmpi sge, %425, %488 : vector<16x1xi32>
    %cst_340 = arith.constant 0.000000e+00 : f32
    %490 = vector.shape_cast %489 : vector<16x1xi1> to vector<16x1xi1>
    %491 = vector.broadcast %490 : vector<16x1xi1> to vector<16x32xi1>
    %492 = vector.broadcast %cst_340 : f32 to vector<16x32xf32>
    %493 = arith.select %491, %487, %492 : vector<16x32xi1>, vector<16x32xf32>
    %494 = arith.truncf %493 : vector<16x32xf32> to vector<16x32xbf16>
    %c6_341 = arith.constant 6 : index
    %c0_342 = arith.constant 0 : index
    %c0_343 = arith.constant 0 : index
    %495 = vector.load %arg10[%c6_341, %c0_342, %c0_343] : memref<9x32x32xbf16, #tpu.memory_space<vmem>>, vector<1x32x32xbf16>
    %496 = vector.shape_cast %495 : vector<1x32x32xbf16> to vector<32x32xbf16>
    %cst_344 = arith.constant dense<0.000000e+00> : vector<16x32xf32>
    %497 = tpu.matmul %494, %496, %cst_344 {dimension_numbers = #tpu.dot_dimension_numbers<[1], [0], [0], [1], [0, 0, 1, 1], [], []>} : vector<16x32xbf16>, vector<32x32xbf16>, vector<16x32xf32> -> vector<16x32xf32>
    %498 = arith.addf %486, %497 : vector<16x32xf32>
    %c12 = arith.constant 12 : index
    %c0_345 = arith.constant 0 : index
    %499 = vector.load %arg20[%c12, %c0_345] : memref<32x32xf32, #tpu.memory_space<vmem>>, vector<16x32xf32>
    %500 = arith.truncf %499 : vector<16x32xf32> to vector<16x32xbf16>
    %c7_346 = arith.constant 7 : index
    %c0_347 = arith.constant 0 : index
    %c0_348 = arith.constant 0 : index
    %501 = vector.load %arg10[%c7_346, %c0_347, %c0_348] : memref<9x32x32xbf16, #tpu.memory_space<vmem>>, vector<1x32x32xbf16>
    %502 = vector.shape_cast %501 : vector<1x32x32xbf16> to vector<32x32xbf16>
    %cst_349 = arith.constant dense<0.000000e+00> : vector<16x32xf32>
    %503 = tpu.matmul %500, %502, %cst_349 {dimension_numbers = #tpu.dot_dimension_numbers<[1], [0], [0], [1], [0, 0, 1, 1], [], []>} : vector<16x32xbf16>, vector<32x32xbf16>, vector<16x32xf32> -> vector<16x32xf32>
    %504 = arith.addf %498, %503 : vector<16x32xf32>
    %c13 = arith.constant 13 : index
    %c0_350 = arith.constant 0 : index
    %505 = vector.load %arg20[%c13, %c0_350] : memref<32x32xf32, #tpu.memory_space<vmem>>, vector<16x32xf32>
    %c2_i32_351 = arith.constant 2 : i32
    %506 = vector.broadcast %c2_i32_351 : i32 to vector<16x1xi32>
    %507 = arith.cmpi sle, %425, %506 : vector<16x1xi32>
    %cst_352 = arith.constant 0.000000e+00 : f32
    %508 = vector.shape_cast %507 : vector<16x1xi1> to vector<16x1xi1>
    %509 = vector.broadcast %508 : vector<16x1xi1> to vector<16x32xi1>
    %510 = vector.broadcast %cst_352 : f32 to vector<16x32xf32>
    %511 = arith.select %509, %505, %510 : vector<16x32xi1>, vector<16x32xf32>
    %512 = arith.truncf %511 : vector<16x32xf32> to vector<16x32xbf16>
    %c8_353 = arith.constant 8 : index
    %c0_354 = arith.constant 0 : index
    %c0_355 = arith.constant 0 : index
    %513 = vector.load %arg10[%c8_353, %c0_354, %c0_355] : memref<9x32x32xbf16, #tpu.memory_space<vmem>>, vector<1x32x32xbf16>
    %514 = vector.shape_cast %513 : vector<1x32x32xbf16> to vector<32x32xbf16>
    %cst_356 = arith.constant dense<0.000000e+00> : vector<16x32xf32>
    %515 = tpu.matmul %512, %514, %cst_356 {dimension_numbers = #tpu.dot_dimension_numbers<[1], [0], [0], [1], [0, 0, 1, 1], [], []>} : vector<16x32xbf16>, vector<32x32xbf16>, vector<16x32xf32> -> vector<16x32xf32>
    %516 = arith.addf %504, %515 : vector<16x32xf32>
    %c0_357 = arith.constant 0 : index
    %c0_358 = arith.constant 0 : index
    %517 = vector.load %arg11[%c0_357, %c0_358] : memref<1x32xf32, #tpu.memory_space<vmem>>, vector<1x32xf32>
    %518 = vector.broadcast %517 : vector<1x32xf32> to vector<16x32xf32>
    %519 = arith.addf %516, %518 : vector<16x32xf32>
    %cst_359 = arith.constant 0.000000e+00 : f32
    %520 = vector.broadcast %cst_359 : f32 to vector<16x32xf32>
    %521 = arith.maximumf %519, %520 : vector<16x32xf32>
    %cst_360 = arith.constant dense<0.000000e+00> : vector<32xf32>
    %522 = vector.multi_reduction <add>, %521, %cst_360 [0] : vector<16x32xf32> to vector<32xf32>
    %523 = vector.shape_cast %522 : vector<32xf32> to vector<1x32xf32>
    %cst_361 = arith.constant 1.600000e+01 : f32
    %524 = vector.broadcast %cst_361 : f32 to vector<1x32xf32>
    %525 = arith.divf %523, %524 : vector<1x32xf32>
    %c0_362 = arith.constant 0 : index
    %c0_363 = arith.constant 0 : index
    %526 = vector.load %arg14[%c0_362, %c0_363] : memref<32x10xf32, #tpu.memory_space<vmem>>, vector<32x10xf32>
    %cst_364 = arith.constant dense<0.000000e+00> : vector<1x10xf32>
    %527 = tpu.matmul %525, %526, %cst_364 {dimension_numbers = #tpu.dot_dimension_numbers<[1], [0], [0], [1], [0, 0, 1, 1], [], []>} : vector<1x32xf32>, vector<32x10xf32>, vector<1x10xf32> -> vector<1x10xf32>
    %c0_365 = arith.constant 0 : index
    %c0_366 = arith.constant 0 : index
    %528 = vector.load %arg15[%c0_365, %c0_366] : memref<1x10xf32, #tpu.memory_space<vmem>>, vector<1x10xf32>
    %529 = arith.addf %527, %528 : vector<1x10xf32>
    %c0_367 = arith.constant 0 : index
    %c0_368 = arith.constant 0 : index
    %c0_369 = arith.constant 0 : index
    %530 = vector.load %arg16[%c0_367, %c0_368, %c0_369] : memref<1x1x10xf32, #tpu.memory_space<vmem>>, vector<1x1x10xf32>
    %531 = vector.shape_cast %530 : vector<1x1x10xf32> to vector<1x10xf32>
    %532 = vector.shape_cast %529 : vector<1x10xf32> to vector<1x1x10xf32>
    tpu.vector_store %arg16[%c0_367, %c0_368, %c0_369], %532 {strides = array<i32>} : memref<1x1x10xf32, #tpu.memory_space<vmem>>, vector<1x1x10xf32>,
    return
  }
  func.func @transform_0(%arg0: i32) -> (i32, i32, i32) {
    %c0_i32 = arith.constant 0 : i32
    %c0_i32_0 = arith.constant 0 : i32
    %c0_i32_1 = arith.constant 0 : i32
    return %arg0, %c0_i32, %c0_i32_0 : i32, i32, i32
  }
  func.func @transform_1(%arg0: i32) -> (i32, i32, i32) {
    %c0_i32 = arith.constant 0 : i32
    %c0_i32_0 = arith.constant 0 : i32
    %c0_i32_1 = arith.constant 0 : i32
    %c0_i32_2 = arith.constant 0 : i32
    return %c0_i32, %c0_i32_0, %c0_i32_1 : i32, i32, i32
  }
  func.func @transform_2(%arg0: i32) -> (i32, i32) {
    %c0_i32 = arith.constant 0 : i32
    %c0_i32_0 = arith.constant 0 : i32
    %c0_i32_1 = arith.constant 0 : i32
    return %c0_i32, %c0_i32_0 : i32, i32
  }
  func.func @transform_3(%arg0: i32) -> (i32, i32, i32) {
    %c0_i32 = arith.constant 0 : i32
    %c0_i32_0 = arith.constant 0 : i32
    %c0_i32_1 = arith.constant 0 : i32
    %c0_i32_2 = arith.constant 0 : i32
    return %c0_i32, %c0_i32_0, %c0_i32_1 : i32, i32, i32
  }
  func.func @transform_4(%arg0: i32) -> (i32, i32) {
    %c0_i32 = arith.constant 0 : i32
    %c0_i32_0 = arith.constant 0 : i32
    %c0_i32_1 = arith.constant 0 : i32
    return %c0_i32, %c0_i32_0 : i32, i32
  }
  func.func @transform_5(%arg0: i32) -> (i32, i32, i32) {
    %c0_i32 = arith.constant 0 : i32
    %c0_i32_0 = arith.constant 0 : i32
    %c0_i32_1 = arith.constant 0 : i32
    %c0_i32_2 = arith.constant 0 : i32
    return %c0_i32, %c0_i32_0, %c0_i32_1 : i32, i32, i32
  }
  func.func @transform_6(%arg0: i32) -> (i32, i32) {
    %c0_i32 = arith.constant 0 : i32
    %c0_i32_0 = arith.constant 0 : i32
    %c0_i32_1 = arith.constant 0 : i32
    return %c0_i32, %c0_i32_0 : i32, i32
  }
  func.func @transform_7(%arg0: i32) -> (i32, i32, i32) {
    %c0_i32 = arith.constant 0 : i32
    %c0_i32_0 = arith.constant 0 : i32
    %c0_i32_1 = arith.constant 0 : i32
    %c0_i32_2 = arith.constant 0 : i32
    return %c0_i32, %c0_i32_0, %c0_i32_1 : i32, i32, i32
  }
  func.func @transform_8(%arg0: i32) -> (i32, i32) {
    %c0_i32 = arith.constant 0 : i32
    %c0_i32_0 = arith.constant 0 : i32
    %c0_i32_1 = arith.constant 0 : i32
    return %c0_i32, %c0_i32_0 : i32, i32
  }
  func.func @transform_9(%arg0: i32) -> (i32, i32, i32) {
    %c0_i32 = arith.constant 0 : i32
    %c0_i32_0 = arith.constant 0 : i32
    %c0_i32_1 = arith.constant 0 : i32
    %c0_i32_2 = arith.constant 0 : i32
    return %c0_i32, %c0_i32_0, %c0_i32_1 : i32, i32, i32
  }
  func.func @transform_10(%arg0: i32) -> (i32, i32) {
    %c0_i32 = arith.constant 0 : i32
    %c0_i32_0 = arith.constant 0 : i32
    %c0_i32_1 = arith.constant 0 : i32
    return %c0_i32, %c0_i32_0 : i32, i32
  }
  func.func @transform_11(%arg0: i32) -> (i32, i32) {
    %c0_i32 = arith.constant 0 : i32
    %c0_i32_0 = arith.constant 0 : i32
    %c0_i32_1 = arith.constant 0 : i32
    return %c0_i32, %c0_i32_0 : i32, i32
  }
  func.func @transform_12(%arg0: i32) -> (i32, i32) {
    %c0_i32 = arith.constant 0 : i32
    %c0_i32_0 = arith.constant 0 : i32
    %c0_i32_1 = arith.constant 0 : i32
    return %c0_i32, %c0_i32_0 : i32, i32
  }
  func.func @transform_13(%arg0: i32) -> (i32, i32) {
    %c0_i32 = arith.constant 0 : i32
    %c0_i32_0 = arith.constant 0 : i32
    %c0_i32_1 = arith.constant 0 : i32
    return %c0_i32, %c0_i32_0 : i32, i32
  }
  func.func @transform_14(%arg0: i32) -> (i32, i32) {
    %c0_i32 = arith.constant 0 : i32
    %c0_i32_0 = arith.constant 0 : i32
    %c0_i32_1 = arith.constant 0 : i32
    return %c0_i32, %c0_i32_0 : i32, i32
  }
  func.func @transform_15(%arg0: i32) -> (i32, i32, i32) {
    %c0_i32 = arith.constant 0 : i32
    %c0_i32_0 = arith.constant 0 : i32
    %c0_i32_1 = arith.constant 0 : i32
    return %arg0, %c0_i32, %c0_i32_0 : i32, i32, i32
  }
}

</mosaic_0001>

<bundles_post_ra>
// kernel: plain_cnn_forward.1
= control target key start
LH: loop header
LB: loop body
LE: loop exit
PB: predicated region body
PF: predicated region fallthrough
CT: control target
= control target key end

     0   :  { %s11948_s0 = inlined_call_operand.vmem [shape: f32[2,304,3], index: 0, kind: input, shape index: {}]   ;;  %s11949_s1 = inlined_call_operand.vmem [shape: bf16[9,3,16], index: 1, kind: input, shape index: {}]   ;;  %s11950_s2 = inlined_call_operand.vmem [shape: f32[1,16], index: 2, kind: input, shape index: {}]   ;;  %s11951_s3 = inlined_call_operand.vmem [shape: bf16[9,16,16], index: 3, kind: input, shape index: {}]   ;;  %s11952_s4 = inlined_call_operand.vmem [shape: f32[1,16], index: 4, kind: input, shape index: {}]   ;;  %s11953_s5 = inlined_call_operand.vmem [shape: bf16[9,16,16], index: 5, kind: input, shape index: {}]   ;;  %s11954_s6 = inlined_call_operand.vmem [shape: f32[1,16], index: 6, kind: input, shape index: {}]   ;;  %s11955_s7 = inlined_call_operand.vmem [shape: bf16[9,16,32], index: 7, kind: input, shape index: {}]   ;;  %s11956_s8 = inlined_call_operand.vmem [shape: f32[1,32], index: 8, kind: input, shape index: {}]   ;;  %s11957_s9 = inlined_call_operand.vmem [shape: bf16[9,32,32], index: 9, kind: input, shape index: {}]   ;;  %s11958_s10 = inlined_call_operand.vmem [shape: f32[1,32], index: 10, kind: input, shape index: {}]   ;;  %s11959_s11 = inlined_call_operand.vmem [shape: bf16[64,256], index: 11, kind: input, shape index: {}]   ;;  %s11960_s12 = inlined_call_operand.vmem [shape: bf16[16,64], index: 12, kind: input, shape index: {}]   ;;  %s11961_s13 = inlined_call_operand.vmem [shape: f32[32,10], index: 13, kind: input, shape index: {}]   ;;  %s11962_s14 = inlined_call_operand.vmem [shape: f32[1,10], index: 14, kind: input, shape index: {}]   ;;  %s11963_s15 = inlined_call_operand.hbm [shape: f32[2,1,10], index: 15, kind: output, shape index: {}]  }
   0x1   :  { %12147 = sst [smem:[#allocation84_spill]] %s11948_s0 }
   0x2   :  { %12148 = sst [smem:[#allocation85_spill]] %s11949_s1 }
   0x3   :  { %12149 = sst [smem:[#allocation86_spill]] %s11950_s2 }
   0x4   :  { %12150 = sst [smem:[#allocation87_spill]] %s11951_s3 }
   0x5   :  { %12151 = sst [smem:[#allocation88_spill]] %s11952_s4 }
   0x6   :  { %20 = vsyncpa [#allocation7], 0 }
   0x7   :  { %22 = vsyncpa [#allocation7 + $0x1], 0  ;;  %s8309_s18 = smov 0   ;;  %s8311_s19 = smov 0  }
   0x8   :  { %s8313_s20 = smov 0   ;;  %s8315_s21 = smov 0  }
   0x9 LB: > { %s8330_s22 = sadd.s32 4294967295, %s8224_s21   ;;  %s7359_s23 = sadd.s32 4294967294, %s8224_s21   ;;  %s8224_s21 = sphi %s8315_s21, %s12947_s21   ;;  %s8220_s20 = sphi %s8313_s20, %s12946_s20   ;;  %s8216_s19 = sphi %s8311_s19, %s12945_s19   ;;  %s8212_s18 = sphi %s8309_s18, %s12944_s18  }
   0xa   : > { %s8334_s24 = sadd.s32 1, %s8224_s21   ;;  %s355_s25 = sadd.s32 1, %s8220_s20 }
   0xb   : > { %s352_s26 = ssub.s32 %s8224_s21, %s8334_s24  ;;  %p365_p0 = scmp.ne.s32.totalorder %s8220_s20, %s8216_s19 }
   0xc   : > { %p353_p1 = scmp.eq.s32.totalorder %s352_s26, 0  ;;  %p366_p2 = scmp.eq.s32.totalorder %s8330_s22, 1 }
   0xd   : > { %p371_p3 = scmp.ne.s32.totalorder %s8216_s19, %s8212_s18  ;;  %p372_p4 = scmp.eq.s32.totalorder %s7359_s23, 1 }
   0xe   : > { %s8345_s27 = scalar_select %p353_p1, %s8220_s20, %s355_s25  }
   0xf   : > { %p8347_p5 = por %p366_p2, %p365_p0  ;;  %p8351_p6 = por %p372_p4, %p371_p3 }
  0x10   : > { %12152 = sst [smem:[#allocation9_spill]] %s8345_s27  ;;  %p7362_p7 = scmp.ge.s32.totalorder %s8224_s21, 1 }
  0x11   : > { %p440_p8 = scmp.lt.s32.totalorder %s8224_s21, 3 }
  0x13   : > { %p441_p9 = pnand %p7362_p7, %p440_p8 }
  0x15   : > { %444 = sbr.rel (%p441_p9) target bundleno = 2911 (0xb5f), region = 80 }
  0x1a   : > { %s12155_s1 = sld [smem:[#allocation85_spill]]  ;;  %vm834_vm0 = vcmask 1040384   ;;  %vm835_vm1 = vcmask 1041408   ;;  %p487_p10 = scmp.lt.s32.totalorder %s8330_s22, 1  ;;  %v493_v1 = vlaneseq  ;;  %v8226_v2 = vmov 65535  }
  0x1b   : > { %v836_v3 = vsel %vm834_vm0, 4294967295, %v8226_v2  ;;  %s12158_s0 = sld [smem:[#allocation84_spill]]  ;;  %vm12015_vm3 = vcmask 23552   ;;  %v12165_v37 = vmov 0  ;;  %v12172_v56 = vmov 0  ;;  %s8182_s26 = scalar_lea.hbm %s11963_s15, 2 }
  0x1c   : > { %v8367_v6 = vsel %vm835_vm1, %v836_v3, 0  ;;  %s488_s30 = scalar_select %p487_p10, %s8330_s22, 1  ;;  %v8370_v7 = vshrl.u32 %v493_v1, 7  ;;  %v12175_v58 = vmov 0 }
  0x1d   : > { %s12422_s3 = sld [smem:[#allocation87_spill]] }
  0x1e   : > { %12156 = vst [vmem:[#allocation10_spill] sm:$0xff] %v8370_v7  ;;  %s8095_s17 = smul.u32 304, %s488_s30  ;;  %v526_v13 = vand.u32 15, %v8370_v7  ;;  %v8381_v14 = vadd.s32 8, %v8370_v7  ;;  %v8410_v30 = vadd.s32 16, %v8370_v7  ;;  %v8416_v33 = vadd.s32 24, %v8370_v7  ;;  %s7300_s30 = scalar_lea.hbm %s11963_s15, %s8330_s22 }
  0x1f   : > { %v8458_v52 = vadd.s32 32, %v8370_v7  ;;  %v8463_v53 = vadd.s32 40, %v8370_v7  ;;  %s12452_s2 = sld [smem:[#allocation86_spill]] }
  0x20   : > { %v7364_v0 = vld [vmem:[%s12155_s1 + $0x2] sm:$0x3]  ;;  %v734_v4 = vld [vmem:[%s12155_s1] sm:$0x3]  ;;  %v7397_v5 = vld [vmem:[%s12155_s1 + $0x4] sm:$0x3] }
  0x21   : > { %v7414_v8 = vld [vmem:[%s12155_s1 + $0x6] sm:$0x3]  ;;  %v839_v9 = vand.u32 %v7364_v0, %v8367_v6  ;;  %v979_v10 = vand.u32 %v8367_v6, %v734_v4  ;;  %v1297_v11 = vand.u32 %v7397_v5, %v8367_v6  ;;  %12157 = vst [vmem:[#allocation11_spill] sm:$0xff] %v8381_v14  ;;  %s8386_s25 = scalar_lea.vmem %s12158_s0, %s8095_s17  ;;  %vm8388_vm2 = vcmp.ge.s32.totalorder %v526_v13, 1  ;;  %s12787_s4 = sld [smem:[#allocation88_spill]] }
  0x22   : > { %v1551_v12 = vand.u32 %v7414_v8, %v8367_v6  ;;  %v527_v16 = vand.u32 15, %v8381_v14  ;;  %v735_v17 = vld [vmem:[%s8386_s25 + $0x8] sm:$0xff]  ;;  %v736_v18 = vld [vmem:[%s8386_s25 + $0x10] sm:$0xff]  ;;  %v1421_v29 = vld [vmem:[%s8386_s25 + $0x1f] sm:$0xff]  ;;  %12163 = vst [vmem:[#allocation12_spill] sm:$0xff] %v8410_v30  ;;  %v528_v35 = vand.u32 15, %v8410_v30 }
  0x23   : > { %848 = vmatpush.bf16.msra.mxu0 %v839_v9  ;;  %988 = vmatpush.bf16.msra.mxu1 %v979_v10  ;;  %v558_v19 = vld [vmem:[%s8386_s25 + $0x7] sm:$0xff]  ;;  %v767_v20 = vpack.c.bf16 %v736_v18, %v735_v17  ;;  %v559_v21 = vld [vmem:[%s8386_s25 + $0xf] sm:$0xff]  ;;  %v1420_v28 = vld [vmem:[%s8386_s25 + $0x17] sm:$0xff]  ;;  %12164 = vst [vmem:[#allocation13_spill] sm:$0xff] %v8416_v33  ;;  %v529_v36 = vand.u32 15, %v8416_v33  ;;  %v530_v54 = vand.u32 15, %v8458_v52 }
  0x24   : > { %1306 = vmatpush.bf16.msra.mxu2 %v1297_v11  ;;  %1560 = vmatpush.bf16.msra.mxu3 %v1551_v12  ;;  %v686_v22 = vsel %vm8388_vm2, %v558_v19, 0.0  ;;  %v1070_v23 = vld [vmem:[%s8386_s25 + $0x9] sm:$0xff]  ;;  %v1071_v24 = vld [vmem:[%s8386_s25 + $0x11] sm:$0xff]  ;;  %vm8401_vm4 = vcmp.le.s32.totalorder %v527_v16, 14  ;;  %v1452_v32 = vsel %vm8388_vm2, %v1420_v28, 0.0  ;;  %vm8423_vm5 = vcmp.ge.s32.totalorder %v528_v35, 1 }
  0x25   : > { %v718_v26 = vpack.c.bf16 %v559_v21, %v686_v22  ;;  %v1199_v27 = vsel %vm8401_vm4, %v1071_v24, 0.0  ;;  %v1484_v34 = vpack.c.bf16 %v1421_v29, %v1452_v32  ;;  %v12166_v37 = vsel %vm8423_vm5, 4294967295, %v12165_v37  ;;  %v8428_v38 = vld [vmem:[%s8386_s25 + $0x21] sm:$0xff]  ;;  %v737_v40 = vld [vmem:[%s8386_s25 + $0x18] sm:$0xff]  ;;  %v8450_v47 = vld [vmem:[%s8386_s25 + $0x2f] sm:$0xff]  ;;  %12170 = vst [vmem:[#allocation15_spill] sm:$0xff] %v8458_v52 }
  0x26   : > { %7365 = vmatmul.msk.bf16.vlgmr.msra.gmra.mxu0 %vm12015_vm3, %v767_v20  ;;  %v1230_v31 = vpack.c.bf16 %v1199_v27, %v1070_v23  ;;  %12167 = vst [vmem:[#allocation14_spill] sm:$0xff] %v12166_v37  ;;  %vm8430_vm6 = vcmp.le.s32.totalorder %v529_v36, 14  ;;  %v738_v41 = vld [vmem:[%s8386_s25 + $0x20] sm:$0xff]  ;;  %v688_v43 = vsel %vm8423_vm5, %v1420_v28, 0.0  ;;  %v531_v55 = vand.u32 15, %v8463_v53  ;;  %v8475_v57 = vld [vmem:[%s8386_s25 + $0x31] sm:$0xff] }
  0x27   : > { %7381 = vmatmul.msk.bf16.vlgmr.msra.gmra.mxu1 %vm12015_vm3, %v718_v26  ;;  %7415 = vmatmul.msk.bf16.vlgmr.msra.gmra.mxu3 %vm12015_vm3, %v1484_v34  ;;  %v8437_v42 = vld [vmem:[%s8386_s25 + $0x27] sm:$0xff]  ;;  %v8442_v44 = vld [vmem:[%s8386_s25 + $0x19] sm:$0xff]  ;;  %v1201_v45 = vsel %vm8430_vm6, %v8428_v38, 0.0  ;;  %v8447_v46 = vpack.c.bf16 %v738_v41, %v737_v40  ;;  %v719_v49 = vpack.c.bf16 %v1421_v29, %v688_v43  ;;  %12171 = vst [vmem:[#allocation16_spill] sm:$0xff] %v8463_v53  ;;  %vm8470_vm7 = vcmp.ge.s32.totalorder %v530_v54, 1  ;;  %v740_v60 = vld [vmem:[%s8386_s25 + $0x30] sm:$0xff] }
  0x28   : > { %7398 = vmatmul.msk.bf16.vlgmr.msra.gmra.mxu2 %vm12015_vm3, %v1230_v31  ;;  %v1454_v48 = vsel %vm8423_vm5, %v8437_v42, 0.0  ;;  %v1231_v50 = vpack.c.bf16 %v1201_v45, %v8442_v44  ;;  %v12173_v56 = vsel %vm8470_vm7, 4294967295, %v12172_v56  ;;  %vm8477_vm8 = vcmp.le.s32.totalorder %v531_v55, 14  ;;  %v739_v59 = vld [vmem:[%s8386_s25 + $0x28] sm:$0xff]  ;;  %v8484_v61 = vld [vmem:[%s8386_s25 + $0x37] sm:$0xff]  ;;  %v8498_v2 = vld [vmem:[%s8386_s25 + $0x3f] sm:$0xff] }
  0x29   : > { %v1485_v51 = vpack.c.bf16 %v8450_v47, %v1454_v48  ;;  %12174 = vst [vmem:[#allocation17_spill] sm:$0xff] %v12173_v56  ;;  %v12176_v58 = vsel %vm8477_vm8, 4294967295, %v12175_v58  ;;  %v690_v62 = vsel %vm8470_vm7, %v8437_v42, 0.0  ;;  %v8490_v63 = vld [vmem:[%s8386_s25 + $0x29] sm:$0xff]  ;;  %v1203_v0 = vsel %vm8477_vm8, %v8475_v57, 0.0  ;;  %v8524_v16 = vld [vmem:[%s8386_s25 + $0x41] sm:$0xff] }
  0x2a   : > { %v8495_v1 = vpack.c.bf16 %v740_v60, %v739_v59  ;;  %v1456_v3 = vsel %vm8470_vm7, %v8484_v61, 0.0  ;;  %v720_v4 = vpack.c.bf16 %v8450_v47, %v690_v62  ;;  %v1232_v5 = vpack.c.bf16 %v1203_v0, %v8490_v63  ;;  %v741_v18 = vld [vmem:[%s8386_s25 + $0x38] sm:$0xff]  ;;  %v742_v19 = vld [vmem:[%s8386_s25 + $0x40] sm:$0xff]  ;;  %v8547_v26 = vld [vmem:[%s8386_s25 + $0x4f] sm:$0xff]  ;;  %s485_s0 = sand.u32 1, %s8216_s19   ;;  %s7304_s17 = sshll.u32 %s7300_s30, 4  ;;  %s7305_s17 = int_to_ptr.hbm [resolvable:$true] %s7304_s17 }
  0x2b   : > { %v1486_v8 = vpack.c.bf16 %v8498_v2, %v1456_v3  ;;  %v8507_v9 = vadd.s32 48, %v8370_v7  ;;  %v8512_v10 = vadd.s32 56, %v8370_v7  ;;  %v12179_v13 = vmov 0  ;;  %v8533_v20 = vld [vmem:[%s8386_s25 + $0x47] sm:$0xff]  ;;  %v8539_v22 = vld [vmem:[%s8386_s25 + $0x39] sm:$0xff]  ;;  %v1079_v41 = vld [vmem:[%s8386_s25 + $0x51] sm:$0xff] }
  0x2c   : > { %v8544_v24 = vpack.c.bf16 %v742_v19, %v741_v18  ;;  %v502_v32 = vadd.s32 64, %v8370_v7  ;;  %v503_v34 = vadd.s32 72, %v8370_v7  ;;  %v12184_v40 = vmov 0  ;;  %v743_v45 = vld [vmem:[%s8386_s25 + $0x48] sm:$0xff]  ;;  %v744_v48 = vld [vmem:[%s8386_s25 + $0x50] sm:$0xff]  ;;  %v8585_v59 = vld [vmem:[%s8386_s25 + $0x5f] sm:$0xff] }
  0x2d   : > { %12177 = vst [vmem:[#allocation18_spill] sm:$0xff] %v8507_v9  ;;  %v532_v11 = vand.u32 15, %v8507_v9  ;;  %v533_v12 = vand.u32 15, %v8512_v10  ;;  %v12187_v43 = vmov 0  ;;  %v8582_v55 = vpack.c.bf16 %v744_v48, %v743_v45  ;;  %v1081_v18 = vld [vmem:[%s8386_s25 + $0x61] sm:$0xff]  ;;  %s7292_s23 = scalar_lea.sflag [#allocation7], %s485_s0 }
  0x2e   : > { %12178 = vst [vmem:[#allocation19_spill] sm:$0xff] %v8512_v10  ;;  %v534_v35 = vand.u32 15, %v502_v32  ;;  %v535_v36 = vand.u32 15, %v503_v34  ;;  %v1431_v34 = vld [vmem:[%s8386_s25 + $0x6f] sm:$0xff]  ;;  %v506_v48 = vadd.s32 96, %v8370_v7  ;;  %v512_v10 = vadd.s32 144, %v8370_v7 }
  0x2f   : > { %vm8519_vm9 = vcmp.ge.s32.totalorder %v532_v11, 1  ;;  %vm8526_vm10 = vcmp.le.s32.totalorder %v533_v12, 14  ;;  %v12189_v12 = vmov 0 }
  0x30   : > { %v12180_v13 = vsel %vm8519_vm9, 4294967295, %v12179_v13  ;;  %v692_v21 = vsel %vm8519_vm9, %v8484_v61, 0.0  ;;  %v1205_v23 = vsel %vm8526_vm10, %v8524_v16, 0.0  ;;  %v1458_v27 = vsel %vm8519_vm9, %v8533_v20, 0.0 }
  0x31   : > { %12181 = vst [vmem:[#allocation20_spill] sm:$0xff] %v12180_v13  ;;  %v721_v28 = vpack.c.bf16 %v8498_v2, %v692_v21  ;;  %v1233_v29 = vpack.c.bf16 %v1205_v23, %v8539_v22  ;;  %v1487_v31 = vpack.c.bf16 %v8547_v26, %v1458_v27  ;;  %vm8562_vm11 = vcmp.ge.s32.totalorder %v534_v35, 1  ;;  %v745_v21 = vld [vmem:[%s8386_s25 + $0x58] sm:$0xff]  ;;  %v746_v23 = vld [vmem:[%s8386_s25 + $0x60] sm:$0xff] }
  0x32   : > { %v12185_v40 = vsel %vm8562_vm11, 4294967295, %v12184_v40  ;;  %vm8567_vm12 = vcmp.le.s32.totalorder %v535_v36, 14  ;;  %v1430_v27 = vld [vmem:[%s8386_s25 + $0x67] sm:$0xff]  ;;  %v8617_v32 = vpack.c.bf16 %v746_v23, %v745_v21  ;;  %v1433_v23 = vld [vmem:[%s8386_s25 + $0x7f] sm:$0xff] }
  0x33   : > { %12186 = vst [vmem:[#allocation21_spill] sm:$0xff] %v12185_v40  ;;  %v12188_v43 = vsel %vm8567_vm12, 4294967295, %v12187_v43  ;;  %v1207_v54 = vsel %vm8567_vm12, %v1079_v41, 0.0 }
  0x36   : > { %7366 = vmatmul.msk.bf16.gmra.mxu0 %vm12015_vm3, %v8447_v46 }
  0x37   : > { %7382 = vmatmul.msk.bf16.gmra.mxu1 %vm12015_vm3, %v719_v49  ;;  %7416 = vmatmul.msk.bf16.gmra.mxu3 %vm12015_vm3, %v1485_v51  ;;  %v8574_v49 = vld [vmem:[%s8386_s25 + $0x57] sm:$0xff]  ;;  %v1078_v51 = vld [vmem:[%s8386_s25 + $0x49] sm:$0xff] }
  0x38   : > { %7399 = vmatmul.msk.bf16.gmra.mxu2 %vm12015_vm3, %v1231_v50  ;;  %v694_v50 = vsel %vm8562_vm11, %v8533_v20, 0.0  ;;  %v1460_v60 = vsel %vm8562_vm11, %v8574_v49, 0.0  ;;  %v1234_v0 = vpack.c.bf16 %v1207_v54, %v1078_v51  ;;  %v538_v51 = vand.u32 15, %v506_v48  ;;  %v1085_v48 = vld [vmem:[%s8386_s25 + $0x81] sm:$0xff] }
  0x39   : > { %v722_v62 = vpack.c.bf16 %v8547_v26, %v694_v50  ;;  %v1488_v3 = vpack.c.bf16 %v8585_v59, %v1460_v60  ;;  %v507_v50 = vadd.s32 104, %v8370_v7  ;;  %v12194_v60 = vmov 0 }
  0x3a   : > { %vm8630_vm15 = vcmp.ge.s32.totalorder %v538_v51, 1  ;;  %v749_v51 = vld [vmem:[%s8386_s25 + $0x78] sm:$0xff] }
  0x3b   : > { %v539_v54 = vand.u32 15, %v507_v50  ;;  %v12195_v60 = vsel %vm8630_vm15, 4294967295, %v12194_v60  ;;  %v12203_v50 = vmov 0 }
  0x3c   : > { %12196 = vst [vmem:[#allocation23_spill] sm:$0xff] %v12195_v60 }
  0x3d   : > { %vm8635_vm0 = vcmp.le.s32.totalorder %v539_v54, 14  ;;  %v750_v54 = vld [vmem:[%s8386_s25 + $0x80] sm:$0xff] }
  0x46   : > { %7367 = vmatmul.msk.bf16.gmra.mxu0 %vm12015_vm3, %v8495_v1 }
  0x47   : > { %7383 = vmatmul.msk.bf16.gmra.mxu1 %vm12015_vm3, %v720_v4  ;;  %7417 = vmatmul.msk.bf16.gmra.mxu3 %vm12015_vm3, %v1486_v8  ;;  %v504_v4 = vadd.s32 80, %v8370_v7 }
  0x48   : > { %7400 = vmatmul.msk.bf16.gmra.mxu2 %vm12015_vm3, %v1232_v5  ;;  %v505_v5 = vadd.s32 88, %v8370_v7 }
  0x49   : > { %v536_v8 = vand.u32 15, %v504_v4  ;;  %v748_v4 = vld [vmem:[%s8386_s25 + $0x70] sm:$0xff] }
  0x4a   : > { %v537_v11 = vand.u32 15, %v505_v5  ;;  %v1432_v5 = vld [vmem:[%s8386_s25 + $0x77] sm:$0xff] }
  0x4b   : > { %vm8599_vm13 = vcmp.ge.s32.totalorder %v536_v8, 1  ;;  %v698_v8 = vsel %vm8630_vm15, %v1430_v27, 0.0 }
  0x4c   : > { %v12190_v12 = vsel %vm8599_vm13, 4294967295, %v12189_v12  ;;  %vm8604_vm14 = vcmp.le.s32.totalorder %v537_v11, 14  ;;  %v1462_v35 = vsel %vm8599_vm13, %v1430_v27, 0.0  ;;  %v1082_v11 = vld [vmem:[%s8386_s25 + $0x69] sm:$0xff]  ;;  %v509_v27 = vadd.s32 120, %v8370_v7 }
  0x4d   : > { %12191 = vst [vmem:[#allocation22_spill] sm:$0xff] %v12190_v12  ;;  %v1489_v45 = vpack.c.bf16 %v1431_v34, %v1462_v35 }
  0x56   : > { %7368 = vmatmul.msk.bf16.gmra.mxu0 %vm12015_vm3, %v8544_v24 }
  0x57   : > { %7384 = vmatmul.msk.bf16.gmra.mxu1 %vm12015_vm3, %v721_v28  ;;  %7418 = vmatmul.msk.bf16.gmra.mxu3 %vm12015_vm3, %v1487_v31  ;;  %v696_v28 = vsel %vm8599_vm13, %v8574_v49, 0.0  ;;  %v1209_v31 = vsel %vm8604_vm14, %v1081_v18, 0.0 }
  0x58   : > { %7401 = vmatmul.msk.bf16.gmra.mxu2 %vm12015_vm3, %v1233_v29  ;;  %v1080_v29 = vld [vmem:[%s8386_s25 + $0x59] sm:$0xff]  ;;  %v723_v36 = vpack.c.bf16 %v8585_v59, %v696_v28  ;;  %v1464_v28 = vsel %vm8630_vm15, %v1432_v5, 0.0 }
  0x59   : > { %v1235_v41 = vpack.c.bf16 %v1209_v31, %v1080_v29  ;;  %v724_v29 = vpack.c.bf16 %v1431_v34, %v698_v8  ;;  %v1490_v35 = vpack.c.bf16 %v1433_v23, %v1464_v28  ;;  %v12200_v34 = vmov 0 }
  0x66   : > { %7369 = vmatmul.msk.bf16.gmra.mxu0 %vm12015_vm3, %v8582_v55 }
  0x67   : > { %7385 = vmatmul.msk.bf16.gmra.mxu1 %vm12015_vm3, %v722_v62  ;;  %7419 = vmatmul.msk.bf16.gmra.mxu3 %vm12015_vm3, %v1488_v3  ;;  %v1083_v62 = vld [vmem:[%s8386_s25 + $0x71] sm:$0xff]  ;;  %v747_v3 = vld [vmem:[%s8386_s25 + $0x68] sm:$0xff] }
  0x68   : > { %7402 = vmatmul.msk.bf16.gmra.mxu2 %vm12015_vm3, %v1234_v0  ;;  %v12197_v0 = vmov 0  ;;  %v1211_v18 = vsel %vm8635_vm0, %v1083_v62, 0.0  ;;  %v773_v21 = vpack.c.bf16 %v748_v4, %v747_v3  ;;  %v1434_v62 = vld [vmem:[%s8386_s25 + $0x87] sm:$0xff]  ;;  %v1084_v4 = vld [vmem:[%s8386_s25 + $0x79] sm:$0xff] }
  0x69   : > { %v12198_v0 = vsel %vm8635_vm0, 4294967295, %v12197_v0  ;;  %v1236_v31 = vpack.c.bf16 %v1211_v18, %v1082_v11  ;;  %v774_v11 = vpack.c.bf16 %v750_v54, %v749_v51  ;;  %v1435_v18 = vld [vmem:[%s8386_s25 + $0x8f] sm:$0xff]  ;;  %v1436_v54 = vld [vmem:[%s8386_s25 + $0x97] sm:$0xff] }
  0x6a   : > { %12199 = vst [vmem:[#allocation24_spill] sm:$0xff] %v12198_v0  ;;  %v752_v51 = vld [vmem:[%s8386_s25 + $0x90] sm:$0xff] }
  0x76   : > { %7370 = vmatmul.msk.bf16.gmra.mxu0 %vm12015_vm3, %v8617_v32 }
  0x77   : > { %7386 = vmatmul.msk.bf16.gmra.mxu1 %vm12015_vm3, %v723_v36  ;;  %7420 = vmatmul.msk.bf16.gmra.mxu3 %vm12015_vm3, %v1489_v45  ;;  %v508_v36 = vadd.s32 112, %v8370_v7  ;;  %v541_v45 = vand.u32 15, %v509_v27 }
  0x78   : > { %7403 = vmatmul.msk.bf16.gmra.mxu2 %vm12015_vm3, %v1235_v41 }
  0x79   : > { %v540_v41 = vand.u32 15, %v508_v36  ;;  %vm8661_vm15 = vcmp.le.s32.totalorder %v541_v45, 14  ;;  %v12209_v45 = vmov 0 }
  0x7a   : > { %v12204_v50 = vsel %vm8661_vm15, 4294967295, %v12203_v50  ;;  %v1213_v8 = vsel %vm8661_vm15, %v1085_v48, 0.0  ;;  %v751_v48 = vld [vmem:[%s8386_s25 + $0x88] sm:$0xff] }
  0x7b   : > { %vm8656_vm1 = vcmp.ge.s32.totalorder %v540_v41, 1  ;;  %12205 = vst [vmem:[#allocation26_spill] sm:$0xff] %v12204_v50  ;;  %v1087_v41 = vld [vmem:[%s8386_s25 + $0x91] sm:$0xff] }
  0x7c   : > { %v12201_v34 = vsel %vm8656_vm1, 4294967295, %v12200_v34  ;;  %v700_v3 = vsel %vm8656_vm1, %v1432_v5, 0.0  ;;  %v511_v5 = vadd.s32 136, %v8370_v7 }
  0x7d   : > { %12202 = vst [vmem:[#allocation25_spill] sm:$0xff] %v12201_v34  ;;  %v725_v28 = vpack.c.bf16 %v1433_v23, %v700_v3  ;;  %v12206_v23 = vmov 0 }
  0x7e   : > { %v543_v27 = vand.u32 15, %v511_v5 }
  0x80   : > { %vm8687_vm15 = vcmp.le.s32.totalorder %v543_v27, 14 }
  0x81   : > { %v12210_v45 = vsel %vm8687_vm15, 4294967295, %v12209_v45 }
  0x82   : > { %12211 = vst [vmem:[#allocation28_spill] sm:$0xff] %v12210_v45 }
  0x86   : > { %7371 = vmatmul.msk.bf16.gmra.mxu0 %vm12015_vm3, %v773_v21  ;;  %v1466_v21 = vsel %vm8656_vm1, %v1434_v62, 0.0 }
  0x87   : > { %7387 = vmatmul.msk.bf16.gmra.mxu1 %vm12015_vm3, %v724_v29  ;;  %7421 = vmatmul.msk.bf16.gmra.mxu3 %vm12015_vm3, %v1490_v35  ;;  %v1237_v29 = vpack.c.bf16 %v1213_v8, %v1084_v4  ;;  %v510_v35 = vadd.s32 128, %v8370_v7  ;;  %v1086_v4 = vld [vmem:[%s8386_s25 + $0x89] sm:$0xff]  ;;  %v1215_v8 = vsel %vm8687_vm15, %v1087_v41, 0.0 }
  0x88   : > { %7404 = vmatmul.msk.bf16.gmra.mxu2 %vm12015_vm3, %v1236_v31  ;;  %v1491_v31 = vpack.c.bf16 %v1435_v18, %v1466_v21  ;;  %v1437_v21 = vld [vmem:[%s8386_s25 + $0x9f] sm:$0xff]  ;;  %v1238_v5 = vpack.c.bf16 %v1215_v8, %v1086_v4 }
  0x89   : > { %v542_v36 = vand.u32 15, %v510_v35 }
  0x8b   : > { %vm8682_vm1 = vcmp.ge.s32.totalorder %v542_v36, 1 }
  0x8c   : > { %v12207_v23 = vsel %vm8682_vm1, 4294967295, %v12206_v23  ;;  %v702_v3 = vsel %vm8682_vm1, %v1434_v62, 0.0  ;;  %v513_v62 = vadd.s32 152, %v8370_v7 }
  0x8d   : > { %12208 = vst [vmem:[#allocation27_spill] sm:$0xff] %v12207_v23 }
  0x8e   : > { %v545_v41 = vand.u32 15, %v513_v62  ;;  %v1088_v62 = vld [vmem:[%s8386_s25 + $0x99] sm:$0xff] }
  0x90   : > { %vm8715_vm15 = vcmp.le.s32.totalorder %v545_v41, 14 }
  0x96   : > { %7372 = vmatmul.msk.bf16.gmra.mxu0 %vm12015_vm3, %v774_v11  ;;  %v775_v11 = vpack.c.bf16 %v752_v51, %v751_v48 }
  0x97   : > { %7388 = vmatmul.msk.bf16.gmra.mxu1 %vm12015_vm3, %v725_v28  ;;  %7422 = vmatmul.msk.bf16.gmra.mxu3 %vm12015_vm3, %v1491_v31  ;;  %v1468_v28 = vsel %vm8682_vm1, %v1436_v54, 0.0  ;;  %v726_v31 = vpack.c.bf16 %v1435_v18, %v702_v3  ;;  %v544_v18 = vand.u32 15, %v512_v10  ;;  %v753_v10 = vld [vmem:[%s8386_s25 + $0x98] sm:$0xff] }
  0x98   : > { %7405 = vmatmul.msk.bf16.gmra.mxu2 %vm12015_vm3, %v1237_v29  ;;  %v1492_v27 = vpack.c.bf16 %v1437_v21, %v1468_v28  ;;  %v12212_v28 = vmov 0 }
  0x99   : > { %vm8708_vm1 = vcmp.ge.s32.totalorder %v544_v18, 1 }
  0x9a   : > { %v12213_v28 = vsel %vm8708_vm1, 4294967295, %v12212_v28 }
  0x9b   : > { %12214 = vst [vmem:[#allocation29_spill] sm:$0xff] %v12213_v28 }
  0xa3   : > { %v850_v29 = vpop.f32.mrf.mxu0 }
  0xa4   : > { %v990_v35 = vpop.f32.mrf.mxu1 }
  0xa5   : > { %v991_v36 = vadd.f32 %v990_v35, %v850_v29  ;;  %v12216_v35 = vmov 0 }
  0xa6   : > { %7373 = vmatmul.msk.bf16.gmra.mxu0 %vm12015_vm3, %v775_v11  ;;  %v12217_v35 = vsel %vm8715_vm15, 4294967295, %v12216_v35 }
  0xa7   : > { %7389 = vmatmul.msk.bf16.gmra.mxu1 %vm12015_vm3, %v726_v31  ;;  %7423 = vmatmul.msk.bf16.gmra.mxu3 %vm12015_vm3, %v1492_v27  ;;  %v1089_v31 = vld [vmem:[%s8386_s25 + $0xa1] sm:$0xff]  ;;  %12218 = vst [vmem:[#allocation31_spill] sm:$0xff] %v12217_v35 }
  0xa8   : > { %7406 = vmatmul.msk.bf16.gmra.mxu2 %vm12015_vm3, %v1238_v5  ;;  %v754_v5 = vld [vmem:[%s8386_s25 + $0xa0] sm:$0xff]  ;;  %v1217_v18 = vsel %vm8715_vm15, %v1089_v31, 0.0  ;;  %v515_v31 = vadd.s32 168, %v8370_v7 }
  0xa9   : > { %v1438_v27 = vld [vmem:[%s8386_s25 + $0xa7] sm:$0xff]  ;;  %v1239_v33 = vpack.c.bf16 %v1217_v18, %v1088_v62  ;;  %v12220_v62 = vmov 0 }
  0xaa   : > { %v1562_v8 = vpop.f32.mrf.mxu3 }
  0xab   : > { %v852_v48 = vpop.f32.mrf.mxu0  ;;  %v1308_v51 = vpop.f32.mrf.mxu2 }
  0xac   : > { %v1388_v3 = vadd.f32 %v1308_v51, %v991_v36  ;;  %v992_v4 = vpop.f32.mrf.mxu1  ;;  %v704_v36 = vsel %vm8708_vm1, %v1436_v54, 0.0  ;;  %v1439_v51 = vld [vmem:[%s8386_s25 + $0xaf] sm:$0xff]  ;;  %v514_v54 = vadd.s32 160, %v8370_v7 }
  0xad   : > { %v993_v11 = vadd.f32 %v992_v4, %v852_v48  ;;  %v776_v48 = vpack.c.bf16 %v754_v5, %v753_v10 }
  0xae   : > { %v8712_v29 = vadd.f32 %v1562_v8, %v1388_v3  ;;  %v1470_v3 = vsel %vm8708_vm1, %v1438_v27, 0.0  ;;  %v727_v8 = vpack.c.bf16 %v1437_v21, %v704_v36  ;;  %v547_v21 = vand.u32 15, %v515_v31  ;;  %v1441_v31 = vld [vmem:[%s8386_s25 + $0xbf] sm:$0xff] }
  0xaf   : > { %v1493_v14 = vpack.c.bf16 %v1439_v51, %v1470_v3  ;;  %v756_v3 = vld [vmem:[%s8386_s25 + $0xb0] sm:$0xff] }
  0xb0   : > { %12215 = vst [vmem:[#allocation30_spill] sm:$0xff] %v8712_v29  ;;  %vm8745_vm15 = vcmp.le.s32.totalorder %v547_v21, 14 }
  0xb2   : > { %v1564_v52 = vpop.f32.mrf.mxu3 }
  0xb3   : > { %v855_v4 = vpop.f32.mrf.mxu0  ;;  %v1310_v41 = vpop.f32.mrf.mxu2 }
  0xb4   : > { %v1389_v9 = vadd.f32 %v1310_v41, %v993_v11  ;;  %v995_v53 = vpop.f32.mrf.mxu1  ;;  %v1090_v41 = vld [vmem:[%s8386_s25 + $0xa9] sm:$0xff] }
  0xb5   : > { %v996_v30 = vadd.f32 %v995_v53, %v855_v4  ;;  %v546_v53 = vand.u32 15, %v514_v54  ;;  %v1440_v4 = vld [vmem:[%s8386_s25 + $0xb7] sm:$0xff] }
  0xb6   : > { %v8731_v29 = vadd.f32 %v1564_v52, %v1389_v9  ;;  %7374 = vmatmul.msk.bf16.gmra.mxu0 %vm12015_vm3, %v776_v48  ;;  %v12224_v48 = vmov 0 }
  0xb7   : > { %7390 = vmatmul.msk.bf16.gmra.mxu1 %vm12015_vm3, %v727_v8  ;;  %7424 = vmatmul.msk.bf16.gmra.mxu3 %vm12015_vm3, %v1493_v14  ;;  %vm8738_vm1 = vcmp.ge.s32.totalorder %v546_v53, 1  ;;  %v12225_v48 = vsel %vm8745_vm15, 4294967295, %v12224_v48  ;;  %v755_v14 = vld [vmem:[%s8386_s25 + $0xa8] sm:$0xff] }
  0xb8   : > { %12219 = vst [vmem:[#allocation32_spill] sm:$0xff] %v8731_v29  ;;  %7407 = vmatmul.msk.bf16.gmra.mxu2 %vm12015_vm3, %v1239_v33  ;;  %v12221_v62 = vsel %vm8738_vm1, 4294967295, %v12220_v62  ;;  %v1091_v33 = vld [vmem:[%s8386_s25 + $0xb1] sm:$0xff]  ;;  %v777_v54 = vpack.c.bf16 %v756_v3, %v755_v14  ;;  %v1472_v53 = vsel %vm8738_vm1, %v1440_v4, 0.0 }
  0xb9   : > { %12222 = vst [vmem:[#allocation33_spill] sm:$0xff] %v12221_v62  ;;  %v1219_v8 = vsel %vm8745_vm15, %v1091_v33, 0.0  ;;  %v1494_v35 = vpack.c.bf16 %v1441_v31, %v1472_v53  ;;  %v517_v33 = vadd.s32 184, %v8370_v7  ;;  %v12228_v53 = vmov 0 }
  0xba   : > { %v1567_v5 = vpop.f32.mrf.mxu3  ;;  %12226 = vst [vmem:[#allocation35_spill] sm:$0xff] %v12225_v48 }
  0xbb   : > { %v857_v11 = vpop.f32.mrf.mxu0  ;;  %v1313_v52 = vpop.f32.mrf.mxu2 }
  0xbc   : > { %v1390_v9 = vadd.f32 %v1313_v52, %v996_v30  ;;  %v997_v10 = vpop.f32.mrf.mxu1  ;;  %v706_v30 = vsel %vm8738_vm1, %v1438_v27, 0.0  ;;  %v516_v27 = vadd.s32 176, %v8370_v7 }
  0xbd   : > { %v998_v36 = vadd.f32 %v997_v10, %v857_v11  ;;  %v728_v52 = vpack.c.bf16 %v1439_v51, %v706_v30 }
  0xbe   : > { %v8742_v18 = vadd.f32 %v1567_v5, %v1390_v9  ;;  %v548_v51 = vand.u32 15, %v516_v27 }
  0xc0   : > { %12223 = vst [vmem:[#allocation34_spill] sm:$0xff] %v8742_v18  ;;  %v1240_v18 = vpack.c.bf16 %v1219_v8, %v1090_v41  ;;  %vm8768_vm1 = vcmp.ge.s32.totalorder %v548_v51, 1 }
  0xc1   : > { %v12229_v53 = vsel %vm8768_vm1, 4294967295, %v12228_v53 }
  0xc2   : > { %v1569_v5 = vpop.f32.mrf.mxu3  ;;  %12230 = vst [vmem:[#allocation37_spill] sm:$0xff] %v12229_v53 }
  0xc3   : > { %v860_v11 = vpop.f32.mrf.mxu0  ;;  %v1315_v21 = vpop.f32.mrf.mxu2 }
  0xc4   : > { %v1391_v9 = vadd.f32 %v1315_v21, %v998_v36  ;;  %v1000_v10 = vpop.f32.mrf.mxu1  ;;  %v549_v36 = vand.u32 15, %v517_v33  ;;  %v12232_v21 = vmov 0  ;;  %v1443_v33 = vld [vmem:[%s8386_s25 + $0xcf] sm:$0xff] }
  0xc5   : > { %v1001_v28 = vadd.f32 %v1000_v10, %v860_v11  ;;  %v1092_v10 = vld [vmem:[%s8386_s25 + $0xb9] sm:$0xff] }
  0xc6   : > { %v8761_v29 = vadd.f32 %v1569_v5, %v1391_v9  ;;  %7375 = vmatmul.msk.bf16.gmra.mxu0 %vm12015_vm3, %v777_v54  ;;  %vm8775_vm15 = vcmp.le.s32.totalorder %v549_v36, 14  ;;  %v1442_v9 = vld [vmem:[%s8386_s25 + $0xc7] sm:$0xff] }
  0xc7   : > { %7391 = vmatmul.msk.bf16.gmra.mxu1 %vm12015_vm3, %v728_v52  ;;  %7425 = vmatmul.msk.bf16.gmra.mxu3 %vm12015_vm3, %v1494_v35  ;;  %v12233_v21 = vsel %vm8775_vm15, 4294967295, %v12232_v21  ;;  %v757_v35 = vld [vmem:[%s8386_s25 + $0xb8] sm:$0xff]  ;;  %v758_v52 = vld [vmem:[%s8386_s25 + $0xc0] sm:$0xff]  ;;  %v1474_v51 = vsel %vm8768_vm1, %v1442_v9, 0.0 }
  0xc8   : > { %12227 = vst [vmem:[#allocation36_spill] sm:$0xff] %v8761_v29  ;;  %7408 = vmatmul.msk.bf16.gmra.mxu2 %vm12015_vm3, %v1240_v18  ;;  %v1093_v18 = vld [vmem:[%s8386_s25 + $0xc1] sm:$0xff]  ;;  %v8787_v27 = vpack.c.bf16 %v758_v52, %v757_v35  ;;  %v1495_v48 = vpack.c.bf16 %v1443_v33, %v1474_v51 }
  0xc9   : > { %12234 = vst [vmem:[#allocation39_spill] sm:$0xff] %v12233_v21  ;;  %v1221_v5 = vsel %vm8775_vm15, %v1093_v18, 0.0  ;;  %v519_v18 = vadd.s32 200, %v8370_v7 }
  0xca   : > { %v1572_v8 = vpop.f32.mrf.mxu3  ;;  %12235 = vst [vmem:[#allocation40_spill] sm:$0xff] %v8787_v27 }
  0xcb   : > { %v862_v14 = vpop.f32.mrf.mxu0  ;;  %v1318_v3 = vpop.f32.mrf.mxu2 }
  0xcc   : > { %v1392_v30 = vadd.f32 %v1318_v3, %v1001_v28  ;;  %v1002_v41 = vpop.f32.mrf.mxu1  ;;  %v708_v28 = vsel %vm8768_vm1, %v1440_v4, 0.0  ;;  %v518_v4 = vadd.s32 192, %v8370_v7 }
  0xcd   : > { %v1003_v54 = vadd.f32 %v1002_v41, %v862_v14  ;;  %v729_v3 = vpack.c.bf16 %v1441_v31, %v708_v28 }
  0xce   : > { %v8772_v11 = vadd.f32 %v1572_v8, %v1392_v30  ;;  %v550_v31 = vand.u32 15, %v518_v4 }
  0xd0   : > { %12231 = vst [vmem:[#allocation38_spill] sm:$0xff] %v8772_v11  ;;  %v1241_v11 = vpack.c.bf16 %v1221_v5, %v1092_v10  ;;  %vm8801_vm1 = vcmp.ge.s32.totalorder %v550_v31, 1  ;;  %v1445_v31 = vld [vmem:[%s8386_s25 + $0xdf] sm:$0xff] }
  0xd2   : > { %v1574_v8 = vpop.f32.mrf.mxu3 }
  0xd3   : > { %v865_v36 = vpop.f32.mrf.mxu0  ;;  %v1320_v14 = vpop.f32.mrf.mxu2 }
  0xd4   : > { %v1393_v30 = vadd.f32 %v1320_v14, %v1003_v54  ;;  %v1005_v41 = vpop.f32.mrf.mxu1  ;;  %v551_v54 = vand.u32 15, %v519_v18 }
  0xd5   : > { %v1006_v62 = vadd.f32 %v1005_v41, %v865_v36  ;;  %v12237_v36 = vmov 0  ;;  %v1444_v41 = vld [vmem:[%s8386_s25 + $0xd7] sm:$0xff] }
  0xd6   : > { %v8793_v29 = vadd.f32 %v1574_v8, %v1393_v30  ;;  %7376 = vmatmul.msk.bf16.gmra.mxu0 %vm12015_vm3, %v8787_v27  ;;  %v12238_v36 = vsel %vm8801_vm1, 4294967295, %v12237_v36  ;;  %vm8808_vm15 = vcmp.le.s32.totalorder %v551_v54, 14  ;;  %v760_v30 = vld [vmem:[%s8386_s25 + $0xd0] sm:$0xff] }
  0xd7   : > { %7392 = vmatmul.msk.bf16.gmra.mxu1 %vm12015_vm3, %v729_v3  ;;  %7426 = vmatmul.msk.bf16.gmra.mxu3 %vm12015_vm3, %v1495_v48  ;;  %12239 = vst [vmem:[#allocation42_spill] sm:$0xff] %v12238_v36  ;;  %v12241_v3 = vmov 0  ;;  %v759_v48 = vld [vmem:[%s8386_s25 + $0xc8] sm:$0xff] }
  0xd8   : > { %12236 = vst [vmem:[#allocation41_spill] sm:$0xff] %v8793_v29  ;;  %7409 = vmatmul.msk.bf16.gmra.mxu2 %vm12015_vm3, %v1241_v11  ;;  %v1095_v11 = vld [vmem:[%s8386_s25 + $0xd1] sm:$0xff]  ;;  %v12242_v3 = vsel %vm8808_vm15, 4294967295, %v12241_v3  ;;  %v1094_v8 = vld [vmem:[%s8386_s25 + $0xc9] sm:$0xff]  ;;  %v8820_v18 = vpack.c.bf16 %v760_v30, %v759_v48 }
  0xd9   : > { %12243 = vst [vmem:[#allocation44_spill] sm:$0xff] %v12242_v3  ;;  %v1223_v4 = vsel %vm8808_vm15, %v1095_v11, 0.0  ;;  %v521_v11 = vadd.s32 216, %v8370_v7  ;;  %v7482_v3 = vld [vmem:[%s12155_s1 + $0xe] sm:$0x3] }
  0xda   : > { %v1577_v5 = vpop.f32.mrf.mxu3  ;;  %v1242_v53 = vpack.c.bf16 %v1223_v4, %v1094_v8 }
  0xdb   : > { %v867_v35 = vpop.f32.mrf.mxu0  ;;  %v1323_v52 = vpop.f32.mrf.mxu2  ;;  %v553_v48 = vand.u32 15, %v521_v11  ;;  %v8859_v11 = vld [vmem:[%s8386_s25 + $0xd9] sm:$0xff] }
  0xdc   : > { %v1394_v28 = vadd.f32 %v1323_v52, %v1006_v62  ;;  %v1007_v10 = vpop.f32.mrf.mxu1  ;;  %v710_v62 = vsel %vm8801_vm1, %v1442_v9, 0.0  ;;  %v520_v9 = vadd.s32 208, %v8370_v7  ;;  %12254 = vst [vmem:[#allocation51_spill] sm:$0xff] %v8859_v11 }
  0xdd   : > { %v1008_v51 = vadd.f32 %v1007_v10, %v867_v35  ;;  %v1476_v35 = vsel %vm8801_vm1, %v1444_v41, 0.0 }
  0xde   : > { %v8805_v14 = vadd.f32 %v1577_v5, %v1394_v28  ;;  %v730_v28 = vpack.c.bf16 %v1443_v33, %v710_v62  ;;  %v1496_v29 = vpack.c.bf16 %v1445_v31, %v1476_v35  ;;  %v7431_v33 = vld [vmem:[%s12155_s1 + $0x8] sm:$0x3] }
  0xe0   : > { %12240 = vst [vmem:[#allocation43_spill] sm:$0xff] %v8805_v14 }
  0xe2   : > { %v1579_v14 = vpop.f32.mrf.mxu3 }
  0xe3   : > { %v870_v54 = vpop.f32.mrf.mxu0  ;;  %v1325_v52 = vpop.f32.mrf.mxu2 }
  0xe4   : > { %v1395_v10 = vadd.f32 %v1325_v52, %v1008_v51  ;;  %v1010_v5 = vpop.f32.mrf.mxu1  ;;  %v1773_v51 = vand.u32 %v7431_v33, %v8367_v6 }
  0xe5   : > { %v1011_v21 = vadd.f32 %v1010_v5, %v870_v54  ;;  %v762_v5 = vld [vmem:[%s8386_s25 + $0xe0] sm:$0xff] }
  0xe6   : > { %v8826_v27 = vadd.f32 %v1579_v14, %v1395_v10  ;;  %7377 = vmatmul.msk.bf16.gmra.mxu0 %vm12015_vm3, %v8820_v18  ;;  %v552_v14 = vand.u32 15, %v520_v9  ;;  %v761_v10 = vld [vmem:[%s8386_s25 + $0xd8] sm:$0xff]  ;;  %v8854_v9 = vld [vmem:[%s8386_s25 + $0xe7] sm:$0xff] }
  0xe7   : > { %7393 = vmatmul.msk.bf16.gmra.mxu1 %vm12015_vm3, %v730_v28  ;;  %7427 = vmatmul.msk.bf16.gmra.mxu3 %vm12015_vm3, %v1496_v29  ;;  %v8845_v28 = vld [vmem:[%s8386_s25 + $0xe1] sm:$0xff]  ;;  %v12250_v29 = vmov 0  ;;  %12253 = vst [vmem:[#allocation50_spill] sm:$0xff] %v8854_v9 }
  0xe8   : > { %12244 = vst [vmem:[#allocation45_spill] sm:$0xff] %v8826_v27  ;;  %7410 = vmatmul.msk.bf16.gmra.mxu2 %vm12015_vm3, %v1242_v53  ;;  %1782 = vmatpush.bf16.msrb.mxu0 %v1773_v51  ;;  %vm8838_vm1 = vcmp.ge.s32.totalorder %v552_v14, 1  ;;  %v12245_v53 = vmov 0  ;;  %vm8847_vm3 = vcmp.le.s32.totalorder %v553_v48, 14  ;;  %v8864_v51 = vpack.c.bf16 %v762_v5, %v761_v10  ;;  %v8867_v14 = vld [vmem:[%s8386_s25 + $0xef] sm:$0xff] }
  0xe9   : > { %v12246_v53 = vsel %vm8838_vm1, 4294967295, %v12245_v53  ;;  %12249 = vst [vmem:[#allocation48_spill] sm:$0xff] %v8845_v28  ;;  %v12251_v29 = vsel %vm8847_vm3, 4294967295, %v12250_v29  ;;  %v1225_v33 = vsel %vm8847_vm3, %v8845_v28, 0.0  ;;  %v1478_v48 = vsel %vm8838_vm1, %v8854_v9, 0.0 }
  0xea   : > { %v1582_v35 = vpop.f32.mrf.mxu3  ;;  %12247 = vst [vmem:[#allocation46_spill] sm:$0xff] %v12246_v53  ;;  %v522_v10 = vadd.s32 224, %v8370_v7  ;;  %vm12257_vm3 = vcmask 23552   ;;  %v523_v53 = vadd.s32 232, %v8370_v7 }
  0xeb   : > { %v872_v30 = vpop.f32.mrf.mxu0  ;;  %v1328_v62 = vpop.f32.mrf.mxu2  ;;  %12252 = vst [vmem:[#allocation49_spill] sm:$0xff] %v12251_v29  ;;  %v1497_v29 = vpack.c.bf16 %v8867_v14, %v1478_v48 }
  0xec   : > { %v1396_v8 = vadd.f32 %v1328_v62, %v1011_v21  ;;  %v1012_v4 = vpop.f32.mrf.mxu1  ;;  %v712_v21 = vsel %vm8838_vm1, %v1444_v41, 0.0  ;;  %12255 = vst [vmem:[#allocation52_spill] sm:$0xff] %v8864_v51  ;;  %vm12258_vm1 = vmmov %vm12257_vm3 }
  0xed   : > { %v1013_v54 = vadd.f32 %v1012_v4, %v872_v30  ;;  %vm12259_vm15 = vmmov %vm12258_vm1 }
  0xee   : > { %v8842_v52 = vadd.f32 %v1582_v35, %v1396_v8  ;;  %v731_v8 = vpack.c.bf16 %v1445_v31, %v712_v21  ;;  %vm12260_vm0 = vmmov %vm12258_vm1  ;;  %v554_v31 = vand.u32 15, %v522_v10  ;;  %v8899_v10 = vld [vmem:[%s8386_s25 + $0xf7] sm:$0xff] }
  0xf0   : > { %12248 = vst [vmem:[#allocation47_spill] sm:$0xff] %v8842_v52  ;;  %v1243_v52 = vpack.c.bf16 %v1225_v33, %v8859_v11 }
  0xf2   : > { %v1584_v41 = vpop.f32.mrf.mxu3 }
  0xf3   : > { %v875_v30 = vpop.f32.mrf.mxu0  ;;  %v1330_v62 = vpop.f32.mrf.mxu2 }
  0xf4   : > { %v1397_v4 = vadd.f32 %v1330_v62, %v1013_v54  ;;  %v1015_v35 = vpop.f32.mrf.mxu1  ;;  %v555_v54 = vand.u32 15, %v523_v53  ;;  %v763_v53 = vld [vmem:[%s8386_s25 + $0xe8] sm:$0xff] }
  0xf5   : > { %v1016_v36 = vadd.f32 %v1015_v35, %v875_v30  ;;  %v12261_v35 = vmov 0 }
  0xf6   : > { %v8875_v5 = vadd.f32 %v1584_v41, %v1397_v4  ;;  %7378 = vmatmul.msk.bf16.gmra.mxu0 %vm12257_vm3, %v8864_v51  ;;  %vm8883_vm3 = vcmp.ge.s32.totalorder %v554_v31, 1  ;;  %v764_v41 = vld [vmem:[%s8386_s25 + $0xf0] sm:$0xff]  ;;  %v524_v51 = vadd.s32 240, %v8370_v7 }
  0xf7   : > { %7394 = vmatmul.msk.bf16.gmra.mxu1 %vm12258_vm1, %v731_v8  ;;  %7428 = vmatmul.msk.bf16.gmra.mxu3 %vm12260_vm0, %v1497_v29  ;;  %v12262_v35 = vsel %vm8883_vm3, 4294967295, %v12261_v35  ;;  %v12266_v29 = vmov 0  ;;  %v8905_v31 = vld [vmem:[%s8386_s25 + $0xe9] sm:$0xff]  ;;  %vm12271_vm1 = vmmov %vm12260_vm0 }
  0xf8   : > { %12256 = vst [vmem:[#allocation53_spill] sm:$0xff] %v8875_v5  ;;  %7411 = vmatmul.msk.bf16.gmra.mxu2 %vm12259_vm15, %v1243_v52  ;;  %v8890_v52 = vld [vmem:[%s8386_s25 + $0xf1] sm:$0xff]  ;;  %vm8892_vm15 = vcmp.le.s32.totalorder %v555_v54, 14  ;;  %v8913_v54 = vld [vmem:[%s8386_s25 + $0xff] sm:$0xff] }
  0xf9   : > { %12263 = vst [vmem:[#allocation54_spill] sm:$0xff] %v12262_v35  ;;  %v12267_v29 = vsel %vm8892_vm15, 4294967295, %v12266_v29 }
  0xfa   : > { %v1587_v62 = vpop.f32.mrf.mxu3  ;;  %12265 = vst [vmem:[#allocation56_spill] sm:$0xff] %v8890_v52 }
  0xfb   : > { %v877_v21 = vpop.f32.mrf.mxu0  ;;  %v1333_v33 = vpop.f32.mrf.mxu2  ;;  %12268 = vst [vmem:[#allocation57_spill] sm:$0xff] %v12267_v29 }
  0xfc   : > { %v1398_v48 = vadd.f32 %v1333_v33, %v1016_v36  ;;  %v1017_v30 = vpop.f32.mrf.mxu1  ;;  %v714_v36 = vsel %vm8883_vm3, %v8854_v9, 0.0  ;;  %12269 = vst [vmem:[#allocation58_spill] sm:$0xff] %v8905_v31  ;;  %v8910_v33 = vpack.c.bf16 %v764_v41, %v763_v53 }
  0xfd   : > { %v1018_v4 = vadd.f32 %v1017_v30, %v877_v21  ;;  %v1227_v21 = vsel %vm8892_vm15, %v8890_v52, 0.0  ;;  %v7448_v30 = vld [vmem:[%s12155_s1 + $0xa] sm:$0x3]  ;;  %v732_v29 = vpack.c.bf16 %v8867_v14, %v714_v36  ;;  %v2503_v36 = vand.u32 %v7482_v3, %v8367_v6  ;;  %vm12273_vm15 = vmmov %vm12260_vm0 }
  0xfe   : > { %v8887_v8 = vadd.f32 %v1587_v62, %v1398_v48  ;;  %v1480_v48 = vsel %vm8883_vm3, %v8899_v10, 0.0  ;;  %v7465_v62 = vld [vmem:[%s12155_s1 + $0xc] sm:$0x3]  ;;  %v2027_v53 = vand.u32 %v7448_v30, %v8367_v6  ;;  %v1244_v9 = vpack.c.bf16 %v1227_v21, %v8905_v31  ;;  %vm12272_vm3 = vmmov %vm12260_vm0 }
  0xff   : > { %v2281_v41 = vand.u32 %v7465_v62, %v8367_v6  ;;  %v1498_v27 = vpack.c.bf16 %v8913_v54, %v1480_v48  ;;  %2512 = vmatpush.bf16.msrb.mxu3 %v2503_v36  ;;  %v8964_v36 = vld [vmem:[%s8386_s25 + $0xf9] sm:$0xff] }
 0x100   : > { %12264 = vst [vmem:[#allocation55_spill] sm:$0xff] %v8887_v8  ;;  %2036 = vmatpush.bf16.msrb.mxu1 %v2027_v53  ;;  %v766_v53 = vld [vmem:[%s8386_s25 + $0x100] sm:$0xff] }
 0x101   : > { %2290 = vmatpush.bf16.msrb.mxu2 %v2281_v41  ;;  %v8958_v41 = vld [vmem:[%s8386_s25 + $0x107] sm:$0xff] }
 0x102   : > { %v1589_v35 = vpop.f32.mrf.mxu3 }
 0x103   : > { %v880_v8 = vpop.f32.mrf.mxu0  ;;  %v1335_v5 = vpop.f32.mrf.mxu2 }
 0x104   : > { %v1399_v52 = vadd.f32 %v1335_v5, %v1018_v4  ;;  %v1020_v11 = vpop.f32.mrf.mxu1  ;;  %v525_v5 = vadd.s32 248, %v8370_v7 }
 0x105   : > { %v1021_v28 = vadd.f32 %v1020_v11, %v880_v8  ;;  %v556_v11 = vand.u32 15, %v524_v51  ;;  %v765_v51 = vld [vmem:[%s8386_s25 + $0xf8] sm:$0xff] }
 0x106   : > { %v8934_v30 = vadd.f32 %v1589_v35, %v1399_v52  ;;  %7379 = vmatmul.msk.bf16.gmra.mxu0 %vm12260_vm0, %v8910_v33  ;;  %v557_v3 = vand.u32 15, %v525_v5 }
 0x107   : > { %7395 = vmatmul.msk.bf16.gmra.mxu1 %vm12271_vm1, %v732_v29  ;;  %7429 = vmatmul.msk.bf16.gmra.mxu3 %vm12273_vm15, %v1498_v27  ;;  %vm8942_vm0 = vcmp.ge.s32.totalorder %v556_v11, 1  ;;  %v12274_v29 = vmov 0  ;;  %v12278_v27 = vmov 0  ;;  %v8969_v11 = vpack.c.bf16 %v766_v53, %v765_v51  ;;  %vm12281_vm15 = vmmov %vm12271_vm1 }
 0x108   : > { %12270 = vst [vmem:[#allocation59_spill] sm:$0xff] %v8934_v30  ;;  %7412 = vmatmul.msk.bf16.gmra.mxu2 %vm12272_vm3, %v1244_v9  ;;  %v12275_v29 = vsel %vm8942_vm0, 4294967295, %v12274_v29  ;;  %v8949_v9 = vld [vmem:[%s8386_s25 + $0x101] sm:$0xff]  ;;  %vm8951_vm3 = vcmp.le.s32.totalorder %v557_v3, 14  ;;  %v8972_v3 = vld [vmem:[%s8386_s25 + $0x10f] sm:$0xff] }
 0x109   : > { %12276 = vst [vmem:[#allocation60_spill] sm:$0xff] %v12275_v29  ;;  %v12279_v27 = vsel %vm8951_vm3, 4294967295, %v12278_v27  ;;  %v1229_v5 = vsel %vm8951_vm3, %v8949_v9, 0.0 }
 0x10a   : > { %v1592_v21 = vpop.f32.mrf.mxu3  ;;  %12280 = vst [vmem:[#allocation62_spill] sm:$0xff] %v12279_v27  ;;  %v1245_v30 = vpack.c.bf16 %v1229_v5, %v8964_v36 }
 0x10b   : > { %v882_v4 = vpop.f32.mrf.mxu0  ;;  %v1338_v35 = vpop.f32.mrf.mxu2 }
 0x10c   : > { %v1400_v8 = vadd.f32 %v1338_v35, %v1021_v28  ;;  %v1022_v52 = vpop.f32.mrf.mxu1  ;;  %v716_v28 = vsel %vm8942_vm0, %v8899_v10, 0.0 }
 0x10d   : > { %v1023_v48 = vadd.f32 %v1022_v52, %v882_v4  ;;  %v1482_v4 = vsel %vm8942_vm0, %v8958_v41, 0.0  ;;  %v733_v52 = vpack.c.bf16 %v8913_v54, %v716_v28  ;;  %vm12282_vm0 = vmmov %vm12271_vm1 }
 0x10e   : > { %v8946_v62 = vadd.f32 %v1592_v21, %v1400_v8  ;;  %v1499_v27 = vpack.c.bf16 %v8972_v3, %v1482_v4  ;;  %vm12283_vm3 = vmmov %vm12282_vm0  ;;  %v2182_v4 = vsel %vm8388_vm2, %v8437_v42, 0.0 }
 0x110   : > { %12277 = vst [vmem:[#allocation61_spill] sm:$0xff] %v8946_v62 }
 0x112   : > { %v1594_v62 = vpop.f32.mrf.mxu3 }
 0x113   : > { %v885_v35 = vpop.f32.mrf.mxu0  ;;  %v1340_v8 = vpop.f32.mrf.mxu2 }
 0x114   : > { %v1401_v21 = vadd.f32 %v1340_v8, %v1023_v48  ;;  %v1025_v7 = vpop.f32.mrf.mxu1 }
 0x115   : > { %v1026_v31 = vadd.f32 %v1025_v7, %v885_v35 }
 0x116   : > { %v8980_v51 = vadd.f32 %v1594_v62, %v1401_v21  ;;  %7380 = vmatmul.msk.bf16.gmra.mxu0 %vm12281_vm15, %v8969_v11  ;;  %v1929_v62 = vsel %vm8401_vm4, %v8428_v38, 0.0  ;;  %vm12285_vm15 = vmmov %vm12282_vm0 }
 0x117   : > { %7396 = vmatmul.msk.bf16.gmra.mxu1 %vm12271_vm1, %v733_v52  ;;  %7430 = vmatmul.msk.bf16.gmra.mxu3 %vm12283_vm3, %v1499_v27  ;;  %v1960_v27 = vpack.c.bf16 %v1929_v62, %v8442_v44  ;;  %vm12284_vm3 = vmmov %vm12282_vm0  ;;  %v1676_v62 = vld [vmem:[%s8386_s25 + $0x28] sm:$0xff] }
 0x118   : > { %7413 = vmatmul.msk.bf16.gmra.mxu2 %vm12282_vm0, %v1245_v30  ;;  %vm12286_vm1 = vmmov %vm12282_vm0 }
 0x11a   : > { %v1597_v29 = vpop.f32.mrf.mxu3 }
 0x11b   : > { %v887_v53 = vpop.f32.mrf.mxu0  ;;  %v1343_v48 = vpop.f32.mrf.mxu2 }
 0x11c   : > { %v1402_v28 = vadd.f32 %v1343_v48, %v1026_v31  ;;  %v1027_v8 = vpop.f32.mrf.mxu1 }
 0x11d   : > { %v1028_v5 = vadd.f32 %v1027_v8, %v887_v53 }
 0x11e   : > { %v8987_v7 = vadd.f32 %v1597_v29, %v1402_v28  ;;  %v2214_v29 = vpack.c.bf16 %v8450_v47, %v2182_v4  ;;  %v1677_v4 = vld [vmem:[%s8386_s25 + $0x30] sm:$0xff] }
 0x122   : > { %v1599_v31 = vpop.f32.mrf.mxu3 }
 0x123   : > { %v890_v35 = vpop.f32.mrf.mxu0  ;;  %v1345_v30 = vpop.f32.mrf.mxu2 }
 0x124   : > { %v1403_v52 = vadd.f32 %v1345_v30, %v1028_v5  ;;  %v1030_v21 = vpop.f32.mrf.mxu1  ;;  %v1707_v30 = vpack.c.bf16 %v1677_v4, %v1676_v62  ;;  %v1679_v62 = vld [vmem:[%s8386_s25 + $0x40] sm:$0xff]  ;;  %v1933_v4 = vsel %vm8477_vm8, %v8524_v16, 0.0 }
 0x125   : > { %v1031_v53 = vadd.f32 %v1030_v21, %v890_v35  ;;  %v2184_v35 = vsel %vm8423_vm5, %v8484_v61, 0.0 }
 0x126   : > { %v8997_v48 = vadd.f32 %v1599_v31, %v1403_v52  ;;  %7432 = vmatmul.msk.bf16.vlgmr.msrb.gmra.mxu0 %vm12282_vm0, %v8447_v46  ;;  %v1931_v46 = vsel %vm8430_vm6, %v8475_v57, 0.0 }
 0x127   : > { %7449 = vmatmul.msk.bf16.vlgmr.msrb.gmra.mxu1 %vm12284_vm3, %v1960_v27  ;;  %7483 = vmatmul.msk.bf16.vlgmr.msrb.gmra.mxu3 %vm12286_vm1, %v8495_v1  ;;  %v1961_v52 = vpack.c.bf16 %v1931_v46, %v8490_v63  ;;  %vm12287_vm3 = vmmov %vm12282_vm0  ;;  %v2186_v46 = vsel %vm8470_vm7, %v8533_v20, 0.0 }
 0x128   : > { %7466 = vmatmul.msk.bf16.vlgmr.msrb.gmra.mxu2 %vm12285_vm15, %v2214_v29  ;;  %vm12288_vm15 = vmmov %vm12282_vm0 }
 0x129   : > { %vm12289_vm1 = vmmov %vm12282_vm0 }
 0x12a   : > { %v1602_v8 = vpop.f32.mrf.mxu3 }
 0x12b   : > { %v892_v38 = vpop.f32.mrf.mxu0  ;;  %v1348_v42 = vpop.f32.mrf.mxu2 }
 0x12c   : > { %v1404_v44 = vadd.f32 %v1348_v42, %v1031_v53  ;;  %v1032_v28 = vpop.f32.mrf.mxu1  ;;  %v2215_v53 = vpack.c.bf16 %v8498_v2, %v2184_v35  ;;  %v1678_v2 = vld [vmem:[%s8386_s25 + $0x38] sm:$0xff] }
 0x12d   : > { %v1033_v5 = vadd.f32 %v1032_v28, %v892_v38  ;;  %v1708_v35 = vpack.c.bf16 %v1679_v62, %v1678_v2 }
 0x12e   : > { %v9005_v47 = vadd.f32 %v1602_v8, %v1404_v44 }
 0x132   : > { %v1604_v29 = vpop.f32.mrf.mxu3 }
 0x133   : > { %v895_v1 = vpop.f32.mrf.mxu0  ;;  %v1350_v27 = vpop.f32.mrf.mxu2 }
 0x134   : > { %v1405_v21 = vadd.f32 %v1350_v27, %v1033_v5  ;;  %v1035_v31 = vpop.f32.mrf.mxu1 }
 0x135   : > { %v1036_v38 = vadd.f32 %v1035_v31, %v895_v1  ;;  %v1962_v1 = vpack.c.bf16 %v1933_v4, %v8539_v22  ;;  %v2216_v31 = vpack.c.bf16 %v8547_v26, %v2186_v46 }
 0x136   : > { %v9017_v42 = vadd.f32 %v1604_v29, %v1405_v21  ;;  %7433 = vmatmul.msk.bf16.gmra.mxu0 %vm12282_vm0, %v1707_v30 }
 0x137   : > { %7450 = vmatmul.msk.bf16.gmra.mxu1 %vm12287_vm3, %v1961_v52  ;;  %7484 = vmatmul.msk.bf16.gmra.mxu3 %vm12289_vm1, %v8544_v24  ;;  %vm12290_vm3 = vmmov %vm12282_vm0 }
 0x138   : > { %7467 = vmatmul.msk.bf16.gmra.mxu2 %vm12288_vm15, %v2215_v53  ;;  %vm12291_vm15 = vmmov %vm12282_vm0 }
 0x139   : > { %vm12292_vm1 = vmmov %vm12282_vm0 }
 0x13a   : > { %v1607_v28 = vpop.f32.mrf.mxu3 }
 0x13b   : > { %v897_v57 = vpop.f32.mrf.mxu0  ;;  %v1353_v61 = vpop.f32.mrf.mxu2 }
 0x13c   : > { %v1406_v63 = vadd.f32 %v1353_v61, %v1036_v38  ;;  %v1037_v44 = vpop.f32.mrf.mxu1  ;;  %v9044_v61 = vld [vmem:[%s8386_s25 + $0x51] sm:$0xff] }
 0x13d   : > { %v1038_v8 = vadd.f32 %v1037_v44, %v897_v57  ;;  %v1680_v44 = vld [vmem:[%s8386_s25 + $0x48] sm:$0xff]  ;;  %v1935_v2 = vsel %vm8526_vm10, %v9044_v61, 0.0 }
 0x13e   : > { %v9024_v5 = vadd.f32 %v1607_v28, %v1406_v63  ;;  %v1681_v28 = vld [vmem:[%s8386_s25 + $0x50] sm:$0xff] }
 0x13f   : > { %v1709_v62 = vpack.c.bf16 %v1681_v28, %v1680_v44  ;;  %v1683_v44 = vld [vmem:[%s8386_s25 + $0x60] sm:$0xff] }
 0x140   : > { %v9077_v28 = vld [vmem:[%s8386_s25 + $0x59] sm:$0xff] }
 0x142   : > { %v1609_v21 = vpop.f32.mrf.mxu3 }
 0x143   : > { %v900_v24 = vpop.f32.mrf.mxu0  ;;  %v1355_v30 = vpop.f32.mrf.mxu2 }
 0x144   : > { %v1407_v27 = vadd.f32 %v1355_v30, %v1038_v8  ;;  %v1040_v52 = vpop.f32.mrf.mxu1  ;;  %v9051_v8 = vld [vmem:[%s8386_s25 + $0x49] sm:$0xff] }
 0x145   : > { %v1041_v29 = vadd.f32 %v1040_v52, %v900_v24 }
 0x146   : > { %v9036_v16 = vadd.f32 %v1609_v21, %v1407_v27  ;;  %7434 = vmatmul.msk.bf16.gmra.mxu0 %vm12282_vm0, %v1708_v35  ;;  %v1963_v35 = vpack.c.bf16 %v1935_v2, %v9051_v8  ;;  %v2159_v2 = vld [vmem:[%s8386_s25 + $0x6f] sm:$0xff] }
 0x147   : > { %7451 = vmatmul.msk.bf16.gmra.mxu1 %vm12290_vm3, %v1962_v1  ;;  %7485 = vmatmul.msk.bf16.gmra.mxu3 %vm12292_vm1, %v8582_v55  ;;  %v2188_v55 = vsel %vm8519_vm9, %v8574_v49, 0.0  ;;  %vm12293_vm3 = vmmov %vm12282_vm0 }
 0x148   : > { %7468 = vmatmul.msk.bf16.gmra.mxu2 %vm12291_vm15, %v2216_v31  ;;  %v2217_v27 = vpack.c.bf16 %v8585_v59, %v2188_v55  ;;  %vm12294_vm15 = vmmov %vm12282_vm0 }
 0x149   : > { %vm12295_vm1 = vmmov %vm12282_vm0 }
 0x14a   : > { %v1612_v57 = vpop.f32.mrf.mxu3 }
 0x14b   : > { %v902_v20 = vpop.f32.mrf.mxu0  ;;  %v1358_v22 = vpop.f32.mrf.mxu2 }
 0x14c   : > { %v1408_v53 = vadd.f32 %v1358_v22, %v1041_v29  ;;  %v1042_v38 = vpop.f32.mrf.mxu1 }
 0x14d   : > { %v1043_v26 = vadd.f32 %v1042_v38, %v902_v20 }
 0x14e   : > { %v9046_v63 = vadd.f32 %v1612_v57, %v1408_v53  ;;  %v9069_v53 = vld [vmem:[%s8386_s25 + $0x61] sm:$0xff] }
 0x14f   : > { %v2158_v57 = vld [vmem:[%s8386_s25 + $0x67] sm:$0xff] }
 0x150   : > { %v2190_v55 = vsel %vm8562_vm11, %v2158_v57, 0.0 }
 0x152   : > { %v1614_v1 = vpop.f32.mrf.mxu3 }
 0x153   : > { %v905_v4 = vpop.f32.mrf.mxu0  ;;  %v1360_v46 = vpop.f32.mrf.mxu2 }
 0x154   : > { %v1409_v24 = vadd.f32 %v1360_v46, %v1043_v26  ;;  %v1045_v30 = vpop.f32.mrf.mxu1  ;;  %v1682_v26 = vld [vmem:[%s8386_s25 + $0x58] sm:$0xff]  ;;  %v2413_v46 = vld [vmem:[%s8386_s25 + $0x70] sm:$0xff] }
 0x155   : > { %v1046_v52 = vadd.f32 %v1045_v30, %v905_v4  ;;  %v2412_v4 = vld [vmem:[%s8386_s25 + $0x68] sm:$0xff] }
 0x156   : > { %v9061_v21 = vadd.f32 %v1614_v1, %v1409_v24  ;;  %7435 = vmatmul.msk.bf16.gmra.mxu0 %vm12282_vm0, %v1709_v62  ;;  %v1710_v62 = vpack.c.bf16 %v1683_v44, %v1682_v26 }
 0x157   : > { %7452 = vmatmul.msk.bf16.gmra.mxu1 %vm12293_vm3, %v1963_v35  ;;  %7486 = vmatmul.msk.bf16.gmra.mxu3 %vm12295_vm1, %v8617_v32  ;;  %v1937_v32 = vsel %vm8567_vm12, %v9069_v53, 0.0  ;;  %vm12296_vm3 = vmmov %vm12282_vm0 }
 0x158   : > { %7469 = vmatmul.msk.bf16.gmra.mxu2 %vm12294_vm15, %v2217_v27  ;;  %v1964_v30 = vpack.c.bf16 %v1937_v32, %v9077_v28  ;;  %vm12297_vm15 = vmmov %vm12282_vm0 }
 0x159   : > { %vm12298_vm1 = vmmov %vm12282_vm0 }
 0x15a   : > { %v1617_v20 = vpop.f32.mrf.mxu3 }
 0x15b   : > { %v907_v49 = vpop.f32.mrf.mxu0  ;;  %v1363_v31 = vpop.f32.mrf.mxu2 }
 0x15c   : > { %v1410_v59 = vadd.f32 %v1363_v31, %v1046_v52  ;;  %v1047_v29 = vpop.f32.mrf.mxu1 }
 0x15d   : > { %v1048_v22 = vadd.f32 %v1047_v29, %v907_v49  ;;  %v2218_v49 = vpack.c.bf16 %v2159_v2, %v2190_v55  ;;  %v9095_v2 = vld [vmem:[%s8386_s25 + $0x71] sm:$0xff] }
 0x15e   : > { %v9071_v38 = vadd.f32 %v1617_v20, %v1410_v59  ;;  %v2440_v59 = vpack.c.bf16 %v2413_v46, %v2412_v4  ;;  %v2160_v4 = vld [vmem:[%s8386_s25 + $0x77] sm:$0xff]  ;;  %v1939_v46 = vsel %vm8604_vm14, %v9095_v2, 0.0 }
 0x162   : > { %v1619_v52 = vpop.f32.mrf.mxu3 }
 0x163   : > { %v910_v35 = vpop.f32.mrf.mxu0  ;;  %v1365_v24 = vpop.f32.mrf.mxu2 }
 0x164   : > { %v1411_v1 = vadd.f32 %v1365_v24, %v1048_v22  ;;  %v1050_v27 = vpop.f32.mrf.mxu1  ;;  %v2192_v24 = vsel %vm8599_vm13, %v2160_v4, 0.0 }
 0x165   : > { %v1051_v31 = vadd.f32 %v1050_v27, %v910_v35  ;;  %v2161_v35 = vld [vmem:[%s8386_s25 + $0x7f] sm:$0xff] }
 0x166   : > { %v9088_v29 = vadd.f32 %v1619_v52, %v1411_v1  ;;  %7436 = vmatmul.msk.bf16.gmra.mxu0 %vm12282_vm0, %v1710_v62  ;;  %v9101_v62 = vld [vmem:[%s8386_s25 + $0x69] sm:$0xff]  ;;  %v2415_v1 = vld [vmem:[%s8386_s25 + $0x80] sm:$0xff] }
 0x167   : > { %7453 = vmatmul.msk.bf16.gmra.mxu1 %vm12296_vm3, %v1964_v30  ;;  %7487 = vmatmul.msk.bf16.gmra.mxu3 %vm12298_vm1, %v2440_v59  ;;  %v2414_v30 = vld [vmem:[%s8386_s25 + $0x78] sm:$0xff]  ;;  %vm12299_vm3 = vmmov %vm12282_vm0 }
 0x168   : > { %7470 = vmatmul.msk.bf16.gmra.mxu2 %vm12297_vm15, %v2218_v49  ;;  %v1965_v49 = vpack.c.bf16 %v1939_v46, %v9101_v62  ;;  %vm12300_vm15 = vmmov %vm12282_vm0 }
 0x169   : > { %vm12301_vm1 = vmmov %vm12282_vm0 }
 0x16a   : > { %v1622_v44 = vpop.f32.mrf.mxu3  ;;  %vm12306_vm13 = vmmov %vm12301_vm1 }
 0x16b   : > { %v912_v20 = vpop.f32.mrf.mxu0  ;;  %v1368_v22 = vpop.f32.mrf.mxu2  ;;  %vm12314_vm11 = vmmov %vm12301_vm1 }
 0x16c   : > { %v1412_v57 = vadd.f32 %v1368_v22, %v1051_v31  ;;  %v1052_v26 = vpop.f32.mrf.mxu1  ;;  %vm12324_vm9 = vmmov %vm12301_vm1 }
 0x16d   : > { %v1053_v32 = vadd.f32 %v1052_v26, %v912_v20  ;;  %vm12338_vm7 = vmmov %vm12301_vm1 }
 0x16e   : > { %v9097_v55 = vadd.f32 %v1622_v44, %v1412_v57  ;;  %v2219_v57 = vpack.c.bf16 %v2161_v35, %v2192_v24  ;;  %v2441_v44 = vpack.c.bf16 %v2415_v1, %v2414_v30  ;;  %v9119_v30 = vld [vmem:[%s8386_s25 + $0x81] sm:$0xff] }
 0x172   : > { %v1624_v22 = vpop.f32.mrf.mxu3 }
 0x173   : > { %v915_v27 = vpop.f32.mrf.mxu0  ;;  %v1370_v52 = vpop.f32.mrf.mxu2 }
 0x174   : > { %v1413_v31 = vadd.f32 %v1370_v52, %v1053_v32  ;;  %v1055_v20 = vpop.f32.mrf.mxu1  ;;  %v2162_v52 = vld [vmem:[%s8386_s25 + $0x87] sm:$0xff] }
 0x175   : > { %v1056_v26 = vadd.f32 %v1055_v20, %v915_v27 }
 0x176   : > { %v9112_v40 = vadd.f32 %v1624_v22, %v1413_v31  ;;  %7437 = vmatmul.msk.bf16.gmra.mxu0 %vm12282_vm0, %v2440_v59  ;;  %v9125_v59 = vld [vmem:[%s8386_s25 + $0x79] sm:$0xff]  ;;  %vm12302_vm0 = vnez %v12198_v0  ;;  %v2163_v31 = vld [vmem:[%s8386_s25 + $0x8f] sm:$0xff] }
 0x177   : > { %7454 = vmatmul.msk.bf16.gmra.mxu1 %vm12299_vm3, %v1965_v49  ;;  %7488 = vmatmul.msk.bf16.gmra.mxu3 %vm12301_vm1, %v2441_v44  ;;  %v1941_v49 = vsel %vm12302_vm0, %v9119_v30, 0.0  ;;  %vm12303_vm3 = vnez %v12195_v60  ;;  %v2416_v22 = vld [vmem:[%s8386_s25 + $0x88] sm:$0xff] }
 0x178   : > { %7471 = vmatmul.msk.bf16.gmra.mxu2 %vm12300_vm15, %v2219_v57  ;;  %v2194_v20 = vsel %vm12303_vm3, %v2162_v52, 0.0  ;;  %v2417_v57 = vld [vmem:[%s8386_s25 + $0x90] sm:$0xff]  ;;  %vm12304_vm15 = vmmov %vm12301_vm1 }
 0x179   : > { %v2220_v12 = vpack.c.bf16 %v2163_v31, %v2194_v20  ;;  %v2442_v56 = vpack.c.bf16 %v2417_v57, %v2416_v22  ;;  %vm12305_vm3 = vmmov %vm12301_vm1  ;;  %v9143_v22 = vld [vmem:[%s8386_s25 + $0x91] sm:$0xff] }
 0x17a   : > { %v1627_v24 = vpop.f32.mrf.mxu3 }
 0x17b   : > { %v917_v32 = vpop.f32.mrf.mxu0  ;;  %v1373_v4 = vpop.f32.mrf.mxu2 }
 0x17c   : > { %v1414_v46 = vadd.f32 %v1373_v4, %v1056_v26  ;;  %v1057_v35 = vpop.f32.mrf.mxu1 }
 0x17d   : > { %v1058_v27 = vadd.f32 %v1057_v35, %v917_v32  ;;  %v1966_v32 = vpack.c.bf16 %v1941_v49, %v9125_v59 }
 0x17e   : > { %v9121_v1 = vadd.f32 %v1627_v24, %v1414_v46 }
 0x182   : > { %v1629_v24 = vpop.f32.mrf.mxu3 }
 0x183   : > { %v920_v26 = vpop.f32.mrf.mxu0  ;;  %v1375_v4 = vpop.f32.mrf.mxu2 }
 0x184   : > { %v1415_v35 = vadd.f32 %v1375_v4, %v1058_v27  ;;  %v1060_v46 = vpop.f32.mrf.mxu1  ;;  %v2164_v4 = vld [vmem:[%s8386_s25 + $0x97] sm:$0xff] }
 0x185   : > { %v1061_v13 = vadd.f32 %v1060_v46, %v920_v26  ;;  %v2418_v46 = vld [vmem:[%s8386_s25 + $0x98] sm:$0xff] }
 0x186   : > { %v9136_v37 = vadd.f32 %v1629_v24, %v1415_v35  ;;  %7438 = vmatmul.msk.bf16.gmra.mxu0 %vm12304_vm15, %v2441_v44  ;;  %v9149_v44 = vld [vmem:[%s8386_s25 + $0x89] sm:$0xff]  ;;  %vm12309_vm15 = vnez %v12204_v50 }
 0x187   : > { %7455 = vmatmul.msk.bf16.gmra.mxu1 %vm12301_vm1, %v1966_v32  ;;  %7489 = vmatmul.msk.bf16.gmra.mxu3 %vm12306_vm13, %v2442_v56  ;;  %12308 = vst [vmem:[#allocation64_spill] sm:$0xff] %v9149_v44  ;;  %v2165_v32 = vld [vmem:[%s8386_s25 + $0x9f] sm:$0xff]  ;;  %vm12310_vm13 = vnez %v12201_v34 }
 0x188   : > { %7472 = vmatmul.msk.bf16.gmra.mxu2 %vm12305_vm3, %v2220_v12  ;;  %v1943_v12 = vsel %vm12309_vm15, %v9143_v22, 0.0  ;;  %v2196_v35 = vsel %vm12310_vm13, %v2164_v4, 0.0  ;;  %vm12312_vm3 = vmmov %vm12301_vm1 }
 0x189   : > { %v2221_v60 = vpack.c.bf16 %v2165_v32, %v2196_v35  ;;  %vm12313_vm13 = vmmov %vm12301_vm1 }
 0x18a   : > { %v1632_v20 = vpop.f32.mrf.mxu3 }
 0x18b   : > { %v922_v27 = vpop.f32.mrf.mxu0  ;;  %v1378_v52 = vpop.f32.mrf.mxu2 }
 0x18c   : > { %v1416_v49 = vadd.f32 %v1378_v52, %v1061_v13  ;;  %v1062_v31 = vpop.f32.mrf.mxu1  ;;  %v2419_v13 = vld [vmem:[%s8386_s25 + $0xa0] sm:$0xff] }
 0x18d   : > { %v1063_v26 = vadd.f32 %v1062_v31, %v922_v27  ;;  %v1967_v27 = vpack.c.bf16 %v1943_v12, %v9149_v44  ;;  %v2443_v50 = vpack.c.bf16 %v2419_v13, %v2418_v46  ;;  %v9167_v46 = vld [vmem:[%s8386_s25 + $0xa1] sm:$0xff] }
 0x18e   : > { %v9145_v57 = vadd.f32 %v1632_v20, %v1416_v49  ;;  %12315 = vst [vmem:[#allocation66_spill] sm:$0xff] %v9167_v46 }
 0x190   : > { %12307 = vst [vmem:[#allocation63_spill] sm:$0xff] %v9145_v57 }
 0x192   : > { %v1634_v20 = vpop.f32.mrf.mxu3 }
 0x193   : > { %v925_v24 = vpop.f32.mrf.mxu0  ;;  %v1380_v52 = vpop.f32.mrf.mxu2 }
 0x194   : > { %v1417_v31 = vadd.f32 %v1380_v52, %v1063_v26  ;;  %v1065_v49 = vpop.f32.mrf.mxu1  ;;  %v2166_v52 = vld [vmem:[%s8386_s25 + $0xa7] sm:$0xff] }
 0x195   : > { %v1066_v57 = vadd.f32 %v1065_v49, %v925_v24  ;;  %v2420_v49 = vld [vmem:[%s8386_s25 + $0xa8] sm:$0xff] }
 0x196   : > { %v9160_v0 = vadd.f32 %v1634_v20, %v1417_v31  ;;  %7439 = vmatmul.msk.bf16.gmra.mxu0 %vm12312_vm3, %v2442_v56  ;;  %v9173_v56 = vld [vmem:[%s8386_s25 + $0x99] sm:$0xff]  ;;  %vm12318_vm3 = vnez %v12210_v45 }
 0x197   : > { %7456 = vmatmul.msk.bf16.gmra.mxu1 %vm12301_vm1, %v1967_v27  ;;  %7490 = vmatmul.msk.bf16.gmra.mxu3 %vm12314_vm11, %v2443_v50  ;;  %12317 = vst [vmem:[#allocation68_spill] sm:$0xff] %v9173_v56  ;;  %v2167_v27 = vld [vmem:[%s8386_s25 + $0xaf] sm:$0xff]  ;;  %vm12319_vm11 = vnez %v12207_v23 }
 0x198   : > { %12311 = vst [vmem:[#allocation65_spill] sm:$0xff] %v9160_v0  ;;  %7473 = vmatmul.msk.bf16.gmra.mxu2 %vm12313_vm13, %v2221_v60  ;;  %v1945_v60 = vsel %vm12318_vm3, %v9167_v46, 0.0  ;;  %v2198_v31 = vsel %vm12319_vm11, %v2166_v52, 0.0  ;;  %vm12322_vm13 = vmmov %vm12301_vm1 }
 0x199   : > { %v2222_v0 = vpack.c.bf16 %v2167_v27, %v2198_v31  ;;  %vm12323_vm11 = vmmov %vm12301_vm1 }
 0x19a   : > { %v1637_v35 = vpop.f32.mrf.mxu3 }
 0x19b   : > { %v927_v26 = vpop.f32.mrf.mxu0  ;;  %v1383_v4 = vpop.f32.mrf.mxu2 }
 0x19c   : > { %v1418_v12 = vadd.f32 %v1383_v4, %v1066_v57  ;;  %v1067_v32 = vpop.f32.mrf.mxu1  ;;  %v2421_v57 = vld [vmem:[%s8386_s25 + $0xb0] sm:$0xff] }
 0x19d   : > { %v1068_v24 = vadd.f32 %v1067_v32, %v927_v26  ;;  %v1968_v26 = vpack.c.bf16 %v1945_v60, %v9173_v56  ;;  %v2444_v44 = vpack.c.bf16 %v2421_v57, %v2420_v49  ;;  %v12325_v60 = vld [vmem:[#allocation32_spill] sm:$0xff] }
 0x19e   : > { %v9169_v13 = vadd.f32 %v1637_v35, %v1418_v12  ;;  %v12320_v12 = vld [vmem:[#allocation30_spill] sm:$0xff] }
 0x1a0   : > { %12316 = vst [vmem:[#allocation67_spill] sm:$0xff] %v9169_v13 }
 0x1a2   : > { %v1639_v34 = vpop.f32.mrf.mxu3 }
 0x1a3   : > { %v1385_v20 = vpop.f32.mrf.mxu2  ;;  %v1784_v4 = vpop.f32.mrf.mxu0 }
 0x1a4   : > { %v1419_v32 = vadd.f32 %v1385_v20, %v1068_v24  ;;  %v1864_v35 = vadd.f32 %v1784_v4, %v12320_v12  ;;  %v2038_v13 = vpop.f32.mrf.mxu1  ;;  %v9199_v4 = vld [vmem:[%s8386_s25 + $0xa9] sm:$0xff] }
 0x1a5   : > { %12328 = vst [vmem:[#allocation70_spill] sm:$0xff] %v9199_v4  ;;  %v12331_v12 = vld [vmem:[#allocation29_spill] sm:$0xff] }
 0x1a6   : > { %v9185_v45 = vadd.f32 %v1639_v34, %v1419_v32  ;;  %v2118_v23 = vadd.f32 %v2038_v13, %v1864_v35  ;;  %7440 = vmatmul.msk.bf16.gmra.mxu0 %vm12322_vm13, %v2443_v50  ;;  %v9193_v34 = vld [vmem:[%s8386_s25 + $0xb1] sm:$0xff]  ;;  %v2169_v32 = vld [vmem:[%s8386_s25 + $0xbf] sm:$0xff]  ;;  %vm12335_vm13 = vmmov %vm12301_vm1 }
 0x1a7   : > { %7457 = vmatmul.msk.bf16.gmra.mxu1 %vm12301_vm1, %v1968_v26  ;;  %7491 = vmatmul.msk.bf16.gmra.mxu3 %vm12324_vm9, %v2444_v44  ;;  %12326 = vst [vmem:[#allocation32_spill] sm:$0xff] %v9193_v34  ;;  %v2168_v50 = vld [vmem:[%s8386_s25 + $0xb7] sm:$0xff]  ;;  %vm12332_vm9 = vnez %v12331_v12 }
 0x1a8   : > { %12321 = vst [vmem:[#allocation30_spill] sm:$0xff] %v9185_v45  ;;  %7474 = vmatmul.msk.bf16.gmra.mxu2 %vm12323_vm11, %v2222_v0  ;;  %v12329_v26 = vld [vmem:[#allocation31_spill] sm:$0xff]  ;;  %v2200_v35 = vsel %vm12332_vm9, %v2168_v50, 0.0  ;;  %vm12336_vm9 = vmmov %vm12301_vm1  ;;  %v12337_v50 = vld [vmem:[#allocation40_spill] sm:$0xff] }
 0x1a9   : > { %vm12330_vm11 = vnez %v12329_v26  ;;  %v12342_v12 = vld [vmem:[#allocation35_spill] sm:$0xff] }
 0x1aa   : > { %v2514_v49 = vpop.f32.mrf.mxu3  ;;  %v1947_v0 = vsel %vm12330_vm11, %v9193_v34, 0.0 }
 0x1ab   : > { %v1786_v24 = vpop.f32.mrf.mxu0  ;;  %v2292_v52 = vpop.f32.mrf.mxu2 }
 0x1ac   : > { %v1865_v20 = vadd.f32 %v1786_v24, %v12325_v60  ;;  %v2372_v27 = vadd.f32 %v2292_v52, %v2118_v23  ;;  %v2040_v31 = vpop.f32.mrf.mxu1  ;;  %v1969_v52 = vpack.c.bf16 %v1947_v0, %v9199_v4  ;;  %v12333_v60 = vld [vmem:[#allocation34_spill] sm:$0xff]  ;;  %v12344_v4 = vld [vmem:[#allocation33_spill] sm:$0xff] }
 0x1ae   : > { %v2119_v57 = vadd.f32 %v2040_v31, %v1865_v20  ;;  %v9195_v13 = vadd.f32 %v2514_v49, %v2372_v27  ;;  %v2223_v49 = vpack.c.bf16 %v2169_v32, %v2200_v35  ;;  %v12339_v32 = vld [vmem:[#allocation36_spill] sm:$0xff] }
 0x1b0   : > { %12327 = vst [vmem:[#allocation69_spill] sm:$0xff] %v9195_v13 }
 0x1b2   : > { %v2516_v31 = vpop.f32.mrf.mxu3 }
 0x1b3   : > { %v1789_v24 = vpop.f32.mrf.mxu0  ;;  %v2294_v23 = vpop.f32.mrf.mxu2 }
 0x1b4   : > { %v1866_v45 = vadd.f32 %v1789_v24, %v12333_v60  ;;  %v2373_v20 = vadd.f32 %v2294_v23, %v2119_v57  ;;  %v2043_v27 = vpop.f32.mrf.mxu1  ;;  %v9218_v60 = vld [vmem:[%s8386_s25 + $0xc1] sm:$0xff] }
 0x1b6   : > { %v2120_v13 = vadd.f32 %v2043_v27, %v1866_v45  ;;  %v9209_v26 = vadd.f32 %v2516_v31, %v2373_v20  ;;  %7441 = vmatmul.msk.bf16.gmra.mxu0 %vm12335_vm13, %v2444_v44  ;;  %v2170_v27 = vld [vmem:[%s8386_s25 + $0xc7] sm:$0xff]  ;;  %vm12348_vm13 = vmmov %vm12301_vm1 }
 0x1b7   : > { %7458 = vmatmul.msk.bf16.gmra.mxu1 %vm12301_vm1, %v1969_v52  ;;  %7492 = vmatmul.msk.bf16.gmra.mxu3 %vm12338_vm7, %v12337_v50  ;;  %v1694_v52 = vld [vmem:[%s8386_s25 + $0xb8] sm:$0xff]  ;;  %v1695_v31 = vld [vmem:[%s8386_s25 + $0xc0] sm:$0xff]  ;;  %vm12343_vm7 = vnez %v12342_v12 }
 0x1b8   : > { %12334 = vst [vmem:[#allocation34_spill] sm:$0xff] %v9209_v26  ;;  %7475 = vmatmul.msk.bf16.gmra.mxu2 %vm12336_vm9, %v2223_v49  ;;  %v9226_v49 = vld [vmem:[%s8386_s25 + $0xb9] sm:$0xff]  ;;  %v1949_v50 = vsel %vm12343_vm7, %v9218_v60, 0.0  ;;  %v2171_v26 = vld [vmem:[%s8386_s25 + $0xcf] sm:$0xff]  ;;  %vm12345_vm9 = vnez %v12344_v4  ;;  %vm12350_vm7 = vmmov %vm12301_vm1 }
 0x1b9   : > { %12341 = vst [vmem:[#allocation36_spill] sm:$0xff] %v9226_v49 }
 0x1ba   : > { %v2519_v23 = vpop.f32.mrf.mxu3 }
 0x1bb   : > { %v1791_v57 = vpop.f32.mrf.mxu0  ;;  %v2297_v0 = vpop.f32.mrf.mxu2 }
 0x1bc   : > { %v1867_v35 = vadd.f32 %v1791_v57, %v12339_v32  ;;  %v2374_v45 = vadd.f32 %v2297_v0, %v2120_v13  ;;  %v2045_v24 = vpop.f32.mrf.mxu1  ;;  %v2202_v13 = vsel %vm12345_vm9, %v2170_v27, 0.0  ;;  %v1716_v57 = vpack.c.bf16 %v1695_v31, %v1694_v52  ;;  %vm12349_vm9 = vmmov %vm12301_vm1 }
 0x1bd   : > { %v2224_v56 = vpack.c.bf16 %v2171_v26, %v2202_v13  ;;  %v12351_v26 = vld [vmem:[#allocation41_spill] sm:$0xff] }
 0x1be   : > { %v2121_v20 = vadd.f32 %v2045_v24, %v1867_v35  ;;  %v9220_v44 = vadd.f32 %v2519_v23, %v2374_v45  ;;  %v1970_v35 = vpack.c.bf16 %v1949_v50, %v9226_v49  ;;  %v12346_v45 = vld [vmem:[#allocation38_spill] sm:$0xff] }
 0x1bf   : > { %v9245_v50 = vld [vmem:[%s8386_s25 + $0xd1] sm:$0xff] }
 0x1c0   : > { %12340 = vst [vmem:[#allocation40_spill] sm:$0xff] %v9220_v44 }
 0x1c2   : > { %v2521_v34 = vpop.f32.mrf.mxu3 }
 0x1c3   : > { %v1794_v0 = vpop.f32.mrf.mxu0  ;;  %v2299_v32 = vpop.f32.mrf.mxu2 }
 0x1c4   : > { %v1868_v24 = vadd.f32 %v1794_v0, %v12346_v45  ;;  %v2375_v23 = vadd.f32 %v2299_v32, %v2121_v20  ;;  %v2048_v44 = vpop.f32.mrf.mxu1  ;;  %v2172_v0 = vld [vmem:[%s8386_s25 + $0xd7] sm:$0xff]  ;;  %v1696_v32 = vld [vmem:[%s8386_s25 + $0xc8] sm:$0xff] }
 0x1c5   : > { %v12354_v45 = vld [vmem:[#allocation39_spill] sm:$0xff] }
 0x1c6   : > { %v2122_v46 = vadd.f32 %v2048_v44, %v1868_v24  ;;  %v9236_v12 = vadd.f32 %v2521_v34, %v2375_v23  ;;  %7442 = vmatmul.msk.bf16.gmra.mxu0 %vm12348_vm13, %v1716_v57  ;;  %v2173_v24 = vld [vmem:[%s8386_s25 + $0xdf] sm:$0xff]  ;;  %v12356_v23 = vld [vmem:[#allocation37_spill] sm:$0xff]  ;;  %vm12360_vm13 = vmmov %vm12301_vm1 }
 0x1c7   : > { %7459 = vmatmul.msk.bf16.gmra.mxu1 %vm12301_vm1, %v1970_v35  ;;  %7493 = vmatmul.msk.bf16.gmra.mxu3 %vm12350_vm7, %v8820_v18  ;;  %v1697_v35 = vld [vmem:[%s8386_s25 + $0xd0] sm:$0xff]  ;;  %vm12355_vm7 = vnez %v12354_v45 }
 0x1c8   : > { %12347 = vst [vmem:[#allocation38_spill] sm:$0xff] %v9236_v12  ;;  %7476 = vmatmul.msk.bf16.gmra.mxu2 %vm12349_vm9, %v2224_v56  ;;  %v9253_v56 = vld [vmem:[%s8386_s25 + $0xc9] sm:$0xff]  ;;  %v1951_v18 = vsel %vm12355_vm7, %v9245_v50, 0.0  ;;  %vm12357_vm9 = vnez %v12356_v23  ;;  %vm12363_vm7 = vmmov %vm12301_vm1 }
 0x1c9   : > { %12353 = vst [vmem:[#allocation71_spill] sm:$0xff] %v9253_v56 }
 0x1ca   : > { %v2524_v34 = vpop.f32.mrf.mxu3 }
 0x1cb   : > { %v1796_v20 = vpop.f32.mrf.mxu0  ;;  %v2302_v27 = vpop.f32.mrf.mxu2 }
 0x1cc   : > { %v1869_v52 = vadd.f32 %v1796_v20, %v12351_v26  ;;  %v2376_v44 = vadd.f32 %v2302_v27, %v2122_v46  ;;  %v2050_v31 = vpop.f32.mrf.mxu1  ;;  %v2204_v46 = vsel %vm12357_vm9, %v2172_v0, 0.0  ;;  %v1717_v20 = vpack.c.bf16 %v1697_v35, %v1696_v32  ;;  %vm12361_vm9 = vmmov %vm12301_vm1  ;;  %v12362_v0 = vld [vmem:[#allocation52_spill] sm:$0xff] }
 0x1cd   : > { %v2225_v12 = vpack.c.bf16 %v2173_v24, %v2204_v46 }
 0x1ce   : > { %v2123_v13 = vadd.f32 %v2050_v31, %v1869_v52  ;;  %v9247_v57 = vadd.f32 %v2524_v34, %v2376_v44  ;;  %v1971_v52 = vpack.c.bf16 %v1951_v18, %v9253_v56  ;;  %v12358_v44 = vld [vmem:[#allocation43_spill] sm:$0xff] }
 0x1d0   : > { %12352 = vst [vmem:[#allocation41_spill] sm:$0xff] %v9247_v57 }
 0x1d2   : > { %v2526_v57 = vpop.f32.mrf.mxu3 }
 0x1d3   : > { %v1799_v27 = vpop.f32.mrf.mxu0  ;;  %v2304_v26 = vpop.f32.mrf.mxu2 }
 0x1d4   : > { %v1870_v31 = vadd.f32 %v1799_v27, %v12358_v44  ;;  %v2377_v34 = vadd.f32 %v2304_v26, %v2123_v13  ;;  %v2053_v4 = vpop.f32.mrf.mxu1  ;;  %v12364_v13 = vld [vmem:[#allocation45_spill] sm:$0xff]  ;;  %v1699_v44 = vld [vmem:[%s8386_s25 + $0xe0] sm:$0xff] }
 0x1d6   : > { %v2124_v49 = vadd.f32 %v2053_v4, %v1870_v31  ;;  %v9263_v45 = vadd.f32 %v2526_v57, %v2377_v34  ;;  %7443 = vmatmul.msk.bf16.gmra.mxu0 %vm12360_vm13, %v1717_v20  ;;  %v1698_v57 = vld [vmem:[%s8386_s25 + $0xd8] sm:$0xff]  ;;  %v12365_v20 = vld [vmem:[#allocation48_spill] sm:$0xff] }
 0x1d7   : > { %7460 = vmatmul.msk.bf16.gmra.mxu1 %vm12301_vm1, %v1971_v52  ;;  %7494 = vmatmul.msk.bf16.gmra.mxu3 %vm12363_vm7, %v12362_v0  ;;  %v12366_v31 = vld [vmem:[#allocation44_spill] sm:$0xff]  ;;  %v12369_v34 = vld [vmem:[#allocation42_spill] sm:$0xff]  ;;  %v1718_v23 = vpack.c.bf16 %v1699_v44, %v1698_v57  ;;  %vm12373_vm7 = vmmov %vm12301_vm1 }
 0x1d8   : > { %12359 = vst [vmem:[#allocation43_spill] sm:$0xff] %v9263_v45  ;;  %7477 = vmatmul.msk.bf16.gmra.mxu2 %vm12361_vm9, %v2225_v12  ;;  %vm12367_vm13 = vnez %v12366_v31  ;;  %v12368_v12 = vld [vmem:[#allocation50_spill] sm:$0xff]  ;;  %vm12370_vm9 = vnez %v12369_v34  ;;  %v7499_v57 = vld [vmem:[%s12155_s1 + $0x10] sm:$0x3] }
 0x1d9   : > { %v1953_v52 = vsel %vm12367_vm13, %v12365_v20, 0.0  ;;  %v2206_v0 = vsel %vm12370_vm9, %v12368_v12, 0.0  ;;  %vm12374_vm9 = vmmov %vm12301_vm1  ;;  %v1700_v12 = vld [vmem:[%s8386_s25 + $0xe8] sm:$0xff] }
 0x1da   : > { %v2529_v24 = vpop.f32.mrf.mxu3  ;;  %vm12375_vm13 = vmmov %vm12301_vm1 }
 0x1db   : > { %v1801_v32 = vpop.f32.mrf.mxu0  ;;  %v2307_v35 = vpop.f32.mrf.mxu2 }
 0x1dc   : > { %v1871_v18 = vadd.f32 %v1801_v32, %v12364_v13  ;;  %v2378_v27 = vadd.f32 %v2307_v35, %v2124_v49  ;;  %v2055_v26 = vpop.f32.mrf.mxu1  ;;  %v12371_v32 = vld [vmem:[#allocation51_spill] sm:$0xff] }
 0x1dd   : > { %v1972_v49 = vpack.c.bf16 %v1953_v52, %v12371_v32  ;;  %v12372_v35 = vld [vmem:[#allocation47_spill] sm:$0xff]  ;;  %v12377_v32 = vld [vmem:[#allocation56_spill] sm:$0xff] }
 0x1de   : > { %v2125_v46 = vadd.f32 %v2055_v26, %v1871_v18  ;;  %v9271_v4 = vadd.f32 %v2529_v24, %v2378_v27  ;;  %v2226_v24 = vpack.c.bf16 %v8867_v14, %v2206_v0  ;;  %v1701_v0 = vld [vmem:[%s8386_s25 + $0xf0] sm:$0xff] }
 0x1e2   : > { %v2531_v26 = vpop.f32.mrf.mxu3 }
 0x1e3   : > { %v1804_v45 = vpop.f32.mrf.mxu0  ;;  %v2309_v56 = vpop.f32.mrf.mxu2 }
 0x1e4   : > { %v1872_v13 = vadd.f32 %v1804_v45, %v12372_v35  ;;  %v2379_v18 = vadd.f32 %v2309_v56, %v2125_v46  ;;  %v2058_v27 = vpop.f32.mrf.mxu1  ;;  %v2757_v45 = vand.u32 %v7499_v57, %v8367_v6  ;;  %v12376_v46 = vld [vmem:[#allocation53_spill] sm:$0xff]  ;;  %v12380_v35 = vld [vmem:[#allocation46_spill] sm:$0xff] }
 0x1e6   : > { %v2126_v31 = vadd.f32 %v2058_v27, %v1872_v13  ;;  %v9284_v20 = vadd.f32 %v2531_v26, %v2379_v18  ;;  %7444 = vmatmul.msk.bf16.gmra.mxu0 %vm12373_vm7, %v1718_v23  ;;  %v1719_v13 = vpack.c.bf16 %v1701_v0, %v1700_v12  ;;  %v12382_v27 = vld [vmem:[#allocation58_spill] sm:$0xff]  ;;  %v12388_v0 = vld [vmem:[#allocation57_spill] sm:$0xff] }
 0x1e7   : > { %7461 = vmatmul.msk.bf16.gmra.mxu1 %vm12301_vm1, %v1972_v49  ;;  %7495 = vmatmul.msk.bf16.gmra.mxu3 %vm12375_vm13, %v8910_v33  ;;  %v12378_v49 = vld [vmem:[#allocation49_spill] sm:$0xff]  ;;  %vm12384_vm13 = vmmov %vm12301_vm1  ;;  %vm12389_vm5 = vnez %v12388_v0 }
 0x1e8   : > { %7478 = vmatmul.msk.bf16.gmra.mxu2 %vm12374_vm9, %v2226_v24  ;;  %2766 = vmatpush.bf16.msra.mxu0 %v2757_v45  ;;  %vm12379_vm7 = vnez %v12378_v49  ;;  %vm12381_vm9 = vnez %v12380_v35 }
 0x1e9   : > { %v1955_v6 = vsel %vm12379_vm7, %v12377_v32, 0.0  ;;  %v2208_v33 = vsel %vm12381_vm9, %v8899_v10, 0.0  ;;  %vm12385_vm7 = vmmov %vm12301_vm1  ;;  %v12390_v32 = vld [vmem:[#allocation54_spill] sm:$0xff] }
 0x1ea   : > { %v1973_v26 = vpack.c.bf16 %v1955_v6, %v12382_v27  ;;  %v2227_v45 = vpack.c.bf16 %v8913_v54, %v2208_v33  ;;  %vm12386_vm9 = vmmov %vm12301_vm1  ;;  %v1957_v54 = vsel %vm12389_vm5, %v8949_v9, 0.0  ;;  %v2432_v33 = vld [vmem:[%s8386_s25 + $0x108] sm:$0xff] }
 0x1eb   : > { %v1806_v14 = vpop.f32.mrf.mxu0  ;;  %v2312_v56 = vpop.f32.mrf.mxu2  ;;  %v1974_v27 = vpack.c.bf16 %v1957_v54, %v8964_v36  ;;  %v9353_v54 = vld [vmem:[%s8386_s25 + $0x109] sm:$0xff] }
 0x1ec   : > { %v9296_v44 = vadd.f32 %v1806_v14, %v12376_v46  ;;  %v9298_v23 = vadd.f32 %v2312_v56, %v2126_v31  ;;  %v9300_v52 = vpop.f32.mrf.mxu1  ;;  %v12383_v31 = vld [vmem:[#allocation55_spill] sm:$0xff] }
 0x1ed   : > { %v12387_v56 = vld [vmem:[#allocation59_spill] sm:$0xff] }
 0x1f3   : > { %v1809_v18 = vpop.f32.mrf.mxu0 }
 0x1f4   : > { %v1874_v24 = vadd.f32 %v1809_v18, %v12383_v31  ;;  %v2063_v57 = vpop.f32.mrf.mxu1 }
 0x1f6   : > { %v9313_v14 = vadd.f32 %v2063_v57, %v1874_v24  ;;  %7445 = vmatmul.msk.bf16.gmra.mxu0 %vm12384_vm13, %v1719_v13  ;;  %vm12391_vm13 = vnez %v12390_v32  ;;  %v2433_v13 = vld [vmem:[%s8386_s25 + $0x110] sm:$0xff] }
 0x1f7   : > { %7462 = vmatmul.msk.bf16.gmra.mxu1 %vm12301_vm1, %v1973_v26  ;;  %7496 = vmatmul.msk.bf16.gmra.mxu3 %vm12386_vm9, %v8969_v11  ;;  %v2210_v6 = vsel %vm12391_vm13, %v8958_v41, 0.0  ;;  %v12392_v26 = vld [vmem:[#allocation61_spill] sm:$0xff]  ;;  %v2450_v9 = vpack.c.bf16 %v2433_v13, %v2432_v33  ;;  %vm12394_vm9 = vmmov %vm12301_vm1  ;;  %v2181_v33 = vld [vmem:[%s8386_s25 + $0x11f] sm:$0xff] }
 0x1f8   : > { %7479 = vmatmul.msk.bf16.gmra.mxu2 %vm12385_vm7, %v2227_v45  ;;  %v2228_v57 = vpack.c.bf16 %v8972_v3, %v2210_v6  ;;  %vm12393_vm7 = vmmov %vm12301_vm1  ;;  %v9349_v3 = vld [vmem:[%s8386_s25 + $0x111] sm:$0xff]  ;;  %v12398_v13 = vld [vmem:[#allocation60_spill] sm:$0xff] }
 0x1f9   : > { %vm12395_vm13 = vmmov %vm12301_vm1  ;;  %v12396_v6 = vld [vmem:[#allocation62_spill] sm:$0xff] }
 0x1fb   : > { %v1811_v10 = vpop.f32.mrf.mxu0 }
 0x1fc   : > { %v9321_v46 = vadd.f32 %v1811_v10, %v12387_v56  ;;  %v9323_v12 = vpop.f32.mrf.mxu1  ;;  %v2180_v56 = vld [vmem:[%s8386_s25 + $0x117] sm:$0xff] }
 0x203   : > { %v1814_v18 = vpop.f32.mrf.mxu0 }
 0x204   : > { %v1876_v31 = vadd.f32 %v1814_v18, %v12392_v26  ;;  %v2068_v24 = vpop.f32.mrf.mxu1  ;;  %v2435_v26 = vld [vmem:[%s8386_s25 + $0x120] sm:$0xff] }
 0x206   : > { %v9336_v45 = vadd.f32 %v2068_v24, %v1876_v31  ;;  %7446 = vmatmul.msk.bf16.gmra.mxu0 %vm12393_vm7, %v8969_v11  ;;  %vm12397_vm7 = vnez %v12396_v6 }
 0x207   : > { %7463 = vmatmul.msk.bf16.gmra.mxu1 %vm12394_vm9, %v1974_v27  ;;  %7497 = vmatmul.msk.bf16.gmra.mxu3 %vm12395_vm13, %v2450_v9  ;;  %v1959_v11 = vsel %vm12397_vm7, %v9349_v3, 0.0  ;;  %vm12399_vm9 = vnez %v12398_v13  ;;  %v2434_v27 = vld [vmem:[%s8386_s25 + $0x118] sm:$0xff]  ;;  %vm12400_vm13 = vmmov %vm12301_vm1 }
 0x208   : > { %7480 = vmatmul.msk.bf16.gmra.mxu2 %vm12301_vm1, %v2228_v57  ;;  %v2212_v18 = vsel %vm12399_vm9, %v2180_v56, 0.0  ;;  %v1975_v31 = vpack.c.bf16 %v1959_v11, %v9353_v54  ;;  %v2451_v32 = vpack.c.bf16 %v2435_v26, %v2434_v27  ;;  %vm12401_vm7 = vmmov %vm12301_vm1  ;;  %v9380_v26 = vpop.f32.mrf.mxu2 }
 0x209   : > { %vm12402_vm9 = vmmov %vm12301_vm1 }
 0x20b   : > { %v1816_v41 = vpop.f32.mrf.mxu0 }
 0x20c   : > { %v9344_v36 = vadd.f32 %v1816_v41, %v8980_v51  ;;  %v9346_v10 = vpop.f32.mrf.mxu1  ;;  %v2229_v41 = vpack.c.bf16 %v2181_v33, %v2212_v18  ;;  %v2626_v33 = vld [vmem:[%s8386_s25 + $0x29] sm:$0xff] }
 0x213   : > { %v1819_v51 = vpop.f32.mrf.mxu0 }
 0x214   : > { %v1878_v24 = vadd.f32 %v1819_v51, %v8987_v7  ;;  %v2073_v57 = vpop.f32.mrf.mxu1  ;;  %v2627_v7 = vld [vmem:[%s8386_s25 + $0x31] sm:$0xff] }
 0x215   : > { %v2659_v18 = vsel %vm8401_vm4, %v2627_v7, 0.0  ;;  %v2628_v7 = vld [vmem:[%s8386_s25 + $0x39] sm:$0xff] }
 0x216   : > { %v9365_v35 = vadd.f32 %v2073_v57, %v1878_v24  ;;  %7447 = vmatmul.msk.bf16.gmra.mxu0 %vm12400_vm13, %v2450_v9  ;;  %v2690_v9 = vpack.c.bf16 %v2659_v18, %v2626_v33  ;;  %vm12411_vm13 = vmmov %vm12301_vm1 }
 0x217   : > { %7464 = vmatmul.msk.bf16.gmra.mxu1 %vm12301_vm1, %v1975_v31  ;;  %7498 = vmatmul.msk.bf16.gmra.mxu3 %vm12402_vm9, %v2451_v32  ;;  %vm12407_vm9 = vmmov %vm12301_vm1 }
 0x218   : > { %7481 = vmatmul.msk.bf16.gmra.mxu2 %vm12401_vm7, %v2229_v41  ;;  %vm12403_vm7 = vmmov %vm12301_vm1  ;;  %v2629_v41 = vld [vmem:[%s8386_s25 + $0x41] sm:$0xff] }
 0x219   : > { %v2661_v33 = vsel %vm8430_vm6, %v2629_v41, 0.0  ;;  %v2663_v41 = vsel %vm8477_vm8, %v9044_v61, 0.0  ;;  %v2665_v61 = vsel %vm8526_vm10, %v9069_v53, 0.0 }
 0x21a   : > { %v2691_v18 = vpack.c.bf16 %v2661_v33, %v2628_v7 }
 0x21b   : > { %v1821_v56 = vpop.f32.mrf.mxu0 }
 0x21c   : > { %v9372_v13 = vadd.f32 %v1821_v56, %v8997_v48  ;;  %v9374_v11 = vpop.f32.mrf.mxu1  ;;  %v9392_v56 = vpop.f32.mrf.mxu2 }
 0x223   : > { %v1824_v27 = vpop.f32.mrf.mxu0 }
 0x224   : > { %v1880_v51 = vadd.f32 %v1824_v27, %v9005_v47  ;;  %v2078_v32 = vpop.f32.mrf.mxu1 }
 0x226   : > { %v9383_v31 = vadd.f32 %v2078_v32, %v1880_v51  ;;  %7500 = vmatmul.msk.bf16.vlgmr.msra.gmra.mxu0 %vm12403_vm7, %v2690_v9  ;;  %vm12418_vm7 = vmmov %vm12301_vm1 }
 0x22b   : > { %v1826_v48 = vpop.f32.mrf.mxu0 }
 0x22c   : > { %v9387_v24 = vadd.f32 %v1826_v48, %v9017_v42  ;;  %v9389_v57 = vpop.f32.mrf.mxu1  ;;  %v9401_v42 = vpop.f32.mrf.mxu2 }
 0x22d   : > { %12405 = vst [vmem:[#allocation45_spill] sm:$0xff] %v9389_v57 }
 0x22e   : > { %12404 = vst [vmem:[#allocation52_spill] sm:$0xff] %v9387_v24 }
 0x233   : > { %v1829_v47 = vpop.f32.mrf.mxu0 }
 0x234   : > { %v1882_v27 = vadd.f32 %v1829_v47, %v9024_v5  ;;  %v2083_v51 = vpop.f32.mrf.mxu1  ;;  %v9411_v7 = vpop.f32.mrf.mxu2  ;;  %v2692_v5 = vpack.c.bf16 %v2663_v41, %v9051_v8 }
 0x235   : > { %v9428_v8 = vpop.f32.mrf.mxu3 }
 0x236   : > { %v9398_v32 = vadd.f32 %v2083_v51, %v1882_v27  ;;  %7501 = vmatmul.msk.bf16.gmra.mxu0 %vm12407_vm9, %v2691_v18  ;;  %vm12097_vm9 = vcmask 130048  }
 0x238   : > { %12406 = vst [vmem:[#allocation48_spill] sm:$0xff] %v9398_v32  ;;  %v12460_v32 = vld [vmem:[#allocation40_spill] sm:$0xff] }
 0x23b   : > { %v1831_v9 = vpop.f32.mrf.mxu0 }
 0x23c   : > { %v9404_v48 = vadd.f32 %v1831_v9, %v9036_v16  ;;  %v9406_v34 = vpop.f32.mrf.mxu1  ;;  %v9418_v51 = vpop.f32.mrf.mxu2 }
 0x23d   : > { %12409 = vst [vmem:[#allocation51_spill] sm:$0xff] %v9406_v34 }
 0x23e   : > { %12408 = vst [vmem:[#allocation50_spill] sm:$0xff] %v9404_v48  ;;  %v2677_v48 = vsel %vm12330_vm11, %v9218_v60, 0.0 }
 0x243   : > { %v1834_v33 = vpop.f32.mrf.mxu0 }
 0x244   : > { %v1884_v47 = vadd.f32 %v1834_v33, %v9046_v63  ;;  %v2088_v18 = vpop.f32.mrf.mxu1  ;;  %v2693_v63 = vpack.c.bf16 %v2665_v61, %v9077_v28  ;;  %v2667_v28 = vsel %vm8567_vm12, %v9095_v2, 0.0 }
 0x245   : > { %v2694_v61 = vpack.c.bf16 %v2667_v28, %v9101_v62  ;;  %v8042_v62 = vld [vmem:[%s12422_s3 + $0x8] sm:$0xff]  ;;  %v2669_v28 = vsel %vm8604_vm14, %v9119_v30, 0.0 }
 0x246   : > { %v9415_v27 = vadd.f32 %v2088_v18, %v1884_v47  ;;  %7502 = vmatmul.msk.bf16.gmra.mxu0 %vm12411_vm13, %v2692_v5  ;;  %v9432_v47 = vpop.f32.mrf.mxu2  ;;  %3213 = vmatpush.bf16.msra.mxu1 %v8042_v62  ;;  %vm12425_vm13 = vmmov %vm12301_vm1 }
 0x248   : > { %12410 = vst [vmem:[#allocation47_spill] sm:$0xff] %v9415_v27  ;;  %v9645_v27 = vld [vmem:[%s12452_s2] ss:$0 sm:$0xff] }
 0x24b   : > { %v1836_v16 = vpop.f32.mrf.mxu0 }
 0x24c   : > { %v9421_v9 = vadd.f32 %v1836_v16, %v9061_v21  ;;  %v9423_v34 = vpop.f32.mrf.mxu1  ;;  %v9437_v21 = vpop.f32.mrf.mxu3 }
 0x24d   : > { %12413 = vst [vmem:[#allocation56_spill] sm:$0xff] %v9423_v34 }
 0x24e   : > { %12412 = vst [vmem:[#allocation53_spill] sm:$0xff] %v9421_v9 }
 0x253   : > { %v1839_v41 = vpop.f32.mrf.mxu0 }
 0x254   : > { %v1886_v33 = vadd.f32 %v1839_v41, %v9071_v38  ;;  %v2093_v5 = vpop.f32.mrf.mxu1  ;;  %v9447_v38 = vpop.f32.mrf.mxu2 }
 0x256   : > { %v9434_v18 = vadd.f32 %v2093_v5, %v1886_v33  ;;  %7503 = vmatmul.msk.bf16.gmra.mxu0 %vm12301_vm1, %v2693_v63  ;;  %v9451_v5 = vpop.f32.mrf.mxu3 }
 0x258   : > { %12414 = vst [vmem:[#allocation58_spill] sm:$0xff] %v9434_v18 }
 0x25b   : > { %v1841_v16 = vpop.f32.mrf.mxu0 }
 0x25c   : > { %v9440_v34 = vadd.f32 %v1841_v16, %v9088_v29  ;;  %v9442_v53 = vpop.f32.mrf.mxu1  ;;  %v9456_v29 = vpop.f32.mrf.mxu2 }
 0x25d   : > { %12416 = vst [vmem:[#allocation59_spill] sm:$0xff] %v9442_v53 }
 0x25e   : > { %12415 = vst [vmem:[#allocation55_spill] sm:$0xff] %v9440_v34 }
 0x25f   : > { %12419 = vst [vmem:[#allocation61_spill] sm:$0xff] %v9456_v29 }
 0x263   : > { %v1844_v41 = vpop.f32.mrf.mxu0 }
 0x264   : > { %v1888_v33 = vadd.f32 %v1844_v41, %v9097_v55  ;;  %v2098_v63 = vpop.f32.mrf.mxu1  ;;  %v9466_v55 = vpop.f32.mrf.mxu3 }
 0x266   : > { %v9453_v18 = vadd.f32 %v2098_v63, %v1888_v33  ;;  %7504 = vmatmul.msk.bf16.gmra.mxu0 %vm12418_vm7, %v2694_v61  ;;  %v2695_v61 = vpack.c.bf16 %v2669_v28, %v9125_v59  ;;  %v12095_v33 = vmov 0.0   ;;  %v8041_v59 = vld [vmem:[%s12422_s3] sm:$0xff]  ;;  %vm12443_vm7 = vmmov %vm12301_vm1 }
 0x267   : > { %2949 = vst.msk [vmem:[#allocation2] sm:$0xff] %vm12097_vm9, %v12095_v33  ;;  %3356 = vmatpush.bf16.msra.mxu2 %v8041_v59 }
 0x268   : > { %12417 = vst [vmem:[#allocation57_spill] sm:$0xff] %v9453_v18  ;;  %v12441_v18 = vld [vmem:[#allocation67_spill] sm:$0xff] }
 0x269   : > { %2950 = vst.msk [vmem:[#allocation2 + $0x8] sm:$0xff] %vm12097_vm9, %v12095_v33 }
 0x26a   : > { %2951 = vst.msk [vmem:[#allocation2 + $0x10] sm:$0xff] %vm12097_vm9, %v12095_v33 }
 0x26b   : > { %v1846_v16 = vpop.f32.mrf.mxu0  ;;  %2952 = vst.msk [vmem:[#allocation2 + $0x18] sm:$0xff] %vm12097_vm9, %v12095_v33 }
 0x26c   : > { %v9459_v53 = vadd.f32 %v1846_v16, %v9112_v40  ;;  %v9461_v2 = vpop.f32.mrf.mxu1  ;;  %v9474_v40 = vpop.f32.mrf.mxu2  ;;  %2953 = vst.msk [vmem:[#allocation2 + $0x20] sm:$0xff] %vm12097_vm9, %v12095_v33 }
 0x26d   : > { %12421 = vst [vmem:[#allocation72_spill] sm:$0xff] %v9461_v2 }
 0x26e   : > { %12420 = vst [vmem:[#allocation62_spill] sm:$0xff] %v9459_v53 }
 0x26f   : > { %12423 = vst [vmem:[#allocation73_spill] sm:$0xff] %v9474_v40 }
 0x270   : > { %2954 = vst.msk [vmem:[#allocation2 + $0x28] sm:$0xff] %vm12097_vm9, %v12095_v33  ;;  %v3019_v28 = vld [vmem:[#allocation2 + $0x7] sm:$0xff] }
 0x271   : > { %2955 = vst.msk [vmem:[#allocation2 + $0x30] sm:$0xff] %vm12097_vm9, %v12095_v33  ;;  %v3438_v60 = vld [vmem:[#allocation2 + $0x9] sm:$0xff] }
 0x272   : > { %2956 = vst.msk [vmem:[#allocation2 + $0x38] sm:$0xff] %vm12097_vm9, %v12095_v33 }
 0x273   : > { %v1849_v41 = vpop.f32.mrf.mxu0  ;;  %2957 = vst.msk [vmem:[#allocation2 + $0x40] sm:$0xff] %vm12097_vm9, %v12095_v33 }
 0x274   : > { %v1890_v63 = vadd.f32 %v1849_v41, %v9121_v1  ;;  %v2103_v16 = vpop.f32.mrf.mxu1  ;;  %v9490_v1 = vpop.f32.mrf.mxu3  ;;  %2958 = vst.msk [vmem:[#allocation2 + $0x48] sm:$0xff] %vm12097_vm9, %v12095_v33 }
 0x275   : > { %2959 = vst.msk [vmem:[#allocation2 + $0x50] sm:$0xff] %vm12097_vm9, %v12095_v33  ;;  %v9512_v59 = vpop.f32.mrf.mxu2 }
 0x276   : > { %v9481_v30 = vadd.f32 %v2103_v16, %v1890_v63  ;;  %7505 = vmatmul.msk.bf16.gmra.mxu0 %vm12425_vm13, %v2695_v61  ;;  %v3020_v63 = vld [vmem:[#allocation2 + $0xf] sm:$0xff]  ;;  %v3051_v16 = vsel %vm8388_vm2, %v3019_v28, 0.0  ;;  %12428 = vst [vmem:[#allocation77_spill] sm:$0xff] %v9512_v59  ;;  %v12430_v28 = vld [vmem:[#allocation64_spill] sm:$0xff]  ;;  %vm12454_vm13 = vmmov %vm12301_vm1 }
 0x277   : > { %2960 = vst.msk [vmem:[#allocation2 + $0x58] sm:$0xff] %vm12097_vm9, %v12095_v33 }
 0x278   : > { %12424 = vst [vmem:[#allocation74_spill] sm:$0xff] %v9481_v30  ;;  %v3083_v30 = vpack.c.bf16 %v3020_v63, %v3051_v16 }
 0x279   : > { %2961 = vst.msk [vmem:[#allocation2 + $0x60] sm:$0xff] %vm12097_vm9, %v12095_v33 }
 0x27a   : > { %7542 = vmatmul.msk.bf16.vlgmr.msra.gmra.mxu2 %vm12097_vm9, %v3083_v30  ;;  %2962 = vst.msk [vmem:[#allocation2 + $0x68] sm:$0xff] %vm12097_vm9, %v12095_v33 }
 0x27b   : > { %v1851_v62 = vpop.f32.mrf.mxu0  ;;  %2963 = vst.msk [vmem:[#allocation2 + $0x70] sm:$0xff] %vm12097_vm9, %v12095_v33 }
 0x27c   : > { %v9502_v61 = vadd.f32 %v1851_v62, %v9136_v37  ;;  %v9504_v41 = vpop.f32.mrf.mxu1  ;;  %v2671_v62 = vsel %vm12302_vm0, %v9143_v22, 0.0  ;;  %2964 = vst.msk [vmem:[#allocation2 + $0x78] sm:$0xff] %vm12097_vm9, %v12095_v33  ;;  %v9529_v16 = vpop.f32.mrf.mxu3  ;;  %v12431_v22 = vld [vmem:[#allocation63_spill] sm:$0xff]  ;;  %v12587_v37 = vld [vmem:[#allocation37_spill] sm:$0xff] }
 0x27d   : > { %12427 = vst [vmem:[#allocation76_spill] sm:$0xff] %v9504_v41  ;;  %v2696_v63 = vpack.c.bf16 %v2671_v62, %v12430_v28  ;;  %v9545_v62 = vpop.f32.mrf.mxu2  ;;  %v3102_v28 = vld [vmem:[#allocation2 + $0x10] sm:$0xff] }
 0x27e   : > { %12426 = vst [vmem:[#allocation75_spill] sm:$0xff] %v9502_v61 }
 0x27f   : > { %2965 = vst.msk [vmem:[#allocation2 + $0x80] sm:$0xff] %vm12097_vm9, %v12095_v33 }
 0x280   : > { %2966 = vst.msk [vmem:[#allocation2 + $0x88] sm:$0xff] %vm12097_vm9, %v12095_v33 }
 0x281   : > { %2967 = vst.msk [vmem:[#allocation2 + $0x90] sm:$0xff] %vm12097_vm9, %v12095_v33 }
 0x282   : > { %2968 = vst.msk [vmem:[#allocation2 + $0x98] sm:$0xff] %vm12097_vm9, %v12095_v33 }
 0x283   : > { %v1854_v41 = vpop.f32.mrf.mxu0  ;;  %2969 = vst.msk [vmem:[#allocation2 + $0xa0] sm:$0xff] %vm12097_vm9, %v12095_v33 }
 0x284   : > { %v1892_v30 = vadd.f32 %v1854_v41, %v12431_v22  ;;  %v2108_v61 = vpop.f32.mrf.mxu1  ;;  %12433 = vst [vmem:[#allocation63_spill] sm:$0xff] %v9545_v62  ;;  %v3101_v41 = vld [vmem:[#allocation2 + $0x8] sm:$0xff]  ;;  %v9563_v53 = vpop.f32.mrf.mxu3 }
 0x285   : > { %2970 = vst.msk [vmem:[#allocation2 + $0xa8] sm:$0xff] %vm12097_vm9, %v12095_v33  ;;  %v12434_v22 = vld [vmem:[#allocation65_spill] sm:$0xff] }
 0x286   : > { %v9538_v2 = vadd.f32 %v2108_v61, %v1892_v30  ;;  %7506 = vmatmul.msk.bf16.gmra.mxu0 %vm12301_vm1, %v2696_v63  ;;  %2971 = vst.msk [vmem:[#allocation2 + $0xb0] sm:$0xff] %vm12097_vm9, %v12095_v33  ;;  %v3133_v61 = vpack.c.bf16 %v3102_v28, %v3101_v41  ;;  %v12437_v41 = vld [vmem:[#allocation66_spill] sm:$0xff] }
 0x287   : > { %2972 = vst.msk [vmem:[#allocation2 + $0xb8] sm:$0xff] %vm12097_vm9, %v12095_v33 }
 0x288   : > { %12432 = vst [vmem:[#allocation64_spill] sm:$0xff] %v9538_v2  ;;  %7522 = vmatmul.msk.bf16.vlgmr.msra.gmra.mxu1 %vm12097_vm9, %v3133_v61  ;;  %v2673_v61 = vsel %vm12309_vm15, %v12437_v41, 0.0  ;;  %v8043_v41 = vld [vmem:[%s12422_s3 + $0x10] sm:$0xff] }
 0x289   : > { %2973 = vst.msk [vmem:[#allocation2 + $0xc0] sm:$0xff] %vm12097_vm9, %v12095_v33  ;;  %3582 = vmatpush.bf16.msra.mxu3 %v8043_v41 }
 0x28a   : > { %2974 = vst.msk [vmem:[#allocation2 + $0xc8] sm:$0xff] %vm12097_vm9, %v12095_v33 }
 0x28b   : > { %v1856_v63 = vpop.f32.mrf.mxu0  ;;  %2975 = vst.msk [vmem:[#allocation2 + $0xd0] sm:$0xff] %vm12097_vm9, %v12095_v33 }
 0x28c   : > { %v9557_v30 = vadd.f32 %v1856_v63, %v12434_v22  ;;  %v9559_v2 = vpop.f32.mrf.mxu1  ;;  %2976 = vst.msk [vmem:[#allocation2 + $0xd8] sm:$0xff] %vm12097_vm9, %v12095_v33  ;;  %v9578_v63 = vpop.f32.mrf.mxu2  ;;  %v12440_v22 = vld [vmem:[#allocation68_spill] sm:$0xff] }
 0x28d   : > { %12436 = vst [vmem:[#allocation78_spill] sm:$0xff] %v9559_v2  ;;  %v2697_v2 = vpack.c.bf16 %v2673_v61, %v12440_v22  ;;  %v9598_v22 = vpop.f32.mrf.mxu3 }
 0x28e   : > { %12435 = vst [vmem:[#allocation65_spill] sm:$0xff] %v9557_v30 }
 0x28f   : > { %2977 = vst.msk [vmem:[#allocation2 + $0xe0] sm:$0xff] %vm12097_vm9, %v12095_v33 }
 0x290   : > { %2978 = vst.msk [vmem:[#allocation2 + $0xe8] sm:$0xff] %vm12097_vm9, %v12095_v33 }
 0x291   : > { %2979 = vst.msk [vmem:[#allocation2 + $0xf0] sm:$0xff] %vm12097_vm9, %v12095_v33 }
 0x292   : > { %12439 = vst [vmem:[#allocation66_spill] sm:$0xff] %v9578_v63 }
 0x293   : > { %2980 = vst.msk [vmem:[#allocation2 + $0xf8] sm:$0xff] %vm12097_vm9, %v12095_v33  ;;  %v1859_v30 = vpop.f32.mrf.mxu0 }
 0x294   : > { %2981 = vst.msk [vmem:[#allocation2 + $0x100] sm:$0xff] %vm12097_vm9, %v12095_v33  ;;  %v1894_v34 = vadd.f32 %v1859_v30, %v12441_v18  ;;  %v2113_v9 = vpop.f32.mrf.mxu1  ;;  %v12445_v18 = vld [vmem:[#allocation30_spill] sm:$0xff]  ;;  %v12447_v30 = vld [vmem:[#allocation32_spill] sm:$0xff] }
 0x295   : > { %2982 = vst.msk [vmem:[#allocation2 + $0x108] sm:$0xff] %vm12097_vm9, %v12095_v33 }
 0x296   : > { %2983 = vst.msk [vmem:[#allocation2 + $0x110] sm:$0xff] %vm12097_vm9, %v12095_v33  ;;  %v9593_v61 = vadd.f32 %v2113_v9, %v1894_v34  ;;  %7507 = vmatmul.msk.bf16.gmra.mxu0 %vm12443_vm7, %v2697_v2  ;;  %v9610_v9 = vpop.f32.mrf.mxu2 }
 0x297   : > { %2984 = vst.msk [vmem:[#allocation2 + $0x118] sm:$0xff] %vm12097_vm9, %v12095_v33 }
 0x298   : > { %12442 = vst [vmem:[#allocation68_spill] sm:$0xff] %v9593_v61  ;;  %v2675_v61 = vsel %vm12318_vm3, %v12447_v30, 0.0  ;;  %v12451_v30 = vld [vmem:[#allocation69_spill] sm:$0xff] }
 0x299   : > { %2985 = vst.msk [vmem:[#allocation2 + $0x120] sm:$0xff] %vm12097_vm9, %v12095_v33 }
 0x29a   : > { %2986 = vst.msk [vmem:[#allocation2 + $0x128] sm:$0xff] %vm12097_vm9, %v12095_v33 }
 0x29b   : > { %5370 = vst.msk [vmem:[#allocation3] sm:$0xff] %vm12097_vm9, %v12095_v33  ;;  %v1861_v34 = vpop.f32.mrf.mxu0 }
 0x29c   : > { %5371 = vst.msk [vmem:[#allocation3 + $0x8] sm:$0xff] %vm12097_vm9, %v12095_v33  ;;  %v9613_v2 = vadd.f32 %v1861_v34, %v12445_v18  ;;  %v9628_v34 = vpop.f32.mrf.mxu3  ;;  %v12450_v18 = vld [vmem:[#allocation70_spill] sm:$0xff] }
 0x29d   : > { %5372 = vst.msk [vmem:[#allocation3 + $0x10] sm:$0xff] %vm12097_vm9, %v12095_v33 }
 0x29e   : > { %12444 = vst [vmem:[#allocation67_spill] sm:$0xff] %v9610_v9  ;;  %v9647_v62 = vpop.f32.mrf.mxu2 }
 0x29f   : > { %12446 = vst [vmem:[#allocation30_spill] sm:$0xff] %v9613_v2  ;;  %v2698_v2 = vpack.c.bf16 %v2675_v61, %v12450_v18  ;;  %v12456_v18 = vld [vmem:[#allocation34_spill] sm:$0xff] }
 0x2a0   : > { %5373 = vst.msk [vmem:[#allocation3 + $0x18] sm:$0xff] %vm12097_vm9, %v12095_v33 }
 0x2a1   : > { %5374 = vst.msk [vmem:[#allocation3 + $0x20] sm:$0xff] %vm12097_vm9, %v12095_v33 }
 0x2a2   : > { %5375 = vst.msk [vmem:[#allocation3 + $0x28] sm:$0xff] %vm12097_vm9, %v12095_v33 }
 0x2a3   : > { %5376 = vst.msk [vmem:[#allocation3 + $0x30] sm:$0xff] %vm12097_vm9, %v12095_v33  ;;  %v2768_v9 = vpop.f32.mrf.mxu0 }
 0x2a4   : > { %5377 = vst.msk [vmem:[#allocation3 + $0x38] sm:$0xff] %vm12097_vm9, %v12095_v33  ;;  %v2848_v63 = vadd.f32 %v2768_v9, %v12451_v30  ;;  %v9661_v9 = vpop.f32.mrf.mxu3 }
 0x2a5   : > { %12449 = vst [vmem:[#allocation32_spill] sm:$0xff] %v9628_v34 }
 0x2a6   : > { %5378 = vst.msk [vmem:[#allocation3 + $0x40] sm:$0xff] %vm12097_vm9, %v12095_v33  ;;  %7508 = vmatmul.msk.bf16.gmra.mxu0 %vm12454_vm13, %v2698_v2  ;;  %v2884_v61 = vadd.f32 %v9645_v27, %v2848_v63  ;;  %v9678_v59 = vpop.f32.mrf.mxu2 }
 0x2a7   : > { %5379 = vst.msk [vmem:[#allocation3 + $0x48] sm:$0xff] %vm12097_vm9, %v12095_v33 }
 0x2a8   : > { %5380 = vst.msk [vmem:[#allocation3 + $0x50] sm:$0xff] %vm12097_vm9, %v12095_v33 }
 0x2a9   : > { %5381 = vst.msk [vmem:[#allocation3 + $0x58] sm:$0xff] %vm12097_vm9, %v12095_v33 }
 0x2aa   : > { %6127 = vst.msk [vmem:[#allocation4] sm:$0xff] %vm12097_vm9, %v12095_v33 }
 0x2ab   : > { %12453 = vst [vmem:[#allocation70_spill] sm:$0xff] %v9647_v62  ;;  %v2770_v2 = vpop.f32.mrf.mxu0  ;;  %v2916_v62 = vmax.f32 %v2884_v61, 0.0  ;;  %v12459_v61 = vld [vmem:[#allocation36_spill] sm:$0xff] }
 0x2ac   : > { %6128 = vst.msk [vmem:[#allocation4 + $0x8] sm:$0xff] %vm12097_vm9, %v12095_v33  ;;  %v2849_v30 = vadd.f32 %v2770_v2, %v12456_v18  ;;  %v2699_v18 = vpack.c.bf16 %v2677_v48, %v12459_v61  ;;  %v9686_v40 = vpop.f32.mrf.mxu3  ;;  %v12462_v48 = vld [vmem:[#allocation14_spill] sm:$0xff] }
 0x2ad   : > { %6129 = vst.msk [vmem:[#allocation4 + $0x10] sm:$0xff] %vm12097_vm9, %v12095_v33  ;;  %vm12463_vm7 = vnez %v12462_v48 }
 0x2ae   : > { %6130 = vst.msk [vmem:[#allocation4 + $0x18] sm:$0xff] %vm12097_vm9, %v12095_v33  ;;  %v2885_v63 = vadd.f32 %v9645_v27, %v2849_v30 }
 0x2af   : > { %6131 = vst.msk [vmem:[#allocation4 + $0x20] sm:$0xff] %vm12097_vm9, %v12095_v33 }
 0x2b0   : > { %6132 = vst.msk [vmem:[#allocation4 + $0x28] sm:$0xff] %vm12097_vm9, %v12095_v33  ;;  %v2917_v2 = vmax.f32 %v2885_v63, 0.0 }
 0x2b1   : > { %12455 = vst [vmem:[#allocation69_spill] sm:$0xff] %v9661_v9 }
 0x2b2   : > { %6133 = vst.msk [vmem:[#allocation4 + $0x30] sm:$0xff] %vm12097_vm9, %v12095_v33 }
 0x2b3   : > { %6134 = vst.msk [vmem:[#allocation4 + $0x38] sm:$0xff] %vm12097_vm9, %v12095_v33  ;;  %v2773_v30 = vpop.f32.mrf.mxu0 }
 0x2b4   : > { %6135 = vst.msk [vmem:[#allocation4 + $0x40] sm:$0xff] %vm12097_vm9, %v12095_v33  ;;  %v2850_v9 = vadd.f32 %v2773_v30, %v12460_v32  ;;  %v9696_v30 = vpop.f32.mrf.mxu2  ;;  %v9706_v29 = vpop.f32.mrf.mxu3 }
 0x2b5   : > { %6136 = vst.msk [vmem:[#allocation4 + $0x48] sm:$0xff] %vm12097_vm9, %v12095_v33 }
 0x2b6   : > { %6137 = vst.msk [vmem:[#allocation4 + $0x50] sm:$0xff] %vm12097_vm9, %v12095_v33  ;;  %v2886_v41 = vadd.f32 %v9645_v27, %v2850_v9  ;;  %7509 = vmatmul.msk.bf16.gmra.mxu0 %vm12301_vm1, %v2699_v18 }
 0x2b7   : > { %12458 = vst [vmem:[#allocation34_spill] sm:$0xff] %v9678_v59 }
 0x2b8   : > { %6138 = vst.msk [vmem:[#allocation4 + $0x58] sm:$0xff] %vm12097_vm9, %v12095_v33  ;;  %v2918_v59 = vmax.f32 %v2886_v41, 0.0 }
 0x2b9   : > { %2987 = vst.msk [vmem:[#allocation2 + $0x18] sm:$0xff] %vm12097_vm9, %v2916_v62 }
 0x2ba   : > { %2988 = vst.msk [vmem:[#allocation2 + $0x20] sm:$0xff] %vm12097_vm9, %v2917_v2 }
 0x2bb   : > { %12461 = vst [vmem:[#allocation36_spill] sm:$0xff] %v9686_v40  ;;  %v2775_v24 = vpop.f32.mrf.mxu0 }
 0x2bc   : > { %12464 = vst [vmem:[#allocation40_spill] sm:$0xff] %v9696_v30 }
 0x2bd   : > { %2989 = vst.msk [vmem:[#allocation2 + $0x28] sm:$0xff] %vm12097_vm9, %v2918_v59  ;;  %v12467_v59 = vld [vmem:[#allocation35_spill] sm:$0xff] }
 0x2be   : > { %12466 = vst [vmem:[#allocation14_spill] sm:$0xff] %v9706_v29  ;;  %vm12468_vm13 = vnez %v12467_v59  ;;  %v12474_v59 = vld [vmem:[#allocation17_spill] sm:$0xff]  ;;  %v2649_v29 = vld [vmem:[%s8386_s25 + $0xe1] sm:$0xff] }
 0x2c0   : > { %v3439_v28 = vld [vmem:[#allocation2 + $0x11] sm:$0xff] }
 0x2c1   : > { %v3021_v33 = vld [vmem:[#allocation2 + $0x17] sm:$0xff]  ;;  %v3471_v62 = vsel %vm8401_vm4, %v3439_v28, 0.0  ;;  %v3104_v2 = vld [vmem:[#allocation2 + $0x20] sm:$0xff] }
 0x2c2   : > { %v3103_v63 = vld [vmem:[#allocation2 + $0x18] sm:$0xff]  ;;  %v3053_v61 = vsel %vm12463_vm7, %v3021_v33, 0.0  ;;  %v3728_v32 = vsel %vm8388_vm2, %v3021_v33, 0.0  ;;  %v3502_v9 = vpack.c.bf16 %v3471_v62, %v3438_v60  ;;  %v2679_v60 = vsel %vm12468_vm13, %v9245_v50, 0.0 }
 0x2c3   : > { %v3022_v57 = vld [vmem:[#allocation2 + $0x1f] sm:$0xff]  ;;  %v3134_v41 = vpack.c.bf16 %v3104_v2, %v3103_v63  ;;  %v12465_v28 = vld [vmem:[#allocation38_spill] sm:$0xff] }
 0x2c4   : > { %v3084_v18 = vpack.c.bf16 %v3022_v57, %v3053_v61  ;;  %v9699_v40 = vpack.c.bf16 %v3022_v57, %v3728_v32  ;;  %7564 = vmatmul.msk.bf16.vlgmr.msra.gmra.mxu3 %vm12097_vm9, %v3502_v9  ;;  %v2851_v34 = vadd.f32 %v2775_v24, %v12465_v28  ;;  %v3441_v57 = vld [vmem:[#allocation2 + $0x21] sm:$0xff]  ;;  %v3440_v63 = vld [vmem:[#allocation2 + $0x19] sm:$0xff]  ;;  %v2778_v32 = vpop.f32.mrf.mxu0 }
 0x2c5   : > { %7523 = vmatmul.msk.bf16.gmra.mxu1 %vm12097_vm9, %v3134_v41  ;;  %v12469_v2 = vld [vmem:[#allocation71_spill] sm:$0xff]  ;;  %v4213_v24 = vsel %vm8401_vm4, %v3441_v57, 0.0  ;;  %v12472_v41 = vld [vmem:[#allocation41_spill] sm:$0xff]  ;;  %v3473_v50 = vsel %vm8430_vm6, %v3441_v57, 0.0 }
 0x2c6   : > { %7543 = vmatmul.msk.bf16.gmra.mxu2 %vm12097_vm9, %v3084_v18  ;;  %v2887_v33 = vadd.f32 %v9645_v27, %v2851_v34  ;;  %v2700_v61 = vpack.c.bf16 %v2679_v60, %v12469_v2  ;;  %v9715_v9 = vpack.c.bf16 %v4213_v24, %v3440_v63  ;;  %v9717_v34 = vpop.f32.mrf.mxu2  ;;  %v2852_v18 = vadd.f32 %v2778_v32, %v12472_v41  ;;  %v9724_v2 = vpop.f32.mrf.mxu3  ;;  %v3105_v30 = vld [vmem:[#allocation2 + $0x28] sm:$0xff] }
 0x2c7   : > { %12471 = vst [vmem:[#allocation71_spill] sm:$0xff] %v9717_v34  ;;  %v3503_v60 = vpack.c.bf16 %v3473_v50, %v3440_v63 }
 0x2c8   : > { %v2919_v62 = vmax.f32 %v2887_v33, 0.0  ;;  %12470 = vst [vmem:[#allocation38_spill] sm:$0xff] %v9715_v9  ;;  %v2888_v28 = vadd.f32 %v9645_v27, %v2852_v18  ;;  %7510 = vmatmul.msk.bf16.gmra.mxu0 %vm12301_vm1, %v2700_v61  ;;  %v3023_v33 = vld [vmem:[#allocation2 + $0x27] sm:$0xff]  ;;  %vm12476_vm1 = vcmask 130048  }
 0x2c9   : > { %12473 = vst [vmem:[#allocation41_spill] sm:$0xff] %v9724_v2  ;;  %v3730_v57 = vsel %vm12463_vm7, %v3023_v33, 0.0  ;;  %v4470_v32 = vsel %vm8388_vm2, %v3023_v33, 0.0  ;;  %vm12478_vm13 = vmmov %vm12476_vm1 }
 0x2ca   : > { %2990 = vst.msk [vmem:[#allocation2 + $0x30] sm:$0xff] %vm12097_vm9, %v2919_v62  ;;  %v2920_v62 = vmax.f32 %v2888_v28, 0.0  ;;  %vm12475_vm9 = vnez %v12474_v59  ;;  %v12479_v28 = vld [vmem:[#allocation43_spill] sm:$0xff]  ;;  %vm12480_vm11 = vmmov %vm12476_vm1 }
 0x2cb   : > { %v3055_v34 = vsel %vm12475_vm9, %v3023_v33, 0.0  ;;  %vm12481_vm3 = vmmov %vm12476_vm1 }
 0x2cc   : > { %2991 = vst.msk [vmem:[#allocation2 + $0x38] sm:$0xff] %vm12476_vm1, %v2920_v62  ;;  %v2780_v50 = vpop.f32.mrf.mxu0 }
 0x2cd   : > { %v2853_v2 = vadd.f32 %v2780_v50, %v12479_v28 }
 0x2ce   : > { %v9742_v15 = vpop.f32.mrf.mxu2 }
 0x2cf   : > { %12482 = vst [vmem:[#allocation43_spill] sm:$0xff] %v9742_v15  ;;  %v2889_v33 = vadd.f32 %v9645_v27, %v2853_v2 }
 0x2d1   : > { %v3106_v24 = vld [vmem:[#allocation2 + $0x30] sm:$0xff] }
 0x2d2   : > { %v3024_v9 = vld [vmem:[#allocation2 + $0x2f] sm:$0xff]  ;;  %v3135_v61 = vpack.c.bf16 %v3106_v24, %v3105_v30  ;;  %v2648_v30 = vld [vmem:[%s8386_s25 + $0xd9] sm:$0xff] }
 0x2d3   : > { %v3085_v63 = vpack.c.bf16 %v3024_v9, %v3055_v34  ;;  %v9733_v41 = vpack.c.bf16 %v3024_v9, %v3730_v57  ;;  %v9735_v18 = vpack.c.bf16 %v3024_v9, %v4470_v32  ;;  %v12483_v34 = vld [vmem:[#allocation39_spill] sm:$0xff]  ;;  %v2921_v9 = vmax.f32 %v2889_v33, 0.0  ;;  %v3443_v24 = vld [vmem:[#allocation2 + $0x31] sm:$0xff]  ;;  %v9749_v32 = vpop.f32.mrf.mxu3  ;;  %v4182_v50 = vld [vmem:[#allocation2 + $0x29] sm:$0xff] }
 0x2d4   : > { %7565 = vmatmul.msk.bf16.gmra.mxu3 %vm12478_vm13, %v3503_v60  ;;  %vm12484_vm2 = vnez %v12483_v34  ;;  %v4183_v57 = vld [vmem:[#allocation2 + $0x31] sm:$0xff]  ;;  %vm12491_vm13 = vmmov %vm12476_vm1 }
 0x2d5   : > { %12477 = vst [vmem:[#allocation79_spill] sm:$0xff] %v9735_v18  ;;  %7524 = vmatmul.msk.bf16.gmra.mxu1 %vm12480_vm11, %v3135_v61  ;;  %v2681_v62 = vsel %vm12484_vm2, %v2649_v29, 0.0  ;;  %v2783_v61 = vpop.f32.mrf.mxu0  ;;  %v3475_v29 = vsel %vm8477_vm8, %v3443_v24, 0.0  ;;  %v3107_v25 = vld [vmem:[#allocation2 + $0x38] sm:$0xff]  ;;  %vm12489_vm11 = vmmov %vm12476_vm1 }
 0x2d6   : > { %7544 = vmatmul.msk.bf16.gmra.mxu2 %vm12481_vm3, %v3085_v63  ;;  %2992 = vst.msk [vmem:[#allocation2 + $0x40] sm:$0xff] %vm12476_vm1, %v2921_v9  ;;  %v2701_v60 = vpack.c.bf16 %v2681_v62, %v2648_v30  ;;  %v4955_v63 = vsel %vm8401_vm4, %v4183_v57, 0.0  ;;  %v2854_v28 = vadd.f32 %v2783_v61, %v9271_v4  ;;  %vm12486_vm3 = vcmask 23552   ;;  %v3025_v30 = vld [vmem:[#allocation2 + $0x37] sm:$0xff]  ;;  %v3442_v62 = vld [vmem:[#allocation2 + $0x29] sm:$0xff]  ;;  %v9760_v9 = vpop.f32.mrf.mxu2 }
 0x2d7   : > { %v9754_v2 = vpack.c.bf16 %v4955_v63, %v4182_v50  ;;  %v3504_v15 = vpack.c.bf16 %v3475_v29, %v3442_v62  ;;  %v12487_v4 = vld [vmem:[#allocation20_spill] sm:$0xff]  ;;  %v3732_v24 = vsel %vm12475_vm9, %v3025_v30, 0.0 }
 0x2d8   : > { %v2890_v33 = vadd.f32 %v9645_v27, %v2854_v28  ;;  %7511 = vmatmul.msk.bf16.gmra.mxu0 %vm12486_vm3, %v2701_v60  ;;  %vm12488_vm4 = vnez %v12487_v4  ;;  %v4472_v60 = vsel %vm12463_vm7, %v3025_v30, 0.0  ;;  %vm12492_vm3 = vmmov %vm12476_vm1 }
 0x2d9   : > { %12485 = vst [vmem:[#allocation80_spill] sm:$0xff] %v9754_v2  ;;  %v3057_v61 = vsel %vm12488_vm4, %v3025_v30, 0.0  ;;  %v2651_v2 = vld [vmem:[%s8386_s25 + $0xf1] sm:$0xff]  ;;  %v12493_v30 = vld [vmem:[#allocation44_spill] sm:$0xff]  ;;  %vm12502_vm9 = vmmov %vm12492_vm3 }
 0x2da   : > { %v2922_v18 = vmax.f32 %v2890_v33, 0.0  ;;  %vm12494_vm7 = vnez %v12493_v30 }
 0x2db   : > { %v9777_v59 = vpop.f32.mrf.mxu3 }
 0x2dc   : > { %2993 = vst.msk [vmem:[#allocation2 + $0x48] sm:$0xff] %vm12489_vm11, %v2922_v18  ;;  %v2650_v18 = vld [vmem:[%s8386_s25 + $0xe9] sm:$0xff]  ;;  %vm12495_vm11 = vmmov %vm12476_vm1 }
 0x2dd   : > { %v3108_v57 = vld [vmem:[#allocation2 + $0x40] sm:$0xff]  ;;  %v2785_v33 = vpop.f32.mrf.mxu0 }
 0x2de   : > { %v3026_v34 = vld [vmem:[#allocation2 + $0x3f] sm:$0xff]  ;;  %v3136_v50 = vpack.c.bf16 %v3108_v57, %v3107_v25  ;;  %v2855_v62 = vadd.f32 %v2785_v33, %v9284_v20  ;;  %v2683_v25 = vsel %vm12494_vm7, %v2651_v2, 0.0  ;;  %v2602_v57 = vadd.f32 %v9428_v8, %v9298_v23 }
 0x2df   : > { %v3086_v63 = vpack.c.bf16 %v3026_v34, %v3057_v61  ;;  %v9769_v28 = vpack.c.bf16 %v3026_v34, %v3732_v24  ;;  %v9771_v29 = vpack.c.bf16 %v3026_v34, %v4472_v60  ;;  %v2702_v61 = vpack.c.bf16 %v2683_v25, %v2650_v18 }
 0x2e0   : > { %v2891_v48 = vadd.f32 %v9645_v27, %v2855_v62  ;;  %v2127_v33 = vadd.f32 %v9300_v52, %v9296_v44 }
 0x2e1   : > { %12490 = vst [vmem:[#allocation20_spill] sm:$0xff] %v9771_v29 }
 0x2e2   : > { %v2923_v34 = vmax.f32 %v2891_v48, 0.0  ;;  %v2381_v8 = vadd.f32 %v9380_v26, %v2127_v33 }
 0x2e3   : > { %v3445_v20 = vld [vmem:[#allocation2 + $0x41] sm:$0xff]  ;;  %v9800_v25 = vpop.f32.mrf.mxu3 }
 0x2e4   : > { %7566 = vmatmul.msk.bf16.gmra.mxu3 %vm12491_vm13, %v3504_v15  ;;  %v9786_v15 = vpop.f32.mrf.mxu2  ;;  %2994 = vst.msk [vmem:[#allocation2 + $0x50] sm:$0xff] %vm12495_vm11, %v2923_v34  ;;  %v4185_v24 = vld [vmem:[#allocation2 + $0x41] sm:$0xff]  ;;  %v3477_v23 = vsel %vm8526_vm10, %v3445_v20, 0.0  ;;  %vm12497_vm13 = vcmask 23552   ;;  %v3444_v34 = vld [vmem:[#allocation2 + $0x39] sm:$0xff]  ;;  %v2603_v20 = vadd.f32 %v9437_v21, %v2381_v8  ;;  %vm12500_vm11 = vmmov %vm12492_vm3  ;;  %v2382_v21 = vadd.f32 %v9392_v56, %v9313_v14 }
 0x2e5   : > { %7525 = vmatmul.msk.bf16.gmra.mxu1 %vm12476_vm1, %v3136_v50  ;;  %v2788_v60 = vpop.f32.mrf.mxu0  ;;  %v4184_v50 = vld [vmem:[#allocation2 + $0x39] sm:$0xff]  ;;  %v3027_v18 = vld [vmem:[#allocation2 + $0x47] sm:$0xff]  ;;  %v3505_v29 = vpack.c.bf16 %v3477_v23, %v3444_v34  ;;  %v2129_v56 = vadd.f32 %v9323_v12, %v9321_v46 }
 0x2e6   : > { %7545 = vmatmul.msk.bf16.gmra.mxu2 %vm12492_vm3, %v3086_v63  ;;  %v4957_v63 = vsel %vm8430_vm6, %v4185_v24, 0.0  ;;  %v2856_v2 = vadd.f32 %v2788_v60, %v2602_v57  ;;  %v3109_v44 = vld [vmem:[#allocation2 + $0x48] sm:$0xff]  ;;  %v3734_v26 = vsel %vm12488_vm4, %v3027_v18, 0.0 }
 0x2e7   : > { %v9793_v62 = vpack.c.bf16 %v4957_v63, %v4184_v50  ;;  %v12498_v60 = vld [vmem:[#allocation21_spill] sm:$0xff]  ;;  %v2653_v34 = vld [vmem:[%s8386_s25 + $0x101] sm:$0xff] }
 0x2e8   : > { %v2892_v48 = vadd.f32 %v9645_v27, %v2856_v2  ;;  %7512 = vmatmul.msk.bf16.gmra.mxu0 %vm12497_vm13, %v2702_v61  ;;  %vm12499_vm1 = vnez %v12498_v60  ;;  %vm12501_vm13 = vmmov %vm12492_vm3 }
 0x2e9   : > { %12496 = vst [vmem:[#allocation81_spill] sm:$0xff] %v9793_v62  ;;  %v3059_v50 = vsel %vm12499_vm1, %v3027_v18, 0.0  ;;  %v2652_v18 = vld [vmem:[%s8386_s25 + $0xf9] sm:$0xff] }
 0x2ea   : > { %v2924_v24 = vmax.f32 %v2892_v48, 0.0 }
 0x2eb   : > { %v3110_v52 = vld [vmem:[#allocation2 + $0x50] sm:$0xff] }
 0x2ec   : > { %v3028_v57 = vld [vmem:[#allocation2 + $0x4f] sm:$0xff]  ;;  %2995 = vst.msk [vmem:[#allocation2 + $0x58] sm:$0xff] %vm12492_vm3, %v2924_v24  ;;  %v3137_v61 = vpack.c.bf16 %v3110_v52, %v3109_v44  ;;  %v9810_v23 = vpop.f32.mrf.mxu2  ;;  %vm12503_vm3 = vnez %v12378_v49  ;;  %v9822_v52 = vpop.f32.mrf.mxu3 }
 0x2ed   : > { %v3087_v63 = vpack.c.bf16 %v3028_v57, %v3059_v50  ;;  %v9808_v33 = vpack.c.bf16 %v3028_v57, %v3734_v26  ;;  %v2790_v2 = vpop.f32.mrf.mxu0  ;;  %v2685_v24 = vsel %vm12503_vm3, %v2653_v34, 0.0  ;;  %v8151_v30 = vld [vmem:[#allocation2 + $0x49] sm:$0xff] }
 0x2ee   : > { %v2857_v48 = vadd.f32 %v2790_v2, %v2603_v20  ;;  %v2703_v50 = vpack.c.bf16 %v2685_v24, %v2652_v18  ;;  %v3446_v18 = vld [vmem:[#allocation2 + $0x49] sm:$0xff] }
 0x2f0   : > { %v2893_v8 = vadd.f32 %v9645_v27, %v2857_v48 }
 0x2f2   : > { %v2925_v44 = vmax.f32 %v2893_v8, 0.0 }
 0x2f3   : > { %v3447_v57 = vld [vmem:[#allocation2 + $0x51] sm:$0xff] }
 0x2f4   : > { %7567 = vmatmul.msk.bf16.gmra.mxu3 %vm12500_vm11, %v3505_v29  ;;  %v2604_v29 = vadd.f32 %v9451_v5, %v2382_v21  ;;  %vm12504_vm11 = vmmov %vm12502_vm9  ;;  %v4187_v26 = vld [vmem:[#allocation2 + $0x51] sm:$0xff]  ;;  %v3479_v48 = vsel %vm8567_vm12, %v3447_v57, 0.0  ;;  %v2383_v5 = vadd.f32 %v9401_v42, %v2129_v56  ;;  %v9835_v34 = vpop.f32.mrf.mxu2  ;;  %v9847_v56 = vpop.f32.mrf.mxu3 }
 0x2f5   : > { %7526 = vmatmul.msk.bf16.gmra.mxu1 %vm12501_vm13, %v3137_v61  ;;  %2996 = vst.msk [vmem:[#allocation2 + $0x60] sm:$0xff] %vm12504_vm11, %v2925_v44  ;;  %v2793_v20 = vpop.f32.mrf.mxu0  ;;  %v4186_v61 = vld [vmem:[#allocation2 + $0x49] sm:$0xff]  ;;  %v4959_v14 = vsel %vm8477_vm8, %v4187_v26, 0.0  ;;  %v3029_v8 = vld [vmem:[#allocation2 + $0x57] sm:$0xff]  ;;  %v3506_v44 = vpack.c.bf16 %v3479_v48, %v3446_v18 }
 0x2f6   : > { %7546 = vmatmul.msk.bf16.gmra.mxu2 %vm12502_vm9, %v3087_v63  ;;  %v2858_v63 = vadd.f32 %v2793_v20, %v2604_v29  ;;  %v9830_v2 = vpack.c.bf16 %v4959_v14, %v4186_v61  ;;  %vm12506_vm9 = vcmask 23552   ;;  %v3111_v26 = vld [vmem:[#allocation2 + $0x58] sm:$0xff]  ;;  %v3736_v57 = vsel %vm12499_vm1, %v3029_v8, 0.0 }
 0x2f7   : > { %v12507_v29 = vld [vmem:[#allocation22_spill] sm:$0xff]  ;;  %v2605_v42 = vadd.f32 %v9466_v55, %v2383_v5  ;;  %v2687_v5 = vsel %vm12389_vm5, %v9349_v3, 0.0 }
 0x2f8   : > { %12505 = vst [vmem:[#allocation21_spill] sm:$0xff] %v9830_v2  ;;  %v2894_v21 = vadd.f32 %v9645_v27, %v2858_v63  ;;  %7513 = vmatmul.msk.bf16.gmra.mxu0 %vm12506_vm9, %v2703_v50  ;;  %vm12508_vm13 = vnez %v12507_v29  ;;  %vm12509_vm9 = vmmov %vm12504_vm11 }
 0x2f9   : > { %v3061_v20 = vsel %vm12508_vm13, %v3029_v8, 0.0  ;;  %vm12510_vm4 = vmmov %vm12509_vm9  ;;  %v9858_v8 = vpop.f32.mrf.mxu1 }
 0x2fa   : > { %v2926_v24 = vmax.f32 %v2894_v21, 0.0  ;;  %vm12511_vm8 = vmmov %vm12510_vm4  ;;  %v2384_v21 = vadd.f32 %v9411_v7, %v9336_v45  ;;  %v2131_v45 = vadd.f32 %v9346_v10, %v9344_v36 }
 0x2fc   : > { %v3112_v46 = vld [vmem:[#allocation2 + $0x60] sm:$0xff]  ;;  %2997 = vst.msk [vmem:[#allocation2 + $0x68] sm:$0xff] %vm12504_vm11, %v2926_v24  ;;  %v9860_v18 = vpop.f32.mrf.mxu2  ;;  %vm12512_vm11 = vmmov %vm12510_vm4 }
 0x2fd   : > { %v3030_v12 = vld [vmem:[#allocation2 + $0x5f] sm:$0xff]  ;;  %v3138_v61 = vpack.c.bf16 %v3112_v46, %v3111_v26  ;;  %v2795_v63 = vpop.f32.mrf.mxu0  ;;  %v2704_v46 = vpack.c.bf16 %v2687_v5, %v9353_v54 }
 0x2fe   : > { %v3088_v14 = vpack.c.bf16 %v3030_v12, %v3061_v20  ;;  %v9845_v50 = vpack.c.bf16 %v3030_v12, %v3736_v57  ;;  %v2859_v48 = vadd.f32 %v2795_v63, %v2605_v42  ;;  %v4188_v20 = vld [vmem:[#allocation2 + $0x59] sm:$0xff] }
 0x2ff   : > { %v3448_v10 = vld [vmem:[#allocation2 + $0x59] sm:$0xff] }
 0x300   : > { %v2895_v55 = vadd.f32 %v9645_v27, %v2859_v48  ;;  %v8044_v5 = vld [vmem:[%s12422_s3 + $0x18] sm:$0xff] }
 0x301   : > { %3840 = vmatpush.bf16.msrb.mxu0 %v8044_v5 }
 0x302   : > { %v2927_v24 = vmax.f32 %v2895_v55, 0.0 }
 0x303   : > { %v3449_v26 = vld [vmem:[#allocation2 + $0x61] sm:$0xff] }
 0x304   : > { %7568 = vmatmul.msk.bf16.gmra.mxu3 %vm12509_vm9, %v3506_v44  ;;  %v2606_v44 = vadd.f32 %v9490_v1, %v2384_v21  ;;  %2998 = vst.msk [vmem:[#allocation2 + $0x70] sm:$0xff] %vm12512_vm11, %v2927_v24  ;;  %v4189_v12 = vld [vmem:[#allocation2 + $0x61] sm:$0xff]  ;;  %v9872_v1 = vpop.f32.mrf.mxu3  ;;  %v3358_v55 = vpop.f32.mrf.mxu2  ;;  %vm12517_vm11 = vmmov %vm12509_vm9 }
 0x305   : > { %7527 = vmatmul.msk.bf16.gmra.mxu1 %vm12510_vm4, %v3138_v61  ;;  %v2798_v7 = vpop.f32.mrf.mxu0  ;;  %v4961_v3 = vsel %vm8526_vm10, %v4189_v12, 0.0  ;;  %v2385_v61 = vadd.f32 %v9418_v51, %v2131_v45  ;;  %v3031_v36 = vld [vmem:[#allocation2 + $0x67] sm:$0xff]  ;;  %v3215_v21 = vpop.f32.mrf.mxu1  ;;  %v12515_v12 = vld [vmem:[#allocation23_spill] sm:$0xff] }
 0x306   : > { %7547 = vmatmul.msk.bf16.gmra.mxu2 %vm12511_vm8, %v3088_v14  ;;  %v2860_v57 = vadd.f32 %v2798_v7, %v2606_v44  ;;  %v9869_v42 = vpack.c.bf16 %v4961_v3, %v4188_v20  ;;  %v3481_v14 = vsel %vm8604_vm14, %v3449_v26, 0.0  ;;  %vm12514_vm8 = vcmask 23552   ;;  %v3113_v24 = vld [vmem:[#allocation2 + $0x68] sm:$0xff] }
 0x307   : > { %v3507_v48 = vpack.c.bf16 %v3481_v14, %v3448_v10  ;;  %v2607_v51 = vadd.f32 %v9529_v16, %v2385_v61  ;;  %vm12516_vm4 = vnez %v12515_v12  ;;  %v3738_v7 = vsel %vm12508_vm13, %v3031_v36, 0.0  ;;  %v2657_v14 = vld [vmem:[%s8386_s25 + $0x121] sm:$0xff] }
 0x308   : > { %12513 = vst [vmem:[#allocation82_spill] sm:$0xff] %v9869_v42  ;;  %v2896_v54 = vadd.f32 %v9645_v27, %v2860_v57  ;;  %7514 = vmatmul.msk.bf16.gmra.mxu0 %vm12514_vm8, %v2704_v46  ;;  %v3063_v45 = vsel %vm12516_vm4, %v3031_v36, 0.0  ;;  %v9884_v46 = vadd.f32 %v3358_v55, %v3215_v21  ;;  %vm12518_vm8 = vmmov %vm12509_vm9 }
 0x309   : > { %vm12519_vm1 = vmmov %vm12518_vm8 }
 0x30a   : > { %v2928_v63 = vmax.f32 %v2896_v54, 0.0  ;;  %v2386_v54 = vadd.f32 %v9432_v47, %v9365_v35  ;;  %v2133_v47 = vadd.f32 %v9374_v11, %v9372_v13 }
 0x30b   : > { %v3114_v44 = vld [vmem:[#allocation2 + $0x70] sm:$0xff] }
 0x30c   : > { %v3032_v26 = vld [vmem:[#allocation2 + $0x6f] sm:$0xff]  ;;  %2999 = vst.msk [vmem:[#allocation2 + $0x78] sm:$0xff] %vm12509_vm9, %v2928_v63  ;;  %v3139_v20 = vpack.c.bf16 %v3114_v44, %v3113_v24  ;;  %v9898_v10 = vpop.f32.mrf.mxu3  ;;  %v2656_v63 = vld [vmem:[%s8386_s25 + $0x119] sm:$0xff]  ;;  %vm12520_vm9 = vnez %v12396_v6  ;;  %v9982_v42 = vpop.f32.mrf.mxu2  ;;  %s486_s25 = scalar_lea.vmem [#allocation6], %s485_s0 }
 0x30d   : > { %v3089_v3 = vpack.c.bf16 %v3032_v26, %v3063_v45  ;;  %v9889_v57 = vpack.c.bf16 %v3032_v26, %v3738_v7  ;;  %v2800_v16 = vpop.f32.mrf.mxu0  ;;  %v2689_v21 = vsel %vm12520_vm9, %v2657_v14, 0.0  ;;  %v4190_v26 = vld [vmem:[#allocation2 + $0x69] sm:$0xff]  ;;  %s7302_s16 = sshll.u32 %s486_s25, 4  ;;  %s7303_s16 = int_to_ptr.vmem [resolvable:$true] %s7302_s16 }
 0x30e   : > { %v2861_v61 = vadd.f32 %v2800_v16, %v2607_v51  ;;  %v2705_v51 = vpack.c.bf16 %v2689_v21, %v2656_v63  ;;  %v12524_v21 = vld [vmem:[#allocation25_spill] sm:$0xff] }
 0x310   : > { %v2897_v36 = vadd.f32 %v9645_v27, %v2861_v61  ;;  %v3450_v61 = vld [vmem:[#allocation2 + $0x69] sm:$0xff] }
 0x312   : > { %v2929_v55 = vmax.f32 %v2897_v36, 0.0 }
 0x313   : > { %v3451_v5 = vld [vmem:[#allocation2 + $0x71] sm:$0xff] }
 0x314   : > { %7569 = vmatmul.msk.bf16.gmra.mxu3 %vm12517_vm11, %v3507_v48  ;;  %v2608_v48 = vadd.f32 %v9563_v53, %v2386_v54  ;;  %vm12521_vm11 = vmmov %vm12519_vm1  ;;  %v4191_v24 = vld [vmem:[#allocation2 + $0x71] sm:$0xff]  ;;  %v2387_v53 = vadd.f32 %v9447_v38, %v2133_v47  ;;  %v9916_v36 = vpop.f32.mrf.mxu3 }
 0x315   : > { %7528 = vmatmul.msk.bf16.gmra.mxu1 %vm12518_vm8, %v3139_v20  ;;  %3000 = vst.msk [vmem:[#allocation2 + $0x80] sm:$0xff] %vm12521_vm11, %v2929_v55  ;;  %v2803_v44 = vpop.f32.mrf.mxu0  ;;  %v4963_v35 = vsel %vm8567_vm12, %v4191_v24, 0.0  ;;  %v3483_v20 = vsel %vm12302_vm0, %v3451_v5, 0.0  ;;  %v3033_v16 = vld [vmem:[#allocation2 + $0x77] sm:$0xff]  ;;  %vm12525_vm8 = vnez %v12524_v21 }
 0x316   : > { %7548 = vmatmul.msk.bf16.gmra.mxu2 %vm12519_vm1, %v3089_v3  ;;  %v2862_v45 = vadd.f32 %v2803_v44, %v2608_v48  ;;  %v9909_v7 = vpack.c.bf16 %v4963_v35, %v4190_v26  ;;  %vm12523_vm1 = vcmask 23552   ;;  %v3508_v54 = vpack.c.bf16 %v3483_v20, %v3450_v61  ;;  %v3115_v63 = vld [vmem:[#allocation2 + $0x78] sm:$0xff]  ;;  %v12529_v35 = vld [vmem:[#allocation61_spill] sm:$0xff]  ;;  %v12530_v20 = vld [vmem:[#allocation32_spill] sm:$0xff] }
 0x317   : > { %v3065_v55 = vsel %vm12525_vm8, %v3033_v16, 0.0  ;;  %v3740_v48 = vsel %vm12516_vm4, %v3033_v16, 0.0  ;;  %v2609_v38 = vadd.f32 %v9598_v22, %v2387_v53  ;;  %v2388_v47 = vadd.f32 %v12529_v35, %v9383_v31  ;;  %v12561_v21 = vld [vmem:[#allocation66_spill] sm:$0xff] }
 0x318   : > { %12522 = vst [vmem:[#allocation83_spill] sm:$0xff] %v9909_v7  ;;  %v2898_v3 = vadd.f32 %v9645_v27, %v2862_v45  ;;  %7515 = vmatmul.msk.bf16.gmra.mxu0 %vm12523_vm1, %v2705_v51  ;;  %vm12526_vm1 = vmmov %vm12521_vm11 }
 0x319   : > { %vm12527_vm13 = vmmov %vm12526_vm1  ;;  %v2610_v53 = vadd.f32 %v12530_v20, %v2388_v47 }
 0x31a   : > { %v2930_v14 = vmax.f32 %v2898_v3, 0.0  ;;  %vm12528_vm12 = vmmov %vm12526_vm1 }
 0x31b   : > { %vm12543_vm4 = vmmov %vm12526_vm1 }
 0x31c   : > { %v3116_v13 = vld [vmem:[#allocation2 + $0x80] sm:$0xff]  ;;  %3001 = vst.msk [vmem:[#allocation2 + $0x88] sm:$0xff] %vm12521_vm11, %v2930_v14  ;;  %vm12531_vm11 = vmmov %vm12526_vm1  ;;  %v9934_v61 = vpop.f32.mrf.mxu3 }
 0x31d   : > { %v3034_v11 = vld [vmem:[#allocation2 + $0x7f] sm:$0xff]  ;;  %v3140_v5 = vpack.c.bf16 %v3116_v13, %v3115_v63  ;;  %v2805_v44 = vpop.f32.mrf.mxu0 }
 0x31e   : > { %v3090_v51 = vpack.c.bf16 %v3034_v11, %v3065_v55  ;;  %v9924_v24 = vpack.c.bf16 %v3034_v11, %v3740_v48  ;;  %v2863_v26 = vadd.f32 %v2805_v44, %v2609_v38  ;;  %v12532_v13 = vld [vmem:[#allocation52_spill] sm:$0xff]  ;;  %v12533_v11 = vld [vmem:[#allocation45_spill] sm:$0xff]  ;;  %v3452_v47 = vld [vmem:[#allocation2 + $0x79] sm:$0xff] }
 0x31f   : > { %v2135_v55 = vadd.f32 %v12533_v11, %v12532_v13 }
 0x320   : > { %v2899_v45 = vadd.f32 %v9645_v27, %v2863_v26 }
 0x322   : > { %v2931_v22 = vmax.f32 %v2899_v45, 0.0 }
 0x323   : > { %v3453_v3 = vld [vmem:[#allocation2 + $0x81] sm:$0xff] }
 0x324   : > { %7570 = vmatmul.msk.bf16.gmra.mxu3 %vm12526_vm1, %v3508_v54  ;;  %3002 = vst.msk [vmem:[#allocation2 + $0x90] sm:$0xff] %vm12531_vm11, %v2931_v22  ;;  %v4193_v16 = vld [vmem:[#allocation2 + $0x81] sm:$0xff]  ;;  %v4192_v54 = vld [vmem:[#allocation2 + $0x79] sm:$0xff]  ;;  %vm12541_vm11 = vmmov %vm12526_vm1 }
 0x325   : > { %7529 = vmatmul.msk.bf16.gmra.mxu1 %vm12527_vm13, %v3140_v5  ;;  %v2808_v14 = vpop.f32.mrf.mxu0  ;;  %v4965_v63 = vsel %vm8604_vm14, %v4193_v16, 0.0  ;;  %v3485_v5 = vsel %vm12309_vm15, %v3453_v3, 0.0  ;;  %v3035_v35 = vld [vmem:[#allocation2 + $0x87] sm:$0xff] }
 0x326   : > { %7549 = vmatmul.msk.bf16.gmra.mxu2 %vm12528_vm12, %v3090_v51  ;;  %v2864_v31 = vadd.f32 %v2808_v14, %v2610_v53  ;;  %v9940_v48 = vpack.c.bf16 %v4965_v63, %v4192_v54  ;;  %v12536_v51 = vld [vmem:[#allocation73_spill] sm:$0xff]  ;;  %vm12537_vm12 = vmmov %vm12526_vm1  ;;  %v3509_v22 = vpack.c.bf16 %v3485_v5, %v3452_v47  ;;  %v12538_v53 = vld [vmem:[#allocation27_spill] sm:$0xff]  ;;  %v3742_v3 = vsel %vm12525_vm8, %v3035_v35, 0.0 }
 0x327   : > { %v2389_v44 = vadd.f32 %v12536_v51, %v2135_v55  ;;  %v3117_v20 = vld [vmem:[#allocation2 + $0x88] sm:$0xff]  ;;  %vm12539_vm13 = vnez %v12538_v53  ;;  %v9958_v51 = vpop.f32.mrf.mxu3  ;;  %vm12558_vm8 = vmmov %vm12526_vm1 }
 0x328   : > { %12534 = vst [vmem:[#allocation61_spill] sm:$0xff] %v9940_v48  ;;  %v2900_v26 = vadd.f32 %v9645_v27, %v2864_v31  ;;  %7586 = vmatmul.msk.bf16.vlgmr.msrb.gmra.mxu0 %vm12537_vm12, %v9699_v40  ;;  %v3067_v14 = vsel %vm12539_vm13, %v3035_v35, 0.0  ;;  %v12540_v54 = vld [vmem:[#allocation69_spill] sm:$0xff]  ;;  %vm12542_vm12 = vmmov %vm12526_vm1  ;;  %v12552_v48 = vld [vmem:[#allocation63_spill] sm:$0xff] }
 0x329   : > { %v2611_v63 = vadd.f32 %v12540_v54, %v2389_v44  ;;  %v12545_v35 = vld [vmem:[#allocation77_spill] sm:$0xff] }
 0x32a   : > { %v2932_v45 = vmax.f32 %v2900_v26, 0.0  ;;  %v12544_v26 = vld [vmem:[#allocation48_spill] sm:$0xff] }
 0x32b   : > { %v3118_v16 = vld [vmem:[#allocation2 + $0x90] sm:$0xff]  ;;  %v2390_v47 = vadd.f32 %v12545_v35, %v12544_v26 }
 0x32c   : > { %v3036_v13 = vld [vmem:[#allocation2 + $0x8f] sm:$0xff]  ;;  %3003 = vst.msk [vmem:[#allocation2 + $0x98] sm:$0xff] %vm12526_vm1, %v2932_v45  ;;  %v3141_v11 = vpack.c.bf16 %v3118_v16, %v3117_v20  ;;  %v9964_v20 = vpop.f32.mrf.mxu1  ;;  %v12546_v16 = vld [vmem:[#allocation36_spill] sm:$0xff] }
 0x32d   : > { %v3091_v55 = vpack.c.bf16 %v3036_v13, %v3067_v14  ;;  %v9954_v40 = vpack.c.bf16 %v3036_v13, %v3742_v3  ;;  %v2810_v31 = vpop.f32.mrf.mxu0  ;;  %v2612_v13 = vadd.f32 %v12546_v16, %v2390_v47  ;;  %v4194_v54 = vld [vmem:[#allocation2 + $0x89] sm:$0xff] }
 0x32e   : > { %v2865_v5 = vadd.f32 %v2810_v31, %v2611_v63 }
 0x32f   : > { %v9980_v7 = vpop.f32.mrf.mxu3 }
 0x330   : > { %v2901_v44 = vadd.f32 %v9645_v27, %v2865_v5  ;;  %v12550_v5 = vld [vmem:[#allocation28_spill] sm:$0xff] }
 0x332   : > { %v2933_v45 = vmax.f32 %v2901_v44, 0.0 }
 0x333   : > { %v4195_v14 = vld [vmem:[#allocation2 + $0x91] sm:$0xff] }
 0x334   : > { %7571 = vmatmul.msk.bf16.gmra.mxu3 %vm12541_vm11, %v3509_v22  ;;  %3004 = vst.msk [vmem:[#allocation2 + $0xa0] sm:$0xff] %vm12526_vm1, %v2933_v45  ;;  %v3455_v22 = vld [vmem:[#allocation2 + $0x91] sm:$0xff]  ;;  %v4967_v63 = vsel %vm12302_vm0, %v4195_v14, 0.0  ;;  %vm12553_vm11 = vmmov %vm12526_vm1  ;;  %v3454_v14 = vld [vmem:[#allocation2 + $0x89] sm:$0xff] }
 0x335   : > { %7530 = vmatmul.msk.bf16.gmra.mxu1 %vm12542_vm12, %v3141_v11  ;;  %v2813_v3 = vpop.f32.mrf.mxu0  ;;  %v12547_v11 = vld [vmem:[#allocation50_spill] sm:$0xff]  ;;  %v9972_v35 = vpack.c.bf16 %v4967_v63, %v4194_v54  ;;  %vm12559_vm0 = vmmov %vm12526_vm1 }
 0x336   : > { %7550 = vmatmul.msk.bf16.gmra.mxu2 %vm12543_vm4, %v3091_v55  ;;  %v12548_v55 = vld [vmem:[#allocation51_spill] sm:$0xff]  ;;  %v2866_v26 = vadd.f32 %v2813_v3, %v2612_v13  ;;  %vm12551_vm4 = vnez %v12550_v5 }
 0x337   : > { %v2137_v31 = vadd.f32 %v12548_v55, %v12547_v11  ;;  %12549 = vst [vmem:[#allocation32_spill] sm:$0xff] %v9972_v35  ;;  %v3487_v44 = vsel %vm12551_vm4, %v3455_v22, 0.0  ;;  %v3037_v16 = vld [vmem:[#allocation2 + $0x97] sm:$0xff]  ;;  %v12554_v22 = vld [vmem:[#allocation29_spill] sm:$0xff] }
 0x338   : > { %v2902_v45 = vadd.f32 %v9645_v27, %v2866_v26  ;;  %7587 = vmatmul.msk.bf16.gmra.mxu0 %vm12553_vm11, %v9733_v41  ;;  %v3510_v13 = vpack.c.bf16 %v3487_v44, %v3454_v14  ;;  %v3119_v54 = vld [vmem:[#allocation2 + $0x98] sm:$0xff]  ;;  %vm12555_vm12 = vnez %v12554_v22  ;;  %vm12557_vm11 = vmmov %vm12526_vm1 }
 0x339   : > { %v2391_v47 = vadd.f32 %v12552_v48, %v2137_v31  ;;  %v3069_v48 = vsel %vm12555_vm12, %v3037_v16, 0.0  ;;  %v3744_v31 = vsel %vm12539_vm13, %v3037_v16, 0.0  ;;  %v12556_v26 = vld [vmem:[#allocation14_spill] sm:$0xff]  ;;  %v12560_v14 = vld [vmem:[#allocation47_spill] sm:$0xff] }
 0x33a   : > { %v2934_v11 = vmax.f32 %v2902_v45, 0.0  ;;  %v2392_v53 = vadd.f32 %v12561_v21, %v12560_v14 }
 0x33b   : > { %v3120_v63 = vld [vmem:[#allocation2 + $0xa0] sm:$0xff]  ;;  %v2613_v41 = vadd.f32 %v12556_v26, %v2391_v47 }
 0x33c   : > { %v3038_v55 = vld [vmem:[#allocation2 + $0x9f] sm:$0xff]  ;;  %3005 = vst.msk [vmem:[#allocation2 + $0xa8] sm:$0xff] %vm12526_vm1, %v2934_v11  ;;  %v3142_v35 = vpack.c.bf16 %v3120_v63, %v3119_v54  ;;  %vm12563_vm1 = vmmov %vm12559_vm0 }
 0x33d   : > { %v3092_v2 = vpack.c.bf16 %v3038_v55, %v3069_v48  ;;  %v9990_v62 = vpack.c.bf16 %v3038_v55, %v3744_v31  ;;  %v2815_v45 = vpop.f32.mrf.mxu0  ;;  %v12562_v31 = vld [vmem:[#allocation41_spill] sm:$0xff]  ;;  %vm12574_vm13 = vmmov %vm12563_vm1 }
 0x33e   : > { %v2867_v44 = vadd.f32 %v2815_v45, %v2613_v41  ;;  %v4196_v41 = vld [vmem:[#allocation2 + $0x99] sm:$0xff]  ;;  %v12564_v45 = vld [vmem:[#allocation53_spill] sm:$0xff] }
 0x340   : > { %v2903_v16 = vadd.f32 %v9645_v27, %v2867_v44  ;;  %v12565_v44 = vld [vmem:[#allocation56_spill] sm:$0xff] }
 0x341   : > { %v2139_v14 = vadd.f32 %v12565_v44, %v12564_v45 }
 0x342   : > { %v3220_v3 = vpop.f32.mrf.mxu1  ;;  %v2935_v54 = vmax.f32 %v2903_v16, 0.0  ;;  %v12567_v16 = vld [vmem:[#allocation31_spill] sm:$0xff] }
 0x343   : > { %v4197_v26 = vld [vmem:[#allocation2 + $0xa1] sm:$0xff] }
 0x344   : > { %7572 = vmatmul.msk.bf16.gmra.mxu3 %vm12557_vm11, %v3510_v13  ;;  %v2614_v13 = vadd.f32 %v12562_v31, %v2392_v53  ;;  %3006 = vst.msk [vmem:[#allocation2 + $0xb0] sm:$0xff] %vm12563_vm1, %v2935_v54  ;;  %v4969_v21 = vsel %vm12309_vm15, %v4197_v26, 0.0  ;;  %v3039_v31 = vld [vmem:[#allocation2 + $0xa7] sm:$0xff]  ;;  %v3456_v26 = vld [vmem:[#allocation2 + $0x99] sm:$0xff]  ;;  %vm12575_vm15 = vmmov %vm12563_vm1 }
 0x345   : > { %7531 = vmatmul.msk.bf16.gmra.mxu1 %vm12558_vm8, %v3142_v35  ;;  %v3457_v35 = vld [vmem:[#allocation2 + $0xa1] sm:$0xff]  ;;  %vm12570_vm8 = vmmov %vm12563_vm1 }
 0x346   : > { %7551 = vmatmul.msk.bf16.gmra.mxu2 %vm12559_vm0, %v3092_v2  ;;  %v2818_v2 = vpop.f32.mrf.mxu0  ;;  %vm12568_vm0 = vnez %v12567_v16 }
 0x347   : > { %v3584_v47 = vpop.f32.mrf.mxu3 }
 0x348   : > { %v9999_v11 = vadd.f32 %v3584_v47, %v9884_v46  ;;  %v2868_v46 = vadd.f32 %v2818_v2, %v2614_v13  ;;  %v10007_v47 = vpack.c.bf16 %v4969_v21, %v4196_v41  ;;  %7588 = vmatmul.msk.bf16.gmra.mxu0 %vm12570_vm8, %v9769_v28  ;;  %v3121_v41 = vld [vmem:[#allocation2 + $0xa8] sm:$0xff]  ;;  %vm12573_vm8 = vmmov %vm12563_vm1 }
 0x349   : > { %v3363_v63 = vpop.f32.mrf.mxu2 }
 0x34a   : > { %v3364_v55 = vadd.f32 %v3363_v63, %v3220_v3  ;;  %v3222_v48 = vpop.f32.mrf.mxu1  ;;  %12566 = vst [vmem:[#allocation52_spill] sm:$0xff] %v10007_v47  ;;  %v3489_v3 = vsel %vm12568_vm0, %v3457_v35, 0.0  ;;  %v12569_v63 = vld [vmem:[#allocation67_spill] sm:$0xff]  ;;  %v2904_v54 = vadd.f32 %v9645_v27, %v2868_v46  ;;  %v12571_v35 = vld [vmem:[#allocation33_spill] sm:$0xff]  ;;  %v3746_v46 = vsel %vm12555_vm12, %v3039_v31, 0.0  ;;  %vm12590_vm12 = vmmov %vm12563_vm1 }
 0x34b   : > { %v2393_v53 = vadd.f32 %v12569_v63, %v2139_v14  ;;  %v3511_v29 = vpack.c.bf16 %v3489_v3, %v3456_v26  ;;  %v3122_v21 = vld [vmem:[#allocation2 + $0xb0] sm:$0xff]  ;;  %vm12572_vm11 = vnez %v12571_v35 }
 0x34c   : > { %v2936_v38 = vmax.f32 %v2904_v54, 0.0  ;;  %v3040_v44 = vld [vmem:[#allocation2 + $0xaf] sm:$0xff]  ;;  %v3071_v14 = vsel %vm12572_vm11, %v3039_v31, 0.0  ;;  %v3143_v63 = vpack.c.bf16 %v3122_v21, %v3121_v41 }
 0x34d   : > { %v2615_v28 = vadd.f32 %v9749_v32, %v2393_v53  ;;  %v3093_v47 = vpack.c.bf16 %v3040_v44, %v3071_v14  ;;  %v10023_v54 = vpack.c.bf16 %v3040_v44, %v3746_v46  ;;  %v12576_v26 = vld [vmem:[#allocation58_spill] sm:$0xff] }
 0x34e   : > { %3007 = vst.msk [vmem:[#allocation2 + $0xb8] sm:$0xff] %vm12563_vm1, %v2936_v38  ;;  %v2820_v3 = vpop.f32.mrf.mxu0 }
 0x34f   : > { %v10015_v12 = vpop.f32.mrf.mxu3 }
 0x351   : > { %v3365_v45 = vpop.f32.mrf.mxu2 }
 0x352   : > { %v3366_v13 = vadd.f32 %v3365_v45, %v3222_v48  ;;  %v3225_v2 = vpop.f32.mrf.mxu1  ;;  %v2869_v48 = vadd.f32 %v2820_v3, %v2615_v28  ;;  %v12577_v45 = vld [vmem:[#allocation70_spill] sm:$0xff]  ;;  %v10037_v28 = vld [vmem:[#allocation2 + $0xa9] sm:$0xff]  ;;  %v12581_v3 = vld [vmem:[#allocation59_spill] sm:$0xff] }
 0x353   : > { %v2394_v22 = vadd.f32 %v12577_v45, %v12576_v26  ;;  %12579 = vst [vmem:[#allocation73_spill] sm:$0xff] %v10037_v28  ;;  %v12585_v45 = vld [vmem:[#allocation34_spill] sm:$0xff] }
 0x354   : > { %7573 = vmatmul.msk.bf16.gmra.mxu3 %vm12573_vm8, %v3511_v29  ;;  %v2905_v31 = vadd.f32 %v9645_v27, %v2869_v48  ;;  %vm12588_vm8 = vnez %v12587_v37 }
 0x355   : > { %7532 = vmatmul.msk.bf16.gmra.mxu1 %vm12574_vm13, %v3143_v63  ;;  %v2616_v14 = vadd.f32 %v9777_v59, %v2394_v22  ;;  %v3459_v29 = vld [vmem:[#allocation2 + $0xb1] sm:$0xff]  ;;  %v12583_v59 = vld [vmem:[#allocation35_spill] sm:$0xff]  ;;  %vm12586_vm13 = vmmov %vm12563_vm1 }
 0x356   : > { %7552 = vmatmul.msk.bf16.gmra.mxu2 %vm12575_vm15, %v3093_v47  ;;  %v2937_v38 = vmax.f32 %v2905_v31, 0.0  ;;  %v10035_v46 = vld [vmem:[#allocation2 + $0xb1] sm:$0xff]  ;;  %v2823_v47 = vpop.f32.mrf.mxu0  ;;  %vm12584_vm15 = vnez %v12583_v59 }
 0x357   : > { %v3589_v32 = vpop.f32.mrf.mxu3  ;;  %12578 = vst [vmem:[#allocation45_spill] sm:$0xff] %v10035_v46  ;;  %v4971_v63 = vsel %vm12551_vm4, %v10035_v46, 0.0  ;;  %v2870_v26 = vadd.f32 %v2823_v47, %v2616_v14  ;;  %v3491_v22 = vsel %vm12584_vm15, %v3459_v29, 0.0  ;;  %v3458_v46 = vld [vmem:[#allocation2 + $0xa9] sm:$0xff]  ;;  %vm12591_vm4 = vmmov %vm12563_vm1 }
 0x358   : > { %v10031_v53 = vadd.f32 %v3589_v32, %v3364_v55  ;;  %3008 = vst.msk [vmem:[#allocation2 + $0xc0] sm:$0xff] %vm12563_vm1, %v2937_v38  ;;  %v12580_v55 = vld [vmem:[#allocation55_spill] sm:$0xff]  ;;  %7589 = vmatmul.msk.bf16.gmra.mxu0 %vm12586_vm13, %v9808_v33  ;;  %v3512_v14 = vpack.c.bf16 %v3491_v22, %v3458_v46  ;;  %vm12589_vm13 = vmmov %vm12563_vm1  ;;  %v12592_v22 = vld [vmem:[#allocation57_spill] sm:$0xff] }
 0x359   : > { %v3368_v41 = vpop.f32.mrf.mxu2  ;;  %v2141_v48 = vadd.f32 %v12581_v3, %v12580_v55  ;;  %v2906_v32 = vadd.f32 %v9645_v27, %v2870_v26  ;;  %v3041_v38 = vld [vmem:[#allocation2 + $0xb7] sm:$0xff] }
 0x35a   : > { %v3369_v21 = vadd.f32 %v3368_v41, %v3225_v2  ;;  %v3227_v44 = vpop.f32.mrf.mxu1  ;;  %v10045_v2 = vpack.c.bf16 %v4971_v63, %v10037_v28  ;;  %v3748_v26 = vsel %vm12572_vm11, %v3041_v38, 0.0 }
 0x35b   : > { %v2395_v31 = vadd.f32 %v12585_v45, %v2141_v48  ;;  %v2938_v55 = vmax.f32 %v2906_v32, 0.0  ;;  %v3073_v48 = vsel %vm12588_vm8, %v3041_v38, 0.0 }
 0x35c   : > { %12582 = vst [vmem:[#allocation69_spill] sm:$0xff] %v10045_v2  ;;  %v3123_v2 = vld [vmem:[#allocation2 + $0xb8] sm:$0xff] }
 0x35d   : > { %v2617_v33 = vadd.f32 %v9800_v25, %v2395_v31  ;;  %3009 = vst.msk [vmem:[#allocation2 + $0xc8] sm:$0xff] %vm12563_vm1, %v2938_v55 }
 0x35e   : > { %v2825_v46 = vpop.f32.mrf.mxu0 }
 0x35f   : > { %v3591_v41 = vpop.f32.mrf.mxu3  ;;  %v3124_v28 = vld [vmem:[#allocation2 + $0xc0] sm:$0xff] }
 0x360   : > { %v10053_v5 = vadd.f32 %v3591_v41, %v3366_v13  ;;  %v3042_v29 = vld [vmem:[#allocation2 + $0xbf] sm:$0xff]  ;;  %v3144_v13 = vpack.c.bf16 %v3124_v28, %v3123_v2 }
 0x361   : > { %v3370_v47 = vpop.f32.mrf.mxu2  ;;  %v3094_v45 = vpack.c.bf16 %v3042_v29, %v3073_v48  ;;  %v10061_v32 = vpack.c.bf16 %v3042_v29, %v3748_v26  ;;  %v12593_v41 = vld [vmem:[#allocation40_spill] sm:$0xff]  ;;  %v12594_v48 = vld [vmem:[#allocation62_spill] sm:$0xff] }
 0x362   : > { %v3371_v63 = vadd.f32 %v3370_v47, %v3227_v44  ;;  %v3230_v3 = vpop.f32.mrf.mxu1  ;;  %v2871_v44 = vadd.f32 %v2825_v46, %v2617_v33  ;;  %v2396_v47 = vadd.f32 %v12593_v41, %v12592_v22  ;;  %v12595_v26 = vld [vmem:[#allocation72_spill] sm:$0xff]  ;;  %v10077_v22 = vld [vmem:[#allocation2 + $0xb9] sm:$0xff] }
 0x363   : > { %12598 = vst [vmem:[#allocation77_spill] sm:$0xff] %v10077_v22 }
 0x364   : > { %7574 = vmatmul.msk.bf16.gmra.mxu3 %vm12589_vm13, %v3512_v14  ;;  %v2907_v38 = vadd.f32 %v9645_v27, %v2871_v44  ;;  %v2143_v14 = vadd.f32 %v12595_v26, %v12594_v48  ;;  %v2618_v33 = vadd.f32 %v9822_v52, %v2396_v47  ;;  %v12599_v44 = vld [vmem:[#allocation71_spill] sm:$0xff] }
 0x365   : > { %7533 = vmatmul.msk.bf16.gmra.mxu1 %vm12590_vm12, %v3144_v13  ;;  %vm12596_vm12 = vmmov %vm12563_vm1  ;;  %v3461_v13 = vld [vmem:[#allocation2 + $0xc1] sm:$0xff]  ;;  %v3460_v48 = vld [vmem:[#allocation2 + $0xb9] sm:$0xff] }
 0x366   : > { %7553 = vmatmul.msk.bf16.gmra.mxu2 %vm12591_vm4, %v3094_v45  ;;  %v2939_v28 = vmax.f32 %v2907_v38, 0.0  ;;  %v10075_v45 = vld [vmem:[#allocation2 + $0xc1] sm:$0xff]  ;;  %v2828_v46 = vpop.f32.mrf.mxu0  ;;  %v3493_v52 = vsel %vm12484_vm2, %v3461_v13, 0.0  ;;  %vm12602_vm4 = vmmov %vm12563_vm1 }
 0x367   : > { %v3594_v25 = vpop.f32.mrf.mxu3  ;;  %12597 = vst [vmem:[#allocation48_spill] sm:$0xff] %v10075_v45  ;;  %v2872_v41 = vadd.f32 %v2828_v46, %v2618_v33  ;;  %v3513_v33 = vpack.c.bf16 %v3493_v52, %v3460_v48  ;;  %vm12605_vm13 = vmmov %vm12602_vm4  ;;  %v12610_v48 = vld [vmem:[#allocation43_spill] sm:$0xff] }
 0x368   : > { %v10069_v31 = vadd.f32 %v3594_v25, %v3369_v21  ;;  %3010 = vst.msk [vmem:[#allocation2 + $0xd0] sm:$0xff] %vm12596_vm12, %v2939_v28  ;;  %v4973_v21 = vsel %vm12568_vm0, %v10075_v45, 0.0  ;;  %7590 = vmatmul.msk.bf16.gmra.mxu0 %vm12602_vm4, %v9845_v50  ;;  %v3043_v28 = vld [vmem:[#allocation2 + $0xc7] sm:$0xff]  ;;  %vm12607_vm12 = vmmov %vm12602_vm4 }
 0x369   : > { %v3373_v2 = vpop.f32.mrf.mxu2  ;;  %v10084_v38 = vpack.c.bf16 %v4973_v21, %v10077_v22  ;;  %v2908_v47 = vadd.f32 %v9645_v27, %v2872_v41  ;;  %v12603_v22 = vld [vmem:[#allocation42_spill] sm:$0xff]  ;;  %v3750_v50 = vsel %vm12588_vm8, %v3043_v28, 0.0  ;;  %v4490_v41 = vsel %vm12572_vm11, %v3043_v28, 0.0  ;;  %vm12608_vm2 = vmmov %vm12602_vm4 }
 0x36a   : > { %v3374_v55 = vadd.f32 %v3373_v2, %v3230_v3  ;;  %v3232_v29 = vpop.f32.mrf.mxu1  ;;  %v2397_v3 = vadd.f32 %v12599_v44, %v2143_v14  ;;  %vm12604_vm1 = vnez %v12603_v22  ;;  %vm12616_vm11 = vmmov %vm12608_vm2 }
 0x36b   : > { %12600 = vst [vmem:[#allocation36_spill] sm:$0xff] %v10084_v38  ;;  %v2940_v14 = vmax.f32 %v2908_v47, 0.0  ;;  %v3125_v38 = vld [vmem:[#allocation2 + $0xc8] sm:$0xff]  ;;  %v3075_v27 = vsel %vm12604_vm1, %v3043_v28, 0.0 }
 0x36c   : > { %v2619_v26 = vadd.f32 %v9847_v56, %v2397_v3 }
 0x36d   : > { %3011 = vst.msk [vmem:[#allocation2 + $0xd8] sm:$0xff] %vm12605_vm13, %v2940_v14 }
 0x36e   : > { %v2830_v52 = vpop.f32.mrf.mxu0 }
 0x36f   : > { %v3596_v2 = vpop.f32.mrf.mxu3  ;;  %v3126_v25 = vld [vmem:[#allocation2 + $0xd0] sm:$0xff]  ;;  %v2873_v47 = vadd.f32 %v2830_v52, %v2619_v26  ;;  %v8045_v52 = vld [vmem:[%s12422_s3 + $0x20] sm:$0xff] }
 0x370   : > { %v10092_v45 = vadd.f32 %v3596_v2, %v3371_v63  ;;  %v3044_v13 = vld [vmem:[#allocation2 + $0xcf] sm:$0xff]  ;;  %v3145_v56 = vpack.c.bf16 %v3126_v25, %v3125_v38  ;;  %v10113_v38 = vld [vmem:[%s12452_s2] ss:$0 sm:$0xff]  ;;  %4066 = vmatpush.bf16.msrb.mxu1 %v8045_v52 }
 0x371   : > { %v3375_v46 = vpop.f32.mrf.mxu2  ;;  %v3095_v63 = vpack.c.bf16 %v3044_v13, %v3075_v27  ;;  %v10101_v3 = vpack.c.bf16 %v3044_v13, %v3750_v50  ;;  %v12609_v2 = vld [vmem:[#allocation74_spill] sm:$0xff]  ;;  %v2909_v25 = vadd.f32 %v10113_v38, %v2873_v47  ;;  %v12611_v27 = vld [vmem:[#allocation75_spill] sm:$0xff]  ;;  %v12612_v50 = vld [vmem:[#allocation76_spill] sm:$0xff] }
 0x372   : > { %v3376_v21 = vadd.f32 %v3375_v46, %v3232_v29  ;;  %v3235_v44 = vpop.f32.mrf.mxu1  ;;  %v10103_v29 = vpack.c.bf16 %v3044_v13, %v4490_v41  ;;  %v2398_v35 = vadd.f32 %v12610_v48, %v12609_v2  ;;  %v2145_v41 = vadd.f32 %v12612_v50, %v12611_v27  ;;  %v10127_v2 = vld [vmem:[#allocation2 + $0xc9] sm:$0xff] }
 0x373   : > { %v2941_v46 = vmax.f32 %v2909_v25, 0.0  ;;  %12614 = vst [vmem:[#allocation63_spill] sm:$0xff] %v10127_v2  ;;  %v3462_v27 = vld [vmem:[#allocation2 + $0xc9] sm:$0xff] }
 0x374   : > { %12606 = vst [vmem:[#allocation50_spill] sm:$0xff] %v10103_v29  ;;  %7575 = vmatmul.msk.bf16.gmra.mxu3 %vm12607_vm12, %v3513_v33  ;;  %v10125_v47 = vld [vmem:[#allocation2 + $0xd1] sm:$0xff]  ;;  %v2399_v48 = vadd.f32 %v9760_v9, %v2145_v41  ;;  %vm12619_vm12 = vmmov %vm12608_vm2 }
 0x375   : > { %7534 = vmatmul.msk.bf16.gmra.mxu1 %vm12602_vm4, %v3145_v56  ;;  %v2620_v56 = vadd.f32 %v9872_v1, %v2398_v35  ;;  %3012 = vst.msk [vmem:[#allocation2 + $0xe0] sm:$0xff] %vm12608_vm2, %v2941_v46  ;;  %v3045_v46 = vld [vmem:[#allocation2 + $0xd7] sm:$0xff]  ;;  %vm12620_vm4 = vmmov %vm12608_vm2 }
 0x376   : > { %7554 = vmatmul.msk.bf16.gmra.mxu2 %vm12608_vm2, %v3095_v63  ;;  %v3463_v63 = vld [vmem:[#allocation2 + $0xd1] sm:$0xff]  ;;  %12613 = vst [vmem:[#allocation51_spill] sm:$0xff] %v10125_v47  ;;  %v2621_v50 = vadd.f32 %v9898_v10, %v2399_v48 }
 0x377   : > { %v3599_v28 = vpop.f32.mrf.mxu3  ;;  %v3495_v35 = vsel %vm12494_vm7, %v3463_v63, 0.0 }
 0x378   : > { %v10116_v14 = vadd.f32 %v3599_v28, %v3374_v55  ;;  %v2833_v55 = vpop.f32.mrf.mxu0  ;;  %7591 = vmatmul.msk.bf16.gmra.mxu0 %vm12616_vm11, %v9889_v57  ;;  %v3514_v41 = vpack.c.bf16 %v3495_v35, %v3462_v27  ;;  %v3752_v57 = vsel %vm12604_vm1, %v3045_v46, 0.0  ;;  %vm12621_vm11 = vmmov %vm12608_vm2 }
 0x379   : > { %v3378_v33 = vpop.f32.mrf.mxu2  ;;  %v2874_v25 = vadd.f32 %v2833_v55, %v2620_v56 }
 0x37a   : > { %v3379_v26 = vadd.f32 %v3378_v33, %v3235_v44  ;;  %v3237_v13 = vpop.f32.mrf.mxu1  ;;  %v4975_v44 = vsel %vm12584_vm15, %v10125_v47, 0.0  ;;  %v4492_v47 = vsel %vm12588_vm8, %v3045_v46, 0.0  ;;  %vm12625_vm8 = vmmov %vm12608_vm2 }
 0x37b   : > { %v10134_v1 = vpack.c.bf16 %v4975_v44, %v10127_v2  ;;  %v2910_v28 = vadd.f32 %v10113_v38, %v2874_v25  ;;  %v3127_v44 = vld [vmem:[#allocation2 + $0xd8] sm:$0xff] }
 0x37c   : > { %v3046_v63 = vld [vmem:[#allocation2 + $0xdf] sm:$0xff]  ;;  %v12617_v2 = vld [vmem:[#allocation46_spill] sm:$0xff] }
 0x37d   : > { %12615 = vst [vmem:[#allocation14_spill] sm:$0xff] %v10134_v1  ;;  %v2942_v9 = vmax.f32 %v2910_v28, 0.0  ;;  %v3128_v1 = vld [vmem:[#allocation2 + $0xe0] sm:$0xff]  ;;  %vm12618_vm13 = vnez %v12617_v2  ;;  %v10151_v48 = vpack.c.bf16 %v3046_v63, %v3752_v57 }
 0x37e   : > { %v3077_v25 = vsel %vm12618_vm13, %v3045_v46, 0.0  ;;  %v3146_v10 = vpack.c.bf16 %v3128_v1, %v3127_v44 }
 0x37f   : > { %v3601_v33 = vpop.f32.mrf.mxu3  ;;  %3013 = vst.msk [vmem:[#allocation2 + $0xe8] sm:$0xff] %vm12619_vm12, %v2942_v9  ;;  %vm12626_vm12 = vmmov %vm12608_vm2 }
 0x380   : > { %v10142_v29 = vadd.f32 %v3601_v33, %v3376_v21  ;;  %v3096_v21 = vpack.c.bf16 %v3046_v63, %v3077_v25  ;;  %v2835_v35 = vpop.f32.mrf.mxu0  ;;  %v12622_v33 = vld [vmem:[#allocation64_spill] sm:$0xff]  ;;  %v12623_v25 = vld [vmem:[#allocation65_spill] sm:$0xff] }
 0x381   : > { %v3380_v56 = vpop.f32.mrf.mxu2  ;;  %v2875_v28 = vadd.f32 %v2835_v35, %v2621_v50  ;;  %v2400_v37 = vadd.f32 %v9786_v15, %v12622_v33 }
 0x382   : > { %v3381_v52 = vadd.f32 %v3380_v56, %v3237_v13  ;;  %v3240_v55 = vpop.f32.mrf.mxu1  ;;  %v10153_v13 = vpack.c.bf16 %v3046_v63, %v4492_v47 }
 0x383   : > { %v2911_v46 = vadd.f32 %v10113_v38, %v2875_v28  ;;  %v2622_v57 = vadd.f32 %v9916_v36, %v2400_v37 }
 0x384   : > { %7576 = vmatmul.msk.bf16.gmra.mxu3 %vm12620_vm4, %v3514_v41  ;;  %v12624_v41 = vld [vmem:[#allocation78_spill] sm:$0xff] }
 0x385   : > { %7535 = vmatmul.msk.bf16.gmra.mxu1 %vm12608_vm2, %v3146_v10  ;;  %v2943_v9 = vmax.f32 %v2911_v46, 0.0  ;;  %v2147_v50 = vadd.f32 %v12624_v41, %v12623_v25  ;;  %v3464_v10 = vld [vmem:[#allocation2 + $0xd9] sm:$0xff] }
 0x386   : > { %7555 = vmatmul.msk.bf16.gmra.mxu2 %vm12621_vm11, %v3096_v21  ;;  %v3465_v63 = vld [vmem:[#allocation2 + $0xe1] sm:$0xff]  ;;  %vm12629_vm11 = vmmov %vm12608_vm2 }
 0x387   : > { %v3604_v27 = vpop.f32.mrf.mxu3  ;;  %3014 = vst.msk [vmem:[#allocation2 + $0xf0] sm:$0xff] %vm12625_vm8, %v2943_v9  ;;  %v4237_v15 = vsel %vm12494_vm7, %v3465_v63, 0.0  ;;  %v3047_v36 = vld [vmem:[#allocation2 + $0xe7] sm:$0xff]  ;;  %vm12630_vm8 = vmmov %vm12608_vm2 }
 0x388   : > { %v10161_v1 = vadd.f32 %v3604_v27, %v3379_v26  ;;  %v2838_v21 = vpop.f32.mrf.mxu0  ;;  %v10169_v35 = vpack.c.bf16 %v4237_v15, %v3464_v10  ;;  %v2401_v26 = vadd.f32 %v9810_v23, %v2147_v50  ;;  %7592 = vmatmul.msk.bf16.gmra.mxu0 %vm12626_vm12, %v9924_v24  ;;  %v3129_v50 = vld [vmem:[#allocation2 + $0xe8] sm:$0xff]  ;;  %v3754_v24 = vsel %vm12618_vm13, %v3047_v36, 0.0  ;;  %vm12631_vm12 = vmmov %vm12608_vm2 }
 0x389   : > { %v3383_v56 = vpop.f32.mrf.mxu2  ;;  %v2876_v28 = vadd.f32 %v2838_v21, %v2622_v57 }
 0x38a   : > { %v3384_v47 = vadd.f32 %v3383_v56, %v3240_v55  ;;  %v3242_v44 = vpop.f32.mrf.mxu1  ;;  %v3497_v55 = vsel %vm12503_vm3, %v3465_v63, 0.0  ;;  %v2623_v46 = vadd.f32 %v9934_v61, %v2401_v26  ;;  %v12627_v63 = vld [vmem:[#allocation54_spill] sm:$0xff] }
 0x38b   : > { %v2912_v33 = vadd.f32 %v10113_v38, %v2876_v28  ;;  %v3515_v56 = vpack.c.bf16 %v3497_v55, %v3464_v10  ;;  %vm12628_vm4 = vnez %v12627_v63  ;;  %v4494_v28 = vsel %vm12604_vm1, %v3047_v36, 0.0  ;;  %vm12633_vm1 = vmmov %vm12608_vm2 }
 0x38c   : > { %v3079_v21 = vsel %vm12628_vm4, %v3047_v36, 0.0 }
 0x38d   : > { %v2944_v9 = vmax.f32 %v2912_v33, 0.0  ;;  %v12632_v33 = vld [vmem:[#allocation68_spill] sm:$0xff] }
 0x38e   : > { %v3130_v57 = vld [vmem:[#allocation2 + $0xf0] sm:$0xff]  ;;  %v2402_v22 = vadd.f32 %v9835_v34, %v12632_v33 }
 0x38f   : > { %v3606_v37 = vpop.f32.mrf.mxu3  ;;  %v3048_v15 = vld [vmem:[#allocation2 + $0xef] sm:$0xff]  ;;  %3015 = vst.msk [vmem:[#allocation2 + $0xf8] sm:$0xff] %vm12608_vm2, %v2944_v9  ;;  %v3147_v61 = vpack.c.bf16 %v3130_v57, %v3129_v50  ;;  %vm12635_vm2 = vmmov %vm12633_vm1 }
 0x390   : > { %v10178_v27 = vadd.f32 %v3606_v37, %v3381_v52  ;;  %v3097_v52 = vpack.c.bf16 %v3048_v15, %v3079_v21  ;;  %v10187_v10 = vpack.c.bf16 %v3048_v15, %v3754_v24  ;;  %v2840_v26 = vpop.f32.mrf.mxu0  ;;  %v8046_v37 = vld [vmem:[%s12422_s3 + $0x28] sm:$0xff]  ;;  %v2624_v21 = vadd.f32 %v9958_v51, %v2402_v22 }
 0x391   : > { %v3385_v25 = vpop.f32.mrf.mxu2  ;;  %v2877_v55 = vadd.f32 %v2840_v26, %v2623_v46  ;;  %4324 = vmatpush.bf16.msrb.mxu2 %v8046_v37  ;;  %v3466_v34 = vld [vmem:[#allocation2 + $0xe9] sm:$0xff] }
 0x392   : > { %v3386_v41 = vadd.f32 %v3385_v25, %v3242_v44  ;;  %v3245_v23 = vpop.f32.mrf.mxu1  ;;  %v10189_v44 = vpack.c.bf16 %v3048_v15, %v4494_v28  ;;  %v12634_v28 = vld [vmem:[#allocation30_spill] sm:$0xff] }
 0x393   : > { %v2913_v36 = vadd.f32 %v10113_v38, %v2877_v55 }
 0x394   : > { %7577 = vmatmul.msk.bf16.gmra.mxu3 %vm12629_vm11, %v3515_v56 }
 0x395   : > { %7536 = vmatmul.msk.bf16.gmra.mxu1 %vm12630_vm8, %v3147_v61  ;;  %v2945_v50 = vmax.f32 %v2913_v36, 0.0  ;;  %v2149_v61 = vadd.f32 %v9858_v8, %v12634_v28  ;;  %vm12638_vm8 = vmmov %vm12633_vm1 }
 0x396   : > { %7556 = vmatmul.msk.bf16.gmra.mxu2 %vm12631_vm12, %v3097_v52  ;;  %v3467_v15 = vld [vmem:[#allocation2 + $0xf1] sm:$0xff]  ;;  %vm12639_vm12 = vmmov %vm12633_vm1 }
 0x397   : > { %v3609_v9 = vpop.f32.mrf.mxu3  ;;  %3016 = vst.msk [vmem:[#allocation2 + $0x100] sm:$0xff] %vm12633_vm1, %v2945_v50  ;;  %v4239_v24 = vsel %vm12503_vm3, %v3467_v15, 0.0  ;;  %v2403_v55 = vadd.f32 %v9860_v18, %v2149_v61  ;;  %v3049_v33 = vld [vmem:[#allocation2 + $0xf7] sm:$0xff]  ;;  %v12636_v61 = vld [vmem:[#allocation60_spill] sm:$0xff] }
 0x398   : > { %v10200_v25 = vadd.f32 %v3609_v9, %v3384_v47  ;;  %v2843_v52 = vpop.f32.mrf.mxu0  ;;  %v10208_v47 = vpack.c.bf16 %v4239_v24, %v3466_v34  ;;  %7593 = vmatmul.msk.bf16.gmra.mxu0 %vm12635_vm2, %v9954_v40  ;;  %v8047_v50 = vld [vmem:[%s12422_s3 + $0x30] sm:$0xff]  ;;  %vm12637_vm11 = vnez %v12636_v61  ;;  %vm12640_vm2 = vmmov %vm12633_vm1 }
 0x399   : > { %v3388_v57 = vpop.f32.mrf.mxu2  ;;  %v2878_v26 = vadd.f32 %v2843_v52, %v2624_v21  ;;  %v2625_v18 = vadd.f32 %v9980_v7, %v2403_v55  ;;  %v3131_v21 = vld [vmem:[#allocation2 + $0xf8] sm:$0xff]  ;;  %v3081_v40 = vsel %vm12637_vm11, %v3049_v33, 0.0  ;;  %4582 = vmatpush.bf16.msrb.mxu3 %v8047_v50  ;;  %v4496_v7 = vsel %vm12618_vm13, %v3049_v33, 0.0  ;;  %vm12641_vm13 = vmmov %vm12633_vm1  ;;  %v8159_v61 = vld [vmem:[#allocation2 + $0x89] sm:$0xff] }
 0x39a   : > { %v3389_v46 = vadd.f32 %v3388_v57, %v3245_v23  ;;  %v3247_v56 = vpop.f32.mrf.mxu1  ;;  %v3499_v23 = vsel %vm12389_vm5, %v3467_v15, 0.0 }
 0x39b   : > { %v2914_v51 = vadd.f32 %v10113_v38, %v2878_v26  ;;  %v3516_v8 = vpack.c.bf16 %v3499_v23, %v3466_v34 }
 0x39d   : > { %v2946_v37 = vmax.f32 %v2914_v51, 0.0 }
 0x39e   : > { %v3132_v24 = vld [vmem:[#allocation2 + $0x100] sm:$0xff] }
 0x39f   : > { %v3611_v22 = vpop.f32.mrf.mxu3  ;;  %v3050_v28 = vld [vmem:[#allocation2 + $0xff] sm:$0xff]  ;;  %3017 = vst.msk [vmem:[#allocation2 + $0x108] sm:$0xff] %vm12638_vm8, %v2946_v37  ;;  %v3148_v34 = vpack.c.bf16 %v3132_v24, %v3131_v21  ;;  %vm12642_vm8 = vmmov %vm12633_vm1 }
 0x3a0   : > { %v10216_v36 = vadd.f32 %v3611_v22, %v3386_v41  ;;  %v3756_v41 = vsel %vm12628_vm4, %v3049_v33, 0.0  ;;  %v3098_v52 = vpack.c.bf16 %v3050_v28, %v3081_v40  ;;  %v10231_v55 = vpack.c.bf16 %v3050_v28, %v4496_v7  ;;  %v3468_v24 = vld [vmem:[#allocation2 + $0xf9] sm:$0xff] }
 0x3a1   : > { %v3390_v9 = vpop.f32.mrf.mxu2  ;;  %v10227_v26 = vpack.c.bf16 %v3050_v28, %v3756_v41  ;;  %v3955_v41 = vld [vmem:[#allocation2 + $0x20] sm:$0xff] }
 0x3a2   : > { %v3391_v57 = vadd.f32 %v3390_v9, %v3247_v56  ;;  %v3250_v15 = vpop.f32.mrf.mxu1  ;;  %v2845_v56 = vpop.f32.mrf.mxu0 }
 0x3a3   : > { %v2879_v23 = vadd.f32 %v2845_v56, %v2625_v18 }
 0x3a4   : > { %7578 = vmatmul.msk.bf16.gmra.mxu3 %vm12639_vm12, %v3516_v8  ;;  %vm12645_vm12 = vmmov %vm12633_vm1 }
 0x3a5   : > { %7537 = vmatmul.msk.bf16.gmra.mxu1 %vm12633_vm1, %v3148_v34  ;;  %v2915_v51 = vadd.f32 %v10113_v38, %v2879_v23  ;;  %v3361_v34 = vadd.f32 %v9982_v42, %v9964_v20 }
 0x3a6   : > { %7557 = vmatmul.msk.bf16.gmra.mxu2 %vm12640_vm2, %v3098_v52  ;;  %v3469_v33 = vld [vmem:[#allocation2 + $0x101] sm:$0xff]  ;;  %vm12651_vm2 = vmmov %vm12633_vm1 }
 0x3a7   : > { %v3614_v22 = vpop.f32.mrf.mxu3  ;;  %v2947_v9 = vmax.f32 %v2915_v51, 0.0  ;;  %v4241_v8 = vsel %vm12389_vm5, %v3469_v33, 0.0  ;;  %v3501_v38 = vsel %vm12520_vm9, %v3469_v33, 0.0  ;;  %v3954_v51 = vld [vmem:[#allocation2 + $0x18] sm:$0xff] }
 0x3a8   : > { %v10237_v37 = vadd.f32 %v3614_v22, %v3389_v46  ;;  %v10242_v28 = vpack.c.bf16 %v4241_v8, %v3468_v24  ;;  %7594 = vmatmul.msk.bf16.gmra.mxu0 %vm12642_vm8, %v9990_v62  ;;  %v10251_v46 = vld [vmem:[#allocation2 + $0x107] sm:$0xff]  ;;  %v3517_v7 = vpack.c.bf16 %v3501_v38, %v3468_v24  ;;  %vm12653_vm8 = vmmov %vm12633_vm1 }
 0x3a9   : > { %v3393_v50 = vpop.f32.mrf.mxu2  ;;  %3018 = vst.msk [vmem:[#allocation2 + $0x110] sm:$0xff] %vm12641_vm13, %v2947_v9  ;;  %v4498_v62 = vsel %vm12628_vm4, %v10251_v46, 0.0  ;;  %v3665_v9 = vadd.f32 %v10015_v12, %v3361_v34  ;;  %vm12646_vm4 = vmmov %vm12633_vm1  ;;  %v12647_v12 = vld [vmem:[#allocation38_spill] sm:$0xff] }
 0x3aa   : > { %v3394_v21 = vadd.f32 %v3393_v50, %v3250_v15  ;;  %v3252_v2 = vpop.f32.mrf.mxu1  ;;  %v3842_v18 = vpop.f32.mrf.mxu0  ;;  %v3986_v50 = vpack.c.bf16 %v3955_v41, %v3954_v51  ;;  %vm12652_vm13 = vmmov %vm12633_vm1 }
 0x3ab   : > { %v10245_v40 = vadd.f32 %v3842_v18, %v9999_v11 }
 0x3af   : > { %v3616_v15 = vpop.f32.mrf.mxu3 }
 0x3b0   : > { %v10255_v52 = vadd.f32 %v3616_v15, %v3391_v57  ;;  %v10257_v22 = vld [vmem:[#allocation2 + $0x10f] sm:$0xff] }
 0x3b1   : > { %v3395_v56 = vpop.f32.mrf.mxu2  ;;  %v10264_v33 = vpack.c.bf16 %v10257_v22, %v4498_v62  ;;  %v10266_v42 = vld [vmem:[#allocation2 + $0x109] sm:$0xff]  ;;  %v10268_v20 = vld [vmem:[#allocation2 + $0x111] sm:$0xff] }
 0x3b2   : > { %v3396_v23 = vadd.f32 %v3395_v56, %v3252_v2  ;;  %v3255_v11 = vpop.f32.mrf.mxu1  ;;  %12644 = vst [vmem:[#allocation66_spill] sm:$0xff] %v10266_v42  ;;  %v3844_v57 = vpop.f32.mrf.mxu0  ;;  %v4983_v2 = vsel %vm12389_vm5, %v10268_v20, 0.0  ;;  %vm12649_vm5 = vmmov %vm12633_vm1  ;;  %v3957_v56 = vld [vmem:[#allocation2 + $0x30] sm:$0xff] }
 0x3b3   : > { %12643 = vst [vmem:[#allocation47_spill] sm:$0xff] %v10264_v33  ;;  %v10274_v24 = vadd.f32 %v3844_v57, %v3665_v9  ;;  %v10280_v63 = vpack.c.bf16 %v4983_v2, %v10266_v42  ;;  %v8146_v9 = vld [vmem:[#allocation2 + $0x31] sm:$0xff] }
 0x3b4   : > { %7579 = vmatmul.msk.bf16.gmra.mxu3 %vm12645_vm12, %v3517_v7  ;;  %vm12655_vm12 = vnez %v12176_v58 }
 0x3b5   : > { %7608 = vmatmul.msk.bf16.vlgmr.msrb.gmra.mxu1 %vm12646_vm4, %v3986_v50  ;;  %12648 = vst [vmem:[#allocation41_spill] sm:$0xff] %v10280_v63  ;;  %vm12657_vm4 = vmmov %vm12633_vm1 }
 0x3b6   : > { %7630 = vmatmul.msk.bf16.vlgmr.msrb.gmra.mxu2 %vm12633_vm1, %v12647_v12 }
 0x3b7   : > { %v3619_v8 = vpop.f32.mrf.mxu3 }
 0x3b8   : > { %v10282_v18 = vadd.f32 %v3619_v8, %v3394_v21  ;;  %7595 = vmatmul.msk.bf16.gmra.mxu0 %vm12649_vm5, %v10023_v54  ;;  %v4215_v21 = vsel %vm8430_vm6, %v8146_v9, 0.0  ;;  %vm12654_vm6 = vmmov %vm12633_vm1  ;;  %v3959_v9 = vld [vmem:[#allocation2 + $0x40] sm:$0xff] }
 0x3b9   : > { %v3398_v38 = vpop.f32.mrf.mxu2  ;;  %vm12658_vm5 = vmmov %vm12633_vm1 }
 0x3ba   : > { %v3399_v15 = vadd.f32 %v3398_v38, %v3255_v11  ;;  %v3257_v41 = vpop.f32.mrf.mxu1  ;;  %v3847_v0 = vpop.f32.mrf.mxu0  ;;  %v3956_v11 = vld [vmem:[#allocation2 + $0x28] sm:$0xff]  ;;  %v12650_v38 = vld [vmem:[#allocation79_spill] sm:$0xff] }
 0x3bb   : > { %v10285_v34 = vadd.f32 %v3847_v0, %v10031_v53  ;;  %v10293_v2 = vpack.c.bf16 %v3957_v56, %v3956_v11  ;;  %v8147_v53 = vld [vmem:[#allocation2 + $0x29] sm:$0xff] }
 0x3bc   : > { %v4245_v8 = vpack.c.bf16 %v4215_v21, %v8147_v53 }
 0x3bf   : > { %v3621_v7 = vpop.f32.mrf.mxu3 }
 0x3c0   : > { %v10289_v51 = vadd.f32 %v3621_v7, %v3396_v23 }
 0x3c1   : > { %v3400_v62 = vpop.f32.mrf.mxu2 }
 0x3c2   : > { %v3401_v50 = vadd.f32 %v3400_v62, %v3257_v41  ;;  %v3260_v57 = vpop.f32.mrf.mxu1  ;;  %v3849_v12 = vpop.f32.mrf.mxu0 }
 0x3c3   : > { %v10298_v54 = vadd.f32 %v3849_v12, %v10053_v5  ;;  %v8148_v12 = vld [vmem:[#allocation2 + $0x41] sm:$0xff] }
 0x3c4   : > { %7652 = vmatmul.msk.bf16.vlgmr.msrb.gmra.mxu3 %vm12651_vm2, %v12650_v38  ;;  %vm12659_vm2 = vmmov %vm12633_vm1 }
 0x3c5   : > { %7609 = vmatmul.msk.bf16.gmra.mxu1 %vm12652_vm13, %v10293_v2 }
 0x3c6   : > { %7631 = vmatmul.msk.bf16.gmra.mxu2 %vm12653_vm8, %v4245_v8  ;;  %vm12662_vm8 = vmmov %vm12633_vm1 }
 0x3c7   : > { %v3624_v39 = vpop.f32.mrf.mxu3 }
 0x3c8   : > { %v10303_v23 = vadd.f32 %v3624_v39, %v3399_v15  ;;  %7596 = vmatmul.msk.bf16.gmra.mxu0 %vm12654_vm6, %v10061_v32  ;;  %v4217_v15 = vsel %vm12655_vm12, %v8148_v12, 0.0  ;;  %vm12663_vm6 = vmmov %vm12633_vm1 }
 0x3c9   : > { %v3403_v41 = vpop.f32.mrf.mxu2  ;;  %vm12665_vm12 = vmmov %vm12633_vm1 }
 0x3ca   : > { %v3404_v0 = vadd.f32 %v3403_v41, %v3260_v57  ;;  %v3262_v7 = vpop.f32.mrf.mxu1  ;;  %v3852_v56 = vpop.f32.mrf.mxu0  ;;  %v3958_v57 = vld [vmem:[#allocation2 + $0x38] sm:$0xff] }
 0x3cb   : > { %v10306_v62 = vadd.f32 %v3852_v56, %v10069_v31  ;;  %v10314_v38 = vpack.c.bf16 %v3959_v9, %v3958_v57  ;;  %v8149_v31 = vld [vmem:[#allocation2 + $0x39] sm:$0xff]  ;;  %v12656_v56 = vld [vmem:[#allocation20_spill] sm:$0xff]  ;;  %v4443_v57 = vld [vmem:[#allocation2 + $0x4f] sm:$0xff] }
 0x3cc   : > { %v4246_v41 = vpack.c.bf16 %v4217_v15, %v8149_v31  ;;  %v4442_v15 = vld [vmem:[#allocation2 + $0x47] sm:$0xff] }
 0x3cf   : > { %v3626_v5 = vpop.f32.mrf.mxu3 }
 0x3d0   : > { %v10310_v21 = vadd.f32 %v3626_v5, %v3401_v50 }
 0x3d1   : > { %v3405_v11 = vpop.f32.mrf.mxu2 }
 0x3d2   : > { %v3406_v53 = vadd.f32 %v3405_v11, %v3262_v7  ;;  %v3265_v8 = vpop.f32.mrf.mxu1  ;;  %v3854_v39 = vpop.f32.mrf.mxu0 }
 0x3d3   : > { %v10319_v32 = vadd.f32 %v3854_v39, %v10092_v45  ;;  %v3961_v39 = vld [vmem:[#allocation2 + $0x50] sm:$0xff] }
 0x3d4   : > { %7653 = vmatmul.msk.bf16.gmra.mxu3 %vm12657_vm4, %v12656_v56  ;;  %v8150_v56 = vld [vmem:[#allocation2 + $0x51] sm:$0xff]  ;;  %vm12666_vm4 = vnez %v12188_v43 }
 0x3d5   : > { %7610 = vmatmul.msk.bf16.gmra.mxu1 %vm12633_vm1, %v10314_v38 }
 0x3d6   : > { %7632 = vmatmul.msk.bf16.gmra.mxu2 %vm12658_vm5, %v4246_v41  ;;  %vm12668_vm5 = vmmov %vm12659_vm2 }
 0x3d7   : > { %v3629_v58 = vpop.f32.mrf.mxu3 }
 0x3d8   : > { %v10324_v50 = vadd.f32 %v3629_v58, %v3404_v0  ;;  %7597 = vmatmul.msk.bf16.gmra.mxu0 %vm12659_vm2, %v10101_v3  ;;  %v4219_v0 = vsel %vm8526_vm10, %v8150_v56, 0.0  ;;  %vm12664_vm10 = vmmov %vm12633_vm1  ;;  %v3963_v56 = vld [vmem:[#allocation2 + $0x60] sm:$0xff]  ;;  %vm12667_vm1 = vnez %v12487_v4 }
 0x3d9   : > { %v3408_v7 = vpop.f32.mrf.mxu2  ;;  %v4247_v33 = vpack.c.bf16 %v4219_v0, %v8151_v30  ;;  %v4444_v30 = vld [vmem:[#allocation2 + $0x57] sm:$0xff] }
 0x3da   : > { %v3409_v5 = vadd.f32 %v3408_v7, %v3265_v8  ;;  %v3267_v9 = vpop.f32.mrf.mxu1  ;;  %v3857_v11 = vpop.f32.mrf.mxu0  ;;  %v12660_v8 = vld [vmem:[#allocation17_spill] sm:$0xff] }
 0x3db   : > { %v10327_v12 = vadd.f32 %v3857_v11, %v10116_v14  ;;  %vm12661_vm13 = vnez %v12660_v8  ;;  %v3960_v11 = vld [vmem:[#allocation2 + $0x48] sm:$0xff] }
 0x3dc   : > { %v4474_v58 = vsel %vm12661_vm13, %v4442_v15, 0.0  ;;  %v10337_v49 = vpack.c.bf16 %v3961_v39, %v3960_v11  ;;  %v8152_v8 = vld [vmem:[#allocation2 + $0x61] sm:$0xff]  ;;  %v3962_v11 = vld [vmem:[#allocation2 + $0x58] sm:$0xff]  ;;  %vm12669_vm13 = vmmov %vm12659_vm2 }
 0x3dd   : > { %v4504_v63 = vpack.c.bf16 %v4443_v57, %v4474_v58  ;;  %v4476_v58 = vsel %vm12667_vm1, %v4444_v30, 0.0 }
 0x3df   : > { %v3631_v45 = vpop.f32.mrf.mxu3 }
 0x3e0   : > { %v10331_v31 = vadd.f32 %v3631_v45, %v3406_v53 }
 0x3e1   : > { %v3410_v41 = vpop.f32.mrf.mxu2 }
 0x3e2   : > { %v3411_v7 = vadd.f32 %v3410_v41, %v3267_v9  ;;  %v3270_v14 = vpop.f32.mrf.mxu1  ;;  %v3859_v3 = vpop.f32.mrf.mxu0 }
 0x3e3   : > { %v10341_v53 = vadd.f32 %v3859_v3, %v10142_v29 }
 0x3e4   : > { %7654 = vmatmul.msk.bf16.gmra.mxu3 %vm12662_vm8, %v4504_v63  ;;  %v4445_v63 = vld [vmem:[#allocation2 + $0x5f] sm:$0xff]  ;;  %vm12670_vm8 = vmmov %vm12659_vm2 }
 0x3e5   : > { %7611 = vmatmul.msk.bf16.gmra.mxu1 %vm12663_vm6, %v10337_v49  ;;  %v4505_v3 = vpack.c.bf16 %v4445_v63, %v4476_v58  ;;  %vm12671_vm6 = vnez %v12498_v60 }
 0x3e6   : > { %7633 = vmatmul.msk.bf16.gmra.mxu2 %vm12664_vm10, %v4247_v33  ;;  %vm12672_vm10 = vmmov %vm12659_vm2 }
 0x3e7   : > { %v3634_v17 = vpop.f32.mrf.mxu3 }
 0x3e8   : > { %v10346_v9 = vadd.f32 %v3634_v17, %v3409_v5  ;;  %7598 = vmatmul.msk.bf16.gmra.mxu0 %vm12665_vm12, %v10151_v48  ;;  %v4221_v5 = vsel %vm12666_vm4, %v8152_v8, 0.0  ;;  %v10359_v17 = vpack.c.bf16 %v3963_v56, %v3962_v11  ;;  %v4447_v8 = vld [vmem:[#allocation2 + $0x6f] sm:$0xff]  ;;  %vm12673_vm12 = vmmov %vm12659_vm2 }
 0x3e9   : > { %v3413_v15 = vpop.f32.mrf.mxu2  ;;  %vm12675_vm4 = vmmov %vm12659_vm2 }
 0x3ea   : > { %v3414_v45 = vadd.f32 %v3413_v15, %v3270_v14  ;;  %v3272_v57 = vpop.f32.mrf.mxu1  ;;  %v3862_v39 = vpop.f32.mrf.mxu0  ;;  %v8153_v15 = vld [vmem:[#allocation2 + $0x59] sm:$0xff] }
 0x3eb   : > { %v10349_v41 = vadd.f32 %v3862_v39, %v10161_v1  ;;  %v4248_v39 = vpack.c.bf16 %v4221_v5, %v8153_v15  ;;  %v3965_v5 = vld [vmem:[#allocation2 + $0x70] sm:$0xff]  ;;  %v3964_v15 = vld [vmem:[#allocation2 + $0x68] sm:$0xff] }
 0x3ef   : > { %v3636_v29 = vpop.f32.mrf.mxu3 }
 0x3f0   : > { %v10353_v0 = vadd.f32 %v3636_v29, %v3411_v7 }
 0x3f1   : > { %v3415_v33 = vpop.f32.mrf.mxu2 }
 0x3f2   : > { %v3416_v14 = vadd.f32 %v3415_v33, %v3272_v57  ;;  %v3275_v1 = vpop.f32.mrf.mxu1  ;;  %v3864_v48 = vpop.f32.mrf.mxu0  ;;  %v4446_v33 = vld [vmem:[#allocation2 + $0x67] sm:$0xff] }
 0x3f3   : > { %v10363_v7 = vadd.f32 %v3864_v48, %v10178_v27 }
 0x3f4   : > { %7655 = vmatmul.msk.bf16.gmra.mxu3 %vm12668_vm5, %v4505_v3  ;;  %v8154_v3 = vld [vmem:[#allocation2 + $0x71] sm:$0xff] }
 0x3f5   : > { %7612 = vmatmul.msk.bf16.gmra.mxu1 %vm12659_vm2, %v10359_v17 }
 0x3f6   : > { %7634 = vmatmul.msk.bf16.gmra.mxu2 %vm12669_vm13, %v4248_v39  ;;  %vm12680_vm13 = vmmov %vm12659_vm2 }
 0x3f7   : > { %v3639_v43 = vpop.f32.mrf.mxu3 }
 0x3f8   : > { %v10368_v4 = vadd.f32 %v3639_v43, %v3414_v45  ;;  %7599 = vmatmul.msk.bf16.gmra.mxu0 %vm12670_vm8, %v10187_v10  ;;  %v4223_v45 = vsel %vm8604_vm14, %v8154_v3, 0.0  ;;  %v10381_v43 = vpack.c.bf16 %v3965_v5, %v3964_v15  ;;  %vm12674_vm14 = vmmov %vm12659_vm2  ;;  %v4449_v3 = vld [vmem:[#allocation2 + $0x7f] sm:$0xff] }
 0x3f9   : > { %v3418_v57 = vpop.f32.mrf.mxu2  ;;  %vm12681_vm8 = vmmov %vm12659_vm2 }
 0x3fa   : > { %v3419_v30 = vadd.f32 %v3418_v57, %v3275_v1  ;;  %v3277_v29 = vpop.f32.mrf.mxu1  ;;  %v3867_v63 = vpop.f32.mrf.mxu0  ;;  %v4478_v1 = vsel %vm12671_vm6, %v4446_v33, 0.0  ;;  %v8155_v57 = vld [vmem:[#allocation2 + $0x69] sm:$0xff]  ;;  %vm12683_vm6 = vmmov %vm12659_vm2 }
 0x3fb   : > { %v10371_v56 = vadd.f32 %v3867_v63, %v10200_v25  ;;  %v4506_v39 = vpack.c.bf16 %v4447_v8, %v4478_v1  ;;  %v4249_v63 = vpack.c.bf16 %v4223_v45, %v8155_v57  ;;  %v3967_v45 = vld [vmem:[#allocation2 + $0x80] sm:$0xff] }
 0x3ff   : > { %v3641_v27 = vpop.f32.mrf.mxu3 }
 0x400   : > { %v10375_v58 = vadd.f32 %v3641_v27, %v3416_v14 }
 0x401   : > { %v3420_v11 = vpop.f32.mrf.mxu2 }
 0x402   : > { %v3421_v48 = vadd.f32 %v3420_v11, %v3277_v29  ;;  %v3280_v25 = vpop.f32.mrf.mxu1  ;;  %v3869_v10 = vpop.f32.mrf.mxu0  ;;  %v4448_v11 = vld [vmem:[#allocation2 + $0x77] sm:$0xff] }
 0x403   : > { %v10385_v14 = vadd.f32 %v3869_v10, %v10216_v36 }
 0x404   : > { %7656 = vmatmul.msk.bf16.gmra.mxu3 %vm12672_vm10, %v4506_v39  ;;  %v8156_v39 = vld [vmem:[#allocation2 + $0x81] sm:$0xff] }
 0x405   : > { %7613 = vmatmul.msk.bf16.gmra.mxu1 %vm12673_vm12, %v10381_v43 }
 0x406   : > { %7635 = vmatmul.msk.bf16.gmra.mxu2 %vm12674_vm14, %v4249_v63  ;;  %vm12688_vm14 = vmmov %vm12659_vm2 }
 0x407   : > { %v3644_v19 = vpop.f32.mrf.mxu3 }
 0x408   : > { %v10390_v60 = vadd.f32 %v3644_v19, %v3419_v30  ;;  %7600 = vmatmul.msk.bf16.gmra.mxu0 %vm12675_vm4, %v10227_v26  ;;  %v12676_v30 = vld [vmem:[#allocation24_spill] sm:$0xff]  ;;  %v3966_v26 = vld [vmem:[#allocation2 + $0x78] sm:$0xff]  ;;  %vm12690_vm4 = vmmov %vm12659_vm2 }
 0x409   : > { %v3423_v29 = vpop.f32.mrf.mxu2  ;;  %vm12677_vm1 = vnez %v12676_v30 }
 0x40a   : > { %v3424_v33 = vadd.f32 %v3423_v29, %v3280_v25  ;;  %v3282_v27 = vpop.f32.mrf.mxu1  ;;  %v3872_v8 = vpop.f32.mrf.mxu0  ;;  %v4225_v10 = vsel %vm12677_vm1, %v8156_v39, 0.0  ;;  %v8048_v25 = vld [vmem:[%s12422_s3 + $0x38] sm:$0xff]  ;;  %vm12691_vm1 = vmmov %vm12659_vm2 }
 0x40b   : > { %v10393_v5 = vadd.f32 %v3872_v8, %v10237_v37  ;;  %v12678_v37 = vld [vmem:[#allocation22_spill] sm:$0xff]  ;;  %v10406_v8 = vpack.c.bf16 %v3967_v45, %v3966_v26  ;;  %4808 = vmatpush.bf16.msra.mxu0 %v8048_v25 }
 0x40c   : > { %vm12679_vm5 = vnez %v12678_v37  ;;  %v4450_v37 = vld [vmem:[#allocation2 + $0x87] sm:$0xff] }
 0x40d   : > { %v4480_v57 = vsel %vm12679_vm5, %v4448_v11, 0.0  ;;  %vm12693_vm5 = vmmov %vm12691_vm1 }
 0x40e   : > { %v4507_v29 = vpack.c.bf16 %v4449_v3, %v4480_v57  ;;  %v4451_v57 = vld [vmem:[#allocation2 + $0x8f] sm:$0xff] }
 0x40f   : > { %v3646_v36 = vpop.f32.mrf.mxu3 }
 0x410   : > { %v10397_v1 = vadd.f32 %v3646_v36, %v3421_v48  ;;  %v8157_v36 = vld [vmem:[#allocation2 + $0x79] sm:$0xff] }
 0x411   : > { %v3425_v15 = vpop.f32.mrf.mxu2  ;;  %v4250_v42 = vpack.c.bf16 %v4225_v10, %v8157_v36  ;;  %v3758_v10 = vsel %vm12637_vm11, %v10251_v46, 0.0 }
 0x412   : > { %v3426_v63 = vadd.f32 %v3425_v15, %v3282_v27  ;;  %v3285_v19 = vpop.f32.mrf.mxu1  ;;  %v3874_v48 = vpop.f32.mrf.mxu0 }
 0x413   : > { %v10410_v39 = vadd.f32 %v3874_v48, %v10255_v52  ;;  %v3775_v52 = vpack.c.bf16 %v10257_v22, %v3758_v10  ;;  %v12684_v48 = vld [vmem:[#allocation26_spill] sm:$0xff] }
 0x414   : > { %7657 = vmatmul.msk.bf16.gmra.mxu3 %vm12659_vm2, %v4507_v29  ;;  %v8158_v29 = vld [vmem:[#allocation2 + $0x91] sm:$0xff]  ;;  %vm12685_vm10 = vnez %v12684_v48  ;;  %v4453_v48 = vld [vmem:[#allocation2 + $0x9f] sm:$0xff] }
 0x415   : > { %7614 = vmatmul.msk.bf16.gmra.mxu1 %vm12680_vm13, %v10406_v8  ;;  %v4227_v36 = vsel %vm12685_vm10, %v8158_v29, 0.0  ;;  %vm12700_vm10 = vmmov %vm12691_vm1 }
 0x416   : > { %7636 = vmatmul.msk.bf16.gmra.mxu2 %vm12681_vm8, %v4250_v42  ;;  %vm12698_vm8 = vmmov %vm12691_vm1 }
 0x417   : > { %v3649_v27 = vpop.f32.mrf.mxu3 }
 0x418   : > { %v10415_v11 = vadd.f32 %v3649_v27, %v3424_v33  ;;  %7601 = vmatmul.msk.bf16.gmra.mxu0 %vm12683_vm6, %v3775_v52  ;;  %v3969_v33 = vld [vmem:[#allocation2 + $0x90] sm:$0xff]  ;;  %v12686_v27 = vld [vmem:[#allocation23_spill] sm:$0xff]  ;;  %vm12699_vm6 = vmmov %vm12691_vm1 }
 0x419   : > { %v3428_v3 = vpop.f32.mrf.mxu2  ;;  %vm12687_vm12 = vnez %v12686_v27 }
 0x41a   : > { %v3429_v45 = vadd.f32 %v3428_v3, %v3285_v19  ;;  %v3287_v15 = vpop.f32.mrf.mxu1  ;;  %v3877_v30 = vpop.f32.mrf.mxu0  ;;  %v4482_v46 = vsel %vm12687_vm12, %v4450_v37, 0.0  ;;  %vm12701_vm12 = vmmov %vm12691_vm1 }
 0x41b   : > { %v10421_v25 = vadd.f32 %v3877_v30, %v10282_v18  ;;  %v3968_v30 = vld [vmem:[#allocation2 + $0x88] sm:$0xff]  ;;  %v4508_v22 = vpack.c.bf16 %v4451_v57, %v4482_v46 }
 0x41c   : > { %v10431_v10 = vpack.c.bf16 %v3969_v33, %v3968_v30  ;;  %v8160_v46 = vld [vmem:[#allocation2 + $0xa1] sm:$0xff] }
 0x41d   : > { %12682 = vst [vmem:[#allocation53_spill] sm:$0xff] %v10421_v25  ;;  %v4251_v25 = vpack.c.bf16 %v4227_v36, %v8159_v61  ;;  %v4452_v61 = vld [vmem:[#allocation2 + $0x97] sm:$0xff]  ;;  %v3971_v36 = vld [vmem:[#allocation2 + $0xa0] sm:$0xff] }
 0x41f   : > { %v3651_v42 = vpop.f32.mrf.mxu3 }
 0x420   : > { %v10425_v26 = vadd.f32 %v3651_v42, %v3426_v63 }
 0x421   : > { %v3430_v19 = vpop.f32.mrf.mxu2 }
 0x422   : > { %v3431_v18 = vadd.f32 %v3430_v19, %v3287_v15  ;;  %v3290_v3 = vpop.f32.mrf.mxu1  ;;  %v3879_v52 = vpop.f32.mrf.mxu0 }
 0x423   : > { %v10435_v63 = vadd.f32 %v3879_v52, %v10289_v51 }
 0x424   : > { %7658 = vmatmul.msk.bf16.gmra.mxu3 %vm12688_vm14, %v4508_v22 }
 0x425   : > { %12689 = vst [vmem:[#allocation56_spill] sm:$0xff] %v10435_v63  ;;  %7615 = vmatmul.msk.bf16.gmra.mxu1 %vm12690_vm4, %v10431_v10  ;;  %v8161_v63 = vld [vmem:[#allocation2 + $0x99] sm:$0xff]  ;;  %vm12706_vm4 = vmmov %vm12691_vm1 }
 0x426   : > { %7637 = vmatmul.msk.bf16.gmra.mxu2 %vm12691_vm1, %v4251_v25 }
 0x427   : > { %v3654_v37 = vpop.f32.mrf.mxu3 }
 0x428   : > { %v10440_v15 = vadd.f32 %v3654_v37, %v3429_v45  ;;  %7674 = vmatmul.msk.bf16.vlgmr.msra.gmra.mxu0 %vm12693_vm5, %v10293_v2  ;;  %v12694_v45 = vld [vmem:[#allocation28_spill] sm:$0xff]  ;;  %v3970_v37 = vld [vmem:[#allocation2 + $0x98] sm:$0xff] }
 0x429   : > { %v3433_v42 = vpop.f32.mrf.mxu2  ;;  %vm12695_vm2 = vnez %v12694_v45  ;;  %v10454_v2 = vpack.c.bf16 %v3971_v36, %v3970_v37  ;;  %v4454_v45 = vld [vmem:[#allocation2 + $0xa7] sm:$0xff]  ;;  %v12703_v37 = vld [vmem:[#allocation27_spill] sm:$0xff] }
 0x42a   : > { %v3434_v57 = vadd.f32 %v3433_v42, %v3290_v3  ;;  %v3292_v33 = vpop.f32.mrf.mxu1  ;;  %v3882_v19 = vpop.f32.mrf.mxu0  ;;  %v4229_v30 = vsel %vm12695_vm2, %v8160_v46, 0.0  ;;  %v12696_v3 = vld [vmem:[#allocation25_spill] sm:$0xff]  ;;  %vm12704_vm14 = vnez %v12703_v37  ;;  %v3975_v37 = vld [vmem:[#allocation2 + $0xc0] sm:$0xff] }
 0x42b   : > { %v10443_v29 = vadd.f32 %v3882_v19, %v10303_v23  ;;  %vm12697_vm13 = vnez %v12696_v3 }
 0x42c   : > { %v4484_v22 = vsel %vm12697_vm13, %v4452_v61, 0.0 }
 0x42d   : > { %12692 = vst [vmem:[#allocation31_spill] sm:$0xff] %v10443_v29  ;;  %v4509_v42 = vpack.c.bf16 %v4453_v48, %v4484_v22  ;;  %v12702_v22 = vld [vmem:[#allocation45_spill] sm:$0xff] }
 0x42f   : > { %v3656_v51 = vpop.f32.mrf.mxu3 }
 0x430   : > { %v10447_v27 = vadd.f32 %v3656_v51, %v3431_v18  ;;  %v4252_v18 = vpack.c.bf16 %v4229_v30, %v8161_v63  ;;  %v3973_v30 = vld [vmem:[#allocation2 + $0xb0] sm:$0xff] }
 0x431   : > { %v3435_v25 = vpop.f32.mrf.mxu2 }
 0x432   : > { %v3436_v52 = vadd.f32 %v3435_v25, %v3292_v33  ;;  %v4068_v23 = vpop.f32.mrf.mxu1  ;;  %v3884_v29 = vpop.f32.mrf.mxu0 }
 0x433   : > { %v4148_v19 = vadd.f32 %v4068_v23, %v10245_v40  ;;  %v10458_v51 = vadd.f32 %v3884_v29, %v10310_v21  ;;  %v4455_v29 = vld [vmem:[#allocation2 + $0xaf] sm:$0xff]  ;;  %v4231_v23 = vsel %vm12568_vm0, %v12702_v22, 0.0  ;;  %vm12707_vm0 = vmmov %vm12691_vm1  ;;  %v4456_v22 = vld [vmem:[#allocation2 + $0xb7] sm:$0xff] }
 0x434   : > { %7659 = vmatmul.msk.bf16.gmra.mxu3 %vm12698_vm8, %v4509_v42  ;;  %vm12708_vm1 = vmmov %vm12707_vm0 }
 0x435   : > { %7616 = vmatmul.msk.bf16.gmra.mxu1 %vm12699_vm6, %v10454_v2  ;;  %vm12709_vm5 = vmmov %vm12707_vm0 }
 0x436   : > { %7638 = vmatmul.msk.bf16.gmra.mxu2 %vm12700_vm10, %v4252_v18  ;;  %vm12714_vm13 = vmmov %vm12707_vm0 }
 0x437   : > { %v3659_v33 = vpop.f32.mrf.mxu3  ;;  %vm12716_vm8 = vmmov %vm12707_vm0 }
 0x438   : > { %v10463_v61 = vadd.f32 %v3659_v33, %v3434_v57  ;;  %7675 = vmatmul.msk.bf16.gmra.mxu0 %vm12701_vm12, %v10314_v38  ;;  %vm12717_vm6 = vmmov %vm12707_vm0 }
 0x439   : > { %v4326_v48 = vpop.f32.mrf.mxu2  ;;  %vm12723_vm12 = vmmov %vm12707_vm0 }
 0x43a   : > { %v4406_v40 = vadd.f32 %v4326_v48, %v4148_v19  ;;  %v4070_v36 = vpop.f32.mrf.mxu1  ;;  %v3887_v46 = vpop.f32.mrf.mxu0  ;;  %v3972_v19 = vld [vmem:[#allocation2 + $0xa8] sm:$0xff] }
 0x43b   : > { %v4149_v25 = vadd.f32 %v4070_v36, %v10274_v24  ;;  %v10467_v63 = vadd.f32 %v3887_v46, %v10324_v50  ;;  %v4486_v24 = vsel %vm12704_vm14, %v4454_v45, 0.0  ;;  %v10479_v38 = vpack.c.bf16 %v3973_v30, %v3972_v19  ;;  %v12705_v36 = vld [vmem:[#allocation73_spill] sm:$0xff]  ;;  %vm12724_vm14 = vmmov %vm12707_vm0 }
 0x43c   : > { %v4510_v18 = vpack.c.bf16 %v4455_v29, %v4486_v24 }
 0x43f   : > { %v3661_v21 = vpop.f32.mrf.mxu3 }
 0x440   : > { %v10471_v3 = vadd.f32 %v3661_v21, %v3436_v52  ;;  %v4253_v52 = vpack.c.bf16 %v4231_v23, %v12705_v36  ;;  %v4457_v23 = vld [vmem:[#allocation2 + $0xbf] sm:$0xff] }
 0x441   : > { %v4328_v57 = vpop.f32.mrf.mxu2 }
 0x442   : > { %v4407_v42 = vadd.f32 %v4328_v57, %v4149_v25  ;;  %v4073_v50 = vpop.f32.mrf.mxu1  ;;  %v3889_v48 = vpop.f32.mrf.mxu0 }
 0x443   : > { %v4150_v33 = vadd.f32 %v4073_v50, %v10285_v34  ;;  %v10484_v46 = vadd.f32 %v3889_v48, %v10331_v31  ;;  %v12710_v50 = vld [vmem:[#allocation48_spill] sm:$0xff]  ;;  %v3974_v48 = vld [vmem:[#allocation2 + $0xb8] sm:$0xff] }
 0x444   : > { %7660 = vmatmul.msk.bf16.gmra.mxu3 %vm12706_vm4, %v4510_v18  ;;  %v4233_v19 = vsel %vm12584_vm15, %v12710_v50, 0.0  ;;  %v12711_v18 = vld [vmem:[#allocation29_spill] sm:$0xff]  ;;  %vm12715_vm15 = vmmov %vm12707_vm0 }
 0x445   : > { %7617 = vmatmul.msk.bf16.gmra.mxu1 %vm12707_vm0, %v10479_v38  ;;  %vm12712_vm2 = vnez %v12711_v18  ;;  %v12718_v18 = vld [vmem:[#allocation51_spill] sm:$0xff]  ;;  %vm12725_vm4 = vmmov %vm12707_vm0 }
 0x446   : > { %7639 = vmatmul.msk.bf16.gmra.mxu2 %vm12708_vm1, %v4253_v52  ;;  %vm12726_vm1 = vmmov %vm12707_vm0 }
 0x447   : > { %v4584_v16 = vpop.f32.mrf.mxu3 }
 0x448   : > { %v10489_v25 = vadd.f32 %v4584_v16, %v4406_v40  ;;  %7676 = vmatmul.msk.bf16.gmra.mxu0 %vm12709_vm5, %v10337_v49  ;;  %v10505_v49 = vpack.c.bf16 %v3975_v37, %v3974_v48  ;;  %vm12727_vm5 = vmmov %vm12707_vm0 }
 0x449   : > { %v4331_v45 = vpop.f32.mrf.mxu2 }
 0x44a   : > { %v4408_v34 = vadd.f32 %v4331_v45, %v4150_v33  ;;  %v4075_v21 = vpop.f32.mrf.mxu1  ;;  %v3892_v30 = vpop.f32.mrf.mxu0  ;;  %v12713_v45 = vld [vmem:[#allocation77_spill] sm:$0xff] }
 0x44b   : > { %v4151_v29 = vadd.f32 %v4075_v21, %v10298_v54  ;;  %v10493_v57 = vadd.f32 %v3892_v30, %v10346_v9  ;;  %v4488_v54 = vsel %vm12712_vm2, %v4456_v22, 0.0  ;;  %vm12728_vm2 = vmmov %vm12707_vm0 }
 0x44c   : > { %v4511_v36 = vpack.c.bf16 %v4457_v23, %v4488_v54 }
 0x44f   : > { %v4586_v31 = vpop.f32.mrf.mxu3 }
 0x450   : > { %v10497_v24 = vadd.f32 %v4586_v31, %v4407_v42  ;;  %v4254_v42 = vpack.c.bf16 %v4233_v19, %v12713_v45 }
 0x451   : > { %v4333_v40 = vpop.f32.mrf.mxu2 }
 0x452   : > { %v4409_v33 = vadd.f32 %v4333_v40, %v4151_v29  ;;  %v4078_v9 = vpop.f32.mrf.mxu1  ;;  %v3894_v16 = vpop.f32.mrf.mxu0  ;;  %v3977_v40 = vld [vmem:[#allocation2 + $0xd0] sm:$0xff] }
 0x453   : > { %v4152_v52 = vadd.f32 %v4078_v9, %v10306_v62  ;;  %v10510_v21 = vadd.f32 %v3894_v16, %v10353_v0  ;;  %v12721_v16 = vld [vmem:[#allocation63_spill] sm:$0xff] }
 0x454   : > { %7661 = vmatmul.msk.bf16.gmra.mxu3 %vm12714_vm13, %v4511_v36  ;;  %v3976_v36 = vld [vmem:[#allocation2 + $0xc8] sm:$0xff]  ;;  %vm12729_vm13 = vmmov %vm12707_vm0 }
 0x455   : > { %7618 = vmatmul.msk.bf16.gmra.mxu1 %vm12715_vm15, %v10505_v49  ;;  %vm12730_vm15 = vmmov %vm12707_vm0 }
 0x456   : > { %7640 = vmatmul.msk.bf16.gmra.mxu2 %vm12716_vm8, %v4254_v42  ;;  %vm12731_vm8 = vmmov %vm12707_vm0 }
 0x457   : > { %v4589_v59 = vpop.f32.mrf.mxu3 }
 0x458   : > { %v10515_v29 = vadd.f32 %v4589_v59, %v4408_v34  ;;  %7677 = vmatmul.msk.bf16.gmra.mxu0 %vm12717_vm6, %v10359_v17  ;;  %v12719_v34 = vld [vmem:[#allocation39_spill] sm:$0xff]  ;;  %v12722_v17 = vld [vmem:[#allocation50_spill] sm:$0xff]  ;;  %vm12732_vm6 = vmmov %vm12707_vm0 }
 0x459   : > { %v4336_v30 = vpop.f32.mrf.mxu2  ;;  %vm12720_vm10 = vnez %v12719_v34 }
 0x45a   : > { %v4410_v62 = vadd.f32 %v4336_v30, %v4152_v52  ;;  %v4080_v22 = vpop.f32.mrf.mxu1  ;;  %v3897_v23 = vpop.f32.mrf.mxu0  ;;  %v4235_v54 = vsel %vm12720_vm10, %v12718_v18, 0.0  ;;  %v10529_v52 = vpack.c.bf16 %v3977_v40, %v3976_v36  ;;  %v3979_v40 = vld [vmem:[#allocation2 + $0xe0] sm:$0xff] }
 0x45b   : > { %v4153_v31 = vadd.f32 %v4080_v22, %v10319_v32  ;;  %v10519_v37 = vadd.f32 %v3897_v23, %v10368_v4  ;;  %v4255_v45 = vpack.c.bf16 %v4235_v54, %v12721_v16 }
 0x45f   : > { %v4591_v0 = vpop.f32.mrf.mxu3 }
 0x460   : > { %v10523_v50 = vadd.f32 %v4591_v0, %v4409_v33 }
 0x461   : > { %v4338_v19 = vpop.f32.mrf.mxu2 }
 0x462   : > { %v4411_v9 = vadd.f32 %v4338_v19, %v4153_v31  ;;  %v4083_v48 = vpop.f32.mrf.mxu1  ;;  %v3899_v4 = vpop.f32.mrf.mxu0 }
 0x463   : > { %v4154_v32 = vadd.f32 %v4083_v48, %v10327_v12  ;;  %v10535_v33 = vadd.f32 %v3899_v4, %v10375_v58  ;;  %v3978_v48 = vld [vmem:[#allocation2 + $0xd8] sm:$0xff] }
 0x464   : > { %7662 = vmatmul.msk.bf16.gmra.mxu3 %vm12723_vm12, %v12722_v17  ;;  %vm12733_vm12 = vmmov %vm12707_vm0 }
 0x465   : > { %7619 = vmatmul.msk.bf16.gmra.mxu1 %vm12724_vm14, %v10529_v52  ;;  %vm12734_vm14 = vmmov %vm12707_vm0 }
 0x466   : > { %7641 = vmatmul.msk.bf16.gmra.mxu2 %vm12725_vm4, %v4255_v45  ;;  %vm12735_vm4 = vmmov %vm12707_vm0 }
 0x467   : > { %v4594_v42 = vpop.f32.mrf.mxu3 }
 0x468   : > { %v10540_v59 = vadd.f32 %v4594_v42, %v4410_v62  ;;  %7678 = vmatmul.msk.bf16.gmra.mxu0 %vm12707_vm0, %v10381_v43  ;;  %v3981_v42 = vld [vmem:[#allocation2 + $0xf0] sm:$0xff] }
 0x469   : > { %v4341_v12 = vpop.f32.mrf.mxu2 }
 0x46a   : > { %v4412_v30 = vadd.f32 %v4341_v12, %v4154_v32  ;;  %v4085_v22 = vpop.f32.mrf.mxu1  ;;  %v3902_v23 = vpop.f32.mrf.mxu0  ;;  %v10551_v32 = vpack.c.bf16 %v3979_v40, %v3978_v48  ;;  %v3983_v48 = vld [vmem:[#allocation2 + $0x100] sm:$0xff] }
 0x46b   : > { %v4155_v31 = vadd.f32 %v4085_v22, %v10341_v53  ;;  %v10544_v0 = vadd.f32 %v3902_v23, %v10390_v60 }
 0x46f   : > { %v4596_v58 = vpop.f32.mrf.mxu3 }
 0x470   : > { %v10548_v19 = vadd.f32 %v4596_v58, %v4411_v9 }
 0x471   : > { %v4343_v18 = vpop.f32.mrf.mxu2 }
 0x472   : > { %v4413_v54 = vadd.f32 %v4343_v18, %v4155_v31  ;;  %v4088_v62 = vpop.f32.mrf.mxu1  ;;  %v3904_v53 = vpop.f32.mrf.mxu0  ;;  %v3980_v31 = vld [vmem:[#allocation2 + $0xe8] sm:$0xff] }
 0x473   : > { %v4156_v36 = vadd.f32 %v4088_v62, %v10349_v41  ;;  %v10556_v60 = vadd.f32 %v3904_v53, %v10397_v1  ;;  %v8049_v41 = vld [vmem:[%s12422_s3 + $0x40] sm:$0xff]  ;;  %v3982_v53 = vld [vmem:[#allocation2 + $0xf8] sm:$0xff]  ;;  %s8176_s3 = sshra.s32 %s7305_s17, 4  ;;  %s8177_s3 = int_to_ptr.hbm [resolvable:$true] %s8176_s3 }
 0x474   : > { %7663 = vmatmul.msk.bf16.gmra.mxu3 %vm12726_vm1, %v10153_v13  ;;  %5066 = vmatpush.bf16.msra.mxu1 %v8049_v41  ;;  %vm12736_vm1 = vmmov %vm12707_vm0  ;;  %p8183_p0 = scmp.lt.s32.totalorder %s8177_s3, %s11963_s15 }
 0x475   : > { %7620 = vmatmul.msk.bf16.gmra.mxu1 %vm12727_vm5, %v10551_v32  ;;  %vm12740_vm5 = vmmov %vm12707_vm0 }
 0x476   : > { %7642 = vmatmul.msk.bf16.gmra.mxu2 %vm12728_vm2, %v10169_v35  ;;  %vm12741_vm2 = vmmov %vm12707_vm0 }
 0x477   : > { %v4599_v43 = vpop.f32.mrf.mxu3 }
 0x478   : > { %v10562_v9 = vadd.f32 %v4599_v43, %v4412_v30  ;;  %7679 = vmatmul.msk.bf16.gmra.mxu0 %vm12729_vm13, %v10406_v8  ;;  %vm12742_vm13 = vmmov %vm12707_vm0 }
 0x479   : > { %v4346_v4 = vpop.f32.mrf.mxu2 }
 0x47a   : > { %v4414_v16 = vadd.f32 %v4346_v4, %v4156_v36  ;;  %v4090_v45 = vpop.f32.mrf.mxu1  ;;  %v3907_v1 = vpop.f32.mrf.mxu0  ;;  %v10612_v4 = vpack.c.bf16 %v3983_v48, %v3982_v53  ;;  %v12743_v53 = vld [vmem:[#allocation56_spill] sm:$0xff] }
 0x47b   : > { %v10568_v13 = vadd.f32 %v4090_v45, %v10363_v7  ;;  %v10571_v17 = vadd.f32 %v3907_v1, %v10415_v11  ;;  %v10582_v7 = vpack.c.bf16 %v3981_v42, %v3980_v31  ;;  %v3985_v1 = vld [vmem:[#allocation2 + $0x110] sm:$0xff] }
 0x47f   : > { %v4601_v35 = vpop.f32.mrf.mxu3 }
 0x480   : > { %v10575_v12 = vadd.f32 %v4601_v35, %v4413_v54 }
 0x481   : > { %v10577_v30 = vpop.f32.mrf.mxu2 }
 0x482   : > { %v4093_v22 = vpop.f32.mrf.mxu1  ;;  %v3909_v58 = vpop.f32.mrf.mxu0 }
 0x483   : > { %v10580_v23 = vadd.f32 %v4093_v22, %v10371_v56  ;;  %v10587_v11 = vadd.f32 %v3909_v58, %v10425_v26  ;;  %v3984_v22 = vld [vmem:[#allocation2 + $0x108] sm:$0xff] }
 0x484   : > { %7664 = vmatmul.msk.bf16.gmra.mxu3 %vm12730_vm15, %v10189_v44  ;;  %v10645_v58 = vpack.c.bf16 %v3985_v1, %v3984_v22  ;;  %v4468_v1 = vld [vmem:[#allocation2 + $0x117] sm:$0xff]  ;;  %vm12744_vm15 = vmmov %vm12707_vm0 }
 0x485   : > { %7621 = vmatmul.msk.bf16.gmra.mxu1 %vm12731_vm8, %v10582_v7  ;;  %v4500_v22 = vsel %vm12637_vm11, %v4468_v1, 0.0  ;;  %vm12748_vm8 = vmmov %vm12707_vm0 }
 0x486   : > { %7643 = vmatmul.msk.bf16.gmra.mxu2 %vm12732_vm6, %v10208_v47  ;;  %vm12750_vm6 = vmmov %vm12707_vm0 }
 0x487   : > { %v4604_v8 = vpop.f32.mrf.mxu3  ;;  %vm12752_vm11 = vmmov %vm12707_vm0 }
 0x488   : > { %v10593_v40 = vadd.f32 %v4604_v8, %v4414_v16  ;;  %7680 = vmatmul.msk.bf16.gmra.mxu0 %vm12733_vm12, %v10431_v10  ;;  %v12738_v8 = vld [vmem:[#allocation66_spill] sm:$0xff]  ;;  %vm12755_vm12 = vmmov %vm12707_vm0 }
 0x489   : > { %v10595_v56 = vpop.f32.mrf.mxu2 }
 0x48a   : > { %v4095_v18 = vpop.f32.mrf.mxu1  ;;  %v3912_v62 = vpop.f32.mrf.mxu0 }
 0x48b   : > { %v10598_v54 = vadd.f32 %v4095_v18, %v10385_v14  ;;  %v10601_v44 = vadd.f32 %v3912_v62, %v10440_v15 }
 0x48f   : > { %v10605_v26 = vpop.f32.mrf.mxu3 }
 0x491   : > { %v10607_v47 = vpop.f32.mrf.mxu2 }
 0x492   : > { %v4098_v36 = vpop.f32.mrf.mxu1  ;;  %v3914_v14 = vpop.f32.mrf.mxu0 }
 0x493   : > { %v10610_v43 = vadd.f32 %v4098_v36, %v10393_v5  ;;  %v10617_v15 = vadd.f32 %v3914_v14, %v10447_v27 }
 0x494   : > { %7665 = vmatmul.msk.bf16.gmra.mxu3 %vm12734_vm14, %v10231_v55  ;;  %vm12756_vm14 = vmmov %vm12707_vm0 }
 0x495   : > { %7622 = vmatmul.msk.bf16.gmra.mxu1 %vm12735_vm4, %v10612_v4  ;;  %vm12759_vm4 = vmmov %vm12707_vm0 }
 0x496   : > { %7644 = vmatmul.msk.bf16.gmra.mxu2 %vm12707_vm0, %v10242_v28  ;;  %v4243_v28 = vsel %vm12520_vm9, %v10268_v20, 0.0 }
 0x497   : > { %v10623_v10 = vpop.f32.mrf.mxu3  ;;  %v4259_v18 = vpack.c.bf16 %v4243_v28, %v12738_v8  ;;  %v4469_v28 = vld [vmem:[#allocation2 + $0x11f] sm:$0xff] }
 0x498   : > { %7681 = vmatmul.msk.bf16.gmra.mxu0 %vm12736_vm1, %v10454_v2  ;;  %v12739_v2 = vld [vmem:[#allocation47_spill] sm:$0xff]  ;;  %v4517_v8 = vpack.c.bf16 %v4469_v28, %v4500_v22  ;;  %vm12762_vm1 = vmmov %vm12707_vm0 }
 0x499   : > { %v10625_v41 = vpop.f32.mrf.mxu2 }
 0x49a   : > { %v4100_v5 = vpop.f32.mrf.mxu1  ;;  %v3917_v45 = vpop.f32.mrf.mxu0 }
 0x49b   : > { %v10628_v16 = vadd.f32 %v4100_v5, %v10410_v39  ;;  %v10631_v55 = vadd.f32 %v3917_v45, %v10463_v61  ;;  %v12737_v39 = vld [vmem:[#allocation53_spill] sm:$0xff] }
 0x49f   : > { %v10635_v27 = vpop.f32.mrf.mxu3 }
 0x4a1   : > { %v10637_v35 = vpop.f32.mrf.mxu2 }
 0x4a2   : > { %v4103_v42 = vpop.f32.mrf.mxu1  ;;  %v3919_v61 = vpop.f32.mrf.mxu0 }
 0x4a3   : > { %v10643_v31 = vadd.f32 %v4103_v42, %v12737_v39  ;;  %v10651_v62 = vadd.f32 %v3919_v61, %v10471_v3 }
 0x4a4   : > { %7666 = vmatmul.msk.bf16.gmra.mxu3 %vm12740_vm5, %v12739_v2  ;;  %vm12764_vm5 = vmmov %vm12707_vm0 }
 0x4a5   : > { %7623 = vmatmul.msk.bf16.gmra.mxu1 %vm12741_vm2, %v10645_v58  ;;  %vm12767_vm2 = vmmov %vm12707_vm0 }
 0x4a6   : > { %7645 = vmatmul.msk.bf16.gmra.mxu2 %vm12742_vm13, %v4259_v18  ;;  %v12747_v18 = vld [vmem:[#allocation31_spill] sm:$0xff]  ;;  %vm12769_vm13 = vmmov %vm12707_vm0 }
 0x4a7   : > { %v10656_v20 = vpop.f32.mrf.mxu3 }
 0x4a8   : > { %7682 = vmatmul.msk.bf16.gmra.mxu0 %vm12744_vm15, %v10479_v38  ;;  %vm12773_vm15 = vmmov %vm12707_vm0 }
 0x4a9   : > { %v10658_v48 = vpop.f32.mrf.mxu2 }
 0x4aa   : > { %v4105_v36 = vpop.f32.mrf.mxu1  ;;  %v4810_v5 = vpop.f32.mrf.mxu0 }
 0x4ab   : > { %v10661_v14 = vadd.f32 %v4105_v36, %v12743_v53  ;;  %v10664_v45 = vadd.f32 %v4810_v5, %v10489_v25  ;;  %v12749_v53 = vld [vmem:[#allocation80_spill] sm:$0xff] }
 0x4af   : > { %v10668_v3 = vpop.f32.mrf.mxu3 }
 0x4b1   : > { %v10672_v39 = vpop.f32.mrf.mxu2 }
 0x4b2   : > { %12746 = vst [vmem:[#allocation67_spill] sm:$0xff] %v10672_v39  ;;  %v4108_v61 = vpop.f32.mrf.mxu1  ;;  %v4812_v36 = vpop.f32.mrf.mxu0 }
 0x4b3   : > { %v4164_v2 = vadd.f32 %v4108_v61, %v12747_v18  ;;  %v10677_v25 = vadd.f32 %v4812_v36, %v10497_v24 }
 0x4b4   : > { %7667 = vmatmul.msk.bf16.gmra.mxu3 %vm12748_vm8, %v4517_v8  ;;  %vm12775_vm8 = vmmov %vm12707_vm0 }
 0x4b5   : > { %7696 = vmatmul.msk.bf16.vlgmr.msra.gmra.mxu1 %vm12750_vm6, %v12749_v53  ;;  %vm12778_vm6 = vmmov %vm12707_vm0 }
 0x4b7   : > { %v10681_v38 = vpop.f32.mrf.mxu3 }
 0x4b8   : > { %7683 = vmatmul.msk.bf16.gmra.mxu0 %vm12752_vm11, %v10505_v49  ;;  %vm12780_vm11 = vmmov %vm12707_vm0 }
 0x4b9   : > { %v4366_v5 = vpop.f32.mrf.mxu2 }
 0x4ba   : > { %v4422_v42 = vadd.f32 %v4366_v5, %v4164_v2  ;;  %v4110_v1 = vpop.f32.mrf.mxu1  ;;  %v4815_v28 = vpop.f32.mrf.mxu0 }
 0x4bb   : > { %v10684_v39 = vadd.f32 %v4110_v1, %v10458_v51  ;;  %v10687_v22 = vadd.f32 %v4815_v28, %v10515_v29  ;;  %v12754_v51 = vld [vmem:[#allocation81_spill] sm:$0xff] }
 0x4bd   : > { %12751 = vst [vmem:[#allocation33_spill] sm:$0xff] %v10684_v39 }
 0x4bf   : > { %v10691_v24 = vpop.f32.mrf.mxu3 }
 0x4c1   : > { %v10693_v61 = vpop.f32.mrf.mxu2 }
 0x4c2   : > { %12753 = vst [vmem:[#allocation58_spill] sm:$0xff] %v10693_v61  ;;  %v4113_v8 = vpop.f32.mrf.mxu1  ;;  %v4817_v36 = vpop.f32.mrf.mxu0 }
 0x4c3   : > { %v4166_v18 = vadd.f32 %v4113_v8, %v10467_v63  ;;  %v10697_v2 = vadd.f32 %v4817_v36, %v10523_v50 }
 0x4c5   : > { %7697 = vmatmul.msk.bf16.gmra.mxu1 %vm12755_vm12, %v12754_v51  ;;  %vm12783_vm12 = vmmov %vm12707_vm0 }
 0x4c7   : > { %v4624_v53 = vpop.f32.mrf.mxu3 }
 0x4c8   : > { %v10701_v29 = vadd.f32 %v4624_v53, %v4422_v42  ;;  %7684 = vmatmul.msk.bf16.gmra.mxu0 %vm12756_vm14, %v10529_v52  ;;  %vm12786_vm14 = vmmov %vm12707_vm0 }
 0x4c9   : > { %v4371_v5 = vpop.f32.mrf.mxu2 }
 0x4ca   : > { %v4424_v1 = vadd.f32 %v4371_v5, %v4166_v18  ;;  %v4115_v49 = vpop.f32.mrf.mxu1  ;;  %v4820_v61 = vpop.f32.mrf.mxu0 }
 0x4cb   : > { %v10704_v28 = vadd.f32 %v4115_v49, %v10484_v46  ;;  %v10707_v39 = vadd.f32 %v4820_v61, %v10540_v59  ;;  %v12758_v46 = vld [vmem:[#allocation21_spill] sm:$0xff] }
 0x4cf   : > { %v10711_v63 = vpop.f32.mrf.mxu3 }
 0x4d1   : > { %v10713_v50 = vpop.f32.mrf.mxu2 }
 0x4d2   : > { %12757 = vst [vmem:[#allocation70_spill] sm:$0xff] %v10713_v50  ;;  %v4118_v8 = vpop.f32.mrf.mxu1  ;;  %v4822_v36 = vpop.f32.mrf.mxu0 }
 0x4d3   : > { %v4168_v42 = vadd.f32 %v4118_v8, %v10493_v57  ;;  %v10717_v18 = vadd.f32 %v4822_v36, %v10548_v19 }
 0x4d5   : > { %7698 = vmatmul.msk.bf16.gmra.mxu1 %vm12759_vm4, %v12758_v46  ;;  %vm12789_vm4 = vmmov %vm12707_vm0 }
 0x4d7   : > { %v4629_v51 = vpop.f32.mrf.mxu3 }
 0x4d8   : > { %v10721_v59 = vadd.f32 %v4629_v51, %v4424_v1  ;;  %7685 = vmatmul.msk.bf16.gmra.mxu0 %vm12707_vm0, %v10551_v32 }
 0x4d9   : > { %v4376_v61 = vpop.f32.mrf.mxu2 }
 0x4da   : > { %v4426_v53 = vadd.f32 %v4376_v61, %v4168_v42  ;;  %v4120_v52 = vpop.f32.mrf.mxu1  ;;  %v4825_v49 = vpop.f32.mrf.mxu0 }
 0x4db   : > { %v10724_v5 = vadd.f32 %v4120_v52, %v10510_v21  ;;  %v10727_v50 = vadd.f32 %v4825_v49, %v10562_v9  ;;  %v12761_v21 = vld [vmem:[#allocation82_spill] sm:$0xff] }
 0x4df   : > { %v10731_v57 = vpop.f32.mrf.mxu3 }
 0x4e1   : > { %v10733_v19 = vpop.f32.mrf.mxu2 }
 0x4e2   : > { %12760 = vst [vmem:[#allocation55_spill] sm:$0xff] %v10733_v19  ;;  %v4123_v8 = vpop.f32.mrf.mxu1  ;;  %v4827_v36 = vpop.f32.mrf.mxu0 }
 0x4e3   : > { %v4170_v1 = vadd.f32 %v4123_v8, %v10519_v37  ;;  %v10737_v42 = vadd.f32 %v4827_v36, %v10575_v12 }
 0x4e5   : > { %7699 = vmatmul.msk.bf16.gmra.mxu1 %vm12762_vm1, %v12761_v21  ;;  %vm12791_vm1 = vmmov %vm12707_vm0 }
 0x4e7   : > { %v4634_v46 = vpop.f32.mrf.mxu3 }
 0x4e8   : > { %v10741_v9 = vadd.f32 %v4634_v46, %v4426_v53  ;;  %7686 = vmatmul.msk.bf16.gmra.mxu0 %vm12764_vm5, %v10582_v7  ;;  %vm12799_vm5 = vmmov %vm12707_vm0 }
 0x4e9   : > { %v4381_v51 = vpop.f32.mrf.mxu2 }
 0x4ea   : > { %v4428_v61 = vadd.f32 %v4381_v51, %v4170_v1  ;;  %v4125_v32 = vpop.f32.mrf.mxu1  ;;  %v4830_v49 = vpop.f32.mrf.mxu0  ;;  %v12766_v1 = vld [vmem:[#allocation83_spill] sm:$0xff] }
 0x4eb   : > { %v10744_v52 = vadd.f32 %v4125_v32, %v10535_v33  ;;  %v10747_v19 = vadd.f32 %v4830_v49, %v10593_v40 }
 0x4ed   : > { %12763 = vst [vmem:[#allocation59_spill] sm:$0xff] %v10744_v52 }
 0x4ef   : > { %v10751_v37 = vpop.f32.mrf.mxu3 }
 0x4f1   : > { %v10753_v12 = vpop.f32.mrf.mxu2 }
 0x4f2   : > { %12765 = vst [vmem:[#allocation35_spill] sm:$0xff] %v10753_v12  ;;  %v4128_v8 = vpop.f32.mrf.mxu1  ;;  %v10756_v36 = vpop.f32.mrf.mxu0  ;;  %v12788_v12 = vld [vmem:[#allocation36_spill] sm:$0xff] }
 0x4f3   : > { %v4172_v53 = vadd.f32 %v4128_v8, %v10544_v0 }
 0x4f5   : > { %7700 = vmatmul.msk.bf16.gmra.mxu1 %vm12767_vm2, %v12766_v1 }
 0x4f7   : > { %v4639_v33 = vpop.f32.mrf.mxu3 }
 0x4f8   : > { %v10760_v21 = vadd.f32 %v4639_v33, %v4428_v61  ;;  %7687 = vmatmul.msk.bf16.gmra.mxu0 %vm12769_vm13, %v10612_v4  ;;  %v12772_v61 = vld [vmem:[#allocation61_spill] sm:$0xff] }
 0x4f9   : > { %v4386_v40 = vpop.f32.mrf.mxu2 }
 0x4fa   : > { %v4430_v46 = vadd.f32 %v4386_v40, %v4172_v53  ;;  %v4130_v51 = vpop.f32.mrf.mxu1  ;;  %v10765_v32 = vpop.f32.mrf.mxu0 }
 0x4fb   : > { %v10763_v7 = vadd.f32 %v4130_v51, %v10556_v60 }
 0x4fd   : > { %12768 = vst [vmem:[#allocation34_spill] sm:$0xff] %v10763_v7 }
 0x4ff   : > { %v10769_v0 = vpop.f32.mrf.mxu3 }
 0x500   : > { %12770 = vst [vmem:[#allocation37_spill] sm:$0xff] %v10769_v0 }
 0x502   : > { %v4133_v49 = vpop.f32.mrf.mxu1  ;;  %v10774_v1 = vpop.f32.mrf.mxu0 }
 0x503   : > { %v10772_v8 = vadd.f32 %v4133_v49, %v10571_v17 }
 0x505   : > { %12771 = vst [vmem:[#allocation57_spill] sm:$0xff] %v10772_v8  ;;  %7701 = vmatmul.msk.bf16.gmra.mxu1 %vm12773_vm15, %v12772_v61  ;;  %v12777_v8 = vld [vmem:[#allocation32_spill] sm:$0xff]  ;;  %vm12821_vm15 = vmmov %vm12707_vm0 }
 0x506   : > { %v4727_v61 = vld [vmem:[#allocation2 + $0x120] sm:$0xff] }
 0x507   : > { %v4644_v53 = vpop.f32.mrf.mxu3 }
 0x508   : > { %v10778_v33 = vadd.f32 %v4644_v53, %v4430_v46  ;;  %7688 = vmatmul.msk.bf16.gmra.mxu0 %vm12775_vm8, %v10645_v58  ;;  %v4726_v46 = vld [vmem:[#allocation2 + $0x118] sm:$0xff]  ;;  %vm12822_vm8 = vmmov %vm12707_vm0 }
 0x50a   : > { %v4135_v60 = vpop.f32.mrf.mxu1  ;;  %v10783_v51 = vpop.f32.mrf.mxu0 }
 0x50b   : > { %v10781_v40 = vadd.f32 %v4135_v60, %v10587_v11  ;;  %v4743_v60 = vpack.c.bf16 %v4727_v61, %v4726_v46 }
 0x50d   : > { %12774 = vst [vmem:[#allocation40_spill] sm:$0xff] %v10781_v40 }
 0x512   : > { %v4138_v4 = vpop.f32.mrf.mxu1  ;;  %v10790_v49 = vpop.f32.mrf.mxu0 }
 0x513   : > { %v10788_v17 = vadd.f32 %v4138_v4, %v10601_v44 }
 0x515   : > { %12776 = vst [vmem:[#allocation62_spill] sm:$0xff] %v10788_v17  ;;  %7702 = vmatmul.msk.bf16.gmra.mxu1 %vm12778_vm6, %v12777_v8  ;;  %v12782_v17 = vld [vmem:[#allocation52_spill] sm:$0xff]  ;;  %vm12823_vm6 = vmmov %vm12707_vm0 }
 0x518   : > { %7689 = vmatmul.msk.bf16.gmra.mxu0 %vm12780_vm11, %v4743_v60  ;;  %vm12824_vm11 = vmmov %vm12707_vm0 }
 0x51a   : > { %v4140_v53 = vpop.f32.mrf.mxu1  ;;  %v10797_v40 = vpop.f32.mrf.mxu0 }
 0x51b   : > { %v10795_v11 = vadd.f32 %v4140_v53, %v10617_v15 }
 0x51d   : > { %12779 = vst [vmem:[#allocation72_spill] sm:$0xff] %v10795_v11 }
 0x522   : > { %v4143_v58 = vpop.f32.mrf.mxu1  ;;  %v10803_v4 = vpop.f32.mrf.mxu0 }
 0x523   : > { %v10801_v44 = vadd.f32 %v4143_v58, %v10631_v55  ;;  %v12785_v55 = vld [vmem:[#allocation69_spill] sm:$0xff] }
 0x525   : > { %12781 = vst [vmem:[#allocation71_spill] sm:$0xff] %v10801_v44  ;;  %7703 = vmatmul.msk.bf16.gmra.mxu1 %vm12783_vm12, %v12782_v17  ;;  %v10821_v17 = vld [vmem:[%s12787_s4] ss:$0 sm:$0xff]  ;;  %s8178_s4 = scalar_lea.hbm %s8177_s3, 1 }
 0x526   : > { %p8179_p11 = scmp.ne.s32.totalorder %s8177_s3, %s8178_s4  ;;  %p8184_p1 = scmp.lt.s32.totalorder %s8182_s26, %s8178_s4 }
 0x528   : > { %p8180_p12 = pnand %p8179_p11, %p8347_p5  ;;  %p8185_p2 = por %p8184_p1, %p8183_p0 }
 0x52a   : > { %v4145_v8 = vpop.f32.mrf.mxu1  ;;  %v4850_v15 = vpop.f32.mrf.mxu0  ;;  %p8181_p13 = pneg %p8180_p12 }
 0x52b   : > { %v10808_v7 = vadd.f32 %v4145_v8, %v10651_v62  ;;  %v10811_v46 = vadd.f32 %v4850_v15, %v10701_v29 }
 0x52c   : > { %p8186_p3 = pnand %p8185_p2, %p8181_p13 }
 0x52d   : > { %12784 = vst [vmem:[#allocation42_spill] sm:$0xff] %v10808_v7 }
 0x532   : > { %v5068_v61 = vpop.f32.mrf.mxu1  ;;  %v10814_v60 = vpop.f32.mrf.mxu0 }
 0x533   : > { %v5148_v53 = vadd.f32 %v5068_v61, %v10664_v45 }
 0x535   : > { %7704 = vmatmul.msk.bf16.gmra.mxu1 %vm12786_vm14, %v12785_v55  ;;  %v5184_v62 = vadd.f32 %v10821_v17, %v5148_v53 }
 0x537   : > { %v5216_v61 = vmax.f32 %v5184_v62, 0.0 }
 0x53a   : > { %v5070_v58 = vpop.f32.mrf.mxu1  ;;  %v4855_v29 = vpop.f32.mrf.mxu0 }
 0x53b   : > { %v5149_v8 = vadd.f32 %v5070_v58, %v10677_v25  ;;  %v10827_v45 = vadd.f32 %v4855_v29, %v10721_v59 }
 0x53d   : > { %v5185_v15 = vadd.f32 %v10821_v17, %v5149_v8 }
 0x53f   : > { %v5217_v7 = vmax.f32 %v5185_v15, 0.0 }
 0x541   : > { %v10829_v44 = vpack.c.bf16 %v5217_v7, %v5216_v61 }
 0x542   : > { %v5073_v55 = vpop.f32.mrf.mxu1  ;;  %v10832_v0 = vpop.f32.mrf.mxu0 }
 0x543   : > { %v5150_v11 = vadd.f32 %v5073_v55, %v10687_v22 }
 0x545   : > { %7705 = vmatmul.msk.bf16.gmra.mxu1 %vm12789_vm4, %v12788_v12  ;;  %v5186_v25 = vadd.f32 %v10821_v17, %v5150_v11  ;;  %v12790_v12 = vld [vmem:[#allocation14_spill] sm:$0xff]  ;;  %vm12831_vm4 = vmmov %vm12707_vm0 }
 0x547   : > { %v5218_v7 = vmax.f32 %v5186_v25, 0.0 }
 0x54a   : > { %v5075_v53 = vpop.f32.mrf.mxu1  ;;  %v4860_v8 = vpop.f32.mrf.mxu0 }
 0x54b   : > { %v5151_v58 = vadd.f32 %v5075_v53, %v10697_v2  ;;  %v10840_v62 = vadd.f32 %v4860_v8, %v10741_v9  ;;  %v4945_v8 = vld [vmem:[#allocation2 + $0xe1] sm:$0xff] }
 0x54d   : > { %v5187_v59 = vadd.f32 %v10821_v17, %v5151_v58 }
 0x54f   : > { %v5219_v29 = vmax.f32 %v5187_v59, 0.0 }
 0x551   : > { %v10842_v15 = vpack.c.bf16 %v5219_v29, %v5218_v7 }
 0x552   : > { %v5078_v22 = vpop.f32.mrf.mxu1  ;;  %v10845_v55 = vpop.f32.mrf.mxu0 }
 0x553   : > { %v5152_v61 = vadd.f32 %v5078_v22, %v10707_v39  ;;  %v4977_v39 = vsel %vm12720_vm10, %v4945_v8, 0.0  ;;  %vm12793_vm10 = vmmov %vm12707_vm0 }
 0x555   : > { %7706 = vmatmul.msk.bf16.gmra.mxu1 %vm12707_vm0, %v12790_v12  ;;  %v5188_v2 = vadd.f32 %v10821_v17, %v5152_v61  ;;  %v4944_v12 = vld [vmem:[#allocation2 + $0xd9] sm:$0xff] }
 0x556   : > { %v4997_v52 = vpack.c.bf16 %v4977_v39, %v4944_v12 }
 0x557   : > { %v5220_v59 = vmax.f32 %v5188_v2, 0.0 }
 0x55a   : > { %v5080_v11 = vpop.f32.mrf.mxu1  ;;  %v4865_v58 = vpop.f32.mrf.mxu0 }
 0x55b   : > { %v5153_v53 = vadd.f32 %v5080_v11, %v10717_v18  ;;  %v10853_v25 = vadd.f32 %v4865_v58, %v10760_v21 }
 0x55d   : > { %v5189_v9 = vadd.f32 %v10821_v17, %v5153_v53 }
 0x55f   : > { %v5221_v7 = vmax.f32 %v5189_v9, 0.0  ;;  %v4947_v9 = vld [vmem:[#allocation2 + $0xf1] sm:$0xff] }
 0x561   : > { %v10857_v29 = vpack.c.bf16 %v5221_v7, %v5220_v59  ;;  %v4979_v7 = vsel %vm12494_vm7, %v4947_v9, 0.0  ;;  %v4949_v9 = vld [vmem:[#allocation2 + $0x101] sm:$0xff]  ;;  %vm12795_vm7 = vmmov %vm12707_vm0 }
 0x562   : > { %v5083_v22 = vpop.f32.mrf.mxu1  ;;  %v10860_v18 = vpop.f32.mrf.mxu0 }
 0x563   : > { %v5154_v61 = vadd.f32 %v5083_v22, %v10727_v50  ;;  %v4946_v22 = vld [vmem:[#allocation2 + $0xe9] sm:$0xff]  ;;  %v4981_v50 = vsel %vm12503_vm3, %v4949_v9, 0.0  ;;  %vm12797_vm3 = vmmov %vm12707_vm0 }
 0x565   : > { %7707 = vmatmul.msk.bf16.gmra.mxu1 %vm12791_vm1, %v4997_v52  ;;  %v5190_v21 = vadd.f32 %v10821_v17, %v5154_v61  ;;  %v4998_v61 = vpack.c.bf16 %v4979_v7, %v4946_v22  ;;  %v4948_v7 = vld [vmem:[#allocation2 + $0xf9] sm:$0xff]  ;;  %v4417_v22 = vadd.f32 %v10607_v47, %v10598_v54  ;;  %v4418_v54 = vadd.f32 %v10625_v41, %v10610_v43  ;;  %vm12832_vm1 = vmmov %vm12707_vm0 }
 0x567   : > { %v5222_v8 = vmax.f32 %v5190_v21, 0.0 }
 0x56a   : > { %v5085_v11 = vpop.f32.mrf.mxu1  ;;  %v4870_v53 = vpop.f32.mrf.mxu0 }
 0x56b   : > { %v5155_v2 = vadd.f32 %v5085_v11, %v10737_v42  ;;  %v10867_v58 = vadd.f32 %v4870_v53, %v10778_v33  ;;  %v4415_v42 = vadd.f32 %v10577_v30, %v10568_v13  ;;  %v4416_v13 = vadd.f32 %v10595_v56, %v10580_v23 }
 0x56d   : > { %v5191_v34 = vadd.f32 %v10821_v17, %v5155_v2  ;;  %v4673_v33 = vadd.f32 %v10605_v26, %v4415_v42 }
 0x56f   : > { %v5223_v59 = vmax.f32 %v5191_v34, 0.0  ;;  %v4899_v11 = vadd.f32 %v10756_v36, %v4673_v33  ;;  %v4674_v36 = vadd.f32 %v10623_v10, %v4416_v13  ;;  %v4952_v13 = vld [vmem:[#allocation2 + $0x119] sm:$0xff] }
 0x571   : > { %v10871_v39 = vpack.c.bf16 %v5223_v59, %v5222_v8 }
 0x572   : > { %v5088_v52 = vpop.f32.mrf.mxu1 }
 0x573   : > { %v5156_v12 = vadd.f32 %v5088_v52, %v10747_v19  ;;  %v4999_v52 = vpack.c.bf16 %v4981_v50, %v4948_v7  ;;  %v4953_v50 = vld [vmem:[#allocation2 + $0x121] sm:$0xff] }
 0x575   : > { %7708 = vmatmul.msk.bf16.gmra.mxu1 %vm12793_vm10, %v4998_v61  ;;  %v5192_v2 = vadd.f32 %v10821_v17, %v5156_v12  ;;  %v4900_v12 = vadd.f32 %v10765_v32, %v4674_v36  ;;  %v4675_v61 = vadd.f32 %v10635_v27, %v4417_v22  ;;  %v4419_v27 = vadd.f32 %v10637_v35, %v10628_v16  ;;  %vm12833_vm10 = vmmov %vm12707_vm0 }
 0x576   : > { %v4985_v16 = vsel %vm12520_vm9, %v4953_v50, 0.0  ;;  %vm12815_vm9 = vmmov %vm12707_vm0 }
 0x577   : > { %v5224_v8 = vmax.f32 %v5192_v2, 0.0  ;;  %v4901_v33 = vadd.f32 %v10774_v1, %v4675_v61  ;;  %v4677_v9 = vadd.f32 %v10668_v3, %v4419_v27  ;;  %v5001_v3 = vpack.c.bf16 %v4985_v16, %v4952_v13 }
 0x57a   : > { %v5090_v21 = vpop.f32.mrf.mxu1 }
 0x57b   : > { %v5157_v53 = vadd.f32 %v5090_v21, %v4899_v11 }
 0x57d   : > { %v5193_v34 = vadd.f32 %v10821_v17, %v5157_v53  ;;  %v4676_v53 = vadd.f32 %v10656_v20, %v4418_v54 }
 0x57f   : > { %v5225_v59 = vmax.f32 %v5193_v34, 0.0  ;;  %v4902_v1 = vadd.f32 %v10783_v51, %v4676_v53  ;;  %v12796_v34 = vld [vmem:[#allocation41_spill] sm:$0xff] }
 0x581   : > { %v10885_v30 = vpack.c.bf16 %v5225_v59, %v5224_v8  ;;  %v4903_v59 = vadd.f32 %v10790_v49, %v4677_v9 }
 0x582   : > { %v5093_v26 = vpop.f32.mrf.mxu1 }
 0x583   : > { %v5158_v42 = vadd.f32 %v5093_v26, %v4900_v12  ;;  %v4420_v26 = vadd.f32 %v10658_v48, %v10643_v31 }
 0x585   : > { %7709 = vmatmul.msk.bf16.gmra.mxu1 %vm12795_vm7, %v4999_v52  ;;  %v5194_v56 = vadd.f32 %v10821_v17, %v5158_v42  ;;  %v4678_v49 = vadd.f32 %v10681_v38, %v4420_v26  ;;  %v12798_v52 = vld [vmem:[#allocation67_spill] sm:$0xff]  ;;  %vm12834_vm7 = vmmov %vm12707_vm0 }
 0x586   : > { %v4421_v22 = vadd.f32 %v12798_v52, %v10661_v14  ;;  %v4388_v52 = vpop.f32.mrf.mxu2 }
 0x587   : > { %v5226_v10 = vmax.f32 %v5194_v56, 0.0  ;;  %v4904_v12 = vadd.f32 %v10797_v40, %v4678_v49  ;;  %v12800_v40 = vld [vmem:[#allocation33_spill] sm:$0xff]  ;;  %v12805_v49 = vld [vmem:[#allocation35_spill] sm:$0xff] }
 0x588   : > { %v4679_v6 = vadd.f32 %v10691_v24, %v4421_v22 }
 0x58a   : > { %v5095_v23 = vpop.f32.mrf.mxu1  ;;  %v4905_v42 = vadd.f32 %v10803_v4, %v4679_v6  ;;  %v4872_v6 = vpop.f32.mrf.mxu0 }
 0x58b   : > { %v5159_v11 = vadd.f32 %v5095_v23, %v4901_v33 }
 0x58d   : > { %v5195_v21 = vadd.f32 %v10821_v17, %v5159_v11 }
 0x58f   : > { %v5227_v2 = vmax.f32 %v5195_v21, 0.0 }
 0x591   : > { %v5261_v47 = vpack.c.bf16 %v5227_v2, %v5226_v10  ;;  %v12801_v10 = vld [vmem:[#allocation58_spill] sm:$0xff] }
 0x592   : > { %v5098_v32 = vpop.f32.mrf.mxu1  ;;  %v4423_v2 = vadd.f32 %v12801_v10, %v12800_v40  ;;  %v12807_v40 = vld [vmem:[#allocation34_spill] sm:$0xff] }
 0x593   : > { %v5160_v8 = vadd.f32 %v5098_v32, %v4902_v1  ;;  %v4431_v10 = vadd.f32 %v4388_v52, %v12807_v40 }
 0x594   : > { %v4681_v24 = vadd.f32 %v10711_v63, %v4423_v2  ;;  %v12802_v63 = vld [vmem:[#allocation70_spill] sm:$0xff] }
 0x595   : > { %7710 = vmatmul.msk.bf16.gmra.mxu1 %vm12797_vm3, %v12796_v34  ;;  %v5196_v43 = vadd.f32 %v10821_v17, %v5160_v8 }
 0x596   : > { %v4907_v4 = vadd.f32 %v10814_v60, %v4681_v24  ;;  %v4425_v60 = vadd.f32 %v12802_v63, %v10704_v28 }
 0x597   : > { %v5228_v35 = vmax.f32 %v5196_v43, 0.0 }
 0x59a   : > { %v5100_v19 = vpop.f32.mrf.mxu1 }
 0x59b   : > { %v5161_v41 = vadd.f32 %v5100_v19, %v4903_v59  ;;  %v4683_v59 = vadd.f32 %v10731_v57, %v4425_v60 }
 0x59d   : > { %v5197_v20 = vadd.f32 %v10821_v17, %v5161_v41 }
 0x59f   : > { %v5229_v51 = vmax.f32 %v5197_v20, 0.0 }
 0x5a1   : > { %v5262_v7 = vpack.c.bf16 %v5229_v51, %v5228_v35 }
 0x5a2   : > { %v5103_v36 = vpop.f32.mrf.mxu1 }
 0x5a3   : > { %v5162_v61 = vadd.f32 %v5103_v36, %v4904_v12  ;;  %v12804_v36 = vld [vmem:[#allocation59_spill] sm:$0xff] }
 0x5a5   : > { %7711 = vmatmul.msk.bf16.gmra.mxu1 %vm12799_vm5, %v5001_v3  ;;  %v5198_v31 = vadd.f32 %v10821_v17, %v5162_v61  ;;  %vm12837_vm5 = vmmov %vm12707_vm0 }
 0x5a7   : > { %v5230_v56 = vmax.f32 %v5198_v31, 0.0 }
 0x5aa   : > { %v5105_v33 = vpop.f32.mrf.mxu1 }
 0x5ab   : > { %v5163_v48 = vadd.f32 %v5105_v33, %v4905_v42 }
 0x5ad   : > { %v5199_v23 = vadd.f32 %v10821_v17, %v5163_v48 }
 0x5af   : > { %v5231_v38 = vmax.f32 %v5199_v23, 0.0 }
 0x5b1   : > { %v5263_v11 = vpack.c.bf16 %v5231_v38, %v5230_v56  ;;  %v4391_v56 = vpop.f32.mrf.mxu2 }
 0x5b2   : > { %v5108_v21 = vpop.f32.mrf.mxu1 }
 0x5b3   : > { %v5164_v14 = vadd.f32 %v5108_v21, %v10811_v46  ;;  %5312 = vmatpush.bf16.msra.mxu2 %v5263_v11 }
 0x5b5   : > { %v5200_v32 = vadd.f32 %v10821_v17, %v5164_v14  ;;  %v4875_v14 = vpop.f32.mrf.mxu0 }
 0x5b7   : > { %5313 = vmatpush.bf16.msra.mxu2 %v5262_v7  ;;  %v5232_v1 = vmax.f32 %v5200_v32, 0.0 }
 0x5b9   : > { %v4393_v24 = vpop.f32.mrf.mxu2 }
 0x5ba   : > { %v5110_v54 = vpop.f32.mrf.mxu1 }
 0x5bb   : > { %v5165_v53 = vadd.f32 %v5110_v54, %v4907_v4  ;;  %5314 = vmatpush.bf16.msra.mxu2 %v5261_v47  ;;  %v4909_v47 = vadd.f32 %v10832_v0, %v4683_v59 }
 0x5bd   : > { %v5201_v27 = vadd.f32 %v10821_v17, %v5165_v53 }
 0x5bf   : > { %v5233_v34 = vmax.f32 %v5201_v27, 0.0  ;;  %5315 = vmatpush.bf16.msra.mxu2 %v10885_v30 }
 0x5c1   : > { %v10929_v46 = vpack.c.bf16 %v5233_v34, %v5232_v1  ;;  %v4877_v1 = vpop.f32.mrf.mxu0 }
 0x5c2   : > { %v5113_v9 = vpop.f32.mrf.mxu1 }
 0x5c3   : > { %v5166_v8 = vadd.f32 %v5113_v9, %v10827_v45  ;;  %5316 = vmatpush.bf16.msra.mxu2 %v10871_v39 }
 0x5c5   : > { %v5202_v43 = vadd.f32 %v10821_v17, %v5166_v8  ;;  %v12808_v8 = vld [vmem:[#allocation57_spill] sm:$0xff] }
 0x5c6   : > { %v4432_v63 = vadd.f32 %v4391_v56, %v12808_v8 }
 0x5c7   : > { %5317 = vmatpush.bf16.msra.mxu2 %v10857_v29  ;;  %v5234_v45 = vmax.f32 %v5202_v43, 0.0  ;;  %v12803_v29 = vld [vmem:[#allocation55_spill] sm:$0xff] }
 0x5c8   : > { %v4427_v0 = vadd.f32 %v12803_v29, %v10724_v5  ;;  %v4429_v5 = vadd.f32 %v12805_v49, %v12804_v36 }
 0x5ca   : > { %v5115_v19 = vpop.f32.mrf.mxu1  ;;  %v4685_v20 = vadd.f32 %v10751_v37, %v4427_v0  ;;  %v12806_v37 = vld [vmem:[#allocation37_spill] sm:$0xff] }
 0x5cb   : > { %v5167_v30 = vadd.f32 %v5115_v19, %v4909_v47  ;;  %5318 = vmatpush.bf16.msra.mxu2 %v10842_v15  ;;  %v4687_v22 = vadd.f32 %v12806_v37, %v4429_v5  ;;  %v4396_v47 = vpop.f32.mrf.mxu2  ;;  %v12809_v19 = vld [vmem:[#allocation40_spill] sm:$0xff] }
 0x5cc   : > { %v4911_v13 = vadd.f32 %v10845_v55, %v4685_v20  ;;  %v4646_v55 = vpop.f32.mrf.mxu3  ;;  %v4433_v43 = vadd.f32 %v4393_v24, %v12809_v19  ;;  %v12811_v5 = vld [vmem:[#allocation72_spill] sm:$0xff]  ;;  %v12813_v24 = vld [vmem:[#allocation42_spill] sm:$0xff] }
 0x5cd   : > { %v5203_v41 = vadd.f32 %v10821_v17, %v5167_v30  ;;  %v4913_v12 = vadd.f32 %v10860_v18, %v4687_v22  ;;  %v4689_v18 = vadd.f32 %v4646_v55, %v4431_v10  ;;  %v8051_v19 = vld [vmem:[%s11959_s11 + $0x4] sm:$0xf0] }
 0x5cf   : > { %v5235_v50 = vmax.f32 %v5203_v41, 0.0  ;;  %5319 = vmatpush.bf16.msra.mxu2 %v10829_v44  ;;  %v4915_v2 = vadd.f32 %v4872_v6, %v4689_v18 }
 0x5d1   : > { %v10942_v39 = vpack.c.bf16 %v5235_v50, %v5234_v45 }
 0x5d2   : > { %v5118_v28 = vpop.f32.mrf.mxu1 }
 0x5d3   : > { %v5168_v57 = vadd.f32 %v5118_v28, %v10840_v62  ;;  %v4880_v28 = vpop.f32.mrf.mxu0 }
 0x5d4   : > { %v4649_v38 = vpop.f32.mrf.mxu3 }
 0x5d5   : > { %v5204_v15 = vadd.f32 %v10821_v17, %v5168_v57  ;;  %v4690_v59 = vadd.f32 %v4649_v38, %v4432_v63 }
 0x5d7   : > { %v5236_v26 = vmax.f32 %v5204_v15, 0.0  ;;  %v4916_v30 = vadd.f32 %v4875_v14, %v4690_v59 }
 0x5da   : > { %v5120_v16 = vpop.f32.mrf.mxu1 }
 0x5db   : > { %v5169_v35 = vadd.f32 %v5120_v16, %v4911_v13  ;;  %v4398_v16 = vpop.f32.mrf.mxu2 }
 0x5dc   : > { %v4651_v53 = vpop.f32.mrf.mxu3  ;;  %v4435_v52 = vadd.f32 %v4398_v16, %v12811_v5  ;;  %v8054_v16 = vld [vmem:[%s11959_s11 + $0x24] sm:$0xf] }
 0x5dd   : > { %v5205_v51 = vadd.f32 %v10821_v17, %v5169_v35  ;;  %v4691_v45 = vadd.f32 %v4651_v53, %v4433_v43 }
 0x5df   : > { %v5237_v44 = vmax.f32 %v5205_v51, 0.0  ;;  %v4917_v57 = vadd.f32 %v4877_v1, %v4691_v45 }
 0x5e1   : > { %v10951_v3 = vpack.c.bf16 %v5237_v44, %v5236_v26  ;;  %v12810_v26 = vld [vmem:[#allocation62_spill] sm:$0xff] }
 0x5e2   : > { %v5123_v7 = vpop.f32.mrf.mxu1  ;;  %v4434_v44 = vadd.f32 %v4396_v47, %v12810_v26  ;;  %v7714_v47 = vld [vmem:[%s11959_s11] sm:$0xf]  ;;  %v7740_v26 = vld [vmem:[%s11959_s11 + $0x38] sm:$0xf0] }
 0x5e3   : > { %v5170_v62 = vadd.f32 %v5123_v7, %v10853_v25  ;;  %v7715_v43 = vor.u32 %v8051_v19, %v7714_v47 }
 0x5e4   : > { %v4654_v41 = vpop.f32.mrf.mxu3 }
 0x5e5   : > { %v5206_v42 = vadd.f32 %v10821_v17, %v5170_v62  ;;  %v4882_v62 = vpop.f32.mrf.mxu0  ;;  %v4692_v49 = vadd.f32 %v4654_v41, %v4434_v44  ;;  %5320 = vmatmul.bf16.vlgmr.msra.gmra.mxu2 %v7715_v43  ;;  %v8053_v41 = vld [vmem:[%s11959_s11 + $0x14] sm:$0xf0] }
 0x5e7   : > { %v5238_v48 = vmax.f32 %v5206_v42, 0.0  ;;  %v4918_v37 = vadd.f32 %v4880_v28, %v4692_v49  ;;  %v7716_v28 = vld [vmem:[%s11959_s11 + $0x8] sm:$0xf0] }
 0x5ea   : > { %v5125_v61 = vpop.f32.mrf.mxu1 }
 0x5eb   : > { %v5171_v33 = vadd.f32 %v5125_v61, %v4913_v12  ;;  %v4401_v12 = vpop.f32.mrf.mxu2 }
 0x5ec   : > { %v4656_v51 = vpop.f32.mrf.mxu3 }
 0x5ed   : > { %v5207_v31 = vadd.f32 %v10821_v17, %v5171_v33  ;;  %v4693_v22 = vadd.f32 %v4656_v51, %v4435_v52  ;;  %v8056_v51 = vld [vmem:[%s11959_s11 + $0x34] sm:$0xf] }
 0x5ee   : > { %v7743_v44 = vor.u32 %v8056_v51, %v7740_v26 }
 0x5ef   : > { %v5239_v23 = vmax.f32 %v5207_v31, 0.0  ;;  %v4919_v6 = vadd.f32 %v4882_v62, %v4693_v22  ;;  %v12814_v22 = vld [vmem:[#allocation10_spill] sm:$0xff] }
 0x5f1   : > { %v10960_v25 = vpack.c.bf16 %v5239_v23, %v5238_v48  ;;  %v4885_v48 = vpop.f32.mrf.mxu0 }
 0x5f2   : > { %v5128_v11 = vpop.f32.mrf.mxu1 }
 0x5f3   : > { %v5172_v21 = vadd.f32 %v5128_v11, %v10867_v58  ;;  %v12812_v11 = vld [vmem:[#allocation71_spill] sm:$0xff]  ;;  %v4403_v40 = vpop.f32.mrf.mxu2 }
 0x5f4   : > { %v4659_v61 = vpop.f32.mrf.mxu3 }
 0x5f5   : > { %v5208_v54 = vadd.f32 %v10821_v17, %v5172_v21  ;;  %v4436_v21 = vadd.f32 %v4401_v12, %v12812_v11  ;;  %v8064_v12 = vld [vmem:[%s11953_s5 + $0x30] sm:$0xff] }
 0x5f6   : > { %5929 = vmatpush.bf16.msrb.mxu0 %v8064_v12 }
 0x5f7   : > { %v5240_v34 = vmax.f32 %v5208_v54, 0.0  ;;  %v4694_v18 = vadd.f32 %v4659_v61, %v4436_v21 }
 0x5f9   : > { %v4920_v54 = vadd.f32 %v4885_v48, %v4694_v18  ;;  %v12819_v48 = vmov 0 }
 0x5fa   : > { %v5130_v4 = vpop.f32.mrf.mxu1 }
 0x5fb   : > { %v5173_v32 = vadd.f32 %v5130_v4, %v4915_v2  ;;  %v4437_v4 = vadd.f32 %v4403_v40, %v12813_v24 }
 0x5fc   : > { %v4661_v2 = vpop.f32.mrf.mxu3 }
 0x5fd   : > { %v5209_v27 = vadd.f32 %v10821_v17, %v5173_v32  ;;  %v4887_v32 = vpop.f32.mrf.mxu0  ;;  %v4695_v53 = vadd.f32 %v4661_v2, %v4437_v4 }
 0x5ff   : > { %v5241_v9 = vmax.f32 %v5209_v27, 0.0  ;;  %v4921_v1 = vadd.f32 %v4887_v32, %v4695_v53  ;;  %v12825_v32 = vld [vmem:[#allocation12_spill] sm:$0xff] }
 0x600   : > { %v5392_v53 = vand.u32 7, %v12825_v32 }
 0x601   : > { %v10967_v60 = vpack.c.bf16 %v5241_v9, %v5240_v34 }
 0x602   : > { %v5133_v58 = vpop.f32.mrf.mxu1  ;;  %vm11080_vm12 = vcmp.ge.s32.totalorder %v5392_v53, 1 }
 0x603   : > { %v5174_v50 = vadd.f32 %v5133_v58, %v4916_v30 }
 0x605   : > { %v5210_v0 = vadd.f32 %v10821_v17, %v5174_v50  ;;  %v8050_v50 = vld [vmem:[%s11959_s11 + $0x4] sm:$0xf] }
 0x607   : > { %v5242_v15 = vmax.f32 %v5210_v0, 0.0  ;;  %v7738_v0 = vld [vmem:[%s11959_s11 + $0x30] sm:$0xf] }
 0x60a   : > { %v5135_v29 = vpop.f32.mrf.mxu1 }
 0x60b   : > { %v5175_v20 = vadd.f32 %v5135_v29, %v4917_v57  ;;  %v7730_v57 = vld [vmem:[%s11959_s11 + $0x20] sm:$0xf]  ;;  %v7724_v29 = vld [vmem:[%s11959_s11 + $0x18] sm:$0xf0] }
 0x60d   : > { %v5211_v13 = vadd.f32 %v10821_v17, %v5175_v20  ;;  %v8057_v20 = vld [vmem:[%s11959_s11 + $0x34] sm:$0xf0] }
 0x60f   : > { %v5243_v35 = vmax.f32 %v5211_v13, 0.0 }
 0x611   : > { %v5269_v7 = vpack.c.bf16 %v5243_v35, %v5242_v15  ;;  %v7732_v15 = vld [vmem:[%s11959_s11 + $0x28] sm:$0xf0] }
 0x612   : > { %v5138_v36 = vpop.f32.mrf.mxu1  ;;  %v7735_v35 = vor.u32 %v8054_v16, %v7732_v15  ;;  %v12839_v16 = vld [vmem:[#allocation16_spill] sm:$0xff] }
 0x613   : > { %v5176_v55 = vadd.f32 %v5138_v36, %v4918_v37  ;;  %v8058_v36 = vld [vmem:[%s11953_s5] sm:$0xff]  ;;  %v8065_v37 = vld [vmem:[%s11953_s5 + $0x38] sm:$0xff]  ;;  %v5395_v15 = vand.u32 7, %v12839_v16 }
 0x614   : > { %5999 = vmatpush.bf16.msrb.mxu1 %v8065_v37 }
 0x615   : > { %v5212_v33 = vadd.f32 %v10821_v17, %v5176_v55  ;;  %v5390_v55 = vand.u32 7, %v12814_v22 }
 0x617   : > { %v5244_v56 = vmax.f32 %v5212_v33, 0.0  ;;  %v5398_v33 = vld [vmem:[#allocation3 + $0x7] sm:$0xff]  ;;  %vm11048_vm2 = vcmp.ge.s32.totalorder %v5390_v55, 1 }
 0x618   : > { %v5430_v11 = vsel %vm11048_vm2, %v5398_v33, 0.0 }
 0x61a   : > { %v5140_v42 = vpop.f32.mrf.mxu1 }
 0x61b   : > { %v5177_v31 = vadd.f32 %v5140_v42, %v4919_v6  ;;  %v12816_v6 = vld [vmem:[#allocation11_spill] sm:$0xff] }
 0x61c   : > { %v5391_v61 = vand.u32 7, %v12816_v6 }
 0x61d   : > { %v5213_v23 = vadd.f32 %v10821_v17, %v5177_v31 }
 0x61e   : > { %vm11052_vm13 = vcmp.ge.s32.totalorder %v5391_v61, 1  ;;  %vm11122_vm3 = vcmp.le.s32.totalorder %v5391_v61, 6 }
 0x61f   : > { %v5245_v38 = vmax.f32 %v5213_v23, 0.0  ;;  %v12820_v48 = vsel %vm11052_vm13, 4294967295, %v12819_v48 }
 0x621   : > { %v5270_v14 = vpack.c.bf16 %v5245_v38, %v5244_v56  ;;  %v5444_v56 = vld [vmem:[#allocation3 + $0x8] sm:$0xff] }
 0x622   : > { %v5143_v10 = vpop.f32.mrf.mxu1 }
 0x623   : > { %v5178_v27 = vadd.f32 %v5143_v10, %v4920_v54 }
 0x625   : > { %v5214_v9 = vadd.f32 %v10821_v17, %v5178_v27  ;;  %v12826_v27 = vld [vmem:[#allocation13_spill] sm:$0xff] }
 0x627   : > { %v5246_v58 = vmax.f32 %v5214_v9, 0.0 }
 0x62a   : > { %v5145_v34 = vpop.f32.mrf.mxu1 }
 0x62b   : > { %v5179_v8 = vadd.f32 %v5145_v34, %v4921_v1  ;;  %v5393_v1 = vand.u32 7, %v12826_v27 }
 0x62d   : > { %v5215_v63 = vadd.f32 %v10821_v17, %v5179_v8  ;;  %v7722_v17 = vld [vmem:[%s11959_s11 + $0x10] sm:$0xf]  ;;  %vm11086_vm14 = vcmp.ge.s32.totalorder %v5393_v1, 1 }
 0x62e   : > { %v7723_v45 = vor.u32 %v8053_v41, %v7722_v17 }
 0x62f   : > { %v5247_v59 = vmax.f32 %v5215_v63, 0.0  ;;  %v12827_v63 = vmov 0 }
 0x630   : > { %5325 = vmatmul.bf16.gmra.mxu2 %v7723_v45  ;;  %v12828_v63 = vsel %vm11080_vm12, 4294967295, %v12827_v63 }
 0x631   : > { %v5271_v30 = vpack.c.bf16 %v5247_v59, %v5246_v58 }
 0x633   : > { %5341 = vmatpush.bf16.msra.mxu3 %v5271_v30 }
 0x637   : > { %5342 = vmatpush.bf16.msra.mxu3 %v5270_v14 }
 0x63b   : > { %5343 = vmatpush.bf16.msra.mxu3 %v5269_v7  ;;  %v8059_v7 = vld [vmem:[%s11953_s5 + $0x8] sm:$0xff] }
 0x63c   : > { %5484 = vmatpush.bf16.msrb.mxu2 %v8059_v7 }
 0x63f   : > { %5344 = vmatpush.bf16.msra.mxu3 %v10967_v60  ;;  %v7719_v60 = vor.u32 %v8050_v50, %v7716_v28  ;;  %v8060_v50 = vld [vmem:[%s11953_s5 + $0x10] sm:$0xff] }
 0x640   : > { %5625 = vmatpush.bf16.msra.mxu2 %v8060_v50 }
 0x643   : > { %5345 = vmatpush.bf16.msra.mxu3 %v10960_v25  ;;  %v8055_v25 = vld [vmem:[%s11959_s11 + $0x24] sm:$0xf0] }
 0x647   : > { %5346 = vmatpush.bf16.msra.mxu3 %v10951_v3  ;;  %v7731_v3 = vor.u32 %v8055_v25, %v7730_v57 }
 0x649   : > { %5330 = vmatmul.bf16.gmra.mxu2 %v7731_v3 }
 0x64b   : > { %5347 = vmatpush.bf16.msra.mxu3 %v10942_v39  ;;  %v8052_v39 = vld [vmem:[%s11959_s11 + $0x14] sm:$0xf] }
 0x64c   : > { %v7727_v13 = vor.u32 %v8052_v39, %v7724_v29 }
 0x64f   : > { %5348 = vmatpush.bf16.msra.mxu3 %v10929_v46  ;;  %v7739_v46 = vor.u32 %v8057_v20, %v7738_v0 }
 0x652   : > { %5349 = vmatmul.bf16.vlgmr.msra.gmra.mxu3 %v7719_v60 }
 0x653   : > { %5531 = vmatpush.bf16.msrb.mxu3 %v8058_v36 }
 0x659   : > { %5335 = vmatmul.bf16.gmra.mxu2 %v7739_v46 }
 0x662   : > { %5354 = vmatmul.bf16.gmra.mxu3 %v7727_v13  ;;  %v12838_v13 = vld [vmem:[#allocation15_spill] sm:$0xff] }
 0x663   : > { %v5394_v46 = vand.u32 7, %v12838_v13 }
 0x668   : > { %v5321_v62 = vpop.f32.mrf.mxu2 }
 0x670   : > { %v5323_v49 = vpop.f32.mrf.mxu2 }
 0x672   : > { %5359 = vmatmul.bf16.gmra.mxu3 %v7735_v35 }
 0x682   : > { %5364 = vmatmul.bf16.gmra.mxu3 %v7743_v44 }
 0x6b3   : > { %v5326_v42 = vpop.f32.mrf.mxu2 }
 0x6bb   : > { %v5328_v24 = vpop.f32.mrf.mxu2 }
 0x6cc   : > { %v5331_v19 = vpop.f32.mrf.mxu2 }
 0x6d4   : > { %v5333_v35 = vpop.f32.mrf.mxu2 }
 0x6d5   : > { %v5350_v5 = vpop.f32.mrf.mxu3 }
 0x6d6   : > { %v5351_v52 = vadd.f32 %v5350_v5, %v5321_v62  ;;  %v12842_v5 = vmov 0 }
 0x6d8   : > { %5382 = vst.msk [vmem:[#allocation3 + $0x10] sm:$0xff] %vm12815_vm9, %v5351_v52  ;;  %vm11129_vm9 = vcmp.le.s32.totalorder %v5390_v55, 6  ;;  %v12844_v52 = vmov 0 }
 0x6dd   : > { %v5352_v23 = vpop.f32.mrf.mxu3 }
 0x6de   : > { %v5353_v38 = vadd.f32 %v5352_v23, %v5323_v49 }
 0x6df   : > { %v11058_v21 = vld [vmem:[#allocation3 + $0x10] sm:$0xff] }
 0x6e0   : > { %v11060_v14 = vld [vmem:[#allocation3 + $0xf] sm:$0xff]  ;;  %5383 = vst.msk [vmem:[#allocation3 + $0x18] sm:$0xff] %vm12821_vm15, %v5353_v38  ;;  %v5452_v40 = vpack.c.bf16 %v11058_v21, %v5444_v56  ;;  %vm11147_vm15 = vcmp.ge.s32.totalorder %v5394_v46, 1 }
 0x6e1   : > { %v5431_v10 = vsel %vm11052_vm13, %v11060_v14, 0.0  ;;  %v12843_v5 = vsel %vm11147_vm15, 4294967295, %v12842_v5 }
 0x6e2   : > { %v5438_v18 = vpack.c.bf16 %v5431_v10, %v5430_v11  ;;  %7750 = vmatmul.msk.bf16.vlgmr.msrb.gmra.mxu2 %vm12822_vm8, %v5452_v40  ;;  %vm11153_vm8 = vcmp.ge.s32.totalorder %v5395_v15, 1  ;;  %v5336_v40 = vpop.f32.mrf.mxu2 }
 0x6e3   : > { %v12845_v52 = vsel %vm11153_vm8, 4294967295, %v12844_v52 }
 0x6e4   : > { %7758 = vmatmul.msk.bf16.vlgmr.msrb.gmra.mxu3 %vm12823_vm6, %v5438_v18  ;;  %vm12846_vm6 = vmmov %vm12707_vm0 }
 0x6e5   : > { %v5355_v2 = vpop.f32.mrf.mxu3 }
 0x6e6   : > { %v5356_v4 = vadd.f32 %v5355_v2, %v5326_v42 }
 0x6e7   : > { %v11069_v54 = vld [vmem:[#allocation3 + $0x18] sm:$0xff] }
 0x6e8   : > { %5384 = vst.msk [vmem:[#allocation3 + $0x20] sm:$0xff] %vm12824_vm11, %v5356_v4  ;;  %v5741_v34 = vpack.c.bf16 %v11069_v54, %v11058_v21  ;;  %v11076_v8 = vld [vmem:[#allocation3 + $0x17] sm:$0xff]  ;;  %vm12847_vm11 = vmmov %vm12707_vm0  ;;  %v8061_v4 = vld [vmem:[%s11953_s5 + $0x18] sm:$0xff] }
 0x6e9   : > { %v5432_v17 = vsel %vm11080_vm12, %v11076_v8, 0.0  ;;  %v5889_v28 = vsel %vm11048_vm2, %v11076_v8, 0.0  ;;  %5703 = vmatpush.bf16.msra.mxu3 %v8061_v4  ;;  %v5554_v4 = vld [vmem:[#allocation3 + $0x11] sm:$0xff] }
 0x6ed   : > { %v5357_v9 = vpop.f32.mrf.mxu3 }
 0x6ee   : > { %v5358_v59 = vadd.f32 %v5357_v9, %v5328_v24  ;;  %v8075_v9 = vld [vmem:[%s11955_s7 + $0x40] sm:$0xff] }
 0x6ef   : > { %v11090_v47 = vld [vmem:[#allocation3 + $0x20] sm:$0xff] }
 0x6f0   : > { %v11092_v43 = vld [vmem:[#allocation3 + $0x1f] sm:$0xff]  ;;  %5385 = vst.msk [vmem:[#allocation3 + $0x28] sm:$0xff] %vm12831_vm4, %v5358_v59  ;;  %v5453_v30 = vpack.c.bf16 %v11090_v47, %v11069_v54  ;;  %vm12848_vm4 = vmmov %vm12707_vm0 }
 0x6f1   : > { %v5433_v41 = vsel %vm11086_vm14, %v11092_v43, 0.0  ;;  %v5890_v57 = vsel %vm11052_vm13, %v11092_v43, 0.0  ;;  %v11118_v29 = vld [vmem:[#allocation3 + $0x19] sm:$0xff] }
 0x6f2   : > { %v5439_v45 = vpack.c.bf16 %v5433_v41, %v5432_v17  ;;  %7751 = vmatmul.msk.bf16.gmra.mxu2 %vm12707_vm0, %v5453_v30  ;;  %7818 = vmatmul.msk.bf16.vlgmr.msrb.gmra.mxu1 %vm12832_vm1, %v5453_v30  ;;  %v5897_v25 = vpack.c.bf16 %v5890_v57, %v5889_v28  ;;  %v6037_v44 = vsel %vm11129_vm9, %v11118_v29, 0.0  ;;  %vm12849_vm1 = vmmov %vm12707_vm0  ;;  %v12855_v17 = vld [vmem:[#allocation18_spill] sm:$0xff]  ;;  %v12859_v57 = vmov 0 }
 0x6f3   : > { %v5396_v41 = vand.u32 7, %v12855_v17 }
 0x6f4   : > { %7759 = vmatmul.msk.bf16.gmra.mxu3 %vm12833_vm10, %v5439_v45  ;;  %7808 = vmatmul.msk.bf16.vlgmr.msrb.gmra.mxu0 %vm12834_vm7, %v5897_v25  ;;  %vm12850_vm10 = vmmov %vm12707_vm0  ;;  %vm11190_vm7 = vcmp.le.s32.totalorder %v5392_v53, 6  ;;  %v12856_v45 = vld [vmem:[#allocation19_spill] sm:$0xff]  ;;  %v5338_v25 = vpop.f32.mrf.mxu2 }
 0x6f5   : > { %v5360_v60 = vpop.f32.mrf.mxu3  ;;  %v5397_v50 = vand.u32 7, %v12856_v45 }
 0x6f6   : > { %v5361_v3 = vadd.f32 %v5360_v60, %v5331_v19 }
 0x6f7   : > { %v11116_v39 = vld [vmem:[#allocation3 + $0x28] sm:$0xff] }
 0x6f8   : > { %v11120_v0 = vld [vmem:[#allocation3 + $0x21] sm:$0xff]  ;;  %5386 = vst.msk [vmem:[#allocation3 + $0x30] sm:$0xff] %vm12837_vm5, %v5361_v3  ;;  %v5742_v26 = vpack.c.bf16 %v11116_v39, %v11090_v47  ;;  %vm11196_vm5 = vcmp.le.s32.totalorder %v5393_v1, 6 }
 0x6f9   : > { %v6038_v7 = vsel %vm11122_vm3, %v11120_v0, 0.0  ;;  %v11143_v49 = vld [vmem:[#allocation3 + $0x27] sm:$0xff] }
 0x6fa   : > { %v11141_v62 = vpack.c.bf16 %v6038_v7, %v6037_v44  ;;  %v5434_v42 = vsel %vm11147_vm15, %v11143_v49, 0.0  ;;  %v5891_v56 = vsel %vm11080_vm12, %v11143_v49, 0.0  ;;  %vm12864_vm12 = vmmov %vm12707_vm0 }
 0x6fd   : > { %v5362_v36 = vpop.f32.mrf.mxu3 }
 0x6fe   : > { %v5363_v37 = vadd.f32 %v5362_v36, %v5333_v35 }
 0x6ff   : > { %v11157_v55 = vld [vmem:[#allocation3 + $0x30] sm:$0xff] }
 0x700   : > { %v11159_v12 = vld [vmem:[#allocation3 + $0x2f] sm:$0xff]  ;;  %5387 = vst.msk [vmem:[#allocation3 + $0x38] sm:$0xff] %vm12846_vm6, %v5363_v37  ;;  %v5454_v61 = vpack.c.bf16 %v11157_v55, %v11116_v39  ;;  %vm11218_vm6 = vcmp.ge.s32.totalorder %v5396_v41, 1 }
 0x701   : > { %v5435_v33 = vsel %vm11153_vm8, %v11159_v12, 0.0  ;;  %v5892_v38 = vsel %vm11086_vm14, %v11159_v12, 0.0  ;;  %v11180_v2 = vld [vmem:[#allocation3 + $0x29] sm:$0xff] }
 0x702   : > { %v5440_v23 = vpack.c.bf16 %v5435_v33, %v5434_v42  ;;  %7752 = vmatmul.msk.bf16.gmra.mxu2 %vm12847_vm11, %v5454_v61  ;;  %v5898_v11 = vpack.c.bf16 %v5892_v38, %v5891_v56  ;;  %7819 = vmatmul.msk.bf16.gmra.mxu1 %vm12848_vm4, %v5454_v61  ;;  %v6039_v32 = vsel %vm11190_vm7, %v11180_v2, 0.0  ;;  %vm11224_vm11 = vcmp.ge.s32.totalorder %v5397_v50, 1  ;;  %vm12861_vm4 = vmmov %vm12707_vm0 }
 0x703   : > { %v12860_v57 = vsel %vm11224_vm11, 4294967295, %v12859_v57 }
 0x704   : > { %7760 = vmatmul.msk.bf16.gmra.mxu3 %vm12707_vm0, %v5440_v23  ;;  %7809 = vmatmul.msk.bf16.gmra.mxu0 %vm12849_vm1, %v5898_v11  ;;  %vm12862_vm1 = vmmov %vm12707_vm0 }
 0x705   : > { %v5365_v10 = vpop.f32.mrf.mxu3 }
 0x706   : > { %v5366_v18 = vadd.f32 %v5365_v10, %v5336_v40 }
 0x707   : > { %v11182_v24 = vld [vmem:[#allocation3 + $0x38] sm:$0xff] }
 0x708   : > { %5388 = vst.msk [vmem:[#allocation3 + $0x40] sm:$0xff] %vm12850_vm10, %v5366_v18  ;;  %v11200_v19 = vld [vmem:[#allocation3 + $0x31] sm:$0xff]  ;;  %v5743_v30 = vpack.c.bf16 %v11182_v24, %v11157_v55  ;;  %vm12863_vm10 = vmmov %vm12707_vm0 }
 0x709   : > { %v6040_v53 = vsel %vm11196_vm5, %v11200_v19, 0.0  ;;  %v11214_v1 = vld [vmem:[#allocation3 + $0x37] sm:$0xff] }
 0x70a   : > { %v11212_v27 = vpack.c.bf16 %v6040_v53, %v6039_v32  ;;  %v5436_v36 = vsel %vm11218_vm6, %v11214_v1, 0.0  ;;  %v5893_v42 = vsel %vm11147_vm15, %v11214_v1, 0.0 }
 0x70d   : > { %v5367_v60 = vpop.f32.mrf.mxu3 }
 0x70e   : > { %v5368_v3 = vadd.f32 %v5367_v60, %v5338_v25  ;;  %v5586_v25 = vsel %vm11122_vm3, %v5554_v4, 0.0  ;;  %v5966_v60 = vld [vmem:[#allocation3 + $0x50] sm:$0xff] }
 0x70f   : > { %v11228_v35 = vld [vmem:[#allocation3 + $0x40] sm:$0xff] }
 0x710   : > { %v11230_v44 = vld [vmem:[#allocation3 + $0x3f] sm:$0xff]  ;;  %v5455_v7 = vpack.c.bf16 %v11228_v35, %v11182_v24  ;;  %5389 = vst.msk [vmem:[#allocation3 + $0x48] sm:$0xff] %vm12861_vm4, %v5368_v3  ;;  %vm11261_vm4 = vcmp.le.s32.totalorder %v5394_v46, 6  ;;  %v5553_v46 = vld [vmem:[#allocation3 + $0x9] sm:$0xff]  ;;  %v5664_v3 = vsel %vm11052_vm13, %v11076_v8, 0.0  ;;  %vm12871_vm13 = vmmov %vm12862_vm1 }
 0x711   : > { %v5437_v37 = vsel %vm11224_vm11, %v11230_v44, 0.0  ;;  %v5894_v33 = vsel %vm11153_vm8, %v11230_v44, 0.0  ;;  %v11251_v56 = vld [vmem:[#allocation3 + $0x39] sm:$0xff]  ;;  %v5669_v17 = vsel %vm11218_vm6, %v11230_v44, 0.0  ;;  %v5815_v47 = vsel %vm11261_vm4, %v11200_v19, 0.0 }
 0x712   : > { %v5441_v61 = vpack.c.bf16 %v5437_v37, %v5436_v36  ;;  %7753 = vmatmul.msk.bf16.gmra.mxu2 %vm12707_vm0, %v5455_v7  ;;  %v5899_v23 = vpack.c.bf16 %v5894_v33, %v5893_v42  ;;  %7820 = vmatmul.msk.bf16.gmra.mxu1 %vm12862_vm1, %v5455_v7  ;;  %vm11267_vm0 = vcmp.le.s32.totalorder %v5395_v15, 6  ;;  %v6041_v32 = vsel %vm11261_vm4, %v11251_v56, 0.0 }
 0x713   : > { %v5585_v7 = vsel %vm11129_vm9, %v5553_v46, 0.0  ;;  %v5663_v36 = vsel %vm11048_vm2, %v11060_v14, 0.0  ;;  %v5588_v14 = vsel %vm11196_vm5, %v11120_v0, 0.0 }
 0x714   : > { %7761 = vmatmul.msk.bf16.gmra.mxu3 %vm12863_vm10, %v5441_v61  ;;  %7810 = vmatmul.msk.bf16.gmra.mxu0 %vm12864_vm12, %v5899_v23  ;;  %v5593_v37 = vpack.c.bf16 %v5586_v25, %v5585_v7  ;;  %v5671_v23 = vpack.c.bf16 %v5664_v3, %v5663_v36  ;;  %vm12869_vm12 = vmmov %vm12862_vm1  ;;  %v5668_v3 = vsel %vm11153_vm8, %v11214_v1, 0.0  ;;  %v5667_v36 = vsel %vm11147_vm15, %v11159_v12, 0.0 }
 0x715   : > { %vm12870_vm10 = vmmov %vm12862_vm1  ;;  %vm11340_vm8 = vcmp.le.s32.totalorder %v5396_v41, 6 }
 0x716   : > { %v5591_v45 = vsel %vm11340_vm8, %v11251_v56, 0.0  ;;  %vm12881_vm15 = vmmov %vm12862_vm1 }
 0x717   : > { %v11253_v38 = vld [vmem:[#allocation3 + $0x41] sm:$0xff]  ;;  %v5888_v15 = vld [vmem:[#allocation3 + $0x4f] sm:$0xff] }
 0x718   : > { %v11255_v11 = vld [vmem:[#allocation3 + $0x48] sm:$0xff]  ;;  %v6042_v53 = vsel %vm11267_vm0, %v11253_v38, 0.0  ;;  %v5896_v42 = vsel %vm11224_vm11, %v5888_v15, 0.0 }
 0x719   : > { %v5744_v40 = vpack.c.bf16 %v11255_v11, %v11228_v35  ;;  %v11277_v13 = vpack.c.bf16 %v6042_v53, %v6041_v32  ;;  %v5662_v16 = vld [vmem:[#allocation3 + $0x47] sm:$0xff]  ;;  %v5970_v33 = vpack.c.bf16 %v5966_v60, %v11255_v11  ;;  %v5666_v32 = vsel %vm11086_vm14, %v11143_v49, 0.0  ;;  %v8062_v60 = vld [vmem:[%s11953_s5 + $0x20] sm:$0xff] }
 0x71a   : > { %v5895_v61 = vsel %vm11218_vm6, %v5662_v16, 0.0  ;;  %v5587_v53 = vsel %vm11190_vm7, %v11118_v29, 0.0  ;;  %5773 = vmatpush.bf16.msrb.mxu2 %v8062_v60  ;;  %v5590_v49 = vsel %vm11267_vm0, %v11200_v19, 0.0  ;;  %v5817_v19 = vsel %vm11340_vm8, %v11253_v38, 0.0 }
 0x71b   : > { %v5900_v8 = vpack.c.bf16 %v5896_v42, %v5895_v61  ;;  %v5594_v46 = vpack.c.bf16 %v5588_v14, %v5587_v53  ;;  %v8063_v61 = vld [vmem:[%s11953_s5 + $0x28] sm:$0xff] }
 0x71c   : > { %5851 = vmatpush.bf16.msrb.mxu3 %v8063_v61 }
 0x722   : > { %7768 = vmatmul.msk.bf16.vlgmr.msra.gmra.mxu2 %vm12869_vm12, %v5593_v37  ;;  %7821 = vmatmul.msk.bf16.gmra.mxu1 %vm12862_vm1, %v5970_v33  ;;  %vm12872_vm12 = vnez %v12828_v63  ;;  %v5673_v37 = vpack.c.bf16 %v5668_v3, %v5667_v36  ;;  %v5670_v33 = vsel %vm11224_vm11, %v5662_v16, 0.0  ;;  %v5811_v16 = vsel %vm11129_vm9, %v5554_v4, 0.0  ;;  %vm12880_vm11 = vmmov %vm12862_vm1 }
 0x723   : > { %v5665_v25 = vsel %vm12872_vm12, %v11092_v43, 0.0  ;;  %v5589_v43 = vsel %vm11261_vm4, %v11180_v2, 0.0  ;;  %v5674_v41 = vpack.c.bf16 %v5670_v33, %v5669_v17  ;;  %v5813_v4 = vsel %vm11190_vm7, %v11120_v0, 0.0 }
 0x724   : > { %7778 = vmatmul.msk.bf16.vlgmr.msra.gmra.mxu3 %vm12870_vm10, %v5671_v23  ;;  %7811 = vmatmul.msk.bf16.gmra.mxu0 %vm12871_vm13, %v5900_v8  ;;  %v5672_v15 = vpack.c.bf16 %v5666_v32, %v5665_v25  ;;  %vm12873_vm13 = vmmov %vm12862_vm1  ;;  %v5595_v7 = vpack.c.bf16 %v5590_v49, %v5589_v43  ;;  %v5812_v23 = vsel %vm11122_vm3, %v11118_v29, 0.0  ;;  %v5814_v29 = vsel %vm11196_vm5, %v11180_v2, 0.0  ;;  %v8066_v2 = vld [vmem:[%s11953_s5 + $0x40] sm:$0xff] }
 0x725   : > { %vm12874_vm10 = vmmov %vm12862_vm1  ;;  %v5819_v8 = vpack.c.bf16 %v5812_v23, %v5811_v16  ;;  %v5820_v21 = vpack.c.bf16 %v5814_v29, %v5813_v4  ;;  %v5816_v0 = vsel %vm11267_vm0, %v11251_v56, 0.0  ;;  %6077 = vmatpush.bf16.msra.mxu2 %v8066_v2  ;;  %v5810_v43 = vld [vmem:[#allocation3 + $0x49] sm:$0xff] }
 0x726   : > { %v5821_v39 = vpack.c.bf16 %v5816_v0, %v5815_v47 }
 0x732   : > { %7769 = vmatmul.msk.bf16.gmra.mxu2 %vm12862_vm1, %v5594_v46 }
 0x734   : > { %7779 = vmatmul.msk.bf16.gmra.mxu3 %vm12873_vm13, %v5672_v15  ;;  %vm11334_vm13 = vcmp.le.s32.totalorder %v5397_v50, 6 }
 0x735   : > { %v5592_v42 = vsel %vm11334_vm13, %v11253_v38, 0.0  ;;  %v5818_v36 = vsel %vm11334_vm13, %v5810_v43, 0.0 }
 0x736   : > { %v5596_v50 = vpack.c.bf16 %v5592_v42, %v5591_v45  ;;  %v5822_v55 = vpack.c.bf16 %v5818_v36, %v5817_v19 }
 0x742   : > { %7770 = vmatmul.msk.bf16.gmra.mxu2 %vm12874_vm10, %v5595_v7  ;;  %vm12879_vm10 = vmmov %vm12862_vm1 }
 0x744   : > { %7780 = vmatmul.msk.bf16.gmra.mxu3 %vm12862_vm1, %v5673_v37 }
 0x752   : > { %7771 = vmatmul.msk.bf16.gmra.mxu2 %vm12879_vm10, %v5596_v50  ;;  %vm12884_vm10 = vmmov %vm12862_vm1 }
 0x754   : > { %7781 = vmatmul.msk.bf16.gmra.mxu3 %vm12862_vm1, %v5674_v41 }
 0x762   : > { %7788 = vmatmul.msk.bf16.vlgmr.msrb.gmra.mxu2 %vm12880_vm11, %v5741_v34  ;;  %vm12883_vm11 = vmmov %vm12862_vm1 }
 0x764   : > { %7798 = vmatmul.msk.bf16.vlgmr.msrb.gmra.mxu3 %vm12881_vm15, %v5819_v8  ;;  %vm12882_vm15 = vmmov %vm12862_vm1  ;;  %v6043_v8 = vsel %vm11340_vm8, %v5810_v43, 0.0 }
 0x765   : > { %v5486_v44 = vpop.f32.mrf.mxu2 }
 0x767   : > { %v5533_v14 = vpop.f32.mrf.mxu3 }
 0x768   : > { %v5534_v32 = vadd.f32 %v5533_v14, %v5486_v44 }
 0x76d   : > { %v11367_v53 = vpop.f32.mrf.mxu2 }
 0x76f   : > { %v11369_v46 = vpop.f32.mrf.mxu3  ;;  %v6001_v19 = vpop.f32.mrf.mxu1 }
 0x771   : > { %v5931_v43 = vpop.f32.mrf.mxu0 }
 0x772   : > { %7789 = vmatmul.msk.bf16.gmra.mxu2 %vm12882_vm15, %v5742_v26  ;;  %vm12885_vm15 = vmmov %vm12862_vm1 }
 0x774   : > { %7799 = vmatmul.msk.bf16.gmra.mxu3 %vm12883_vm11, %v5820_v21  ;;  %vm12886_vm11 = vmmov %vm12862_vm1 }
 0x775   : > { %v5491_v54 = vpop.f32.mrf.mxu2 }
 0x777   : > { %v5538_v34 = vpop.f32.mrf.mxu3 }
 0x778   : > { %v5539_v25 = vadd.f32 %v5538_v34, %v5491_v54 }
 0x77d   : > { %v11382_v15 = vpop.f32.mrf.mxu2 }
 0x77f   : > { %v11387_v60 = vpop.f32.mrf.mxu3 }
 0x782   : > { %7790 = vmatmul.msk.bf16.gmra.mxu2 %vm12884_vm10, %v5743_v30  ;;  %vm12887_vm10 = vmmov %vm12862_vm1 }
 0x784   : > { %7800 = vmatmul.msk.bf16.gmra.mxu3 %vm12862_vm1, %v5821_v39 }
 0x785   : > { %v5496_v26 = vpop.f32.mrf.mxu2 }
 0x787   : > { %v5543_v49 = vpop.f32.mrf.mxu3 }
 0x788   : > { %v5544_v3 = vadd.f32 %v5543_v49, %v5496_v26 }
 0x78d   : > { %v11400_v7 = vpop.f32.mrf.mxu2 }
 0x78f   : > { %v11402_v56 = vpop.f32.mrf.mxu3 }
 0x792   : > { %7791 = vmatmul.msk.bf16.gmra.mxu2 %vm12885_vm15, %v5744_v40  ;;  %vm12888_vm15 = vmmov %vm12862_vm1 }
 0x794   : > { %7801 = vmatmul.msk.bf16.gmra.mxu3 %vm12886_vm11, %v5822_v55  ;;  %vm12889_vm11 = vmmov %vm12862_vm1  ;;  %v8068_v55 = vld [vmem:[%s11955_s7 + $0x8] sm:$0xff] }
 0x795   : > { %v5501_v24 = vpop.f32.mrf.mxu2  ;;  %6209 = vmatpush.bf16.msra.mxu3 %v8068_v55 }
 0x797   : > { %v5548_v30 = vpop.f32.mrf.mxu3 }
 0x798   : > { %v5549_v37 = vadd.f32 %v5548_v30, %v5501_v24  ;;  %v8067_v24 = vld [vmem:[%s11955_s7] sm:$0xff] }
 0x799   : > { %6256 = vmatpush.bf16.msra.mxu0 %v8067_v24  ;;  %v11472_v24 = vld [vmem:[%s11954_s6] ss:$0 sm:$0xff] }
 0x79d   : > { %v11414_v61 = vpop.f32.mrf.mxu2 }
 0x79f   : > { %v11418_v45 = vpop.f32.mrf.mxu3 }
 0x7a2   : > { %7828 = vmatmul.msk.bf16.vlgmr.msra.gmra.mxu2 %vm12887_vm10, %v11141_v62  ;;  %v6036_v62 = vld [vmem:[#allocation3 + $0x51] sm:$0xff]  ;;  %vm12890_vm10 = vmmov %vm12862_vm1 }
 0x7a5   : > { %v5627_v38 = vpop.f32.mrf.mxu2 }
 0x7a6   : > { %v5647_v42 = vadd.f32 %v5627_v38, %v5534_v32  ;;  %v5536_v38 = vadd.f32 %v11369_v46, %v11367_v53 }
 0x7a7   : > { %v5705_v40 = vpop.f32.mrf.mxu3 }
 0x7ad   : > { %v5629_v33 = vpop.f32.mrf.mxu2 }
 0x7af   : > { %v5707_v17 = vpop.f32.mrf.mxu3 }
 0x7b2   : > { %7829 = vmatmul.msk.bf16.gmra.mxu2 %vm12862_vm1, %v11212_v27  ;;  %v6044_v27 = vsel %vm11334_vm13, %v6036_v62, 0.0  ;;  %v5933_v62 = vpop.f32.mrf.mxu0 }
 0x7b3   : > { %v6048_v14 = vpack.c.bf16 %v6044_v27, %v6043_v8  ;;  %v8069_v27 = vld [vmem:[%s11955_s7 + $0x10] sm:$0xff] }
 0x7b4   : > { %6326 = vmatpush.bf16.msra.mxu1 %v8069_v27 }
 0x7b5   : > { %v5632_v35 = vpop.f32.mrf.mxu2 }
 0x7b6   : > { %v5649_v11 = vadd.f32 %v5632_v35, %v5539_v25 }
 0x7b7   : > { %v5710_v44 = vpop.f32.mrf.mxu3 }
 0x7bd   : > { %v11422_v50 = vpop.f32.mrf.mxu2 }
 0x7c2   : > { %7830 = vmatmul.msk.bf16.gmra.mxu2 %vm12888_vm15, %v11277_v13  ;;  %v5712_v13 = vpop.f32.mrf.mxu3  ;;  %vm12891_vm15 = vnez %v12820_v48 }
 0x7c5   : > { %v5637_v41 = vpop.f32.mrf.mxu2 }
 0x7c6   : > { %v11426_v23 = vadd.f32 %v5637_v41, %v5544_v3  ;;  %v5648_v41 = vadd.f32 %v5629_v33, %v5536_v38  ;;  %v5727_v38 = vadd.f32 %v5710_v44, %v5649_v11 }
 0x7ca   : > { %v11439_v21 = vpop.f32.mrf.mxu3 }
 0x7cd   : > { %v11428_v16 = vpop.f32.mrf.mxu2 }
 0x7d2   : > { %7831 = vmatmul.msk.bf16.gmra.mxu2 %vm12889_vm11, %v6048_v14  ;;  %v11441_v34 = vpop.f32.mrf.mxu3  ;;  %vm12892_vm11 = vmmov %vm12862_vm1 }
 0x7d5   : > { %v5642_v32 = vpop.f32.mrf.mxu2 }
 0x7d6   : > { %v11435_v29 = vadd.f32 %v5642_v32, %v5549_v37  ;;  %v5725_v37 = vadd.f32 %v5705_v40, %v5647_v42  ;;  %v8070_v32 = vld [vmem:[%s11955_s7 + $0x18] sm:$0xff]  ;;  %v5726_v42 = vadd.f32 %v5707_v17, %v5648_v41  ;;  %v6003_v40 = vpop.f32.mrf.mxu1  ;;  %v5541_v17 = vadd.f32 %v11387_v60, %v11382_v15 }
 0x7d7   : > { %6404 = vmatpush.bf16.msrb.mxu2 %v8070_v32 }
 0x7da   : > { %v11443_v0 = vpop.f32.mrf.mxu3 }
 0x7dd   : > { %v11437_v4 = vpop.f32.mrf.mxu2 }
 0x7de   : > { %v6006_v27 = vpop.f32.mrf.mxu1 }
 0x7e2   : > { %v11445_v39 = vpop.f32.mrf.mxu3 }
 0x7e5   : > { %v5775_v54 = vpop.f32.mrf.mxu2 }
 0x7e6   : > { %v5795_v35 = vadd.f32 %v5775_v54, %v5725_v37 }
 0x7ea   : > { %v5853_v49 = vpop.f32.mrf.mxu3 }
 0x7eb   : > { %v5873_v8 = vadd.f32 %v5853_v49, %v5795_v35  ;;  %v5936_v49 = vpop.f32.mrf.mxu0 }
 0x7ed   : > { %v5777_v25 = vpop.f32.mrf.mxu2  ;;  %v5951_v46 = vadd.f32 %v5931_v43, %v5873_v8  ;;  %v5650_v43 = vadd.f32 %v11422_v50, %v5541_v17 }
 0x7ee   : > { %v5796_v53 = vadd.f32 %v5777_v25, %v5726_v42 }
 0x7ef   : > { %v6021_v33 = vadd.f32 %v6001_v19, %v5951_v46  ;;  %v5728_v42 = vadd.f32 %v5712_v13, %v5650_v43 }
 0x7f2   : > { %v5855_v36 = vpop.f32.mrf.mxu3 }
 0x7f3   : > { %v5874_v54 = vadd.f32 %v5855_v36, %v5796_v53  ;;  %v5938_v11 = vpop.f32.mrf.mxu0 }
 0x7f5   : > { %v5780_v2 = vpop.f32.mrf.mxu2  ;;  %v5952_v6 = vadd.f32 %v5933_v62, %v5874_v54  ;;  %v6008_v62 = vpop.f32.mrf.mxu1 }
 0x7f6   : > { %v5797_v41 = vadd.f32 %v5780_v2, %v5727_v38  ;;  %v6169_v2 = vld [vmem:[#allocation4 + $0x8] sm:$0xff]  ;;  %v5729_v38 = vadd.f32 %v11439_v21, %v11426_v23 }
 0x7f7   : > { %v6022_v36 = vadd.f32 %v6003_v40, %v5952_v6 }
 0x7fa   : > { %v5858_v55 = vpop.f32.mrf.mxu3 }
 0x7fb   : > { %v5875_v8 = vadd.f32 %v5858_v55, %v5797_v41  ;;  %v5941_v43 = vpop.f32.mrf.mxu0 }
 0x7fd   : > { %v5782_v47 = vpop.f32.mrf.mxu2  ;;  %v5953_v15 = vadd.f32 %v5936_v49, %v5875_v8 }
 0x7fe   : > { %v5798_v46 = vadd.f32 %v5782_v47, %v5728_v42 }
 0x7ff   : > { %v6023_v13 = vadd.f32 %v6006_v27, %v5953_v15 }
 0x802   : > { %v5860_v32 = vpop.f32.mrf.mxu3 }
 0x803   : > { %v5876_v6 = vadd.f32 %v5860_v32, %v5798_v46  ;;  %v5546_v32 = vadd.f32 %v11402_v56, %v11400_v7  ;;  %v6011_v46 = vpop.f32.mrf.mxu1 }
 0x805   : > { %v11447_v26 = vpop.f32.mrf.mxu2 }
 0x806   : > { %v5799_v27 = vadd.f32 %v11447_v26, %v5729_v38 }
 0x80a   : > { %v5863_v54 = vpop.f32.mrf.mxu3 }
 0x80b   : > { %v5877_v42 = vadd.f32 %v5863_v54, %v5799_v27 }
 0x80d   : > { %v11449_v3 = vpop.f32.mrf.mxu2 }
 0x812   : > { %v5865_v7 = vpop.f32.mrf.mxu3 }
 0x815   : > { %v11457_v30 = vpop.f32.mrf.mxu2 }
 0x81d   : > { %v11464_v14 = vpop.f32.mrf.mxu2 }
 0x825   : > { %v6079_v37 = vpop.f32.mrf.mxu2 }
 0x826   : > { %v6099_v35 = vadd.f32 %v6079_v37, %v6021_v33  ;;  %v6147_v33 = vld [vmem:[#allocation4 + $0x7] sm:$0xff] }
 0x827   : > { %v6155_v50 = vsel %vm11048_vm2, %v6147_v33, 0.0 }
 0x828   : > { %v6111_v25 = vadd.f32 %v11472_v24, %v6099_v35 }
 0x82a   : > { %v6119_v19 = vmax.f32 %v6111_v25, 0.0  ;;  %v5954_v25 = vadd.f32 %v5938_v11, %v5876_v6  ;;  %v5943_v6 = vpop.f32.mrf.mxu0 }
 0x82c   : > { %6139 = vst.msk [vmem:[#allocation4 + $0x10] sm:$0xff] %vm12890_vm10, %v6119_v19  ;;  %vm12893_vm10 = vmmov %vm12862_vm1  ;;  %v6024_v21 = vadd.f32 %v6008_v62, %v5954_v25  ;;  %v6013_v25 = vpop.f32.mrf.mxu1 }
 0x82d   : > { %v6081_v53 = vpop.f32.mrf.mxu2 }
 0x82e   : > { %v6100_v44 = vadd.f32 %v6081_v53, %v6022_v36  ;;  %v5652_v36 = vadd.f32 %v11428_v16, %v5546_v32 }
 0x830   : > { %v6112_v60 = vadd.f32 %v11472_v24, %v6100_v44  ;;  %v5730_v33 = vadd.f32 %v11441_v34, %v5652_v36  ;;  %v5551_v36 = vadd.f32 %v11418_v45, %v11414_v61 }
 0x832   : > { %v6120_v37 = vmax.f32 %v6112_v60, 0.0  ;;  %v5800_v54 = vadd.f32 %v11449_v3, %v5730_v33 }
 0x833   : > { %v11482_v40 = vld [vmem:[#allocation4 + $0x10] sm:$0xff] }
 0x834   : > { %v6148_v55 = vld [vmem:[#allocation4 + $0xf] sm:$0xff]  ;;  %6140 = vst.msk [vmem:[#allocation4 + $0x18] sm:$0xff] %vm12862_vm1, %v6120_v37  ;;  %v6177_v47 = vpack.c.bf16 %v11482_v40, %v6169_v2  ;;  %v5955_v37 = vadd.f32 %v5941_v43, %v5877_v42  ;;  %v5868_v43 = vpop.f32.mrf.mxu3 }
 0x835   : > { %v6156_v49 = vsel %vm12891_vm15, %v6148_v55, 0.0  ;;  %v6084_v35 = vpop.f32.mrf.mxu2  ;;  %v6278_v8 = vld [vmem:[#allocation4 + $0x9] sm:$0xff]  ;;  %v6364_v16 = vsel %vm11048_vm2, %v6148_v55, 0.0 }
 0x836   : > { %v6163_v17 = vpack.c.bf16 %v6156_v49, %v6155_v50  ;;  %v6101_v41 = vadd.f32 %v6084_v35, %v6023_v13  ;;  %7838 = vmatmul.msk.bf16.vlgmr.msra.gmra.mxu3 %vm12892_vm11, %v6177_v47  ;;  %v6286_v56 = vsel %vm11129_vm9, %v6278_v8, 0.0  ;;  %vm12894_vm11 = vmmov %vm12862_vm1  ;;  %v5878_v13 = vadd.f32 %v5865_v7, %v5800_v54 }
 0x837   : > { %v6025_v38 = vadd.f32 %v6011_v46, %v5955_v37 }
 0x838   : > { %7846 = vmatmul.msk.bf16.vlgmr.msra.gmra.mxu0 %vm12893_vm10, %v6163_v17  ;;  %v6113_v19 = vadd.f32 %v11472_v24, %v6101_v41  ;;  %vm12895_vm10 = vmmov %vm12862_vm1  ;;  %v5731_v41 = vadd.f32 %v11443_v0, %v11435_v29  ;;  %v5654_v29 = vadd.f32 %v11437_v4, %v5551_v36 }
 0x83a   : > { %v6121_v23 = vmax.f32 %v6113_v19, 0.0  ;;  %v5801_v8 = vadd.f32 %v11457_v30, %v5731_v41 }
 0x83b   : > { %v11497_v53 = vld [vmem:[#allocation4 + $0x11] sm:$0xff] }
 0x83c   : > { %v11499_v44 = vld [vmem:[#allocation4 + $0x17] sm:$0xff]  ;;  %6141 = vst.msk [vmem:[#allocation4 + $0x20] sm:$0xff] %vm12862_vm1, %v6121_v23  ;;  %v6287_v26 = vsel %vm11122_vm3, %v11497_v53, 0.0  ;;  %v5956_v23 = vadd.f32 %v5943_v6, %v5878_v13  ;;  %v5879_v7 = vadd.f32 %v5868_v43, %v5801_v8  ;;  %v6016_v13 = vpop.f32.mrf.mxu1 }
 0x83d   : > { %v6365_v11 = vsel %vm12891_vm15, %v11499_v44, 0.0  ;;  %v6086_v15 = vpop.f32.mrf.mxu2  ;;  %v6294_v60 = vpack.c.bf16 %v6287_v26, %v6286_v56  ;;  %v11517_v47 = vld [vmem:[#allocation4 + $0x18] sm:$0xff]  ;;  %v6157_v35 = vsel %vm12872_vm12, %v11499_v44, 0.0  ;;  %v6590_v20 = vsel %vm11048_vm2, %v11499_v44, 0.0 }
 0x83e   : > { %v6372_v2 = vpack.c.bf16 %v6365_v11, %v6364_v16  ;;  %v6102_v62 = vadd.f32 %v6086_v15, %v6024_v21  ;;  %v6026_v46 = vadd.f32 %v6013_v25, %v5956_v23  ;;  %v5946_v16 = vpop.f32.mrf.mxu0  ;;  %v5732_v11 = vadd.f32 %v11445_v39, %v5654_v29  ;;  %v8071_v39 = vld [vmem:[%s11955_s7 + $0x20] sm:$0xff] }
 0x83f   : > { %7856 = vmatmul.msk.bf16.vlgmr.msra.gmra.mxu1 %vm12894_vm11, %v6294_v60  ;;  %vm12896_vm11 = vmmov %vm12862_vm1  ;;  %6474 = vmatpush.bf16.msrb.mxu3 %v8071_v39 }
 0x840   : > { %7866 = vmatmul.msk.bf16.vlgmr.msrb.gmra.mxu2 %vm12895_vm10, %v6372_v2  ;;  %v6114_v50 = vadd.f32 %v11472_v24, %v6102_v62  ;;  %vm12897_vm10 = vmmov %vm12862_vm1  ;;  %v5802_v37 = vadd.f32 %v11464_v14, %v5732_v11 }
 0x842   : > { %v6122_v55 = vmax.f32 %v6114_v50, 0.0  ;;  %v8072_v50 = vld [vmem:[%s11955_s7 + $0x28] sm:$0xff] }
 0x843   : > { %v11519_v49 = vld [vmem:[#allocation4 + $0x20] sm:$0xff]  ;;  %6552 = vmatpush.bf16.msrb.mxu0 %v8072_v50  ;;  %6778 = vmatpush.bf16.msra.mxu3 %v8075_v9 }
 0x844   : > { %v11521_v34 = vld [vmem:[#allocation4 + $0x1f] sm:$0xff]  ;;  %6142 = vst.msk [vmem:[#allocation4 + $0x28] sm:$0xff] %vm12862_vm1, %v6122_v55  ;;  %v11526_v3 = vpack.c.bf16 %v11519_v49, %v11517_v47  ;;  %v5957_v55 = vadd.f32 %v5946_v16, %v5879_v7  ;;  %v8074_v7 = vld [vmem:[%s11955_s7 + $0x38] sm:$0xff] }
 0x845   : > { %v6158_v17 = vsel %vm11086_vm14, %v11521_v34, 0.0  ;;  %v6089_v32 = vpop.f32.mrf.mxu2  ;;  %v11544_v0 = vld [vmem:[#allocation4 + $0x19] sm:$0xff]  ;;  %v6366_v4 = vsel %vm12872_vm12, %v11521_v34, 0.0  ;;  %vm12902_vm12 = vmmov %vm12862_vm1  ;;  %6700 = vmatpush.bf16.msra.mxu2 %v8074_v7 }
 0x846   : > { %v6164_v27 = vpack.c.bf16 %v6158_v17, %v6157_v35  ;;  %v6103_v19 = vadd.f32 %v6089_v32, %v6025_v38  ;;  %7839 = vmatmul.msk.bf16.gmra.mxu3 %vm12896_vm11, %v11526_v3  ;;  %v6288_v61 = vsel %vm11190_vm7, %v11544_v0, 0.0  ;;  %v6738_v62 = vsel %vm11129_vm9, %v11544_v0, 0.0  ;;  %vm12898_vm11 = vmmov %vm12862_vm1  ;;  %v5870_v38 = vpop.f32.mrf.mxu3 }
 0x847   : > { %v5880_v17 = vadd.f32 %v5870_v38, %v5802_v37  ;;  %v6027_v25 = vadd.f32 %v6016_v13, %v5957_v55 }
 0x848   : > { %7847 = vmatmul.msk.bf16.gmra.mxu0 %vm12897_vm10, %v6164_v27  ;;  %v6115_v21 = vadd.f32 %v11472_v24, %v6103_v19  ;;  %vm12899_vm10 = vmmov %vm12862_vm1 }
 0x84a   : > { %v6123_v42 = vmax.f32 %v6115_v21, 0.0  ;;  %v5948_v21 = vpop.f32.mrf.mxu0 }
 0x84b   : > { %v11546_v56 = vld [vmem:[#allocation4 + $0x21] sm:$0xff] }
 0x84c   : > { %v11548_v26 = vld [vmem:[#allocation4 + $0x27] sm:$0xff]  ;;  %6143 = vst.msk [vmem:[#allocation4 + $0x30] sm:$0xff] %vm12862_vm1, %v6123_v42  ;;  %v6289_v45 = vsel %vm11196_vm5, %v11546_v56, 0.0  ;;  %v6739_v54 = vsel %vm11122_vm3, %v11546_v56, 0.0  ;;  %v5958_v42 = vadd.f32 %v5948_v21, %v5880_v17  ;;  %v6514_v48 = vsel %vm11190_vm7, %v11546_v56, 0.0 }
 0x84d   : > { %v6367_v30 = vsel %vm11086_vm14, %v11548_v26, 0.0  ;;  %v6091_v33 = vpop.f32.mrf.mxu2  ;;  %v6295_v15 = vpack.c.bf16 %v6289_v45, %v6288_v61  ;;  %v11579_v6 = vpack.c.bf16 %v6739_v54, %v6738_v62  ;;  %v11582_v41 = vld [vmem:[#allocation4 + $0x28] sm:$0xff]  ;;  %v6018_v45 = vpop.f32.mrf.mxu1 }
 0x84e   : > { %v6373_v60 = vpack.c.bf16 %v6367_v30, %v6366_v4  ;;  %v6104_v2 = vadd.f32 %v6091_v33, %v6026_v46  ;;  %v8073_v46 = vld [vmem:[%s11955_s7 + $0x30] sm:$0xff]  ;;  %v6028_v30 = vadd.f32 %v6018_v45, %v5958_v42 }
 0x84f   : > { %7857 = vmatmul.msk.bf16.gmra.mxu1 %vm12898_vm11, %v6295_v15  ;;  %vm12900_vm11 = vnez %v12843_v5 }
 0x850   : > { %7867 = vmatmul.msk.bf16.gmra.mxu2 %vm12899_vm10, %v6373_v60  ;;  %v6116_v35 = vadd.f32 %v11472_v24, %v6104_v2  ;;  %v6159_v19 = vsel %vm12900_vm11, %v11548_v26, 0.0  ;;  %vm12901_vm10 = vnez %v12845_v52  ;;  %6630 = vmatpush.bf16.msrb.mxu1 %v8073_v46 }
 0x852   : > { %v6124_v14 = vmax.f32 %v6116_v35, 0.0 }
 0x853   : > { %v11584_v32 = vld [vmem:[#allocation4 + $0x30] sm:$0xff] }
 0x854   : > { %v11586_v27 = vld [vmem:[#allocation4 + $0x2f] sm:$0xff]  ;;  %6144 = vst.msk [vmem:[#allocation4 + $0x38] sm:$0xff] %vm12862_vm1, %v6124_v14  ;;  %v11591_v43 = vpack.c.bf16 %v11584_v32, %v11582_v41 }
 0x855   : > { %v6160_v36 = vsel %vm12901_vm10, %v11586_v27, 0.0  ;;  %v6094_v8 = vpop.f32.mrf.mxu2  ;;  %v11609_v61 = vld [vmem:[#allocation4 + $0x29] sm:$0xff]  ;;  %v6368_v2 = vsel %vm12900_vm11, %v11586_v27, 0.0  ;;  %vm12905_vm11 = vmmov %vm12862_vm1  ;;  %v6593_v31 = vsel %vm11086_vm14, %v11586_v27, 0.0 }
 0x856   : > { %v6165_v23 = vpack.c.bf16 %v6160_v36, %v6159_v19  ;;  %v6105_v29 = vadd.f32 %v6094_v8, %v6027_v25  ;;  %7840 = vmatmul.msk.bf16.gmra.mxu3 %vm12902_vm12, %v11591_v43  ;;  %vm12903_vm12 = vmmov %vm12862_vm1  ;;  %v6290_v15 = vsel %vm11261_vm4, %v11609_v61, 0.0  ;;  %v6740_v55 = vsel %vm11190_vm7, %v11609_v61, 0.0 }
 0x857   : > { %v6515_v51 = vsel %vm11196_vm5, %v11609_v61, 0.0  ;;  %v6667_v61 = vld [vmem:[#allocation4 + $0x50] sm:$0xff] }
 0x858   : > { %7848 = vmatmul.msk.bf16.gmra.mxu0 %vm12862_vm1, %v6165_v23  ;;  %v6117_v16 = vadd.f32 %v11472_v24, %v6105_v29 }
 0x85a   : > { %v6125_v4 = vmax.f32 %v6117_v16, 0.0 }
 0x85b   : > { %v11611_v11 = vld [vmem:[#allocation4 + $0x31] sm:$0xff] }
 0x85c   : > { %v11613_v33 = vld [vmem:[#allocation4 + $0x37] sm:$0xff]  ;;  %6145 = vst.msk [vmem:[#allocation4 + $0x40] sm:$0xff] %vm12903_vm12, %v6125_v4  ;;  %v6291_v60 = vsel %vm11267_vm0, %v11611_v11, 0.0  ;;  %v6741_v13 = vsel %vm11196_vm5, %v11611_v11, 0.0  ;;  %vm12904_vm12 = vmmov %vm12862_vm1 }
 0x85d   : > { %v6369_v62 = vsel %vm12901_vm10, %v11613_v33, 0.0  ;;  %v6096_v54 = vpop.f32.mrf.mxu2  ;;  %v6296_v37 = vpack.c.bf16 %v6291_v60, %v6290_v15  ;;  %v11636_v38 = vpack.c.bf16 %v6741_v13, %v6740_v55  ;;  %v6175_v17 = vld [vmem:[#allocation4 + $0x38] sm:$0xff]  ;;  %v6161_v8 = vsel %vm11218_vm6, %v11613_v33, 0.0  ;;  %vm12908_vm10 = vmmov %vm12905_vm11 }
 0x85e   : > { %v6374_v39 = vpack.c.bf16 %v6369_v62, %v6368_v2  ;;  %v6106_v50 = vadd.f32 %v6096_v54, %v6028_v30  ;;  %v6513_v62 = vsel %vm11122_vm3, %v11544_v0, 0.0  ;;  %v6442_v54 = vpack.c.bf16 %v11517_v47, %v11482_v40 }
 0x85f   : > { %7858 = vmatmul.msk.bf16.gmra.mxu1 %vm12862_vm1, %v6296_v37  ;;  %vm12906_vm1 = vnez %v12860_v57  ;;  %v6512_v37 = vsel %vm11129_vm9, %v11497_v53, 0.0  ;;  %v6443_v40 = vpack.c.bf16 %v11582_v41, %v11519_v49  ;;  %v6521_v53 = vpack.c.bf16 %v6515_v51, %v6514_v48 }
 0x860   : > { %7868 = vmatmul.msk.bf16.gmra.mxu2 %vm12904_vm12, %v6374_v39  ;;  %v6118_v35 = vadd.f32 %v11472_v24, %v6106_v50  ;;  %vm12907_vm12 = vmmov %vm12905_vm11  ;;  %v6520_v39 = vpack.c.bf16 %v6513_v62, %v6512_v37  ;;  %v6591_v50 = vsel %vm12891_vm15, %v11521_v34, 0.0  ;;  %vm12916_vm15 = vnez %v12828_v63 }
 0x861   : > { %v6598_v0 = vpack.c.bf16 %v6591_v50, %v6590_v20  ;;  %v6592_v59 = vsel %vm12916_vm15, %v11548_v26, 0.0  ;;  %v6444_v58 = vpack.c.bf16 %v6175_v17, %v11584_v32  ;;  %v6516_v63 = vsel %vm11261_vm4, %v11611_v11, 0.0 }
 0x862   : > { %v6126_v14 = vmax.f32 %v6118_v35, 0.0  ;;  %v6599_v44 = vpack.c.bf16 %v6593_v31, %v6592_v59 }
 0x863   : > { %v11639_v25 = vld [vmem:[#allocation4 + $0x40] sm:$0xff] }
 0x864   : > { %v6154_v19 = vld [vmem:[#allocation4 + $0x3f] sm:$0xff]  ;;  %6146 = vst.msk [vmem:[#allocation4 + $0x48] sm:$0xff] %vm12905_vm11, %v6126_v14  ;;  %v6180_v36 = vpack.c.bf16 %v11639_v25, %v6175_v17  ;;  %vm12909_vm11 = vmmov %vm12908_vm10 }
 0x865   : > { %v6162_v23 = vsel %vm12906_vm1, %v6154_v19, 0.0  ;;  %v6284_v24 = vld [vmem:[#allocation4 + $0x39] sm:$0xff]  ;;  %v6370_v16 = vsel %vm11218_vm6, %v6154_v19, 0.0 }
 0x866   : > { %v6166_v21 = vpack.c.bf16 %v6162_v23, %v6161_v8  ;;  %7841 = vmatmul.msk.bf16.gmra.mxu3 %vm12907_vm12, %v6180_v36  ;;  %v6292_v46 = vsel %vm11340_vm8, %v6284_v24, 0.0  ;;  %v6742_v15 = vsel %vm11261_vm4, %v6284_v24, 0.0  ;;  %vm12910_vm12 = vmmov %vm12908_vm10  ;;  %v6517_v47 = vsel %vm11267_vm0, %v6284_v24, 0.0 }
 0x867   : > { %v6522_v49 = vpack.c.bf16 %v6517_v47, %v6516_v63 }
 0x868   : > { %7849 = vmatmul.msk.bf16.gmra.mxu0 %vm12908_vm10, %v6166_v21 }
 0x86b   : > { %v6285_v29 = vld [vmem:[#allocation4 + $0x41] sm:$0xff]  ;;  %v6511_v56 = vld [vmem:[#allocation4 + $0x49] sm:$0xff] }
 0x86c   : > { %v6363_v42 = vld [vmem:[#allocation4 + $0x47] sm:$0xff]  ;;  %v6293_v7 = vsel %vm11334_vm13, %v6285_v29, 0.0  ;;  %v6743_v60 = vsel %vm11267_vm0, %v6285_v29, 0.0  ;;  %v6518_v26 = vsel %vm11340_vm8, %v6285_v29, 0.0  ;;  %v6519_v41 = vsel %vm11334_vm13, %v6511_v56, 0.0 }
 0x86d   : > { %v6371_v45 = vsel %vm12906_vm1, %v6363_v42, 0.0  ;;  %v6297_v4 = vpack.c.bf16 %v6293_v7, %v6292_v46  ;;  %v11664_v2 = vpack.c.bf16 %v6743_v60, %v6742_v15  ;;  %vm12911_vm1 = vmmov %vm12908_vm10  ;;  %v6441_v10 = vld [vmem:[#allocation4 + $0x48] sm:$0xff]  ;;  %v6523_v32 = vpack.c.bf16 %v6519_v41, %v6518_v26 }
 0x86e   : > { %v6375_v30 = vpack.c.bf16 %v6371_v45, %v6370_v16  ;;  %vm12912_vm3 = vmmov %vm12911_vm1  ;;  %v6596_v27 = vsel %vm11218_vm6, %v6363_v42, 0.0 }
 0x86f   : > { %7859 = vmatmul.msk.bf16.gmra.mxu1 %vm12909_vm11, %v6297_v4  ;;  %vm12913_vm11 = vmmov %vm12911_vm1 }
 0x870   : > { %7869 = vmatmul.msk.bf16.gmra.mxu2 %vm12908_vm10, %v6375_v30  ;;  %vm12914_vm9 = vmmov %vm12911_vm1  ;;  %vm12920_vm10 = vnez %v12845_v52  ;;  %v6445_v52 = vpack.c.bf16 %v6441_v10, %v11639_v25 }
 0x871   : > { %vm12915_vm2 = vmmov %vm12911_vm1  ;;  %v6595_v34 = vsel %vm12920_vm10, %v6154_v19, 0.0 }
 0x872   : > { %vm12917_vm5 = vmmov %vm12911_vm1 }
 0x873   : > { %vm12918_vm14 = vmmov %vm12911_vm1 }
 0x874   : > { %vm12919_vm7 = vmmov %vm12911_vm1 }
 0x875   : > { %vm12922_vm0 = vmmov %vm12911_vm1 }
 0x876   : > { %7876 = vmatmul.msk.bf16.vlgmr.msrb.gmra.mxu3 %vm12910_vm12, %v6442_v54  ;;  %vm12921_vm12 = vnez %v12843_v5  ;;  %vm12924_vm4 = vmmov %vm12922_vm0  ;;  %v6589_v5 = vld [vmem:[#allocation4 + $0x4f] sm:$0xff] }
 0x877   : > { %vm12928_vm15 = vmmov %vm12922_vm0 }
 0x878   : > { %7886 = vmatmul.msk.bf16.vlgmr.msrb.gmra.mxu0 %vm12911_vm1, %v6520_v39  ;;  %vm12930_vm6 = vmmov %vm12922_vm0 }
 0x87f   : > { %7896 = vmatmul.msk.bf16.vlgmr.msrb.gmra.mxu1 %vm12912_vm3, %v6598_v0  ;;  %vm12923_vm3 = vmmov %vm12922_vm0 }
 0x880   : > { %7906 = vmatmul.msk.bf16.vlgmr.msra.gmra.mxu2 %vm12913_vm11, %v11526_v3  ;;  %v6594_v3 = vsel %vm12921_vm12, %v11613_v33, 0.0  ;;  %vm12925_vm11 = vmmov %vm12922_vm0  ;;  %v6671_v33 = vpack.c.bf16 %v6667_v61, %v6441_v10 }
 0x881   : > { %v6600_v18 = vpack.c.bf16 %v6595_v34, %v6594_v3 }
 0x886   : > { %7877 = vmatmul.msk.bf16.gmra.mxu3 %vm12914_vm9, %v6443_v40  ;;  %vm12926_vm9 = vnez %v12860_v57  ;;  %v6737_v40 = vld [vmem:[#allocation4 + $0x51] sm:$0xff] }
 0x887   : > { %v6745_v31 = vsel %vm11334_vm13, %v6737_v40, 0.0  ;;  %vm6857_vm13 = vcmask 261120  }
 0x888   : > { %7887 = vmatmul.msk.bf16.gmra.mxu0 %vm12915_vm2, %v6521_v53  ;;  %vm12927_vm2 = vmmov %vm12922_vm0  ;;  %v6744_v53 = vsel %vm11340_vm8, %v6511_v56, 0.0  ;;  %vm6839_vm8 = vcmask 523264  }
 0x88f   : > { %7897 = vmatmul.msk.bf16.gmra.mxu1 %vm12917_vm5, %v6599_v44  ;;  %vm12929_vm5 = vmmov %vm12922_vm0 }
 0x890   : > { %7907 = vmatmul.msk.bf16.gmra.mxu2 %vm12911_vm1, %v11591_v43  ;;  %v6597_v43 = vsel %vm12926_vm9, %v6589_v5, 0.0  ;;  %vm12931_vm1 = vmmov %vm12922_vm0 }
 0x891   : > { %v6601_v11 = vpack.c.bf16 %v6597_v43, %v6596_v27 }
 0x896   : > { %7878 = vmatmul.msk.bf16.gmra.mxu3 %vm12918_vm14, %v6444_v58  ;;  %vm12932_vm14 = vmmov %vm12922_vm0 }
 0x898   : > { %7888 = vmatmul.msk.bf16.gmra.mxu0 %vm12919_vm7, %v6522_v49 }
 0x89f   : > { %7898 = vmatmul.msk.bf16.gmra.mxu1 %vm12922_vm0, %v6600_v18 }
 0x8a0   : > { %7908 = vmatmul.msk.bf16.gmra.mxu2 %vm12923_vm3, %v6180_v36 }
 0x8a6   : > { %7879 = vmatmul.msk.bf16.gmra.mxu3 %vm12924_vm4, %v6445_v52  ;;  %vm7289_vm4 = vcmask 73728  }
 0x8a8   : > { %7889 = vmatmul.msk.bf16.gmra.mxu0 %vm12925_vm11, %v6523_v32 }
 0x8af   : > { %7899 = vmatmul.msk.bf16.gmra.mxu1 %vm12927_vm2, %v6601_v11 }
 0x8b0   : > { %7909 = vmatmul.msk.bf16.gmra.mxu2 %vm12928_vm15, %v6671_v33 }
 0x8b5   : > { %v6258_v55 = vpop.f32.mrf.mxu0 }
 0x8b6   : > { %7916 = vmatmul.msk.bf16.vlgmr.msra.gmra.mxu3 %vm12929_vm5, %v11579_v6 }
 0x8b9   : > { %v6211_v13 = vpop.f32.mrf.mxu3 }
 0x8ba   : > { %v6259_v35 = vadd.f32 %v6258_v55, %v6211_v13 }
 0x8bc   : > { %v6328_v17 = vpop.f32.mrf.mxu1 }
 0x8bd   : > { %v6260_v14 = vpop.f32.mrf.mxu0  ;;  %v6348_v28 = vadd.f32 %v6328_v17, %v6259_v35 }
 0x8c1   : > { %v6213_v25 = vpop.f32.mrf.mxu3 }
 0x8c2   : > { %v6261_v19 = vadd.f32 %v6260_v14, %v6213_v25 }
 0x8c3   : > { %v6406_v57 = vpop.f32.mrf.mxu2 }
 0x8c4   : > { %v6426_v36 = vadd.f32 %v6406_v57, %v6348_v28  ;;  %v6330_v23 = vpop.f32.mrf.mxu1 }
 0x8c5   : > { %v6263_v8 = vpop.f32.mrf.mxu0  ;;  %v6349_v21 = vadd.f32 %v6330_v23, %v6261_v19 }
 0x8c6   : > { %7917 = vmatmul.msk.bf16.gmra.mxu3 %vm12930_vm6, %v11636_v38 }
 0x8c9   : > { %v6216_v24 = vpop.f32.mrf.mxu3 }
 0x8ca   : > { %v6264_v29 = vadd.f32 %v6263_v8, %v6216_v24 }
 0x8cb   : > { %v6408_v42 = vpop.f32.mrf.mxu2 }
 0x8cc   : > { %v6427_v46 = vadd.f32 %v6408_v42, %v6349_v21  ;;  %v6333_v7 = vpop.f32.mrf.mxu1 }
 0x8cd   : > { %v6265_v6 = vpop.f32.mrf.mxu0  ;;  %v6350_v16 = vadd.f32 %v6333_v7, %v6264_v29 }
 0x8d1   : > { %v6218_v45 = vpop.f32.mrf.mxu3 }
 0x8d2   : > { %v6266_v4 = vadd.f32 %v6265_v6, %v6218_v45 }
 0x8d3   : > { %v6411_v30 = vpop.f32.mrf.mxu2 }
 0x8d4   : > { %v6428_v15 = vadd.f32 %v6411_v30, %v6350_v16  ;;  %v6335_v62 = vpop.f32.mrf.mxu1 }
 0x8d5   : > { %v6268_v60 = vpop.f32.mrf.mxu0  ;;  %v6351_v54 = vadd.f32 %v6335_v62, %v6266_v4  ;;  %v11759_v62 = vld [vmem:[%s11956_s8] ss:$0 sm:$0xff] }
 0x8d6   : > { %7918 = vmatmul.msk.bf16.gmra.mxu3 %vm12931_vm1, %v11664_v2  ;;  %v6749_v2 = vpack.c.bf16 %v6745_v31, %v6744_v53 }
 0x8d9   : > { %v6221_v37 = vpop.f32.mrf.mxu3 }
 0x8da   : > { %v6269_v39 = vadd.f32 %v6268_v60, %v6221_v37 }
 0x8db   : > { %v6413_v38 = vpop.f32.mrf.mxu2 }
 0x8dc   : > { %v6429_v50 = vadd.f32 %v6413_v38, %v6351_v54  ;;  %v6338_v20 = vpop.f32.mrf.mxu1 }
 0x8dd   : > { %v6270_v0 = vpop.f32.mrf.mxu0  ;;  %v6352_v51 = vadd.f32 %v6338_v20, %v6269_v39 }
 0x8e1   : > { %v6223_v48 = vpop.f32.mrf.mxu3 }
 0x8e2   : > { %v6271_v59 = vadd.f32 %v6270_v0, %v6223_v48 }
 0x8e3   : > { %v6416_v44 = vpop.f32.mrf.mxu2 }
 0x8e4   : > { %v6430_v9 = vadd.f32 %v6416_v44, %v6352_v51  ;;  %v6340_v47 = vpop.f32.mrf.mxu1 }
 0x8e5   : > { %v6353_v58 = vadd.f32 %v6340_v47, %v6271_v59  ;;  %v6273_v63 = vpop.f32.mrf.mxu0 }
 0x8e6   : > { %7919 = vmatmul.msk.bf16.gmra.mxu3 %vm12932_vm14, %v6749_v2 }
 0x8e9   : > { %v6226_v49 = vpop.f32.mrf.mxu3 }
 0x8ea   : > { %v6274_v34 = vadd.f32 %v6273_v63, %v6226_v49 }
 0x8eb   : > { %v6418_v3 = vpop.f32.mrf.mxu2 }
 0x8ec   : > { %v6431_v18 = vadd.f32 %v6418_v3, %v6353_v58  ;;  %v6343_v10 = vpop.f32.mrf.mxu1 }
 0x8ed   : > { %v6354_v26 = vadd.f32 %v6343_v10, %v6274_v34  ;;  %v11746_v12 = vpop.f32.mrf.mxu0 }
 0x8f1   : > { %v11748_v56 = vpop.f32.mrf.mxu3 }
 0x8f3   : > { %v6421_v1 = vpop.f32.mrf.mxu2 }
 0x8f4   : > { %v6432_v41 = vadd.f32 %v6421_v1, %v6354_v26  ;;  %v11750_v52 = vpop.f32.mrf.mxu1 }
 0x8f5   : > { %v6554_v43 = vpop.f32.mrf.mxu0 }
 0x8f9   : > { %v6476_v32 = vpop.f32.mrf.mxu3 }
 0x8fa   : > { %v6496_v5 = vadd.f32 %v6476_v32, %v6426_v36 }
 0x8fb   : > { %v11752_v27 = vpop.f32.mrf.mxu2 }
 0x8fc   : > { %v6574_v61 = vadd.f32 %v6554_v43, %v6496_v5  ;;  %v6632_v11 = vpop.f32.mrf.mxu1 }
 0x8fd   : > { %v6556_v29 = vpop.f32.mrf.mxu0 }
 0x8fe   : > { %v6652_v33 = vadd.f32 %v6632_v11, %v6574_v61 }
 0x901   : > { %v6478_v55 = vpop.f32.mrf.mxu3 }
 0x902   : > { %v6497_v13 = vadd.f32 %v6478_v55, %v6427_v46 }
 0x903   : > { %v6702_v35 = vpop.f32.mrf.mxu2 }
 0x904   : > { %v6722_v14 = vadd.f32 %v6702_v35, %v6652_v33  ;;  %v6634_v42 = vpop.f32.mrf.mxu1  ;;  %v6575_v4 = vadd.f32 %v6556_v29, %v6497_v13 }
 0x905   : > { %v6559_v16 = vpop.f32.mrf.mxu0 }
 0x909   : > { %v6481_v17 = vpop.f32.mrf.mxu3 }
 0x90a   : > { %v6498_v28 = vadd.f32 %v6481_v17, %v6428_v15  ;;  %v6653_v15 = vadd.f32 %v6634_v42, %v6575_v4  ;;  %v6276_v17 = vadd.f32 %v11746_v12, %v11748_v56 }
 0x90b   : > { %v6704_v6 = vpop.f32.mrf.mxu2 }
 0x90c   : > { %v6637_v45 = vpop.f32.mrf.mxu1  ;;  %v6723_v54 = vadd.f32 %v6704_v6, %v6653_v15  ;;  %v6576_v40 = vadd.f32 %v6559_v16, %v6498_v28 }
 0x90d   : > { %v6561_v37 = vpop.f32.mrf.mxu0 }
 0x90e   : > { %v6654_v44 = vadd.f32 %v6637_v45, %v6576_v40 }
 0x911   : > { %v6483_v25 = vpop.f32.mrf.mxu3 }
 0x912   : > { %v6499_v19 = vadd.f32 %v6483_v25, %v6429_v50 }
 0x913   : > { %v6707_v60 = vpop.f32.mrf.mxu2 }
 0x914   : > { %v6639_v20 = vpop.f32.mrf.mxu1  ;;  %v6724_v2 = vadd.f32 %v6707_v60, %v6654_v44  ;;  %v8082_v44 = vld [vmem:[%s11957_s9 + $0x28] sm:$0xff] }
 0x915   : > { %v6564_v47 = vpop.f32.mrf.mxu0  ;;  %6984 = vmatpush.bf16.msrb.mxu3 %v8082_v44 }
 0x919   : > { %v6486_v57 = vpop.f32.mrf.mxu3 }
 0x91a   : > { %v6500_v8 = vadd.f32 %v6486_v57, %v6430_v9  ;;  %v6577_v9 = vadd.f32 %v6561_v37, %v6499_v19 }
 0x91b   : > { %v6709_v51 = vpop.f32.mrf.mxu2 }
 0x91c   : > { %v6642_v58 = vpop.f32.mrf.mxu1  ;;  %v6655_v63 = vadd.f32 %v6639_v20, %v6577_v9  ;;  %v6578_v32 = vadd.f32 %v6564_v47, %v6500_v8  ;;  %v6355_v8 = vadd.f32 %v11750_v52, %v6276_v17  ;;  %v8079_v9 = vld [vmem:[%s11957_s9 + $0x10] sm:$0xff]  ;;  %v8077_v47 = vld [vmem:[%s11957_s9] sm:$0xff] }
 0x91e   : > { %v6725_v3 = vadd.f32 %v6709_v51, %v6655_v63  ;;  %v6656_v13 = vadd.f32 %v6642_v58, %v6578_v32  ;;  %v6433_v16 = vadd.f32 %v11752_v27, %v6355_v8  ;;  %v8084_v58 = vld [vmem:[%s11957_s9 + $0x38] sm:$0xff]  ;;  %v8086_v63 = vld [vmem:[%s11957_s9 + $0x48] sm:$0xff]  ;;  %v8091_v32 = vld [vmem:[%s11957_s9 + $0x70] sm:$0xff] }
 0x921   : > { %v6488_v23 = vpop.f32.mrf.mxu3 }
 0x922   : > { %v6501_v21 = vadd.f32 %v6488_v23, %v6431_v18 }
 0x923   : > { %v6712_v34 = vpop.f32.mrf.mxu2 }
 0x924   : > { %v6644_v61 = vpop.f32.mrf.mxu1 }
 0x929   : > { %v6491_v24 = vpop.f32.mrf.mxu3 }
 0x92a   : > { %v11754_v36 = vadd.f32 %v6491_v24, %v6432_v41  ;;  %v6566_v41 = vpop.f32.mrf.mxu0 }
 0x92b   : > { %v6714_v33 = vpop.f32.mrf.mxu2  ;;  %v6579_v35 = vadd.f32 %v6566_v41, %v6501_v21  ;;  %v8092_v41 = vld [vmem:[%s11957_s9 + $0x78] sm:$0xff] }
 0x92c   : > { %v6647_v23 = vpop.f32.mrf.mxu1 }
 0x92d   : > { %v6657_v28 = vadd.f32 %v6644_v61, %v6579_v35  ;;  %v12934_v61 = vld [vmem:[#allocation11_spill] sm:$0xff] }
 0x92f   : > { %v6727_v57 = vadd.f32 %v6714_v33, %v6657_v28 }
 0x931   : > { %v6493_v7 = vpop.f32.mrf.mxu3 }
 0x932   : > { %v6569_v19 = vpop.f32.mrf.mxu0 }
 0x933   : > { %v6717_v6 = vpop.f32.mrf.mxu2  ;;  %v6580_v45 = vadd.f32 %v6569_v19, %v11754_v36 }
 0x934   : > { %v6649_v37 = vpop.f32.mrf.mxu1 }
 0x935   : > { %v6658_v15 = vadd.f32 %v6647_v23, %v6580_v45 }
 0x937   : > { %v6728_v52 = vadd.f32 %v6717_v6, %v6658_v15 }
 0x939   : > { %v6780_v46 = vpop.f32.mrf.mxu3 }
 0x93a   : > { %v6800_v30 = vadd.f32 %v6780_v46, %v6722_v14  ;;  %v6726_v14 = vadd.f32 %v6712_v34, %v6656_v13  ;;  %v6503_v46 = vadd.f32 %v6493_v7, %v6433_v16  ;;  %v8090_v34 = vld [vmem:[%s11957_s9 + $0x68] sm:$0xff]  ;;  %v7263_v13 = vld [vmem:[%s11961_s13 + $0x10] sm:$0xff] }
 0x93b   : > { %v8094_v16 = vld [vmem:[%s11957_s9 + $0x88] sm:$0xff] }
 0x93c   : > { %v6812_v38 = vadd.f32 %v11759_v62, %v6800_v30  ;;  %v6571_v30 = vpop.f32.mrf.mxu0 }
 0x93e   : > { %v6820_v48 = vmax.f32 %v6812_v38, 0.0 }
 0x941   : > { %v6782_v39 = vpop.f32.mrf.mxu3 }
 0x942   : > { %v6801_v50 = vadd.f32 %v6782_v39, %v6723_v54  ;;  %v6581_v54 = vadd.f32 %v6571_v30, %v6503_v46  ;;  %v6719_v39 = vpop.f32.mrf.mxu2 }
 0x944   : > { %v6813_v0 = vadd.f32 %v11759_v62, %v6801_v50  ;;  %v6659_v38 = vadd.f32 %v6649_v37, %v6581_v54 }
 0x946   : > { %v6821_v53 = vmax.f32 %v6813_v0, 0.0  ;;  %v6729_v20 = vadd.f32 %v6719_v39, %v6659_v38 }
 0x948   : > { %v11763_v31 = vpack.c.bf16 %v6821_v53, %v6820_v48  ;;  %v8076_v53 = vld [vmem:[%s11960_s12] sm:$0xff] }
 0x949   : > { %v6785_v59 = vpop.f32.mrf.mxu3 }
 0x94a   : > { %v6802_v49 = vadd.f32 %v6785_v59, %v6724_v2  ;;  %v12933_v59 = vmov 0.0   ;;  %v8081_v2 = vld [vmem:[%s11957_s9 + $0x20] sm:$0xff] }
 0x94b   : > { %6859 = vst.msk [vmem:[#allocation5 + $0x8] sm:$0xff] %vm6857_vm13, %v12933_v59  ;;  %6985 = vmatpush.bf16.msrb.mxu3 %v8081_v2 }
 0x94c   : > { %v6814_v10 = vadd.f32 %v11759_v62, %v6802_v49  ;;  %6858 = vst.msk [vmem:[#allocation5] sm:$0xff] %vm6857_vm13, %v12933_v59  ;;  %v8088_v49 = vld [vmem:[%s11957_s9 + $0x58] sm:$0xff] }
 0x94d   : > { %6860 = vst.msk [vmem:[#allocation5 + $0x10] sm:$0xff] %vm6857_vm13, %v12933_v59 }
 0x94e   : > { %v6822_v5 = vmax.f32 %v6814_v10, 0.0  ;;  %6861 = vst.msk [vmem:[#allocation5 + $0x18] sm:$0xff] %vm6857_vm13, %v12933_v59 }
 0x94f   : > { %7146 = vmatpush.bf16.msra.mxu3 %v8090_v34 }
 0x951   : > { %v6787_v18 = vpop.f32.mrf.mxu3 }
 0x952   : > { %v6803_v26 = vadd.f32 %v6787_v18, %v6725_v3  ;;  %v8083_v3 = vld [vmem:[%s11957_s9 + $0x30] sm:$0xff]  ;;  %v8085_v18 = vld [vmem:[%s11957_s9 + $0x40] sm:$0xff] }
 0x954   : > { %v6815_v1 = vadd.f32 %v11759_v62, %v6803_v26  ;;  %v8087_v26 = vld [vmem:[%s11957_s9 + $0x50] sm:$0xff] }
 0x956   : > { %v6823_v43 = vmax.f32 %v6815_v1, 0.0  ;;  %v8089_v1 = vld [vmem:[%s11957_s9 + $0x60] sm:$0xff] }
 0x957   : > { %7147 = vmatpush.bf16.msra.mxu3 %v8089_v1 }
 0x958   : > { %v6831_v11 = vpack.c.bf16 %v6823_v43, %v6822_v5  ;;  %v6864_v43 = vand.u32 3, %v12814_v22 }
 0x959   : > { %v6790_v55 = vpop.f32.mrf.mxu3 }
 0x95a   : > { %v6804_v25 = vadd.f32 %v6790_v55, %v6726_v14  ;;  %vm11840_vm7 = vcmp.ge.s32.totalorder %v6864_v43, 1  ;;  %vm11848_vm12 = vcmp.le.s32.totalorder %v6864_v43, 2  ;;  %v7264_v55 = vld [vmem:[%s11961_s13 + $0x18] sm:$0xff] }
 0x95c   : > { %v6816_v29 = vadd.f32 %v11759_v62, %v6804_v25 }
 0x95e   : > { %v6824_v12 = vmax.f32 %v6816_v29, 0.0 }
 0x961   : > { %v6792_v24 = vpop.f32.mrf.mxu3 }
 0x962   : > { %v6805_v42 = vadd.f32 %v6792_v24, %v6727_v57 }
 0x964   : > { %v6817_v21 = vadd.f32 %v11759_v62, %v6805_v42 }
 0x966   : > { %v6825_v56 = vmax.f32 %v6817_v21, 0.0 }
 0x968   : > { %v6832_v4 = vpack.c.bf16 %v6825_v56, %v6824_v12 }
 0x969   : > { %v6795_v60 = vpop.f32.mrf.mxu3 }
 0x96a   : > { %v6806_v50 = vadd.f32 %v6795_v60, %v6728_v52 }
 0x96c   : > { %v6818_v27 = vadd.f32 %v11759_v62, %v6806_v50 }
 0x96e   : > { %v6826_v7 = vmax.f32 %v6818_v27, 0.0 }
 0x971   : > { %v6797_v0 = vpop.f32.mrf.mxu3 }
 0x972   : > { %v6807_v51 = vadd.f32 %v6797_v0, %v6729_v20 }
 0x974   : > { %v6819_v36 = vadd.f32 %v11759_v62, %v6807_v51  ;;  %v8080_v62 = vld [vmem:[%s11957_s9 + $0x18] sm:$0xff] }
 0x975   : > { %6910 = vmatpush.bf16.msra.mxu1 %v8080_v62 }
 0x976   : > { %v6827_v40 = vmax.f32 %v6819_v36, 0.0 }
 0x978   : > { %v6833_v48 = vpack.c.bf16 %v6827_v40, %v6826_v7 }
 0x979   : > { %6911 = vmatpush.bf16.msra.mxu1 %v8079_v9 }
 0x97a   : > { %6847 = vmatpush.bf16.msra.mxu0 %v6833_v48 }
 0x97d   : > { %7064 = vmatpush.bf16.msrb.mxu1 %v8086_v63 }
 0x97e   : > { %6848 = vmatpush.bf16.msra.mxu0 %v6832_v4  ;;  %v8093_v4 = vld [vmem:[%s11957_s9 + $0x80] sm:$0xff] }
 0x981   : > { %7065 = vmatpush.bf16.msrb.mxu1 %v8085_v18 }
 0x982   : > { %6849 = vmatpush.bf16.msra.mxu0 %v6831_v11  ;;  %v6865_v11 = vand.u32 3, %v12934_v61 }
 0x984   : > { %vm11844_vm10 = vcmp.ge.s32.totalorder %v6865_v11, 1  ;;  %vm11852_vm0 = vcmp.le.s32.totalorder %v6865_v11, 2 }
 0x986   : > { %6850 = vmatpush.bf16.msra.mxu0 %v11763_v31  ;;  %v8078_v31 = vld [vmem:[%s11957_s9 + $0x8] sm:$0xff] }
 0x987   : > { %6939 = vmatpush.bf16.msrb.mxu2 %v8078_v31 }
 0x989   : > { %7924 = vmatmul.msk.bf16.vlgmr.msra.gmra.mxu0 %vm6839_vm8, %v8076_v53 }
 0x98a   : > { %7025 = vmatpush.bf16.msrb.mxu0 %v8084_v58 }
 0x98b   : > { %6940 = vmatpush.bf16.msrb.mxu2 %v8077_v47 }
 0x98e   : > { %7026 = vmatpush.bf16.msrb.mxu0 %v8083_v3 }
 0x98f   : > { %7105 = vmatpush.bf16.msra.mxu2 %v8088_v49 }
 0x992   : > { %7185 = vmatpush.bf16.msra.mxu0 %v8092_v41 }
 0x993   : > { %7106 = vmatpush.bf16.msra.mxu2 %v8087_v26 }
 0x996   : > { %7186 = vmatpush.bf16.msra.mxu0 %v8091_v32 }
 0xa06   : > { %v6852_v10 = vpop.f32.mrf.mxu0 }
 0xa07   : > { %6862 = vst.msk [vmem:[#allocation5 + $0x8] sm:$0xff] %vm6857_vm13, %v6852_v10 }
 0xa0e   : > { %v6854_v5 = vpop.f32.mrf.mxu0  ;;  %v6866_v33 = vld [vmem:[#allocation5 + $0x3] sm:$0xff] }
 0xa0f   : > { %6863 = vst.msk [vmem:[#allocation5 + $0x10] sm:$0xff] %vm6857_vm13, %v6854_v5  ;;  %v6947_v35 = vld [vmem:[#allocation5 + $0x5] sm:$0xff]  ;;  %v6874_v57 = vsel %vm11840_vm7, %v6866_v33, 0.0 }
 0xa10   : > { %v6881_v22 = vld [vmem:[#allocation5 + $0x4] sm:$0xff]  ;;  %v6955_v29 = vsel %vm11848_vm12, %v6947_v35, 0.0 }
 0xa11   : > { %v6994_v28 = vld [vmem:[#allocation5 + $0x7] sm:$0xff] }
 0xa12   : > { %v6996_v46 = vsel %vm11840_vm7, %v6994_v28, 0.0  ;;  %v7035_v50 = vld [vmem:[#allocation5 + $0x8] sm:$0xff] }
 0xa16   : > { %v6882_v25 = vld [vmem:[#allocation5 + $0xc] sm:$0xff]  ;;  %v7157_v20 = vld [vmem:[#allocation5 + $0x14] sm:$0xff] }
 0xa17   : > { %v6867_v19 = vld [vmem:[#allocation5 + $0xb] sm:$0xff]  ;;  %v6883_v24 = vpack.c.bf16 %v6882_v25, %v6881_v22  ;;  %v7116_v15 = vld [vmem:[#allocation5 + $0x13] sm:$0xff]  ;;  %v7158_v36 = vpack.c.bf16 %v7157_v20, %v6882_v25 }
 0xa18   : > { %v6948_v23 = vld [vmem:[#allocation5 + $0xd] sm:$0xff]  ;;  %v6875_v8 = vsel %vm11844_vm10, %v6867_v19, 0.0  ;;  %v7117_v39 = vsel %vm11840_vm7, %v6867_v19, 0.0  ;;  %v7118_v38 = vsel %vm11844_vm10, %v7116_v15, 0.0  ;;  %v7196_v7 = vld [vmem:[#allocation5 + $0x15] sm:$0xff]  ;;  %v8228_v19 = vmov 16.0  }
 0xa19   : > { %v6956_v42 = vsel %vm11852_vm0, %v6948_v23, 0.0  ;;  %v6995_v6 = vld [vmem:[#allocation5 + $0xf] sm:$0xff]  ;;  %v6876_v21 = vpack.c.bf16 %v6875_v8, %v6874_v57  ;;  %7937 = vmatmul.msk.bf16.vlgmr.msra.gmra.mxu1 %vm6857_vm13, %v6883_v24  ;;  %v7119_v51 = vpack.c.bf16 %v7118_v38, %v7117_v39  ;;  %v7197_v40 = vsel %vm11848_vm12, %v6948_v23, 0.0  ;;  %v7262_v22 = vld [vmem:[%s11961_s13 + $0x8] sm:$0xff] }
 0xa1a   : > { %v6957_v45 = vpack.c.bf16 %v6956_v42, %v6955_v29  ;;  %v6997_v12 = vsel %vm11844_vm10, %v6995_v6, 0.0  ;;  %7226 = vmatpush.bf16.msra.mxu1 %v8094_v16  ;;  %v7074_v30 = vld [vmem:[#allocation5 + $0x9] sm:$0xff]  ;;  %v7075_v60 = vld [vmem:[#allocation5 + $0x11] sm:$0xff]  ;;  %v7198_v48 = vsel %vm11852_vm0, %v7196_v7, 0.0  ;;  %8143 = vrcp.f32 %v8228_v19 }
 0xa1b   : > { %v6998_v56 = vpack.c.bf16 %v6997_v12, %v6996_v46  ;;  %7946 = vmatmul.msk.bf16.vlgmr.msrb.gmra.mxu2 %vm6857_vm13, %v6876_v21  ;;  %v7036_v54 = vld [vmem:[#allocation5 + $0x10] sm:$0xff]  ;;  %v7076_v37 = vsel %vm11848_vm12, %v7074_v30, 0.0  ;;  %v7077_v52 = vsel %vm11852_vm0, %v7075_v60, 0.0  ;;  %v7199_v53 = vpack.c.bf16 %v7198_v48, %v7197_v40 }
 0xa1c   : > { %7959 = vmatmul.msk.bf16.vlgmr.msrb.gmra.mxu3 %vm6857_vm13, %v6957_v45  ;;  %v7037_v0 = vpack.c.bf16 %v7036_v54, %v7035_v50  ;;  %v7078_v27 = vpack.c.bf16 %v7077_v52, %v7076_v37  ;;  %7281 = vmatpush.msrb.mxu2 %v7264_v55  ;;  %v7261_v57 = vld [vmem:[%s11961_s13] sm:$0xff] }
 0xa1d   : > { %7972 = vmatmul.msk.bf16.vlgmr.msrb.gmra.mxu0 %vm6857_vm13, %v6998_v56  ;;  %v8142_v24 = vld [vmem:[%s11958_s10] ss:$0 sm:$0xff] }
 0xa1e   : > { %7227 = vmatpush.bf16.msra.mxu1 %v8093_v4  ;;  %7282 = vmatpush.msrb.mxu2 %v7263_v13  ;;  %v7265_v7 = vld [vmem:[%s11962_s14] sm:$0x1] }
 0xa20   : > { %7283 = vmatpush.msrb.mxu2 %v7262_v22  ;;  %v8144_v16 = vpop.eup %8143 }
 0xa21   : > { %v7254_v56 = vmul.f32 16.0, %v8144_v16  ;;  %vm7258_vm3 = vweird.f32 %v8144_v16 }
 0xa22   : > { %7284 = vmatpush.msrb.mxu2 %v7261_v57 }
 0xa23   : > { %v7255_v15 = vsub.f32 1.0, %v7254_v56 }
 0xa25   : > { %v7256_v52 = vmul.f32 %v8144_v16, %v7255_v15 }
 0xa27   : > { %v7257_v50 = vadd.f32 %v8144_v16, %v7256_v52 }
 0xa29   : > { %7985 = vmatmul.msk.bf16.vlgmr.msrb.gmra.mxu1 %vm6857_vm13, %v7037_v0 }
 0xa2b   : > { %7998 = vmatmul.msk.bf16.vlgmr.msra.gmra.mxu2 %vm6857_vm13, %v7078_v27  ;;  %v7259_v27 = vsel %vm7258_vm3, %v8144_v16, %v7257_v50 }
 0xa2c   : > { %8011 = vmatmul.msk.bf16.vlgmr.msra.gmra.mxu3 %vm6857_vm13, %v7119_v51 }
 0xa2d   : > { %8024 = vmatmul.msk.bf16.vlgmr.msra.gmra.mxu0 %vm6857_vm13, %v7158_v36 }
 0xa39   : > { %8037 = vmatmul.msk.bf16.vlgmr.msra.gmra.mxu1 %vm6857_vm13, %v7199_v53 }
 0xa96   : > { %v6913_v59 = vpop.f32.mrf.mxu1 }
 0xa9a   : > { %v7028_v9 = vpop.f32.mrf.mxu0 }
 0xa9e   : > { %v6942_v62 = vpop.f32.mrf.mxu2  ;;  %v6915_v44 = vpop.f32.mrf.mxu1 }
 0xa9f   : > { %v6987_v31 = vpop.f32.mrf.mxu3  ;;  %v6943_v47 = vadd.f32 %v6942_v62, %v6913_v59 }
 0xaa1   : > { %v6992_v49 = vadd.f32 %v6987_v31, %v6943_v47 }
 0xaa2   : > { %v7030_v34 = vpop.f32.mrf.mxu0 }
 0xaa3   : > { %v7033_v18 = vadd.f32 %v7028_v9, %v6992_v49 }
 0xaa6   : > { %v6944_v2 = vpop.f32.mrf.mxu2  ;;  %v7067_v63 = vpop.f32.mrf.mxu1 }
 0xaa7   : > { %v6989_v58 = vpop.f32.mrf.mxu3  ;;  %v6945_v3 = vadd.f32 %v6944_v2, %v6915_v44  ;;  %v7072_v10 = vadd.f32 %v7067_v63, %v7033_v18 }
 0xaa9   : > { %v6993_v1 = vadd.f32 %v6989_v58, %v6945_v3 }
 0xaaa   : > { %v7188_v61 = vpop.f32.mrf.mxu0 }
 0xaab   : > { %v7034_v43 = vadd.f32 %v7030_v34, %v6993_v1 }
 0xaae   : > { %v7108_v26 = vpop.f32.mrf.mxu2  ;;  %v7069_v41 = vpop.f32.mrf.mxu1 }
 0xaaf   : > { %v7149_v32 = vpop.f32.mrf.mxu3  ;;  %v7113_v5 = vadd.f32 %v7108_v26, %v7072_v10  ;;  %v7073_v33 = vadd.f32 %v7069_v41, %v7034_v43 }
 0xab1   : > { %v7154_v11 = vadd.f32 %v7149_v32, %v7113_v5 }
 0xab2   : > { %v7190_v29 = vpop.f32.mrf.mxu0 }
 0xab3   : > { %v7193_v28 = vadd.f32 %v7188_v61, %v7154_v11 }
 0xab6   : > { %v7110_v35 = vpop.f32.mrf.mxu2  ;;  %v7229_v14 = vpop.f32.mrf.mxu1 }
 0xab7   : > { %v7114_v17 = vadd.f32 %v7110_v35, %v7073_v33  ;;  %v7151_v25 = vpop.f32.mrf.mxu3  ;;  %v7234_v23 = vadd.f32 %v7229_v14, %v7193_v28 }
 0xab9   : > { %v7155_v8 = vadd.f32 %v7151_v25, %v7114_v17  ;;  %v7240_v42 = vadd.f32 %v8142_v24, %v7234_v23 }
 0xabb   : > { %v7194_v6 = vadd.f32 %v7190_v29, %v7155_v8  ;;  %v7242_v46 = vmax.f32 %v7240_v42, 0.0 }
 0xabd   : > { %v7244_v30 = vsel %vm6857_vm13, %v7242_v46, 0.0 }
 0xabe   : > { %v7231_v21 = vpop.f32.mrf.mxu1 }
 0xabf   : > { %v7235_v45 = vadd.f32 %v7231_v21, %v7194_v6 }
 0xac1   : > { %v7241_v12 = vadd.f32 %v8142_v24, %v7235_v45 }
 0xac3   : > { %v7243_v4 = vmax.f32 %v7241_v12, 0.0 }
 0xac5   : > { %v7245_v60 = vsel %vm6857_vm13, %v7243_v4, 0.0 }
 0xac6   : > { %v7246_v54 = vadd.f32 %v7245_v60, %v7244_v30 }
 0xac8   : > { %v7247_v37 = vrot.slane %v7246_v54, 4 }
 0xaca   : > { %v7248_v39 = vadd.f32 %v7247_v37, %v7246_v54 }
 0xacc   : > { %v7249_v38 = vrot.slane %v7248_v39, 2 }
 0xace   : > { %v7250_v20 = vadd.f32 %v7249_v38, %v7248_v39 }
 0xad0   : > { %v7251_v0 = vrot.slane %v7250_v20, 1 }
 0xad2   : > { %v7252_v51 = vadd.f32 %v7251_v0, %v7250_v20 }
 0xad4   : > { %v7260_v36 = vmul.f32 %v7259_v27, %v7252_v51 }
 0xad6   : > { %8038 = vmatmul.msk.f32.vlgmr.msrb.gmra.mxu2 %vm6857_vm13, %v7260_v36 }
 0xb59   : > { %v7286_v40 = vpop.f32.mrf.mxu2 }
 0xb5a   : > { %v7287_v48 = vadd.f32 %v7286_v40, %v7265_v7 }
 0xb5c   : > { %7290 = vst.msk [vmem:[%s486_s25] sm:$0x1] %vm7289_vm4, %v7287_v48 }
 0xb5d   : > { %8189 = shalt.err (!%p8186_p3)
}
 0xb5e   : > { %8096 = dma.vmem_to_hbm [thread:$0]  (%p8347_p5), %s7303_s16, 16, %s7305_s17, %s7292_s23  }
 0xb5f PF: > { %p8102_p4 = scmp.ge.s32.totalorder %s8224_s21, 2  ;;  %s7316_s0 = sand.u32 1, %s8212_s18  }
 0xb60   : > { %s7317_s2 = scalar_lea.sflag [#allocation7], %s7316_s0 }
 0xb61   : > { %p8099_p7 = pnand %p8102_p4, %p8351_p6 }
 0xb63   : > { %p8100_p8 = pneg %p8099_p7 }
 0xb65   : > { %8207 = dma.done.wait (%p8100_p8), %s7317_s2, 16  }
 0xb66   : > { %8209 = vsyncadd (%p8100_p8), %s7317_s2, 4294967280  ;;  %s12943_s3 = sld [smem:[#allocation9_spill]]  ;;  %p25_p9 = scmp.ge.s32.totalorder %s8334_s24, 4  }
 0xb67   : > { %s12944_s18 = smov %s8216_s19  ;;  %s12945_s19 = smov %s8220_s20 }
 0xb68   : > { %s12947_s21 = smov %s8334_s24  ;;  %27 = sbr.rel (!%p25_p9) target bundleno = 9 (0x9), region = 155 }
 0xb6c   : > { %s12946_s20 = smov %s12943_s3 }
 0xb6d   :  { %7322 = vsyncpa [#allocation7], 1 }
 0xb6e   :  { %7324 = vsyncpa [#allocation7 + $0x1], 1 }

</bundles_post_ra>
